<compile_context>
chip_gen: v7x
topology: tpu7x:2x2x1
jax: 0.10.0
libtpu: 0.0.40
codegen_flags: <defaults>
</compile_context>

<pallas_src>
import functools
import math

import jax
import jax.numpy as jnp
from jax.experimental import pallas as pl
from jax.experimental.pallas import tpu as pltpu

COMPUTE_DTYPE = jnp.bfloat16          # MXU input dtype (accumulate in f32)


def _round_up(v, m):
    return (v + m - 1) // m * m


def _nbytes(shape, dtype):
    return int(math.prod(shape)) * jnp.dtype(dtype).itemsize


# ----------------------------------------------------------------------------
# Per-generation sizing (derived from physical VMEM capacity)
# ----------------------------------------------------------------------------
@functools.lru_cache(maxsize=None)
def _tpu_vmem_capacity():
    try:
        cap = getattr(pltpu.get_tpu_info(), "vmem_capacity_bytes", None)
    except Exception:
        cap = None
    return int(cap) if cap else 64 * 1024 * 1024      # conservative (v7x)


def _vmem_limit_bytes():
    # ~3/4 of physical VMEM, capped at 100 MiB on 128 MiB parts; 48 MiB on v7x.
    return int(min(_tpu_vmem_capacity() * 3 // 4, 100 * 1024 * 1024))


def _tk_max():
    # Larger weight-stream tiles on 128 MiB parts (v5e/v6e); 2048 on v7x.
    return 4096 if _tpu_vmem_capacity() >= (100 << 20) else 2048


def _tm_max():
    # Bigger row tiles on 128 MiB parts amortise the epilogue matmuls.
    return 512 if _tpu_vmem_capacity() >= (100 << 20) else 256


def _choose_k_tile(K, tk_max):
    """K tile (multiple of 128) dividing the lane-rounded K exactly when
    possible (no zero weight rows streamed); else pad to tk_max blocks."""
    K_lane = _round_up(K, 128)
    for t in range(min(tk_max, K_lane), 127, -128):
        if K_lane % t == 0:
            return t, K_lane
    return tk_max, _round_up(K, tk_max)


def _choose_row_tile(n):
    tm = min(_tm_max(), _round_up(max(n, 1), 16))
    return tm, _round_up(max(n, 1), tm)


# ----------------------------------------------------------------------------
# Pallas kernels
# ----------------------------------------------------------------------------
def _make_main_kernel(rep, with_head, single_k):
    """Fused proposal-branch kernel.

    h   = relu(x @ [W6c | W6r] + [b6c | b6r])     (K-tiled; bias in acc init)
    xc  = relu(h[:, :rep] @ W7c + b7c)
    xr  = relu(h[:, rep:] @ W7r + b7r)
    cpe = l2norm(relu(xc @ H1 + hb1) @ H2 + hb2)  (only if with_head)
    """

    def kernel(*refs):
        if with_head:
            (x_ref, w6_ref, b6_ref, w7c_ref, b7c_ref, w7r_ref, b7r_ref,
             h1w_ref, h1b_ref, h2w_ref, h2b_ref,
             xc_ref, xr_ref, cpe_ref, *rest) = refs
        else:
            (x_ref, w6_ref, b6_ref, w7c_ref, b7c_ref, w7r_ref, b7r_ref,
             xc_ref, xr_ref, *rest) = refs

        def epilogue(h_lin):
            h = jnp.maximum(h_lin, 0.0)
            hc = h[:, :rep].astype(COMPUTE_DTYPE)
            hr = h[:, rep:].astype(COMPUTE_DTYPE)
            xc = jnp.maximum(
                jnp.dot(hc, w7c_ref[...], preferred_element_type=jnp.float32)
                + b7c_ref[...], 0.0)
            xr = jnp.maximum(
                jnp.dot(hr, w7r_ref[...], preferred_element_type=jnp.float32)
                + b7r_ref[...], 0.0)
            xc_ref[...] = xc.astype(xc_ref.dtype)
            xr_ref[...] = xr.astype(xr_ref.dtype)
            if with_head:
                hh = jnp.maximum(
                    jnp.dot(xc.astype(COMPUTE_DTYPE), h1w_ref[...],
                            preferred_element_type=jnp.float32) + h1b_ref[...],
                    0.0)
                cpe = jnp.dot(hh.astype(COMPUTE_DTYPE), h2w_ref[...],
                              preferred_element_type=jnp.float32) + h2b_ref[...]
                ss = jnp.sum(cpe * cpe, axis=1, keepdims=True)
                cpe_ref[...] = (cpe * jax.lax.rsqrt(jnp.maximum(ss, 1e-24))
                                ).astype(cpe_ref.dtype)

        if single_k:
            epilogue(jnp.dot(x_ref[...], w6_ref[...],
                             preferred_element_type=jnp.float32) + b6_ref[...])
        else:
            acc_ref = rest[0]
            k = pl.program_id(1)

            @pl.when(k == 0)
            def _():  # fold the fc6 bias into the accumulator init
                acc_ref[...] = jnp.broadcast_to(b6_ref[...], acc_ref.shape)

            acc_ref[...] += jnp.dot(x_ref[...], w6_ref[...],
                                    preferred_element_type=jnp.float32)

            @pl.when(k == pl.num_programs(1) - 1)
            def _():
                epilogue(acc_ref[...])

    return kernel


def _make_chain_kernel(num_layers, relus, l2_normalize, single_k):
    """Generic fused MLP chain: first matmul K-tiled, later weights resident."""

    def kernel(*refs):
        x_ref = refs[0]
        wb = refs[1:1 + 2 * num_layers]
        o_ref = refs[1 + 2 * num_layers]
        rest = refs[2 + 2 * num_layers:]

        def epilogue(h):
            if relus[0]:
                h = jnp.maximum(h, 0.0)
            for i in range(1, num_layers):
                h = jnp.dot(h.astype(COMPUTE_DTYPE), wb[2 * i][...],
                            preferred_element_type=jnp.float32) + wb[2 * i + 1][...]
                if relus[i]:
                    h = jnp.maximum(h, 0.0)
            if l2_normalize:
                ss = jnp.sum(h * h, axis=1, keepdims=True)
                h = h * jax.lax.rsqrt(jnp.maximum(ss, 1e-24))
            o_ref[...] = h.astype(o_ref.dtype)

        if single_k:
            epilogue(jnp.dot(x_ref[...], wb[0][...],
                             preferred_element_type=jnp.float32) + wb[1][...])
        else:
            acc_ref = rest[0]
            k = pl.program_id(1)

            @pl.when(k == 0)
            def _():
                acc_ref[...] = jnp.broadcast_to(wb[1][...], acc_ref.shape)

            acc_ref[...] += jnp.dot(x_ref[...], wb[0][...],
                                    preferred_element_type=jnp.float32)

            @pl.when(k == pl.num_programs(1) - 1)
            def _():
                epilogue(acc_ref[...])

    return kernel


# ----------------------------------------------------------------------------
# Pallas wrappers
# ----------------------------------------------------------------------------
def dacl_main_branch(flat, params, with_head=True):
    """One fused pallas_call for the proposal-branch MLPs (xc, xr [, cpe])."""
    n, K = flat.shape
    fc6 = params["fc6cat"]
    assert K == fc6["k"], (K, fc6["k"])
    w6, b6, K_pad, tk = fc6["w"], fc6["b"], fc6["k_pad"], fc6["tk"]
    w7c, b7c = params["fc7c"]
    w7r, b7r = params["fc7r"]
    rep = w7c.shape[0]

    tm, n_pad = _choose_row_tile(n)
    xb = jnp.pad(flat.astype(COMPUTE_DTYPE), ((0, n_pad - n), (0, K_pad - K)))
    grid = (n_pad // tm, K_pad // tk)
    single_k = grid[1] == 1

    args = [xb, w6, b6, w7c, b7c, w7r, b7r]
    in_specs = [
        pl.BlockSpec((tm, tk), lambda i, k: (i, k)),
        pl.BlockSpec((tk, 2 * rep), lambda i, k: (k, 0)),
        pl.BlockSpec((1, 2 * rep), lambda i, k: (0, 0)),
        pl.BlockSpec((rep, rep), lambda i, k: (0, 0)),
        pl.BlockSpec((1, rep), lambda i, k: (0, 0)),
        pl.BlockSpec((rep, rep), lambda i, k: (0, 0)),
        pl.BlockSpec((1, rep), lambda i, k: (0, 0)),
    ]
    out_shapes = [jax.ShapeDtypeStruct((n_pad, rep), jnp.float32),
                  jax.ShapeDtypeStruct((n_pad, rep), jnp.float32)]
    out_specs = [pl.BlockSpec((tm, rep), lambda i, k: (i, 0)),
                 pl.BlockSpec((tm, rep), lambda i, k: (i, 0))]
    flops = 2 * n_pad * (K_pad * 2 * rep + 2 * rep * rep)
    transcendentals = 0

    if with_head:
        h1w, h1b = params["head1"]
        h2w, h2b = params["head2"]
        proj = h2w.shape[1]
        args += [h1w, h1b, h2w, h2b]
        in_specs += [
            pl.BlockSpec((rep, rep), lambda i, k: (0, 0)),
            pl.BlockSpec((1, rep), lambda i, k: (0, 0)),
            pl.BlockSpec((rep, proj), lambda i, k: (0, 0)),
            pl.BlockSpec((1, proj), lambda i, k: (0, 0)),
        ]
        out_shapes.append(jax.ShapeDtypeStruct((n_pad, proj), jnp.float32))
        out_specs.append(pl.BlockSpec((tm, proj), lambda i, k: (i, 0)))
        flops += 2 * n_pad * (rep * rep + rep * proj)
        transcendentals = n_pad

    bytes_accessed = (sum(_nbytes(a.shape, a.dtype) for a in args)
                      + sum(_nbytes(s.shape, s.dtype) for s in out_shapes))

    outs = pl.pallas_call(
        _make_main_kernel(rep, with_head, single_k),
        out_shape=tuple(out_shapes),
        grid=grid,
        in_specs=in_specs,
        out_specs=tuple(out_specs),
        scratch_shapes=([] if single_k
                        else [pltpu.VMEM((tm, 2 * rep), jnp.float32)]),
        compiler_params=pltpu.CompilerParams(
            dimension_semantics=("parallel", "arbitrary"),
            vmem_limit_bytes=_vmem_limit_bytes()),
        cost_estimate=pl.CostEstimate(flops=flops,
                                      transcendentals=transcendentals,
                                      bytes_accessed=bytes_accessed),
    )(*args)

    if with_head:
        xc, xr, cpe = outs
        return xc[:n], xr[:n], cpe[:n]
    xc, xr = outs
    return xc[:n], xr[:n]


def fused_mlp_chain(x, first_layer, rest_layers, relus, l2_normalize=False):
    """One fused pallas_call over a chain of Linear layers.

    first_layer: prepared dict with pre-padded wide weight + K tiling metadata.
    rest_layers: [(w, b), ...] kept VMEM-resident (<= 1024x1024 each).
    """
    n, K = x.shape
    assert K == first_layer["k"], (K, first_layer["k"])
    w0, b0 = first_layer["w"], first_layer["b"]
    K_pad, tk = first_layer["k_pad"], first_layer["tk"]
    out0 = w0.shape[1]

    tm, n_pad = _choose_row_tile(n)
    xb = jnp.pad(x.astype(COMPUTE_DTYPE), ((0, n_pad - n), (0, K_pad - K)))
    grid = (n_pad // tm, K_pad // tk)
    single_k = grid[1] == 1

    args = [xb, w0, b0]
    in_specs = [
        pl.BlockSpec((tm, tk), lambda i, k: (i, k)),
        pl.BlockSpec((tk, out0), lambda i, k: (k, 0)),
        pl.BlockSpec((1, out0), lambda i, k: (0, 0)),
    ]
    flops = 2 * n_pad * K_pad * out0
    for (w, b) in rest_layers:
        in_specs += [pl.BlockSpec(w.shape, lambda i, k: (0, 0)),
                     pl.BlockSpec((1, w.shape[1]), lambda i, k: (0, 0))]
        args += [w, b]
        flops += 2 * n_pad * w.shape[0] * w.shape[1]
    m_out = rest_layers[-1][0].shape[1] if rest_layers else out0
    num_layers = 1 + len(rest_layers)

    bytes_accessed = (sum(_nbytes(a.shape, a.dtype) for a in args)
                      + _nbytes((n_pad, m_out), jnp.float32))

    out = pl.pallas_call(
        _make_chain_kernel(num_layers, tuple(relus), l2_normalize, single_k),
        out_shape=jax.ShapeDtypeStruct((n_pad, m_out), jnp.float32),
        grid=grid,
        in_specs=in_specs,
        out_specs=pl.BlockSpec((tm, m_out), lambda i, k: (i, 0)),
        scratch_shapes=([] if single_k
                        else [pltpu.VMEM((tm, out0), jnp.float32)]),
        compiler_params=pltpu.CompilerParams(
            dimension_semantics=("parallel", "arbitrary"),
            vmem_limit_bytes=_vmem_limit_bytes()),
        cost_estimate=pl.CostEstimate(
            flops=flops,
            transcendentals=n_pad if l2_normalize else 0,
            bytes_accessed=bytes_accessed),
    )(*args)
    return out[:n]


# ----------------------------------------------------------------------------
# Plain-JAX glue (interpolation / pooling matrices -> MXU, no gathers)
# ----------------------------------------------------------------------------
def roi_align(feat, boxes, box_batch_idx, out_size, spatial_scale, sampling_ratio):
    """maskrcnn_benchmark-style ROIAlign (aligned=False), single FPN level.

    The per-ROI image selection is folded into the row-interpolation matrix so
    the (B,C,H,W) map is contracted directly; no (R,C,H,W) replica is built.
    feat: (B, C, H, W); boxes: (R, 4) image coords; box_batch_idx: (R,) int32.
    Returns (R, C, out_size, out_size).
    """
    B, C, H, W = feat.shape
    R = boxes.shape[0]
    sr = sampling_ratio
    S = out_size * sr
    x1 = boxes[:, 0] * spatial_scale
    y1 = boxes[:, 1] * spatial_scale
    x2 = boxes[:, 2] * spatial_scale
    y2 = boxes[:, 3] * spatial_scale
    roi_w = jnp.maximum(x2 - x1, 1.0)
    roi_h = jnp.maximum(y2 - y1, 1.0)
    bin_w = roi_w / out_size
    bin_h = roi_h / out_size
    sub = (jnp.arange(out_size, dtype=jnp.float32)[:, None]
           + (jnp.arange(sr, dtype=jnp.float32)[None, :] + 0.5) / sr).reshape(-1)
    ys = y1[:, None] + sub[None, :] * bin_h[:, None]     # (R, S)
    xs = x1[:, None] + sub[None, :] * bin_w[:, None]     # (R, S)

    def interp_matrix(coords, size):
        valid = (coords >= -1.0) & (coords <= size)
        c = jnp.clip(coords, 0.0, size - 1.0)
        idx = jnp.arange(size, dtype=jnp.float32)
        w = jnp.maximum(0.0, 1.0 - jnp.abs(c[..., None] - idx[None, None, :]))
        return w * valid[..., None].astype(w.dtype)      # (R, S, size)

    Ay = interp_matrix(ys, H)                            # (R, S, H)
    Ax = interp_matrix(xs, W)                            # (R, S, W)
    sel = jax.nn.one_hot(box_batch_idx, B, dtype=jnp.float32)   # (R, B)

    # Fold image selection into the row matrix: (R*S, B*H) @ (B*H, C*W).
    # TODO(synk): for very large B, group ROIs per image instead of widening K.
    Ayb = (Ay[:, :, None, :] * sel[:, None, :, None]).reshape(R * S, B * H)
    feat_mat = feat.astype(jnp.float32).transpose(0, 2, 1, 3).reshape(B * H, C * W)
    rows = jnp.dot(Ayb, feat_mat, preferred_element_type=jnp.float32)
    rows = rows.reshape(R, S, C, W)
    samples = jnp.einsum('rscw,rjw->rcsj', rows, Ax)     # (R, C, S, S)
    return samples.reshape(R, C, out_size, sr, out_size, sr).mean(axis=(3, 5))


def bilinear_resize_align_corners(x, out_h, out_w):
    """F.interpolate(x, (out_h,out_w), mode='bilinear', align_corners=True)."""
    N, C, H, W = x.shape

    def matrix(out, size):
        scale = (size - 1) / (out - 1) if out > 1 else 0.0
        coords = jnp.arange(out, dtype=jnp.float32) * scale
        idx = jnp.arange(size, dtype=jnp.float32)
        return jnp.maximum(0.0, 1.0 - jnp.abs(coords[:, None] - idx[None, :]))

    Ay = matrix(out_h, H)
    Ax = matrix(out_w, W)
    return jnp.einsum('oh,nchw,pw->ncop', Ay, x, Ax)


def _adaptive_pool_matrix(size, out):
    i = jnp.arange(out, dtype=jnp.float32)
    start = jnp.floor(i * size / out)
    end = jnp.ceil((i + 1) * size / out)
    pos = jnp.arange(size, dtype=jnp.float32)
    mask = ((pos[None, :] >= start[:, None])
            & (pos[None, :] < end[:, None])).astype(jnp.float32)
    return mask / jnp.sum(mask, axis=1, keepdims=True)


def adaptive_avg_pool2d(x, out):
    """nn.AdaptiveAvgPool2d((out, out)) for arbitrary H, W (matrix form)."""
    N, C, H, W = x.shape
    Py = _adaptive_pool_matrix(H, out).astype(x.dtype)
    Px = _adaptive_pool_matrix(W, out).astype(x.dtype)
    return jnp.einsum('oh,nchw,pw->ncop', Py, x, Px)


# ----------------------------------------------------------------------------
# Parameters: raw init + one-time prep (concat / pad the wide fc6 weights)
# ----------------------------------------------------------------------------
def init_params(key, in_channels, resolution, representation_size=1024):
    input_size = in_channels * resolution ** 2
    keys = jax.random.split(key, 10)

    def lin(k, fin, fout):
        w = (jax.random.normal(k, (fin, fout), jnp.float32) * 0.02
             ).astype(COMPUTE_DTYPE)                      # bf16 weights (MXU)
        b = jnp.zeros((1, fout), jnp.float32)             # f32 biases
        return w, b

    return {
        "fc6c": lin(keys[0], input_size, representation_size),
        "fc7c": lin(keys[1], representation_size, representation_size),
        "fc6r": lin(keys[2], input_size, representation_size),
        "fc7r": lin(keys[3], representation_size, representation_size),
        "fc_sup1": lin(keys[4], input_size, representation_size),
        "fc_sup2": lin(keys[5], representation_size, representation_size),
        "head1": lin(keys[6], 1024, 1024),
        "head2": lin(keys[7], 1024, 128),
        "head_sup1": lin(keys[8], 1024, 1024),
        "head_sup2": lin(keys[9], 1024, 128),
    }


def _prep_first_layer(w, b, tk_max):
    K = w.shape[0]
    tk, K_pad = _choose_k_tile(K, tk_max)
    if K_pad != K:
        w = jnp.pad(w, ((0, K_pad - K), (0, 0)))
    return {"w": w, "b": b, "k": K, "k_pad": K_pad, "tk": tk}


def prepare_params(raw):
    """One-time weight prep: concat fc6c|fc6r and pre-pad every wide first-layer
    weight to the chosen K tiling so no HBM->HBM copies happen per forward."""
    tk_max = _tk_max()
    p = dict(raw)
    w6 = jnp.concatenate([raw["fc6c"][0], raw["fc6r"][0]], axis=1)
    b6 = jnp.concatenate([raw["fc6c"][1], raw["fc6r"][1]], axis=1)
    p["fc6cat"] = _prep_first_layer(w6, b6, tk_max)
    p["fc6c_first"] = _prep_first_layer(raw["fc6c"][0], raw["fc6c"][1], tk_max)
    p["fc_sup1_first"] = _prep_first_layer(raw["fc_sup1"][0], raw["fc_sup1"][1],
                                           tk_max)
    return p


# ----------------------------------------------------------------------------
# Forward (mirrors FPN2MLPFeatureExtractor_DaCL.forward)
# ----------------------------------------------------------------------------
def forward(params, x, proposals=None, sup_features=None, oneStage=None,
            resolution=8, pooler_scale=0.25, sampling_ratio=2):
    if proposals is not None:
        boxes, box_batch_idx = proposals
        sup = bilinear_resize_align_corners(sup_features, 8, 8)
        sup = sup.reshape(sup.shape[0], -1)
        pooled = roi_align(x, boxes, box_batch_idx, resolution, pooler_scale,
                           sampling_ratio)
        flat = pooled.reshape(pooled.shape[0], -1)
        if oneStage:
            xc, xr = dacl_main_branch(flat, params, with_head=False)
            return xc, xr, None, None
        xc, xr, xc_cpe_normalized = dacl_main_branch(flat, params, with_head=True)
        xc_sup_cpe_normalized = fused_mlp_chain(
            sup, params["fc_sup1_first"],
            [params["fc_sup2"], params["head_sup1"], params["head_sup2"]],
            relus=(True, True, True, False),
            l2_normalize=True)
        return xc, xr, xc_cpe_normalized, xc_sup_cpe_normalized
    else:
        # Concatenate all levels into one matrix -> single fused kernel.
        pooled = [adaptive_avg_pool2d(f, resolution).reshape(f.shape[0], -1)
                  for f in x]
        sizes = [p.shape[0] for p in pooled]
        cat = jnp.concatenate(pooled, axis=0)
        y = fused_mlp_chain(cat, params["fc6c_first"], [params["fc7c"]],
                            relus=(True, False),   # fc7c has NO ReLU here
                            l2_normalize=False)
        features, off = [], 0
        for s in sizes:
            features.append(y[off:off + s])
            off += s
        return features


# ----------------------------------------------------------------------------
# Example run
# ----------------------------------------------------------------------------
if __name__ == "__main__":
    key = jax.random.PRNGKey(0)
    k_feat, k_box, k_sup, k_param, k_extra = jax.random.split(key, 5)

    # Synthetic config: in_channels=4, POOLER_RESOLUTION=8, POOLER_SCALES=(0.25,),
    # SAMPLING_RATIO=2, MLP_HEAD_DIM=1024 (required by the hard-coded head dims).
    in_channels = 4
    resolution = 8
    B, H, W = 2, 16, 16             # feature map (image is 64x64 at scale 0.25)
    R = 8                           # total proposals (4 per image)

    x = jax.random.normal(k_feat, (B, in_channels, H, W), jnp.float32)

    # proposals: boxes in image coordinates (x1,y1,x2,y2) + image index per box
    raw = jax.random.uniform(k_box, (R, 4), jnp.float32, 2.0, 62.0)
    bx1 = jnp.minimum(raw[:, 0], raw[:, 2])
    bx2 = jnp.maximum(raw[:, 0], raw[:, 2]) + 4.0
    by1 = jnp.minimum(raw[:, 1], raw[:, 3])
    by2 = jnp.maximum(raw[:, 1], raw[:, 3]) + 4.0
    boxes = jnp.stack([bx1, by1, bx2, by2], axis=1)
    box_batch_idx = jnp.array([0, 0, 0, 0, 1, 1, 1, 1], jnp.int32)

    # support features (any spatial size; resized to 8x8 inside forward)
    sup_features = jax.random.normal(k_sup, (3, in_channels, 10, 12), jnp.float32)

    params = prepare_params(init_params(k_param, in_channels, resolution,
                                        representation_size=1024))

    # proposal branch (two-stage path with contrastive heads)
    xc, xr, xc_cpe_n, xc_sup_cpe_n = forward(
        params, x, proposals=(boxes, box_batch_idx),
        sup_features=sup_features, oneStage=False,
        resolution=resolution, pooler_scale=0.25, sampling_ratio=2)

    # one-stage proposal branch (no heads)
    xc1, xr1, none_a, none_b = forward(
        params, x, proposals=(boxes, box_batch_idx),
        sup_features=sup_features, oneStage=True,
        resolution=resolution, pooler_scale=0.25, sampling_ratio=2)

    # else branch (list of feature levels, no proposals)
    x_lvl2 = jax.random.normal(k_extra, (B, in_channels, 8, 8), jnp.float32)
    feats = forward(params, [x, x_lvl2], proposals=None, resolution=resolution)

    jax.block_until_ready((xc, xr, xc_cpe_n, xc_sup_cpe_n, xc1, xr1, feats))
    assert xc.shape == (R, 1024) and xr.shape == (R, 1024)
    assert xc_cpe_n.shape == (R, 128) and xc_sup_cpe_n.shape == (3, 128)
    assert xc1.shape == (R, 1024) and xr1.shape == (R, 1024)
    assert none_a is None and none_b is None
    assert len(feats) == 2 and feats[0].shape == (B, 1024) and feats[1].shape == (B, 1024)
    print("KERNEL_OK")
</pallas_src>

<mosaic_0001>
module attributes {stable_mosaic.version = 11 : i64} {
  func.func @kernel(%arg0: i32, %arg1: i32, %arg2: memref<16x256xbf16, #tpu.memory_space<vmem>>, %arg3: memref<256x2048xbf16, #tpu.memory_space<vmem>>, %arg4: memref<1x2048xf32, #tpu.memory_space<vmem>>, %arg5: memref<1024x1024xbf16, #tpu.memory_space<vmem>>, %arg6: memref<1x1024xf32, #tpu.memory_space<vmem>>, %arg7: memref<1024x1024xbf16, #tpu.memory_space<vmem>>, %arg8: memref<1x1024xf32, #tpu.memory_space<vmem>>, %arg9: memref<1024x1024xbf16, #tpu.memory_space<vmem>>, %arg10: memref<1x1024xf32, #tpu.memory_space<vmem>>, %arg11: memref<1024x128xbf16, #tpu.memory_space<vmem>>, %arg12: memref<1x128xf32, #tpu.memory_space<vmem>>, %arg13: memref<16x1024xf32, #tpu.memory_space<vmem>>, %arg14: memref<16x1024xf32, #tpu.memory_space<vmem>>, %arg15: memref<16x128xf32, #tpu.memory_space<vmem>>) attributes {dimension_semantics = [#tpu.dimension_semantics<parallel>, #tpu.dimension_semantics<arbitrary>], iteration_bounds = array<i64: 1, 1>, scalar_prefetch = 0 : i64, scratch_operands = 0 : i64, tpu.core_type = #tpu.core_type<tc>, window_params = [{transform_indices = @transform_0, window_bounds = array<i64: 16, 256>}, {transform_indices = @transform_1, window_bounds = array<i64: 256, 2048>}, {pipeline_mode = #tpu.pipeline_mode<synchronous>, transform_indices = @transform_2, window_bounds = array<i64: 1, 2048>}, {pipeline_mode = #tpu.pipeline_mode<synchronous>, transform_indices = @transform_3, window_bounds = array<i64: 1024, 1024>}, {pipeline_mode = #tpu.pipeline_mode<synchronous>, transform_indices = @transform_4, window_bounds = array<i64: 1, 1024>}, {pipeline_mode = #tpu.pipeline_mode<synchronous>, transform_indices = @transform_5, window_bounds = array<i64: 1024, 1024>}, {pipeline_mode = #tpu.pipeline_mode<synchronous>, transform_indices = @transform_6, window_bounds = array<i64: 1, 1024>}, {pipeline_mode = #tpu.pipeline_mode<synchronous>, transform_indices = @transform_7, window_bounds = array<i64: 1024, 1024>}, {pipeline_mode = #tpu.pipeline_mode<synchronous>, transform_indices = @transform_8, window_bounds = array<i64: 1, 1024>}, {pipeline_mode = #tpu.pipeline_mode<synchronous>, transform_indices = @transform_9, window_bounds = array<i64: 1024, 128>}, {pipeline_mode = #tpu.pipeline_mode<synchronous>, transform_indices = @transform_10, window_bounds = array<i64: 1, 128>}, {transform_indices = @transform_11, window_bounds = array<i64: 16, 1024>}, {transform_indices = @transform_12, window_bounds = array<i64: 16, 1024>}, {transform_indices = @transform_13, window_bounds = array<i64: 16, 128>}]} {
    %c0 = arith.constant 0 : index
    %c0_0 = arith.constant 0 : index
    %0 = vector.load %arg2[%c0, %c0_0] : memref<16x256xbf16, #tpu.memory_space<vmem>>, vector<16x256xbf16>
    %c0_1 = arith.constant 0 : index
    %c0_2 = arith.constant 0 : index
    %1 = vector.load %arg3[%c0_1, %c0_2] : memref<256x2048xbf16, #tpu.memory_space<vmem>>, vector<256x2048xbf16>
    %cst = arith.constant dense<0.000000e+00> : vector<16x2048xf32>
    %2 = tpu.matmul %0, %1, %cst {dimension_numbers = #tpu.dot_dimension_numbers<[1], [0], [0], [1], [0, 0, 1, 1], [], []>} : vector<16x256xbf16>, vector<256x2048xbf16>, vector<16x2048xf32> -> vector<16x2048xf32>
    %c0_3 = arith.constant 0 : index
    %c0_4 = arith.constant 0 : index
    %3 = vector.load %arg4[%c0_3, %c0_4] : memref<1x2048xf32, #tpu.memory_space<vmem>>, vector<1x2048xf32>
    %4 = vector.broadcast %3 : vector<1x2048xf32> to vector<16x2048xf32>
    %5 = arith.addf %2, %4 : vector<16x2048xf32>
    %cst_5 = arith.constant 0.000000e+00 : f32
    %6 = vector.broadcast %cst_5 : f32 to vector<16x2048xf32>
    %7 = arith.maximumf %5, %6 : vector<16x2048xf32>
    %8 = vector.extract_strided_slice %7 {offsets = [0, 0], sizes = [16, 1024], strides = [1, 1]} : vector<16x2048xf32> to vector<16x1024xf32>
    %9 = arith.truncf %8 : vector<16x1024xf32> to vector<16x1024xbf16>
    %10 = vector.extract_strided_slice %7 {offsets = [0, 1024], sizes = [16, 1024], strides = [1, 1]} : vector<16x2048xf32> to vector<16x1024xf32>
    %11 = arith.truncf %10 : vector<16x1024xf32> to vector<16x1024xbf16>
    %c0_6 = arith.constant 0 : index
    %c0_7 = arith.constant 0 : index
    %12 = vector.load %arg5[%c0_6, %c0_7] : memref<1024x1024xbf16, #tpu.memory_space<vmem>>, vector<1024x1024xbf16>
    %cst_8 = arith.constant dense<0.000000e+00> : vector<16x1024xf32>
    %13 = tpu.matmul %9, %12, %cst_8 {dimension_numbers = #tpu.dot_dimension_numbers<[1], [0], [0], [1], [0, 0, 1, 1], [], []>} : vector<16x1024xbf16>, vector<1024x1024xbf16>, vector<16x1024xf32> -> vector<16x1024xf32>
    %c0_9 = arith.constant 0 : index
    %c0_10 = arith.constant 0 : index
    %14 = vector.load %arg6[%c0_9, %c0_10] : memref<1x1024xf32, #tpu.memory_space<vmem>>, vector<1x1024xf32>
    %15 = vector.broadcast %14 : vector<1x1024xf32> to vector<16x1024xf32>
    %16 = arith.addf %13, %15 : vector<16x1024xf32>
    %cst_11 = arith.constant 0.000000e+00 : f32
    %17 = vector.broadcast %cst_11 : f32 to vector<16x1024xf32>
    %18 = arith.maximumf %16, %17 : vector<16x1024xf32>
    %c0_12 = arith.constant 0 : index
    %c0_13 = arith.constant 0 : index
    %19 = vector.load %arg7[%c0_12, %c0_13] : memref<1024x1024xbf16, #tpu.memory_space<vmem>>, vector<1024x1024xbf16>
    %cst_14 = arith.constant dense<0.000000e+00> : vector<16x1024xf32>
    %20 = tpu.matmul %11, %19, %cst_14 {dimension_numbers = #tpu.dot_dimension_numbers<[1], [0], [0], [1], [0, 0, 1, 1], [], []>} : vector<16x1024xbf16>, vector<1024x1024xbf16>, vector<16x1024xf32> -> vector<16x1024xf32>
    %c0_15 = arith.constant 0 : index
    %c0_16 = arith.constant 0 : index
    %21 = vector.load %arg8[%c0_15, %c0_16] : memref<1x1024xf32, #tpu.memory_space<vmem>>, vector<1x1024xf32>
    %22 = vector.broadcast %21 : vector<1x1024xf32> to vector<16x1024xf32>
    %23 = arith.addf %20, %22 : vector<16x1024xf32>
    %cst_17 = arith.constant 0.000000e+00 : f32
    %24 = vector.broadcast %cst_17 : f32 to vector<16x1024xf32>
    %25 = arith.maximumf %23, %24 : vector<16x1024xf32>
    %c0_18 = arith.constant 0 : index
    %c0_19 = arith.constant 0 : index
    %26 = vector.load %arg13[%c0_18, %c0_19] : memref<16x1024xf32, #tpu.memory_space<vmem>>, vector<16x1024xf32>
    tpu.vector_store %arg13[%c0_18, %c0_19], %18 {strides = array<i32>} : memref<16x1024xf32, #tpu.memory_space<vmem>>, vector<16x1024xf32>,
    %c0_20 = arith.constant 0 : index
    %c0_21 = arith.constant 0 : index
    %27 = vector.load %arg14[%c0_20, %c0_21] : memref<16x1024xf32, #tpu.memory_space<vmem>>, vector<16x1024xf32>
    tpu.vector_store %arg14[%c0_20, %c0_21], %25 {strides = array<i32>} : memref<16x1024xf32, #tpu.memory_space<vmem>>, vector<16x1024xf32>,
    %28 = arith.truncf %18 : vector<16x1024xf32> to vector<16x1024xbf16>
    %c0_22 = arith.constant 0 : index
    %c0_23 = arith.constant 0 : index
    %29 = vector.load %arg9[%c0_22, %c0_23] : memref<1024x1024xbf16, #tpu.memory_space<vmem>>, vector<1024x1024xbf16>
    %cst_24 = arith.constant dense<0.000000e+00> : vector<16x1024xf32>
    %30 = tpu.matmul %28, %29, %cst_24 {dimension_numbers = #tpu.dot_dimension_numbers<[1], [0], [0], [1], [0, 0, 1, 1], [], []>} : vector<16x1024xbf16>, vector<1024x1024xbf16>, vector<16x1024xf32> -> vector<16x1024xf32>
    %c0_25 = arith.constant 0 : index
    %c0_26 = arith.constant 0 : index
    %31 = vector.load %arg10[%c0_25, %c0_26] : memref<1x1024xf32, #tpu.memory_space<vmem>>, vector<1x1024xf32>
    %32 = vector.broadcast %31 : vector<1x1024xf32> to vector<16x1024xf32>
    %33 = arith.addf %30, %32 : vector<16x1024xf32>
    %cst_27 = arith.constant 0.000000e+00 : f32
    %34 = vector.broadcast %cst_27 : f32 to vector<16x1024xf32>
    %35 = arith.maximumf %33, %34 : vector<16x1024xf32>
    %36 = arith.truncf %35 : vector<16x1024xf32> to vector<16x1024xbf16>
    %c0_28 = arith.constant 0 : index
    %c0_29 = arith.constant 0 : index
    %37 = vector.load %arg11[%c0_28, %c0_29] : memref<1024x128xbf16, #tpu.memory_space<vmem>>, vector<1024x128xbf16>
    %cst_30 = arith.constant dense<0.000000e+00> : vector<16x128xf32>
    %38 = tpu.matmul %36, %37, %cst_30 {dimension_numbers = #tpu.dot_dimension_numbers<[1], [0], [0], [1], [0, 0, 1, 1], [], []>} : vector<16x1024xbf16>, vector<1024x128xbf16>, vector<16x128xf32> -> vector<16x128xf32>
    %c0_31 = arith.constant 0 : index
    %c0_32 = arith.constant 0 : index
    %39 = vector.load %arg12[%c0_31, %c0_32] : memref<1x128xf32, #tpu.memory_space<vmem>>, vector<1x128xf32>
    %40 = vector.broadcast %39 : vector<1x128xf32> to vector<16x128xf32>
    %41 = arith.addf %38, %40 : vector<16x128xf32>
    %42 = arith.mulf %41, %41 : vector<16x128xf32>
    %cst_33 = arith.constant dense<0.000000e+00> : vector<16xf32>
    %43 = vector.multi_reduction <add>, %42, %cst_33 [1] : vector<16x128xf32> to vector<16xf32>
    %44 = vector.shape_cast %43 : vector<16xf32> to vector<16x1xf32>
    %cst_34 = arith.constant 1.000000e-24 : f32
    %45 = vector.broadcast %cst_34 : f32 to vector<16x1xf32>
    %46 = arith.maximumf %44, %45 : vector<16x1xf32>
    %47 = math.rsqrt %46 : vector<16x1xf32>
    %48 = vector.broadcast %47 : vector<16x1xf32> to vector<16x128xf32>
    %49 = arith.mulf %41, %48 : vector<16x128xf32>
    %c0_35 = arith.constant 0 : index
    %c0_36 = arith.constant 0 : index
    %50 = vector.load %arg15[%c0_35, %c0_36] : memref<16x128xf32, #tpu.memory_space<vmem>>, vector<16x128xf32>
    tpu.vector_store %arg15[%c0_35, %c0_36], %49 {strides = array<i32>} : memref<16x128xf32, #tpu.memory_space<vmem>>, vector<16x128xf32>,
    return
  }
  func.func @transform_0(%arg0: i32, %arg1: i32) -> (i32, i32) {
    %c0_i32 = arith.constant 0 : i32
    return %arg0, %arg1 : i32, i32
  }
  func.func @transform_1(%arg0: i32, %arg1: i32) -> (i32, i32) {
    %c0_i32 = arith.constant 0 : i32
    %c0_i32_0 = arith.constant 0 : i32
    return %arg1, %c0_i32 : i32, i32
  }
  func.func @transform_2(%arg0: i32, %arg1: i32) -> (i32, i32) {
    %c0_i32 = arith.constant 0 : i32
    %c0_i32_0 = arith.constant 0 : i32
    %c0_i32_1 = arith.constant 0 : i32
    return %c0_i32, %c0_i32_0 : i32, i32
  }
  func.func @transform_3(%arg0: i32, %arg1: i32) -> (i32, i32) {
    %c0_i32 = arith.constant 0 : i32
    %c0_i32_0 = arith.constant 0 : i32
    %c0_i32_1 = arith.constant 0 : i32
    return %c0_i32, %c0_i32_0 : i32, i32
  }
  func.func @transform_4(%arg0: i32, %arg1: i32) -> (i32, i32) {
    %c0_i32 = arith.constant 0 : i32
    %c0_i32_0 = arith.constant 0 : i32
    %c0_i32_1 = arith.constant 0 : i32
    return %c0_i32, %c0_i32_0 : i32, i32
  }
  func.func @transform_5(%arg0: i32, %arg1: i32) -> (i32, i32) {
    %c0_i32 = arith.constant 0 : i32
    %c0_i32_0 = arith.constant 0 : i32
    %c0_i32_1 = arith.constant 0 : i32
    return %c0_i32, %c0_i32_0 : i32, i32
  }
  func.func @transform_6(%arg0: i32, %arg1: i32) -> (i32, i32) {
    %c0_i32 = arith.constant 0 : i32
    %c0_i32_0 = arith.constant 0 : i32
    %c0_i32_1 = arith.constant 0 : i32
    return %c0_i32, %c0_i32_0 : i32, i32
  }
  func.func @transform_7(%arg0: i32, %arg1: i32) -> (i32, i32) {
    %c0_i32 = arith.constant 0 : i32
    %c0_i32_0 = arith.constant 0 : i32
    %c0_i32_1 = arith.constant 0 : i32
    return %c0_i32, %c0_i32_0 : i32, i32
  }
  func.func @transform_8(%arg0: i32, %arg1: i32) -> (i32, i32) {
    %c0_i32 = arith.constant 0 : i32
    %c0_i32_0 = arith.constant 0 : i32
    %c0_i32_1 = arith.constant 0 : i32
    return %c0_i32, %c0_i32_0 : i32, i32
  }
  func.func @transform_9(%arg0: i32, %arg1: i32) -> (i32, i32) {
    %c0_i32 = arith.constant 0 : i32
    %c0_i32_0 = arith.constant 0 : i32
    %c0_i32_1 = arith.constant 0 : i32
    return %c0_i32, %c0_i32_0 : i32, i32
  }
  func.func @transform_10(%arg0: i32, %arg1: i32) -> (i32, i32) {
    %c0_i32 = arith.constant 0 : i32
    %c0_i32_0 = arith.constant 0 : i32
    %c0_i32_1 = arith.constant 0 : i32
    return %c0_i32, %c0_i32_0 : i32, i32
  }
  func.func @transform_11(%arg0: i32, %arg1: i32) -> (i32, i32) {
    %c0_i32 = arith.constant 0 : i32
    %c0_i32_0 = arith.constant 0 : i32
    return %arg0, %c0_i32 : i32, i32
  }
  func.func @transform_12(%arg0: i32, %arg1: i32) -> (i32, i32) {
    %c0_i32 = arith.constant 0 : i32
    %c0_i32_0 = arith.constant 0 : i32
    return %arg0, %c0_i32 : i32, i32
  }
  func.func @transform_13(%arg0: i32, %arg1: i32) -> (i32, i32) {
    %c0_i32 = arith.constant 0 : i32
    %c0_i32_0 = arith.constant 0 : i32
    return %arg0, %c0_i32 : i32, i32
  }
}

</mosaic_0001>

<bundles_post_ra>
// kernel: tpu_custom_call.1
= control target key start
LH: loop header
LB: loop body
LE: loop exit
PB: predicated region body
PF: predicated region fallthrough
CT: control target
= control target key end

     0   :  { %19 = vsyncpa [#allocation3], 0  ;;  %s17613_s0 = inlined_call_operand.hbm [shape: bf16[16,256], index: 0, kind: input, shape index: {}]   ;;  %s17614_s1 = inlined_call_operand.hbm [shape: bf16[256,2048], index: 1, kind: input, shape index: {}]   ;;  %s17615_s2 = inlined_call_operand.hbm [shape: f32[1,2048], index: 2, kind: input, shape index: {}]   ;;  %s17616_s3 = inlined_call_operand.hbm [shape: bf16[1024,1024], index: 3, kind: input, shape index: {}]   ;;  %s17617_s4 = inlined_call_operand.hbm [shape: f32[1,1024], index: 4, kind: input, shape index: {}]   ;;  %s17618_s5 = inlined_call_operand.hbm [shape: bf16[1024,1024], index: 5, kind: input, shape index: {}]   ;;  %s17619_s6 = inlined_call_operand.hbm [shape: f32[1,1024], index: 6, kind: input, shape index: {}]   ;;  %s17620_s7 = inlined_call_operand.hbm [shape: bf16[1024,1024], index: 7, kind: input, shape index: {}]   ;;  %s17621_s8 = inlined_call_operand.hbm [shape: f32[1,1024], index: 8, kind: input, shape index: {}]   ;;  %s17622_s9 = inlined_call_operand.hbm [shape: bf16[1024,128], index: 9, kind: input, shape index: {}]   ;;  %s17623_s10 = inlined_call_operand.hbm [shape: f32[1,128], index: 10, kind: input, shape index: {}]   ;;  %s17624_s11 = inlined_call_operand.hbm [shape: f32[16,1024], index: 11, kind: output, shape index: {0}]   ;;  %s17625_s12 = inlined_call_operand.hbm [shape: f32[16,1024], index: 12, kind: output, shape index: {1}]   ;;  %s17626_s13 = inlined_call_operand.hbm [shape: f32[16,128], index: 13, kind: output, shape index: {2}]  }
   0x1   :  { %20 = vsyncpa [#allocation6], 0 }
   0x2   :  { %21 = vsyncpa [#allocation9], 0 }
   0x3   :  { %22 = vsyncpa [#allocation12], 0 }
   0x4   :  { %23 = vsyncpa [#allocation15], 0 }
   0x5   :  { %24 = vsyncpa [#allocation18], 0 }
   0x6   :  { %25 = vsyncpa [#allocation4], 0 }
   0x7   :  { %26 = vsyncpa [#allocation22], 0  ;;  %s17018_s25 = smov [#allocation5]   ;;  %s16694_s29 = scalar_lea.hbm %s17614_s1, 32768 }
   0x8   :  { %s44_s26 = sshll.u32 %s17018_s25, 4  ;;  %p16695_p0 = scmp.ne.s32.totalorder %s17614_s1, %s16694_s29  ;;  %s45_s26 = int_to_ptr.vmem [resolvable:$true] %s44_s26 }
   0x9   :  { %p16698_p1 = scmp.lt.u32.totalorder %s16694_s29, %s17614_s1 }
   0xb   :  { %p16700_p2 = pnand %p16698_p1, %p16695_p0 }
   0xd   :  { %16703 = shalt.err (!%p16700_p2)
}
   0xe   :  { %s16704_s17 = scalar_lea.vmem %s45_s26, 32768  ;;  %p16709_p4 = scmp.lt.s32.totalorder %s45_s26, %s45_s26 }
   0xf   :  { %p16705_p3 = scmp.ne.s32.totalorder %s45_s26, %s16704_s17  ;;  %p16710_p5 = scmp.lt.s32.totalorder %s16704_s17, %s16704_s17 }
  0x11   :  { %p16711_p6 = por %p16710_p5, %p16709_p4 }
  0x13   :  { %p16712_p7 = pnand %p16711_p6, %p16705_p3 }
  0x15   :  { %16715 = shalt.err (!%p16712_p7)
}
  0x16   :  { %s17019_s18 = smov 1024   ;;  %s17020_s19 = smov 64  }
  0x17   :  { %50 = dma.hbm_to_vmem [thread:$0]  %s17614_s1, 32768, %s45_s26, [#allocation6], %s17019_s18, %s17019_s18, %s17020_s19  }
  0x18   :  { %s17021_s22 = smov [#allocation8]   ;;  %s16716_s27 = scalar_lea.hbm %s17616_s3, 65536 }
  0x19   :  { %s66_s23 = sshll.u32 %s17021_s22, 4  ;;  %p16717_p8 = scmp.ne.s32.totalorder %s17616_s3, %s16716_s27  ;;  %s67_s23 = int_to_ptr.vmem [resolvable:$true] %s66_s23 }
  0x1a   :  { %p16720_p9 = scmp.lt.u32.totalorder %s16716_s27, %s17616_s3 }
  0x1c   :  { %p16722_p10 = pnand %p16720_p9, %p16717_p8 }
  0x1e   :  { %16725 = shalt.err (!%p16722_p10)
}
  0x1f   :  { %s16726_s15 = scalar_lea.vmem %s67_s23, 65536  ;;  %p16731_p12 = scmp.lt.s32.totalorder %s67_s23, %s67_s23 }
  0x20   :  { %p16727_p11 = scmp.ne.s32.totalorder %s67_s23, %s16726_s15  ;;  %p16732_p13 = scmp.lt.s32.totalorder %s16726_s15, %s16726_s15 }
  0x22   :  { %p16733_p0 = por %p16732_p13, %p16731_p12 }
  0x24   :  { %p16734_p1 = pnand %p16733_p0, %p16727_p11 }
  0x26   :  { %16737 = shalt.err (!%p16734_p1)
}
  0x27   :  { %s17022_s1 = smov 512   ;;  %s17023_s26 = smov 32  }
  0x28   :  { %72 = dma.hbm_to_vmem [thread:$0]  %s17616_s3, 65536, %s67_s23, [#allocation9], %s17022_s1, %s17022_s1, %s17023_s26  }
  0x29   :  { %s17024_s20 = smov [#allocation11]   ;;  %s17025_s22 = smov [#allocation14]  }
  0x2a   :  { %s88_s21 = sshll.u32 %s17024_s20, 4  ;;  %s110_s24 = sshll.u32 %s17025_s22, 4  ;;  %s89_s21 = int_to_ptr.vmem [resolvable:$true] %s88_s21  ;;  %s17139_s24 = int_to_ptr.vmem [resolvable:$true] %s110_s24 }
  0x2b   :  { %s16738_s28 = scalar_lea.hbm %s17618_s5, 65536 }
  0x2c   :  { %p16739_p2 = scmp.ne.s32.totalorder %s17618_s5, %s16738_s28  ;;  %p16742_p3 = scmp.lt.u32.totalorder %s16738_s28, %s17618_s5 }
  0x2e   :  { %p16744_p4 = pnand %p16742_p3, %p16739_p2 }
  0x30   :  { %16747 = shalt.err (!%p16744_p4)
}
  0x31   :  { %s16748_s3 = scalar_lea.vmem %s89_s21, 65536  ;;  %p16753_p6 = scmp.lt.s32.totalorder %s89_s21, %s89_s21 }
  0x32   :  { %p16749_p5 = scmp.ne.s32.totalorder %s89_s21, %s16748_s3  ;;  %p16754_p7 = scmp.lt.s32.totalorder %s16748_s3, %s16748_s3 }
  0x34   :  { %p16755_p8 = por %p16754_p7, %p16753_p6 }
  0x36   :  { %p16756_p9 = pnand %p16755_p8, %p16749_p5 }
  0x38   :  { %16759 = shalt.err (!%p16756_p9)
}
  0x39   :  { %94 = dma.hbm_to_vmem [thread:$0]  %s17618_s5, 65536, %s89_s21, [#allocation12], %s17022_s1, %s17022_s1, %s17023_s26  }
  0x3a   :  { %s16760_s22 = scalar_lea.hbm %s17620_s7, 65536 }
  0x3b   :  { %p16761_p10 = scmp.ne.s32.totalorder %s17620_s7, %s16760_s22  ;;  %p16764_p11 = scmp.lt.u32.totalorder %s16760_s22, %s17620_s7 }
  0x3d   :  { %p16766_p12 = pnand %p16764_p11, %p16761_p10 }
  0x3f   :  { %16769 = shalt.err (!%p16766_p12)
}
  0x40   :  { %s16770_s30 = scalar_lea.vmem %s17139_s24, 65536  ;;  %p16775_p0 = scmp.lt.s32.totalorder %s17139_s24, %s17139_s24 }
  0x41   :  { %p16771_p13 = scmp.ne.s32.totalorder %s17139_s24, %s16770_s30  ;;  %p16776_p1 = scmp.lt.s32.totalorder %s16770_s30, %s16770_s30 }
  0x43   :  { %p16777_p2 = por %p16776_p1, %p16775_p0 }
  0x45   :  { %p16778_p3 = pnand %p16777_p2, %p16771_p13 }
  0x47   :  { %16781 = shalt.err (!%p16778_p3)
}
  0x48   :  { %116 = dma.hbm_to_vmem [thread:$0]  %s17620_s7, 65536, %s17139_s24, [#allocation15], %s17022_s1, %s17022_s1, %s17023_s26  }
  0x49   :  { %s17026_s14 = smov [#allocation17]   ;;  %s17027_s3 = smov [#allocation2]  }
  0x4a   :  { %s132_s15 = sshll.u32 %s17026_s14, 4  ;;  %s32_s23 = sshll.u32 %s17027_s3, 4  ;;  %s133_s15 = int_to_ptr.vmem [resolvable:$true] %s132_s15  ;;  %s33_s23 = int_to_ptr.vmem [resolvable:$true] %s32_s23 }
  0x4b   :  { %s16782_s20 = scalar_lea.hbm %s17622_s9, 8192 }
  0x4c   :  { %p16783_p4 = scmp.ne.s32.totalorder %s17622_s9, %s16782_s20  ;;  %p16786_p5 = scmp.lt.u32.totalorder %s16782_s20, %s17622_s9 }
  0x4e   :  { %p16788_p6 = pnand %p16786_p5, %p16783_p4 }
  0x50   :  { %16791 = shalt.err (!%p16788_p6)
}
  0x51   :  { %s16792_s7 = scalar_lea.vmem %s133_s15, 8192  ;;  %p16797_p8 = scmp.lt.s32.totalorder %s133_s15, %s133_s15 }
  0x52   :  { %p16793_p7 = scmp.ne.s32.totalorder %s133_s15, %s16792_s7  ;;  %p16798_p9 = scmp.lt.s32.totalorder %s16792_s7, %s16792_s7 }
  0x54   :  { %p16799_p10 = por %p16798_p9, %p16797_p8 }
  0x56   :  { %p16800_p11 = pnand %p16799_p10, %p16793_p7 }
  0x58   :  { %16803 = shalt.err (!%p16800_p11)
}
  0x59   :  { %s17028_s1 = smov 4   ;;  %s16804_s5 = scalar_lea.hbm %s17613_s0, 256 }
  0x5a   :  { %138 = dma.hbm_to_vmem [thread:$0]  %s17622_s9, 8192, %s133_s15, [#allocation18], %s17020_s19, %s17020_s19, %s17028_s1  }
  0x5b   :  { %p16805_p12 = scmp.ne.s32.totalorder %s17613_s0, %s16804_s5  ;;  %p16808_p13 = scmp.lt.u32.totalorder %s16804_s5, %s17613_s0 }
  0x5d   :  { %p16810_p0 = pnand %p16808_p13, %p16805_p12 }
  0x5f   :  { %16813 = shalt.err (!%p16810_p0)
}
  0x60   :  { %s16814_s17 = scalar_lea.vmem %s33_s23, 256  ;;  %p16819_p2 = scmp.lt.s32.totalorder %s33_s23, %s33_s23 }
  0x61   :  { %p16815_p1 = scmp.ne.s32.totalorder %s33_s23, %s16814_s17  ;;  %p16820_p3 = scmp.lt.s32.totalorder %s16814_s17, %s16814_s17 }
  0x63   :  { %p16821_p4 = por %p16820_p3, %p16819_p2 }
  0x65   :  { %p16822_p5 = pnand %p16821_p4, %p16815_p1 }
  0x67   :  { %16825 = shalt.err (!%p16822_p5)
}
  0x68   :  { %s17029_s9 = smov 128   ;;  %s17030_s15 = smov 8  }
  0x69   :  { %38 = dma.hbm_to_vmem [thread:$0]  %s17613_s0, 256, %s33_s23, [#allocation3], %s17029_s9, %s17029_s9, %s17030_s15  }
  0x6a   :  { %s17031_s25 = smov [#allocation7]   ;;  %s17032_s28 = smov [#allocation10]  }
  0x6b   :  { %s57_s27 = sshll.u32 %s17031_s25, 4  ;;  %s79_s7 = sshll.u32 %s17032_s28, 4  ;;  %s58_s27 = int_to_ptr.vmem [resolvable:$true] %s57_s27  ;;  %s80_s7 = int_to_ptr.vmem [resolvable:$true] %s79_s7 }
  0x6c   :  { %s16826_s24 = scalar_lea.hbm %s17615_s2, 256 }
  0x6d   :  { %p16827_p6 = scmp.ne.s32.totalorder %s17615_s2, %s16826_s24  ;;  %p16830_p7 = scmp.lt.u32.totalorder %s16826_s24, %s17615_s2 }
  0x6f   :  { %p16832_p8 = pnand %p16830_p7, %p16827_p6 }
  0x71   :  { %16835 = shalt.err (!%p16832_p8)
}
  0x72   :  { %s16836_s0 = scalar_lea.vmem %s58_s27, 256  ;;  %p16841_p10 = scmp.lt.s32.totalorder %s58_s27, %s58_s27 }
  0x73   :  { %p16837_p9 = scmp.ne.s32.totalorder %s58_s27, %s16836_s0  ;;  %p16842_p11 = scmp.lt.s32.totalorder %s16836_s0, %s16836_s0 }
  0x75   :  { %p16843_p12 = por %p16842_p11, %p16841_p10 }
  0x77   :  { %p16844_p13 = pnand %p16843_p12, %p16837_p9 }
  0x79   :  { %16847 = shalt.err (!%p16844_p13)
}
  0x7a   :  { %60 = dma.hbm_to_vmem [thread:$0]  %s17615_s2, 256, %s58_s27, [#allocation6]  }
  0x7b   :  { %s16848_s17 = scalar_lea.hbm %s17617_s4, 128 }
  0x7c   :  { %p16849_p0 = scmp.ne.s32.totalorder %s17617_s4, %s16848_s17  ;;  %p16852_p1 = scmp.lt.u32.totalorder %s16848_s17, %s17617_s4 }
  0x7e   :  { %p16854_p2 = pnand %p16852_p1, %p16849_p0 }
  0x80   :  { %16857 = shalt.err (!%p16854_p2)
}
  0x81   :  { %s16858_s1 = scalar_lea.vmem %s80_s7, 128  ;;  %p16863_p4 = scmp.lt.s32.totalorder %s80_s7, %s80_s7 }
  0x82   :  { %p16859_p3 = scmp.ne.s32.totalorder %s80_s7, %s16858_s1  ;;  %p16864_p5 = scmp.lt.s32.totalorder %s16858_s1, %s16858_s1 }
  0x84   :  { %p16865_p6 = por %p16864_p5, %p16863_p4 }
  0x86   :  { %p16866_p7 = pnand %p16865_p6, %p16859_p3 }
  0x88   :  { %16869 = shalt.err (!%p16866_p7)
}
  0x89   :  { %82 = dma.hbm_to_vmem [thread:$0]  %s17617_s4, 128, %s80_s7, [#allocation9]  }
  0x8a   :  { %s17033_s26 = smov [#allocation13]   ;;  %s17034_s29 = smov [#allocation16]  }
  0x8b   :  { %s101_s24 = sshll.u32 %s17033_s26, 4  ;;  %s123_s30 = sshll.u32 %s17034_s29, 4  ;;  %s102_s24 = int_to_ptr.vmem [resolvable:$true] %s101_s24  ;;  %s124_s30 = int_to_ptr.vmem [resolvable:$true] %s123_s30 }
  0x8c   :  { %s16870_s0 = scalar_lea.hbm %s17619_s6, 128 }
  0x8d   :  { %p16871_p8 = scmp.ne.s32.totalorder %s17619_s6, %s16870_s0  ;;  %p16874_p9 = scmp.lt.u32.totalorder %s16870_s0, %s17619_s6 }
  0x8f   :  { %p16876_p10 = pnand %p16874_p9, %p16871_p8 }
  0x91   :  { %16879 = shalt.err (!%p16876_p10)
}
  0x92   :  { %s16880_s4 = scalar_lea.vmem %s102_s24, 128  ;;  %p16885_p12 = scmp.lt.s32.totalorder %s102_s24, %s102_s24 }
  0x93   :  { %p16881_p11 = scmp.ne.s32.totalorder %s102_s24, %s16880_s4  ;;  %p16886_p13 = scmp.lt.s32.totalorder %s16880_s4, %s16880_s4 }
  0x95   :  { %p16887_p0 = por %p16886_p13, %p16885_p12 }
  0x97   :  { %p16888_p1 = pnand %p16887_p0, %p16881_p11 }
  0x99   :  { %16891 = shalt.err (!%p16888_p1)
}
  0x9a   :  { %104 = dma.hbm_to_vmem [thread:$0]  %s17619_s6, 128, %s102_s24, [#allocation12]  }
  0x9b   :  { %s16892_s25 = scalar_lea.hbm %s17621_s8, 128 }
  0x9c   :  { %p16893_p2 = scmp.ne.s32.totalorder %s17621_s8, %s16892_s25  ;;  %p16896_p3 = scmp.lt.u32.totalorder %s16892_s25, %s17621_s8 }
  0x9e   :  { %p16898_p4 = pnand %p16896_p3, %p16893_p2 }
  0xa0   :  { %16901 = shalt.err (!%p16898_p4)
}
  0xa1   :  { %s16902_s26 = scalar_lea.vmem %s124_s30, 128  ;;  %p16907_p6 = scmp.lt.s32.totalorder %s124_s30, %s124_s30 }
  0xa2   :  { %p16903_p5 = scmp.ne.s32.totalorder %s124_s30, %s16902_s26  ;;  %p16908_p7 = scmp.lt.s32.totalorder %s16902_s26, %s16902_s26 }
  0xa4   :  { %p16909_p8 = por %p16908_p7, %p16907_p6 }
  0xa6   :  { %p16910_p9 = pnand %p16909_p8, %p16903_p5 }
  0xa8   :  { %16913 = shalt.err (!%p16910_p9)
}
  0xa9   :  { %126 = dma.hbm_to_vmem [thread:$0]  %s17621_s8, 128, %s124_s30, [#allocation15]  }
  0xaa   :  { %s17035_s29 = smov [#allocation19]   ;;  %s16914_s23 = scalar_lea.hbm %s17623_s10, 16 }
  0xab   :  { %s145_s5 = sshll.u32 %s17035_s29, 4  ;;  %p16915_p10 = scmp.ne.s32.totalorder %s17623_s10, %s16914_s23  ;;  %s146_s5 = int_to_ptr.vmem [resolvable:$true] %s145_s5 }
  0xac   :  { %p16918_p11 = scmp.lt.u32.totalorder %s16914_s23, %s17623_s10 }
  0xae   :  { %p16920_p12 = pnand %p16918_p11, %p16915_p10 }
  0xb0   :  { %16923 = shalt.err (!%p16920_p12)
}
  0xb1   :  { %s16924_s7 = scalar_lea.vmem %s146_s5, 16  ;;  %s16928_s8 = scalar_lea.vmem %s146_s5, 32 }
  0xb2   :  { %p16925_p13 = scmp.ne.s32.totalorder %s146_s5, %s16924_s7  ;;  %p16929_p0 = scmp.lt.s32.totalorder %s146_s5, %s146_s5 }
  0xb3   :  { %p16930_p1 = scmp.lt.s32.totalorder %s16928_s8, %s16924_s7 }
  0xb5   :  { %p16931_p2 = por %p16930_p1, %p16929_p0 }
  0xb7   :  { %p16932_p3 = pnand %p16931_p2, %p16925_p13 }
  0xb9   :  { %16935 = shalt.err (!%p16932_p3)
}
  0xba   :  { %148 = dma.hbm_to_vmem [thread:$0]  %s17623_s10, 16, %s146_s5, [#allocation18]  }
  0xbb   :  { %17002 = dma.done.wait [#allocation3], 256  }
  0xbc   :  { %17003 = vsyncadd [#allocation3], 4294967040 }
  0xbd   :  { %17004 = dma.done.wait [#allocation6], 33024  }
  0xbe   :  { %17005 = vsyncadd [#allocation6], 4294934272 }
  0xbf   :  { %17006 = dma.done.wait [#allocation9], 65664  }
  0xc0   :  { %17007 = vsyncadd [#allocation9], 4294901632 }
  0xc1   :  { %17008 = dma.done.wait [#allocation12], 65664  }
  0xc2   :  { %17009 = vsyncadd [#allocation12], 4294901632 }
  0xc3   :  { %17010 = dma.done.wait [#allocation15], 65664  }
  0xc4   :  { %17011 = vsyncadd [#allocation15], 4294901632 }
  0xc5   :  { %17012 = dma.done.wait [#allocation18], 8208  }
  0xc6   :  { %17013 = vsyncadd [#allocation18], 4294959088  ;;  %v185_v0 = vld [vmem:[#allocation5] sm:$0xff]  ;;  %v186_v2 = vld [vmem:[#allocation5 + $0x8] sm:$0xff]  ;;  %s17036_s10 = smov [#allocation21]   ;;  %s17037_s22 = smov [#allocation20]  }
  0xc7   :  { %v193_v1 = vld [vmem:[#allocation5 + $0x40] sm:$0xff]  ;;  %v194_v4 = vld [vmem:[#allocation5 + $0x48] sm:$0xff]  ;;  %v17265_v56 = vld [vmem:[#allocation2 + $0x4] ss:$8 sps:$4 sm:$0xff]   ;;  %s14423_s20 = sshll.u32 %s17036_s10, 4  ;;  %s14411_s25 = sshll.u32 %s17037_s22, 4  ;;  %s14424_s20 = int_to_ptr.vmem [resolvable:$true] %s14423_s20  ;;  %s17561_s25 = int_to_ptr.vmem [resolvable:$true] %s14411_s25 }
  0xc8   :  { %v14462_v3 = vcombine.high %v185_v0, %v193_v1  ;;  %v14461_v5 = vcombine.low %v185_v0, %v193_v1  ;;  %v201_v6 = vld [vmem:[#allocation5 + $0x80] sm:$0xff]  ;;  %v14464_v8 = vcombine.high %v186_v2, %v194_v4  ;;  %v14463_v9 = vcombine.low %v186_v2, %v194_v4  ;;  %v202_v11 = vld [vmem:[#allocation5 + $0x88] sm:$0xff]  ;;  %1847 = vmatprep.mubr.bf16.mxu0 %v17265_v56  ;;  %s16936_s28 = scalar_lea.vmem %s14424_s20, 2048  ;;  %p16941_p5 = scmp.lt.s32.totalorder %s14424_s20, %s14424_s20 }
  0xc9   :  { %v209_v7 = vld [vmem:[#allocation5 + $0xc0] sm:$0xff]  ;;  %v210_v12 = vld [vmem:[#allocation5 + $0xc8] sm:$0xff]  ;;  %1890 = vmatprep.mubr.bf16.mxu1 %v17265_v56  ;;  %p16937_p4 = scmp.ne.s32.totalorder %s14424_s20, %s16936_s28  ;;  %p16942_p6 = scmp.lt.s32.totalorder %s16936_s28, %s16936_s28 }
  0xca   :  { %v14478_v10 = vcombine.high %v201_v6, %v209_v7  ;;  %v217_v13 = vld [vmem:[#allocation5 + $0x100] sm:$0xff]  ;;  %1815 = vmatprep.subr.bf16.mxu0 %v14462_v3  ;;  %v14480_v14 = vcombine.high %v202_v11, %v210_v12  ;;  %v218_v16 = vld [vmem:[#allocation5 + $0x108] sm:$0xff]  ;;  %1858 = vmatprep.subr.bf16.mxu1 %v14464_v8  ;;  %v14477_v18 = vcombine.low %v201_v6, %v209_v7 }
  0xcb   :  { %v225_v15 = vld [vmem:[#allocation5 + $0x140] sm:$0xff]  ;;  %v226_v17 = vld [vmem:[#allocation5 + $0x148] sm:$0xff]  ;;  %1816 = vmatpush1.bf16.msra.mxu0 %v14461_v5  ;;  %1859 = vmatpush1.bf16.msra.mxu1 %v14463_v9  ;;  %v14479_v19 = vcombine.low %v202_v11, %v210_v12  ;;  %p16943_p7 = por %p16942_p6, %p16941_p5 }
  0xcc   :  { %1817 = vmatprep.subr.bf16.mxu0 %v14478_v10  ;;  %v14494_v20 = vcombine.high %v217_v13, %v225_v15  ;;  %1860 = vmatprep.subr.bf16.mxu1 %v14480_v14  ;;  %v14496_v21 = vcombine.high %v218_v16, %v226_v17  ;;  %v233_v22 = vld [vmem:[#allocation5 + $0x180] sm:$0xff]  ;;  %v234_v24 = vld [vmem:[#allocation5 + $0x188] sm:$0xff]  ;;  %v14493_v26 = vcombine.low %v217_v13, %v225_v15 }
  0xcd   :  { %v241_v23 = vld [vmem:[#allocation5 + $0x1c0] sm:$0xff]  ;;  %v242_v25 = vld [vmem:[#allocation5 + $0x1c8] sm:$0xff]  ;;  %v14495_v27 = vcombine.low %v218_v16, %v226_v17  ;;  %p16944_p8 = pnand %p16943_p7, %p16937_p4 }
  0xce   :  { %v14510_v28 = vcombine.high %v233_v22, %v241_v23  ;;  %v14512_v29 = vcombine.high %v234_v24, %v242_v25  ;;  %v249_v30 = vld [vmem:[#allocation5 + $0x200] sm:$0xff]  ;;  %v250_v32 = vld [vmem:[#allocation5 + $0x208] sm:$0xff]  ;;  %v14509_v34 = vcombine.low %v233_v22, %v241_v23  ;;  %v14511_v35 = vcombine.low %v234_v24, %v242_v25 }
  0xcf   :  { %1818 = vmatpush1.bf16.msra.mxu0 %v14477_v18  ;;  %1861 = vmatpush1.bf16.msra.mxu1 %v14479_v19  ;;  %v257_v31 = vld [vmem:[#allocation5 + $0x240] sm:$0xff]  ;;  %v258_v33 = vld [vmem:[#allocation5 + $0x248] sm:$0xff] }
  0xd0   :  { %1819 = vmatprep.subr.bf16.mxu0 %v14494_v20  ;;  %1862 = vmatprep.subr.bf16.mxu1 %v14496_v21  ;;  %v14526_v36 = vcombine.high %v249_v30, %v257_v31  ;;  %v14528_v37 = vcombine.high %v250_v32, %v258_v33  ;;  %v265_v38 = vld [vmem:[#allocation5 + $0x280] sm:$0xff]  ;;  %v266_v40 = vld [vmem:[#allocation5 + $0x288] sm:$0xff]  ;;  %v14525_v42 = vcombine.low %v249_v30, %v257_v31 }
  0xd1   :  { %v273_v39 = vld [vmem:[#allocation5 + $0x2c0] sm:$0xff]  ;;  %v274_v41 = vld [vmem:[#allocation5 + $0x2c8] sm:$0xff]  ;;  %v14527_v43 = vcombine.low %v250_v32, %v258_v33 }
  0xd2   :  { %v14542_v44 = vcombine.high %v265_v38, %v273_v39  ;;  %v14544_v45 = vcombine.high %v266_v40, %v274_v41  ;;  %v281_v46 = vld [vmem:[#allocation5 + $0x300] sm:$0xff]  ;;  %v282_v48 = vld [vmem:[#allocation5 + $0x308] sm:$0xff]  ;;  %v14541_v50 = vcombine.low %v265_v38, %v273_v39  ;;  %v14543_v51 = vcombine.low %v266_v40, %v274_v41 }
  0xd3   :  { %1820 = vmatpush1.bf16.msra.mxu0 %v14493_v26  ;;  %1863 = vmatpush1.bf16.msra.mxu1 %v14495_v27  ;;  %v289_v47 = vld [vmem:[#allocation5 + $0x340] sm:$0xff]  ;;  %v290_v49 = vld [vmem:[#allocation5 + $0x348] sm:$0xff] }
  0xd4   :  { %1821 = vmatprep.subr.bf16.mxu0 %v14510_v28  ;;  %1864 = vmatprep.subr.bf16.mxu1 %v14512_v29  ;;  %v14558_v52 = vcombine.high %v281_v46, %v289_v47  ;;  %v14560_v53 = vcombine.high %v282_v48, %v290_v49  ;;  %v297_v54 = vld [vmem:[#allocation5 + $0x380] sm:$0xff]  ;;  %v298_v57 = vld [vmem:[#allocation5 + $0x388] sm:$0xff]  ;;  %v14557_v59 = vcombine.low %v281_v46, %v289_v47 }
  0xd5   :  { %v305_v55 = vld [vmem:[#allocation5 + $0x3c0] sm:$0xff]  ;;  %v306_v58 = vld [vmem:[#allocation5 + $0x3c8] sm:$0xff]  ;;  %v14559_v60 = vcombine.low %v282_v48, %v290_v49 }
  0xd6   :  { %v14574_v61 = vcombine.high %v297_v54, %v305_v55  ;;  %v14576_v62 = vcombine.high %v298_v57, %v306_v58  ;;  %v313_v63 = vld [vmem:[#allocation5 + $0x400] sm:$0xff]  ;;  %v314_v1 = vld [vmem:[#allocation5 + $0x408] sm:$0xff]  ;;  %v14573_v3 = vcombine.low %v297_v54, %v305_v55  ;;  %v14575_v4 = vcombine.low %v298_v57, %v306_v58 }
  0xd7   :  { %1822 = vmatpush1.bf16.msra.mxu0 %v14509_v34  ;;  %1865 = vmatpush1.bf16.msra.mxu1 %v14511_v35  ;;  %v321_v0 = vld [vmem:[#allocation5 + $0x440] sm:$0xff]  ;;  %v322_v2 = vld [vmem:[#allocation5 + $0x448] sm:$0xff] }
  0xd8   :  { %1823 = vmatprep.subr.bf16.mxu0 %v14526_v36  ;;  %1866 = vmatprep.subr.bf16.mxu1 %v14528_v37  ;;  %v14590_v5 = vcombine.high %v313_v63, %v321_v0  ;;  %v14592_v6 = vcombine.high %v314_v1, %v322_v2  ;;  %v329_v7 = vld [vmem:[#allocation5 + $0x480] sm:$0xff]  ;;  %v330_v9 = vld [vmem:[#allocation5 + $0x488] sm:$0xff]  ;;  %v14589_v11 = vcombine.low %v313_v63, %v321_v0  ;;  %v187_v0 = vld [vmem:[#allocation5 + $0x10] sm:$0xff] }
  0xd9   :  { %v337_v8 = vld [vmem:[#allocation5 + $0x4c0] sm:$0xff]  ;;  %v338_v10 = vld [vmem:[#allocation5 + $0x4c8] sm:$0xff]  ;;  %v14591_v12 = vcombine.low %v314_v1, %v322_v2  ;;  %v195_v1 = vld [vmem:[#allocation5 + $0x50] sm:$0xff] }
  0xda   :  { %v14606_v13 = vcombine.high %v329_v7, %v337_v8  ;;  %v14608_v14 = vcombine.high %v330_v9, %v338_v10  ;;  %v345_v15 = vld [vmem:[#allocation5 + $0x500] sm:$0xff]  ;;  %v346_v17 = vld [vmem:[#allocation5 + $0x508] sm:$0xff]  ;;  %v14605_v19 = vcombine.low %v329_v7, %v337_v8  ;;  %v14607_v20 = vcombine.low %v330_v9, %v338_v10  ;;  %v188_v2 = vld [vmem:[#allocation5 + $0x18] sm:$0xff] }
  0xdb   :  { %1824 = vmatpush1.bf16.msra.mxu0 %v14525_v42  ;;  %1867 = vmatpush1.bf16.msra.mxu1 %v14527_v43  ;;  %v353_v16 = vld [vmem:[#allocation5 + $0x540] sm:$0xff]  ;;  %v354_v18 = vld [vmem:[#allocation5 + $0x548] sm:$0xff]  ;;  %v203_v8 = vld [vmem:[#allocation5 + $0x90] sm:$0xff] }
  0xdc   :  { %1825 = vmatprep.subr.bf16.mxu0 %v14542_v44  ;;  %1868 = vmatprep.subr.bf16.mxu1 %v14544_v45  ;;  %v14622_v21 = vcombine.high %v345_v15, %v353_v16  ;;  %v14624_v22 = vcombine.high %v346_v17, %v354_v18  ;;  %v361_v23 = vld [vmem:[#allocation5 + $0x580] sm:$0xff]  ;;  %v362_v25 = vld [vmem:[#allocation5 + $0x588] sm:$0xff]  ;;  %v14621_v27 = vcombine.low %v345_v15, %v353_v16  ;;  %v211_v9 = vld [vmem:[#allocation5 + $0xd0] sm:$0xff] }
  0xdd   :  { %v369_v24 = vld [vmem:[#allocation5 + $0x5c0] sm:$0xff]  ;;  %v370_v26 = vld [vmem:[#allocation5 + $0x5c8] sm:$0xff]  ;;  %v14623_v28 = vcombine.low %v346_v17, %v354_v18  ;;  %v17269_v10 = vld [vmem:[#allocation2] ss:$8 sps:$4 sm:$0xff]   ;;  %v14482_v15 = vcombine.high %v203_v8, %v211_v9 }
  0xde   :  { %v14638_v29 = vcombine.high %v361_v23, %v369_v24  ;;  %v14640_v30 = vcombine.high %v362_v25, %v370_v26  ;;  %v377_v31 = vld [vmem:[#allocation5 + $0x600] sm:$0xff]  ;;  %v378_v33 = vld [vmem:[#allocation5 + $0x608] sm:$0xff]  ;;  %v14637_v35 = vcombine.low %v361_v23, %v369_v24  ;;  %v14639_v36 = vcombine.low %v362_v25, %v370_v26  ;;  %v219_v16 = vld [vmem:[#allocation5 + $0x110] sm:$0xff] }
  0xdf   :  { %1826 = vmatpush1.bf16.msra.mxu0 %v14541_v50  ;;  %1869 = vmatpush1.bf16.msra.mxu1 %v14543_v51  ;;  %v385_v32 = vld [vmem:[#allocation5 + $0x640] sm:$0xff]  ;;  %v386_v34 = vld [vmem:[#allocation5 + $0x648] sm:$0xff]  ;;  %v227_v17 = vld [vmem:[#allocation5 + $0x150] sm:$0xff] }
  0xe0   :  { %1827 = vmatprep.subr.bf16.mxu0 %v14558_v52  ;;  %1870 = vmatprep.subr.bf16.mxu1 %v14560_v53  ;;  %v14654_v37 = vcombine.high %v377_v31, %v385_v32  ;;  %v14656_v38 = vcombine.high %v378_v33, %v386_v34  ;;  %v393_v39 = vld [vmem:[#allocation5 + $0x680] sm:$0xff]  ;;  %v394_v41 = vld [vmem:[#allocation5 + $0x688] sm:$0xff]  ;;  %v14653_v43 = vcombine.low %v377_v31, %v385_v32  ;;  %v235_v24 = vld [vmem:[#allocation5 + $0x190] sm:$0xff] }
  0xe1   :  { %v401_v40 = vld [vmem:[#allocation5 + $0x6c0] sm:$0xff]  ;;  %v402_v42 = vld [vmem:[#allocation5 + $0x6c8] sm:$0xff]  ;;  %v14655_v44 = vcombine.low %v378_v33, %v386_v34  ;;  %v14498_v23 = vcombine.high %v219_v16, %v227_v17  ;;  %v243_v25 = vld [vmem:[#allocation5 + $0x1d0] sm:$0xff] }
  0xe2   :  { %v14670_v45 = vcombine.high %v393_v39, %v401_v40  ;;  %v14672_v46 = vcombine.high %v394_v41, %v402_v42  ;;  %v409_v47 = vld [vmem:[#allocation5 + $0x700] sm:$0xff]  ;;  %v410_v49 = vld [vmem:[#allocation5 + $0x708] sm:$0xff]  ;;  %v14669_v51 = vcombine.low %v393_v39, %v401_v40  ;;  %v14671_v52 = vcombine.low %v394_v41, %v402_v42  ;;  %v236_v26 = vld [vmem:[#allocation5 + $0x198] sm:$0xff] }
  0xe3   :  { %1828 = vmatpush1.bf16.msra.mxu0 %v14557_v59  ;;  %1871 = vmatpush1.bf16.msra.mxu1 %v14559_v60  ;;  %v417_v48 = vld [vmem:[#allocation5 + $0x740] sm:$0xff]  ;;  %v418_v50 = vld [vmem:[#allocation5 + $0x748] sm:$0xff]  ;;  %v14514_v31 = vcombine.high %v235_v24, %v243_v25  ;;  %v251_v32 = vld [vmem:[#allocation5 + $0x210] sm:$0xff] }
  0xe4   :  { %1829 = vmatprep.subr.bf16.mxu0 %v14574_v61  ;;  %1872 = vmatprep.subr.bf16.mxu1 %v14576_v62  ;;  %v14686_v53 = vcombine.high %v409_v47, %v417_v48  ;;  %v14688_v54 = vcombine.high %v410_v49, %v418_v50  ;;  %v425_v55 = vld [vmem:[#allocation5 + $0x780] sm:$0xff]  ;;  %v426_v58 = vld [vmem:[#allocation5 + $0x788] sm:$0xff]  ;;  %v14685_v60 = vcombine.low %v409_v47, %v417_v48  ;;  %v259_v33 = vld [vmem:[#allocation5 + $0x250] sm:$0xff] }
  0xe5   :  { %v433_v57 = vld [vmem:[#allocation5 + $0x7c0] sm:$0xff]  ;;  %v434_v59 = vld [vmem:[#allocation5 + $0x7c8] sm:$0xff]  ;;  %v14687_v61 = vcombine.low %v410_v49, %v418_v50  ;;  %v252_v34 = vld [vmem:[#allocation5 + $0x218] sm:$0xff]  ;;  %v14530_v39 = vcombine.high %v251_v32, %v259_v33 }
  0xe6   :  { %v14702_v62 = vcombine.high %v425_v55, %v433_v57  ;;  %v14704_v63 = vcombine.high %v426_v58, %v434_v59  ;;  %v267_v40 = vld [vmem:[#allocation5 + $0x290] sm:$0xff]  ;;  %v268_v42 = vld [vmem:[#allocation5 + $0x298] sm:$0xff] }
  0xe7   :  { %1830 = vmatpush1.bf16.msra.mxu0 %v14573_v3  ;;  %1873 = vmatpush1.bf16.msra.mxu1 %v14575_v4  ;;  %v196_v3 = vld [vmem:[#allocation5 + $0x58] sm:$0xff]  ;;  %v14701_v4 = vcombine.low %v425_v55, %v433_v57  ;;  %v275_v41 = vld [vmem:[#allocation5 + $0x2d0] sm:$0xff] }
  0xe8   :  { %1831 = vmatprep.subr.bf16.mxu0 %v14590_v5  ;;  %1874 = vmatprep.subr.bf16.mxu1 %v14592_v6  ;;  %v14703_v5 = vcombine.low %v426_v58, %v434_v59  ;;  %v14466_v6 = vcombine.high %v187_v0, %v195_v1  ;;  %v14468_v7 = vcombine.high %v188_v2, %v196_v3  ;;  %v283_v48 = vld [vmem:[#allocation5 + $0x310] sm:$0xff]  ;;  %v284_v50 = vld [vmem:[#allocation5 + $0x318] sm:$0xff] }
  0xe9   :  { %v14546_v47 = vcombine.high %v267_v40, %v275_v41  ;;  %v291_v49 = vld [vmem:[#allocation5 + $0x350] sm:$0xff]  ;;  %v300_v59 = vld [vmem:[#allocation5 + $0x398] sm:$0xff] }
  0xea   :  { %v14562_v55 = vcombine.high %v283_v48, %v291_v49  ;;  %v299_v57 = vld [vmem:[#allocation5 + $0x390] sm:$0xff] }
  0xeb   :  { %1832 = vmatpush1.bf16.msra.mxu0 %v14589_v11  ;;  %1875 = vmatpush1.bf16.msra.mxu1 %v14591_v12  ;;  %v204_v11 = vld [vmem:[#allocation5 + $0x98] sm:$0xff]  ;;  %v307_v58 = vld [vmem:[#allocation5 + $0x3d0] sm:$0xff] }
  0xec   :  { %1833 = vmatprep.subr.bf16.mxu0 %v14606_v13  ;;  %1876 = vmatprep.subr.bf16.mxu1 %v14608_v14  ;;  %v212_v12 = vld [vmem:[#allocation5 + $0xd8] sm:$0xff]  ;;  %v14465_v13 = vcombine.low %v187_v0, %v195_v1  ;;  %v14467_v14 = vcombine.low %v188_v2, %v196_v3  ;;  %v14578_v0 = vcombine.high %v299_v57, %v307_v58  ;;  %v315_v1 = vld [vmem:[#allocation5 + $0x410] sm:$0xff] }
  0xed   :  { %v14484_v18 = vcombine.high %v204_v11, %v212_v12  ;;  %v323_v2 = vld [vmem:[#allocation5 + $0x450] sm:$0xff]  ;;  %v316_v3 = vld [vmem:[#allocation5 + $0x418] sm:$0xff] }
  0xef   :  { %1834 = vmatpush1.bf16.msra.mxu0 %v14605_v19  ;;  %1877 = vmatpush1.bf16.msra.mxu1 %v14607_v20  ;;  %v220_v19 = vld [vmem:[#allocation5 + $0x118] sm:$0xff] }
  0xf0   :  { %1835 = vmatprep.subr.bf16.mxu0 %v14622_v21  ;;  %1878 = vmatprep.subr.bf16.mxu1 %v14624_v22  ;;  %v228_v20 = vld [vmem:[#allocation5 + $0x158] sm:$0xff]  ;;  %v14481_v21 = vcombine.low %v203_v8, %v211_v9  ;;  %v14483_v22 = vcombine.low %v204_v11, %v212_v12  ;;  %v14594_v8 = vcombine.high %v315_v1, %v323_v2  ;;  %v331_v9 = vld [vmem:[#allocation5 + $0x490] sm:$0xff] }
  0xf1   :  { %v339_v11 = vld [vmem:[#allocation5 + $0x4d0] sm:$0xff]  ;;  %v332_v12 = vld [vmem:[#allocation5 + $0x498] sm:$0xff] }
  0xf3   :  { %1836 = vmatpush1.bf16.msra.mxu0 %v14621_v27  ;;  %1879 = vmatpush1.bf16.msra.mxu1 %v14623_v28  ;;  %v14500_v27 = vcombine.high %v220_v19, %v228_v20  ;;  %v244_v28 = vld [vmem:[#allocation5 + $0x1d8] sm:$0xff] }
  0xf4   :  { %1837 = vmatprep.subr.bf16.mxu0 %v14638_v29  ;;  %1880 = vmatprep.subr.bf16.mxu1 %v14640_v30  ;;  %v14497_v29 = vcombine.low %v219_v16, %v227_v17  ;;  %v14499_v30 = vcombine.low %v220_v19, %v228_v20  ;;  %v14610_v17 = vcombine.high %v331_v9, %v339_v11  ;;  %v355_v19 = vld [vmem:[#allocation5 + $0x550] sm:$0xff]  ;;  %v348_v20 = vld [vmem:[#allocation5 + $0x518] sm:$0xff] }
  0xf7   :  { %1838 = vmatpush1.bf16.msra.mxu0 %v14637_v35  ;;  %1881 = vmatpush1.bf16.msra.mxu1 %v14639_v36  ;;  %v14516_v35 = vcombine.high %v236_v26, %v244_v28  ;;  %v260_v36 = vld [vmem:[#allocation5 + $0x258] sm:$0xff] }
  0xf8   :  { %1839 = vmatprep.subr.bf16.mxu0 %v14654_v37  ;;  %1882 = vmatprep.subr.bf16.mxu1 %v14656_v38  ;;  %v14513_v37 = vcombine.low %v235_v24, %v243_v25  ;;  %v14515_v38 = vcombine.low %v236_v26, %v244_v28  ;;  %v363_v26 = vld [vmem:[#allocation5 + $0x590] sm:$0xff]  ;;  %v364_v28 = vld [vmem:[#allocation5 + $0x598] sm:$0xff] }
  0xfb   :  { %1840 = vmatpush1.bf16.msra.mxu0 %v14653_v43  ;;  %1883 = vmatpush1.bf16.msra.mxu1 %v14655_v44  ;;  %v14532_v43 = vcombine.high %v252_v34, %v260_v36  ;;  %v276_v44 = vld [vmem:[#allocation5 + $0x2d8] sm:$0xff] }
  0xfc   :  { %1841 = vmatprep.subr.bf16.mxu0 %v14670_v45  ;;  %1884 = vmatprep.subr.bf16.mxu1 %v14672_v46  ;;  %v14529_v45 = vcombine.low %v251_v32, %v259_v33  ;;  %v14531_v46 = vcombine.low %v252_v34, %v260_v36  ;;  %v379_v34 = vld [vmem:[#allocation5 + $0x610] sm:$0xff]  ;;  %v380_v36 = vld [vmem:[#allocation5 + $0x618] sm:$0xff] }
  0xff   :  { %1842 = vmatpush1.bf16.msra.mxu0 %v14669_v51  ;;  %1885 = vmatpush1.bf16.msra.mxu1 %v14671_v52  ;;  %v14548_v51 = vcombine.high %v268_v42, %v276_v44  ;;  %v292_v52 = vld [vmem:[#allocation5 + $0x358] sm:$0xff] }
 0x100   :  { %1843 = vmatprep.subr.bf16.mxu0 %v14686_v53  ;;  %1886 = vmatprep.subr.bf16.mxu1 %v14688_v54  ;;  %v14545_v53 = vcombine.low %v267_v40, %v275_v41  ;;  %v14547_v54 = vcombine.low %v268_v42, %v276_v44  ;;  %v395_v42 = vld [vmem:[#allocation5 + $0x690] sm:$0xff]  ;;  %v396_v44 = vld [vmem:[#allocation5 + $0x698] sm:$0xff] }
 0x103   :  { %1844 = vmatpush1.bf16.msra.mxu0 %v14685_v60  ;;  %1887 = vmatpush1.bf16.msra.mxu1 %v14687_v61  ;;  %v14564_v60 = vcombine.high %v284_v50, %v292_v52  ;;  %v308_v61 = vld [vmem:[#allocation5 + $0x3d8] sm:$0xff] }
 0x104   :  { %1845 = vmatprep.subr.bf16.mxu0 %v14702_v62  ;;  %1888 = vmatprep.subr.bf16.mxu1 %v14704_v63  ;;  %v14561_v62 = vcombine.low %v283_v48, %v291_v49  ;;  %v14563_v63 = vcombine.low %v284_v50, %v292_v52  ;;  %v411_v50 = vld [vmem:[#allocation5 + $0x710] sm:$0xff]  ;;  %v412_v52 = vld [vmem:[#allocation5 + $0x718] sm:$0xff] }
 0x107   :  { %1846 = vmatpush1.bf16.msra.mxu0 %v14701_v4  ;;  %1889 = vmatpush1.bf16.msra.mxu1 %v14703_v5  ;;  %v14580_v4 = vcombine.high %v300_v59, %v308_v61  ;;  %v324_v5 = vld [vmem:[#allocation5 + $0x458] sm:$0xff] }
 0x108   :  { %1901 = vmatprep.subr.bf16.mxu0 %v14466_v6  ;;  %1944 = vmatprep.subr.bf16.mxu1 %v14468_v7  ;;  %v14577_v6 = vcombine.low %v299_v57, %v307_v58  ;;  %v14579_v7 = vcombine.low %v300_v59, %v308_v61  ;;  %v14595_v16 = vcombine.low %v316_v3, %v324_v5  ;;  %v427_v59 = vld [vmem:[#allocation5 + $0x790] sm:$0xff]  ;;  %v428_v61 = vld [vmem:[#allocation5 + $0x798] sm:$0xff] }
 0x10a   :  { %1848 = vmatmul.mubr.bf16.vlgmr.msra.gmra.mrb[0].mxu0 %v17269_v10  ;;  %1891 = vmatmul.mubr.bf16.vlgmr.msra.gmra.mrb[0].mxu1 %v17269_v10 }
 0x10b   :  { %1902 = vmatpush1.bf16.msra.mxu0 %v14465_v13  ;;  %1945 = vmatpush1.bf16.msra.mxu1 %v14467_v14  ;;  %v14596_v13 = vcombine.high %v316_v3, %v324_v5  ;;  %v340_v14 = vld [vmem:[#allocation5 + $0x4d8] sm:$0xff]  ;;  %v189_v3 = vld [vmem:[#allocation5 + $0x20] sm:$0xff]  ;;  %v190_v5 = vld [vmem:[#allocation5 + $0x28] sm:$0xff] }
 0x10c   :  { %1903 = vmatprep.subr.bf16.mxu0 %v14482_v15  ;;  %1946 = vmatprep.subr.bf16.mxu1 %v14484_v18  ;;  %v14593_v15 = vcombine.low %v315_v1, %v323_v2  ;;  %v347_v18 = vld [vmem:[#allocation5 + $0x510] sm:$0xff]  ;;  %v14611_v24 = vcombine.low %v332_v12, %v340_v14 }
 0x10d   :  { %1933 = vmatprep.mubr.bf16.mxu0 %v17265_v56  ;;  %1976 = vmatprep.mubr.bf16.mxu1 %v17265_v56  ;;  %v14626_v25 = vcombine.high %v347_v18, %v355_v19 }
 0x10f   :  { %1904 = vmatpush1.bf16.msra.mxu0 %v14481_v21  ;;  %1947 = vmatpush1.bf16.msra.mxu1 %v14483_v22  ;;  %v14612_v21 = vcombine.high %v332_v12, %v340_v14  ;;  %v356_v22 = vld [vmem:[#allocation5 + $0x558] sm:$0xff]  ;;  %v205_v12 = vld [vmem:[#allocation5 + $0xa0] sm:$0xff]  ;;  %v206_v14 = vld [vmem:[#allocation5 + $0xa8] sm:$0xff] }
 0x110   :  { %1905 = vmatprep.subr.bf16.mxu0 %v14498_v23  ;;  %1948 = vmatprep.subr.bf16.mxu1 %v14500_v27  ;;  %v14609_v23 = vcombine.low %v331_v9, %v339_v11  ;;  %v371_v27 = vld [vmem:[#allocation5 + $0x5d0] sm:$0xff]  ;;  %v14627_v32 = vcombine.low %v348_v20, %v356_v22 }
 0x111   :  { %v14642_v33 = vcombine.high %v363_v26, %v371_v27 }
 0x113   :  { %1906 = vmatpush1.bf16.msra.mxu0 %v14497_v29  ;;  %1949 = vmatpush1.bf16.msra.mxu1 %v14499_v30  ;;  %v14628_v29 = vcombine.high %v348_v20, %v356_v22  ;;  %v372_v30 = vld [vmem:[#allocation5 + $0x5d8] sm:$0xff]  ;;  %v229_v22 = vld [vmem:[#allocation5 + $0x160] sm:$0xff] }
 0x114   :  { %1907 = vmatprep.subr.bf16.mxu0 %v14514_v31  ;;  %1950 = vmatprep.subr.bf16.mxu1 %v14516_v35  ;;  %v14625_v31 = vcombine.low %v347_v18, %v355_v19  ;;  %v387_v35 = vld [vmem:[#allocation5 + $0x650] sm:$0xff]  ;;  %v14643_v40 = vcombine.low %v364_v28, %v372_v30 }
 0x115   :  { %v14658_v41 = vcombine.high %v379_v34, %v387_v35 }
 0x117   :  { %1908 = vmatpush1.bf16.msra.mxu0 %v14513_v37  ;;  %1951 = vmatpush1.bf16.msra.mxu1 %v14515_v38  ;;  %v14644_v37 = vcombine.high %v364_v28, %v372_v30  ;;  %v388_v38 = vld [vmem:[#allocation5 + $0x658] sm:$0xff]  ;;  %v245_v30 = vld [vmem:[#allocation5 + $0x1e0] sm:$0xff] }
 0x118   :  { %1909 = vmatprep.subr.bf16.mxu0 %v14530_v39  ;;  %1952 = vmatprep.subr.bf16.mxu1 %v14532_v43  ;;  %v14641_v39 = vcombine.low %v363_v26, %v371_v27  ;;  %v403_v43 = vld [vmem:[#allocation5 + $0x6d0] sm:$0xff]  ;;  %v14659_v48 = vcombine.low %v380_v36, %v388_v38 }
 0x119   :  { %v14674_v49 = vcombine.high %v395_v42, %v403_v43 }
 0x11b   :  { %1910 = vmatpush1.bf16.msra.mxu0 %v14529_v45  ;;  %1953 = vmatpush1.bf16.msra.mxu1 %v14531_v46  ;;  %v14660_v45 = vcombine.high %v380_v36, %v388_v38  ;;  %v404_v46 = vld [vmem:[#allocation5 + $0x6d8] sm:$0xff]  ;;  %v253_v36 = vld [vmem:[#allocation5 + $0x220] sm:$0xff]  ;;  %v254_v38 = vld [vmem:[#allocation5 + $0x228] sm:$0xff] }
 0x11c   :  { %1911 = vmatprep.subr.bf16.mxu0 %v14546_v47  ;;  %1954 = vmatprep.subr.bf16.mxu1 %v14548_v51  ;;  %v14657_v47 = vcombine.low %v379_v34, %v387_v35  ;;  %v419_v51 = vld [vmem:[#allocation5 + $0x750] sm:$0xff]  ;;  %v14675_v57 = vcombine.low %v396_v44, %v404_v46 }
 0x11d   :  { %v14690_v58 = vcombine.high %v411_v50, %v419_v51 }
 0x11f   :  { %1912 = vmatpush1.bf16.msra.mxu0 %v14545_v53  ;;  %1955 = vmatpush1.bf16.msra.mxu1 %v14547_v54  ;;  %v14676_v53 = vcombine.high %v396_v44, %v404_v46  ;;  %v420_v54 = vld [vmem:[#allocation5 + $0x758] sm:$0xff]  ;;  %v277_v44 = vld [vmem:[#allocation5 + $0x2e0] sm:$0xff]  ;;  %v278_v46 = vld [vmem:[#allocation5 + $0x2e8] sm:$0xff] }
 0x120   :  { %1913 = vmatprep.subr.bf16.mxu0 %v14562_v55  ;;  %1956 = vmatprep.subr.bf16.mxu1 %v14564_v60  ;;  %v14673_v55 = vcombine.low %v395_v42, %v403_v43  ;;  %v435_v60 = vld [vmem:[#allocation5 + $0x7d0] sm:$0xff]  ;;  %v14691_v1 = vcombine.low %v412_v52, %v420_v54  ;;  %v269_v43 = vld [vmem:[#allocation5 + $0x2a0] sm:$0xff] }
 0x121   :  { %v14706_v2 = vcombine.high %v427_v59, %v435_v60 }
 0x123   :  { %1914 = vmatpush1.bf16.msra.mxu0 %v14561_v62  ;;  %1957 = vmatpush1.bf16.msra.mxu1 %v14563_v63  ;;  %v14692_v62 = vcombine.high %v412_v52, %v420_v54  ;;  %v436_v63 = vld [vmem:[#allocation5 + $0x7d8] sm:$0xff]  ;;  %v293_v52 = vld [vmem:[#allocation5 + $0x360] sm:$0xff]  ;;  %v294_v54 = vld [vmem:[#allocation5 + $0x368] sm:$0xff] }
 0x124   :  { %1915 = vmatprep.subr.bf16.mxu0 %v14578_v0  ;;  %1958 = vmatprep.subr.bf16.mxu1 %v14580_v4  ;;  %v14689_v0 = vcombine.low %v411_v50, %v419_v51  ;;  %v197_v4 = vld [vmem:[#allocation5 + $0x60] sm:$0xff]  ;;  %v14707_v9 = vcombine.low %v428_v61, %v436_v63 }
 0x125   :  { %v14470_v11 = vcombine.high %v189_v3, %v197_v4  ;;  %v285_v51 = vld [vmem:[#allocation5 + $0x320] sm:$0xff] }
 0x127   :  { %1916 = vmatpush1.bf16.msra.mxu0 %v14577_v6  ;;  %1959 = vmatpush1.bf16.msra.mxu1 %v14579_v7  ;;  %v14708_v6 = vcombine.high %v428_v61, %v436_v63  ;;  %v198_v7 = vld [vmem:[#allocation5 + $0x68] sm:$0xff]  ;;  %v309_v61 = vld [vmem:[#allocation5 + $0x3e0] sm:$0xff] }
 0x128   :  { %1917 = vmatprep.subr.bf16.mxu0 %v14594_v8  ;;  %1960 = vmatprep.subr.bf16.mxu1 %v14596_v13  ;;  %v14705_v8 = vcombine.low %v427_v59, %v435_v60  ;;  %v213_v13 = vld [vmem:[#allocation5 + $0xe0] sm:$0xff]  ;;  %v14471_v18 = vcombine.low %v190_v5, %v198_v7  ;;  %v310_v63 = vld [vmem:[#allocation5 + $0x3e8] sm:$0xff] }
 0x129   :  { %v14486_v19 = vcombine.high %v205_v12, %v213_v13  ;;  %v301_v60 = vld [vmem:[#allocation5 + $0x3a0] sm:$0xff] }
 0x12b   :  { %1918 = vmatpush1.bf16.msra.mxu0 %v14593_v15  ;;  %1961 = vmatpush1.bf16.msra.mxu1 %v14595_v16  ;;  %v14472_v15 = vcombine.high %v190_v5, %v198_v7  ;;  %v214_v16 = vld [vmem:[#allocation5 + $0xe8] sm:$0xff]  ;;  %v325_v5 = vld [vmem:[#allocation5 + $0x460] sm:$0xff] }
 0x12c   :  { %1919 = vmatprep.subr.bf16.mxu0 %v14610_v17  ;;  %1962 = vmatprep.subr.bf16.mxu1 %v14612_v21  ;;  %v14469_v17 = vcombine.low %v189_v3, %v197_v4  ;;  %v14488_v20 = vcombine.high %v206_v14, %v214_v16  ;;  %v221_v21 = vld [vmem:[#allocation5 + $0x120] sm:$0xff]  ;;  %v14487_v26 = vcombine.low %v206_v14, %v214_v16  ;;  %v326_v7 = vld [vmem:[#allocation5 + $0x468] sm:$0xff] }
 0x12d   :  { %v14502_v27 = vcombine.high %v221_v21, %v229_v22  ;;  %v317_v4 = vld [vmem:[#allocation5 + $0x420] sm:$0xff]  ;;  %v342_v16 = vld [vmem:[#allocation5 + $0x4e8] sm:$0xff] }
 0x12e   :  { %v341_v14 = vld [vmem:[#allocation5 + $0x4e0] sm:$0xff] }
 0x12f   :  { %1920 = vmatpush1.bf16.msra.mxu0 %v14609_v23  ;;  %1963 = vmatpush1.bf16.msra.mxu1 %v14611_v24  ;;  %v222_v23 = vld [vmem:[#allocation5 + $0x128] sm:$0xff] }
 0x130   :  { %1921 = vmatprep.subr.bf16.mxu0 %v14626_v25  ;;  %1964 = vmatprep.subr.bf16.mxu1 %v14628_v29  ;;  %v230_v24 = vld [vmem:[#allocation5 + $0x168] sm:$0xff]  ;;  %v14485_v25 = vcombine.low %v205_v12, %v213_v13  ;;  %v237_v29 = vld [vmem:[#allocation5 + $0x1a0] sm:$0xff] }
 0x131   :  { %v14504_v28 = vcombine.high %v222_v23, %v230_v24  ;;  %v14518_v34 = vcombine.high %v237_v29, %v245_v30  ;;  %v333_v13 = vld [vmem:[#allocation5 + $0x4a0] sm:$0xff] }
 0x133   :  { %1922 = vmatpush1.bf16.msra.mxu0 %v14625_v31  ;;  %1965 = vmatpush1.bf16.msra.mxu1 %v14627_v32  ;;  %v238_v31 = vld [vmem:[#allocation5 + $0x1a8] sm:$0xff] }
 0x134   :  { %1923 = vmatprep.subr.bf16.mxu0 %v14642_v33  ;;  %1966 = vmatprep.subr.bf16.mxu1 %v14644_v37  ;;  %v246_v32 = vld [vmem:[#allocation5 + $0x1e8] sm:$0xff]  ;;  %v14501_v33 = vcombine.low %v221_v21, %v229_v22  ;;  %v261_v37 = vld [vmem:[#allocation5 + $0x260] sm:$0xff] }
 0x135   :  { %v14520_v35 = vcombine.high %v238_v31, %v246_v32  ;;  %v14534_v42 = vcombine.high %v253_v36, %v261_v37  ;;  %v349_v21 = vld [vmem:[#allocation5 + $0x520] sm:$0xff] }
 0x136   :  { %v357_v22 = vld [vmem:[#allocation5 + $0x560] sm:$0xff] }
 0x137   :  { %1924 = vmatpush1.bf16.msra.mxu0 %v14641_v39  ;;  %1967 = vmatpush1.bf16.msra.mxu1 %v14643_v40  ;;  %v262_v39 = vld [vmem:[#allocation5 + $0x268] sm:$0xff]  ;;  %v14517_v40 = vcombine.low %v237_v29, %v245_v30  ;;  %v365_v29 = vld [vmem:[#allocation5 + $0x5a0] sm:$0xff] }
 0x138   :  { %1925 = vmatprep.subr.bf16.mxu0 %v14658_v41  ;;  %1968 = vmatprep.subr.bf16.mxu1 %v14660_v45  ;;  %v14519_v41 = vcombine.low %v238_v31, %v246_v32  ;;  %v270_v45 = vld [vmem:[#allocation5 + $0x2a8] sm:$0xff]  ;;  %v373_v30 = vld [vmem:[#allocation5 + $0x5e0] sm:$0xff] }
 0x139   :  { %v14552_v50 = vcombine.high %v270_v45, %v278_v46  ;;  %v366_v31 = vld [vmem:[#allocation5 + $0x5a8] sm:$0xff] }
 0x13a   :  { %v374_v32 = vld [vmem:[#allocation5 + $0x5e8] sm:$0xff] }
 0x13b   :  { %1926 = vmatpush1.bf16.msra.mxu0 %v14657_v47  ;;  %1969 = vmatpush1.bf16.msra.mxu1 %v14659_v48  ;;  %v14533_v47 = vcombine.low %v253_v36, %v261_v37  ;;  %v14535_v48 = vcombine.low %v254_v38, %v262_v39  ;;  %v381_v36 = vld [vmem:[#allocation5 + $0x620] sm:$0xff] }
 0x13c   :  { %1927 = vmatprep.subr.bf16.mxu0 %v14674_v49  ;;  %1970 = vmatprep.subr.bf16.mxu1 %v14676_v53  ;;  %v14550_v49 = vcombine.high %v269_v43, %v277_v44  ;;  %v286_v53 = vld [vmem:[#allocation5 + $0x328] sm:$0xff]  ;;  %v389_v37 = vld [vmem:[#allocation5 + $0x660] sm:$0xff] }
 0x13d   :  { %v14568_v59 = vcombine.high %v286_v53, %v294_v54 }
 0x13f   :  { %1928 = vmatpush1.bf16.msra.mxu0 %v14673_v55  ;;  %1971 = vmatpush1.bf16.msra.mxu1 %v14675_v57  ;;  %v14549_v55 = vcombine.low %v269_v43, %v277_v44  ;;  %v14551_v57 = vcombine.low %v270_v45, %v278_v46  ;;  %v397_v43 = vld [vmem:[#allocation5 + $0x6a0] sm:$0xff]  ;;  %v398_v45 = vld [vmem:[#allocation5 + $0x6a8] sm:$0xff] }
 0x140   :  { %1929 = vmatprep.subr.bf16.mxu0 %v14690_v58  ;;  %1972 = vmatprep.subr.bf16.mxu1 %v14692_v62  ;;  %v14566_v58 = vcombine.high %v285_v51, %v293_v52  ;;  %v302_v62 = vld [vmem:[#allocation5 + $0x3a8] sm:$0xff]  ;;  %v405_v44 = vld [vmem:[#allocation5 + $0x6e0] sm:$0xff] }
 0x141   :  { %v14584_v3 = vcombine.high %v302_v62, %v310_v63  ;;  %v406_v46 = vld [vmem:[#allocation5 + $0x6e8] sm:$0xff] }
 0x143   :  { %1930 = vmatpush1.bf16.msra.mxu0 %v14689_v0  ;;  %1973 = vmatpush1.bf16.msra.mxu1 %v14691_v1  ;;  %v14565_v0 = vcombine.low %v285_v51, %v293_v52  ;;  %v14567_v1 = vcombine.low %v286_v53, %v294_v54  ;;  %v413_v51 = vld [vmem:[#allocation5 + $0x720] sm:$0xff]  ;;  %v414_v53 = vld [vmem:[#allocation5 + $0x728] sm:$0xff] }
 0x144   :  { %1931 = vmatprep.subr.bf16.mxu0 %v14706_v2  ;;  %1974 = vmatprep.subr.bf16.mxu1 %v14708_v6  ;;  %v14582_v2 = vcombine.high %v301_v60, %v309_v61  ;;  %v318_v6 = vld [vmem:[#allocation5 + $0x428] sm:$0xff]  ;;  %v421_v52 = vld [vmem:[#allocation5 + $0x760] sm:$0xff] }
 0x145   :  { %v14600_v12 = vcombine.high %v318_v6, %v326_v7  ;;  %v422_v54 = vld [vmem:[#allocation5 + $0x768] sm:$0xff] }
 0x147   :  { %1932 = vmatpush1.bf16.msra.mxu0 %v14705_v8  ;;  %1975 = vmatpush1.bf16.msra.mxu1 %v14707_v9  ;;  %v14581_v8 = vcombine.low %v301_v60, %v309_v61  ;;  %v14583_v9 = vcombine.low %v302_v62, %v310_v63  ;;  %v429_v60 = vld [vmem:[#allocation5 + $0x7a0] sm:$0xff]  ;;  %v430_v62 = vld [vmem:[#allocation5 + $0x7a8] sm:$0xff] }
 0x148   :  { %1987 = vmatprep.subr.bf16.mxu0 %v14470_v11  ;;  %2030 = vmatprep.subr.bf16.mxu1 %v14472_v15  ;;  %v14598_v11 = vcombine.high %v317_v4, %v325_v5  ;;  %v334_v15 = vld [vmem:[#allocation5 + $0x4a8] sm:$0xff]  ;;  %v437_v61 = vld [vmem:[#allocation5 + $0x7e0] sm:$0xff] }
 0x149   :  { %v438_v63 = vld [vmem:[#allocation5 + $0x7e8] sm:$0xff] }
 0x14a   :  { %1934 = vmatmul.mubr.bf16.vlgmr.msra.gmra.mrb[4].mxu0 %v17269_v10  ;;  %1977 = vmatmul.mubr.bf16.vlgmr.msra.gmra.mrb[4].mxu1 %v17269_v10  ;;  %v14503_v10 = vcombine.low %v222_v23, %v230_v24  ;;  %v350_v23 = vld [vmem:[#allocation5 + $0x528] sm:$0xff] }
 0x14b   :  { %1988 = vmatpush1.bf16.msra.mxu0 %v14469_v17  ;;  %2031 = vmatpush1.bf16.msra.mxu1 %v14471_v18  ;;  %v14597_v17 = vcombine.low %v317_v4, %v325_v5  ;;  %v14599_v18 = vcombine.low %v318_v6, %v326_v7  ;;  %v358_v24 = vld [vmem:[#allocation5 + $0x568] sm:$0xff]  ;;  %v191_v4 = vld [vmem:[#allocation5 + $0x30] sm:$0xff]  ;;  %v192_v6 = vld [vmem:[#allocation5 + $0x38] sm:$0xff] }
 0x14c   :  { %1989 = vmatprep.subr.bf16.mxu0 %v14486_v19  ;;  %2032 = vmatprep.subr.bf16.mxu1 %v14488_v20  ;;  %v14614_v19 = vcombine.high %v333_v13, %v341_v14  ;;  %v14616_v20 = vcombine.high %v334_v15, %v342_v16  ;;  %v199_v5 = vld [vmem:[#allocation5 + $0x70] sm:$0xff]  ;;  %v200_v7 = vld [vmem:[#allocation5 + $0x78] sm:$0xff] }
 0x14d   :  { %2019 = vmatprep.mubr.bf16.mxu0 %v17265_v56  ;;  %2062 = vmatprep.mubr.bf16.mxu1 %v17265_v56  ;;  %v14536_v56 = vcombine.high %v254_v38, %v262_v39  ;;  %v382_v38 = vld [vmem:[#allocation5 + $0x628] sm:$0xff] }
 0x14e   :  { %v390_v39 = vld [vmem:[#allocation5 + $0x668] sm:$0xff] }
 0x14f   :  { %1990 = vmatpush1.bf16.msra.mxu0 %v14485_v25  ;;  %2033 = vmatpush1.bf16.msra.mxu1 %v14487_v26  ;;  %v14613_v25 = vcombine.low %v333_v13, %v341_v14  ;;  %v14615_v26 = vcombine.low %v334_v15, %v342_v16  ;;  %v207_v13 = vld [vmem:[#allocation5 + $0xb0] sm:$0xff]  ;;  %v208_v15 = vld [vmem:[#allocation5 + $0xb8] sm:$0xff] }
 0x150   :  { %1991 = vmatprep.subr.bf16.mxu0 %v14502_v27  ;;  %2034 = vmatprep.subr.bf16.mxu1 %v14504_v28  ;;  %v14630_v27 = vcombine.high %v349_v21, %v357_v22  ;;  %v14632_v28 = vcombine.high %v350_v23, %v358_v24  ;;  %v215_v14 = vld [vmem:[#allocation5 + $0xf0] sm:$0xff]  ;;  %v216_v16 = vld [vmem:[#allocation5 + $0xf8] sm:$0xff] }
 0x153   :  { %1992 = vmatpush1.bf16.msra.mxu0 %v14501_v33  ;;  %2035 = vmatpush1.bf16.msra.mxu1 %v14503_v10  ;;  %v14629_v33 = vcombine.low %v349_v21, %v357_v22  ;;  %v14631_v10 = vcombine.low %v350_v23, %v358_v24  ;;  %v223_v21 = vld [vmem:[#allocation5 + $0x130] sm:$0xff]  ;;  %v224_v24 = vld [vmem:[#allocation5 + $0x138] sm:$0xff] }
 0x154   :  { %1993 = vmatprep.subr.bf16.mxu0 %v14518_v34  ;;  %2036 = vmatprep.subr.bf16.mxu1 %v14520_v35  ;;  %v14646_v34 = vcombine.high %v365_v29, %v373_v30  ;;  %v14648_v35 = vcombine.high %v366_v31, %v374_v32  ;;  %v231_v22 = vld [vmem:[#allocation5 + $0x170] sm:$0xff] }
 0x155   :  { %v17279_v23 = vld [vmem:[#allocation2] ss:$8 sps:$4 sm:$0xff]  }
 0x157   :  { %1994 = vmatpush1.bf16.msra.mxu0 %v14517_v40  ;;  %2037 = vmatpush1.bf16.msra.mxu1 %v14519_v41  ;;  %v14645_v40 = vcombine.low %v365_v29, %v373_v30  ;;  %v14647_v41 = vcombine.low %v366_v31, %v374_v32  ;;  %v239_v30 = vld [vmem:[#allocation5 + $0x1b0] sm:$0xff] }
 0x158   :  { %1995 = vmatprep.subr.bf16.mxu0 %v14534_v42  ;;  %2038 = vmatprep.subr.bf16.mxu1 %v14536_v56  ;;  %v14662_v42 = vcombine.high %v381_v36, %v389_v37  ;;  %v14664_v56 = vcombine.high %v382_v38, %v390_v39  ;;  %v247_v31 = vld [vmem:[#allocation5 + $0x1f0] sm:$0xff] }
 0x159   :  { %v16691_v32 = vld [vmem:[#allocation2 + $0x4] ss:$8 sps:$4 sm:$0xff]  }
 0x15b   :  { %1996 = vmatpush1.bf16.msra.mxu0 %v14533_v47  ;;  %2039 = vmatpush1.bf16.msra.mxu1 %v14535_v48  ;;  %v14661_v47 = vcombine.low %v381_v36, %v389_v37  ;;  %v14663_v48 = vcombine.low %v382_v38, %v390_v39  ;;  %v14522_v36 = vcombine.high %v239_v30, %v247_v31  ;;  %v255_v38 = vld [vmem:[#allocation5 + $0x230] sm:$0xff] }
 0x15c   :  { %1997 = vmatprep.subr.bf16.mxu0 %v14550_v49  ;;  %2040 = vmatprep.subr.bf16.mxu1 %v14552_v50  ;;  %v14678_v49 = vcombine.high %v397_v43, %v405_v44  ;;  %v14680_v50 = vcombine.high %v398_v45, %v406_v46  ;;  %v263_v39 = vld [vmem:[#allocation5 + $0x270] sm:$0xff] }
 0x15f   :  { %1998 = vmatpush1.bf16.msra.mxu0 %v14549_v55  ;;  %2041 = vmatpush1.bf16.msra.mxu1 %v14551_v57  ;;  %v14677_v55 = vcombine.low %v397_v43, %v405_v44  ;;  %v14679_v57 = vcombine.low %v398_v45, %v406_v46  ;;  %v14538_v43 = vcombine.high %v255_v38, %v263_v39  ;;  %v271_v45 = vld [vmem:[#allocation5 + $0x2b0] sm:$0xff] }
 0x160   :  { %1999 = vmatprep.subr.bf16.mxu0 %v14566_v58  ;;  %2042 = vmatprep.subr.bf16.mxu1 %v14568_v59  ;;  %v14694_v58 = vcombine.high %v413_v51, %v421_v52  ;;  %v14696_v59 = vcombine.high %v414_v53, %v422_v54  ;;  %v279_v46 = vld [vmem:[#allocation5 + $0x2f0] sm:$0xff] }
 0x163   :  { %2000 = vmatpush1.bf16.msra.mxu0 %v14565_v0  ;;  %2043 = vmatpush1.bf16.msra.mxu1 %v14567_v1  ;;  %v14693_v0 = vcombine.low %v413_v51, %v421_v52  ;;  %v14695_v1 = vcombine.low %v414_v53, %v422_v54  ;;  %v14554_v51 = vcombine.high %v271_v45, %v279_v46  ;;  %v287_v53 = vld [vmem:[#allocation5 + $0x330] sm:$0xff] }
 0x164   :  { %2001 = vmatprep.subr.bf16.mxu0 %v14582_v2  ;;  %2044 = vmatprep.subr.bf16.mxu1 %v14584_v3  ;;  %v14710_v2 = vcombine.high %v429_v60, %v437_v61  ;;  %v14712_v3 = vcombine.high %v430_v62, %v438_v63  ;;  %v295_v54 = vld [vmem:[#allocation5 + $0x370] sm:$0xff] }
 0x167   :  { %2002 = vmatpush1.bf16.msra.mxu0 %v14581_v8  ;;  %2045 = vmatpush1.bf16.msra.mxu1 %v14583_v9  ;;  %v14709_v8 = vcombine.low %v429_v60, %v437_v61  ;;  %v14711_v9 = vcombine.low %v430_v62, %v438_v63  ;;  %v14570_v60 = vcombine.high %v287_v53, %v295_v54  ;;  %v303_v62 = vld [vmem:[#allocation5 + $0x3b0] sm:$0xff] }
 0x168   :  { %2003 = vmatprep.subr.bf16.mxu0 %v14598_v11  ;;  %2046 = vmatprep.subr.bf16.mxu1 %v14600_v12  ;;  %v14474_v11 = vcombine.high %v191_v4, %v199_v5  ;;  %v14476_v12 = vcombine.high %v192_v6, %v200_v7  ;;  %v311_v63 = vld [vmem:[#allocation5 + $0x3f0] sm:$0xff] }
 0x16b   :  { %2004 = vmatpush1.bf16.msra.mxu0 %v14597_v17  ;;  %2047 = vmatpush1.bf16.msra.mxu1 %v14599_v18  ;;  %v14473_v17 = vcombine.low %v191_v4, %v199_v5  ;;  %v14475_v18 = vcombine.low %v192_v6, %v200_v7  ;;  %v14586_v4 = vcombine.high %v303_v62, %v311_v63  ;;  %v319_v6 = vld [vmem:[#allocation5 + $0x430] sm:$0xff] }
 0x16c   :  { %2005 = vmatprep.subr.bf16.mxu0 %v14614_v19  ;;  %2048 = vmatprep.subr.bf16.mxu1 %v14616_v20  ;;  %v14490_v19 = vcombine.high %v207_v13, %v215_v14  ;;  %v14492_v20 = vcombine.high %v208_v15, %v216_v16  ;;  %v327_v7 = vld [vmem:[#allocation5 + $0x470] sm:$0xff] }
 0x16f   :  { %2006 = vmatpush1.bf16.msra.mxu0 %v14613_v25  ;;  %2049 = vmatpush1.bf16.msra.mxu1 %v14615_v26  ;;  %v232_v25 = vld [vmem:[#allocation5 + $0x178] sm:$0xff]  ;;  %v14489_v26 = vcombine.low %v207_v13, %v215_v14  ;;  %v14602_v13 = vcombine.high %v319_v6, %v327_v7 }
 0x170   :  { %2007 = vmatprep.subr.bf16.mxu0 %v14630_v27  ;;  %2050 = vmatprep.subr.bf16.mxu1 %v14632_v28  ;;  %v14491_v27 = vcombine.low %v208_v15, %v216_v16  ;;  %v14506_v28 = vcombine.high %v223_v21, %v231_v22  ;;  %v14508_v29 = vcombine.high %v224_v24, %v232_v25  ;;  %v335_v15 = vld [vmem:[#allocation5 + $0x4b0] sm:$0xff] }
 0x171   :  { %v343_v16 = vld [vmem:[#allocation5 + $0x4f0] sm:$0xff] }
 0x173   :  { %2008 = vmatpush1.bf16.msra.mxu0 %v14629_v33  ;;  %2051 = vmatpush1.bf16.msra.mxu1 %v14631_v10  ;;  %v240_v33 = vld [vmem:[#allocation5 + $0x1b8] sm:$0xff] }
 0x174   :  { %2009 = vmatprep.subr.bf16.mxu0 %v14646_v34  ;;  %2052 = vmatprep.subr.bf16.mxu1 %v14648_v35  ;;  %v248_v10 = vld [vmem:[#allocation5 + $0x1f8] sm:$0xff]  ;;  %v14505_v34 = vcombine.low %v223_v21, %v231_v22  ;;  %v14507_v35 = vcombine.low %v224_v24, %v232_v25  ;;  %v14618_v21 = vcombine.high %v335_v15, %v343_v16  ;;  %v351_v24 = vld [vmem:[#allocation5 + $0x530] sm:$0xff] }
 0x175   :  { %v14524_v37 = vcombine.high %v240_v33, %v248_v10  ;;  %v359_v25 = vld [vmem:[#allocation5 + $0x570] sm:$0xff] }
 0x177   :  { %2010 = vmatpush1.bf16.msra.mxu0 %v14645_v40  ;;  %2053 = vmatpush1.bf16.msra.mxu1 %v14647_v41  ;;  %v256_v40 = vld [vmem:[#allocation5 + $0x238] sm:$0xff] }
 0x178   :  { %2011 = vmatprep.subr.bf16.mxu0 %v14662_v42  ;;  %2054 = vmatprep.subr.bf16.mxu1 %v14664_v56  ;;  %v264_v41 = vld [vmem:[#allocation5 + $0x278] sm:$0xff]  ;;  %v14521_v42 = vcombine.low %v239_v30, %v247_v31  ;;  %v14523_v56 = vcombine.low %v240_v33, %v248_v10  ;;  %v14634_v30 = vcombine.high %v351_v24, %v359_v25  ;;  %v375_v33 = vld [vmem:[#allocation5 + $0x5f0] sm:$0xff] }
 0x179   :  { %v14540_v44 = vcombine.high %v256_v40, %v264_v41  ;;  %v368_v10 = vld [vmem:[#allocation5 + $0x5b8] sm:$0xff] }
 0x17b   :  { %2012 = vmatpush1.bf16.msra.mxu0 %v14661_v47  ;;  %2055 = vmatpush1.bf16.msra.mxu1 %v14663_v48  ;;  %v272_v47 = vld [vmem:[#allocation5 + $0x2b8] sm:$0xff] }
 0x17c   :  { %2013 = vmatprep.subr.bf16.mxu0 %v14678_v49  ;;  %2056 = vmatprep.subr.bf16.mxu1 %v14680_v50  ;;  %v280_v48 = vld [vmem:[#allocation5 + $0x2f8] sm:$0xff]  ;;  %v14537_v49 = vcombine.low %v255_v38, %v263_v39  ;;  %v14539_v50 = vcombine.low %v256_v40, %v264_v41  ;;  %v383_v39 = vld [vmem:[#allocation5 + $0x630] sm:$0xff] }
 0x17d   :  { %v14556_v52 = vcombine.high %v272_v47, %v280_v48  ;;  %v391_v40 = vld [vmem:[#allocation5 + $0x670] sm:$0xff]  ;;  %v384_v41 = vld [vmem:[#allocation5 + $0x638] sm:$0xff] }
 0x17f   :  { %2014 = vmatpush1.bf16.msra.mxu0 %v14677_v55  ;;  %2057 = vmatpush1.bf16.msra.mxu1 %v14679_v57  ;;  %v288_v55 = vld [vmem:[#allocation5 + $0x338] sm:$0xff] }
 0x180   :  { %2015 = vmatprep.subr.bf16.mxu0 %v14694_v58  ;;  %2058 = vmatprep.subr.bf16.mxu1 %v14696_v59  ;;  %v296_v57 = vld [vmem:[#allocation5 + $0x378] sm:$0xff]  ;;  %v14553_v58 = vcombine.low %v271_v45, %v279_v46  ;;  %v14555_v59 = vcombine.low %v272_v47, %v280_v48  ;;  %v399_v46 = vld [vmem:[#allocation5 + $0x6b0] sm:$0xff] }
 0x181   :  { %v14572_v61 = vcombine.high %v288_v55, %v296_v57  ;;  %v407_v47 = vld [vmem:[#allocation5 + $0x6f0] sm:$0xff]  ;;  %v400_v48 = vld [vmem:[#allocation5 + $0x6b8] sm:$0xff] }
 0x183   :  { %2016 = vmatpush1.bf16.msra.mxu0 %v14693_v0  ;;  %2059 = vmatpush1.bf16.msra.mxu1 %v14695_v1  ;;  %v304_v0 = vld [vmem:[#allocation5 + $0x3b8] sm:$0xff] }
 0x184   :  { %2017 = vmatprep.subr.bf16.mxu0 %v14710_v2  ;;  %2060 = vmatprep.subr.bf16.mxu1 %v14712_v3  ;;  %v312_v1 = vld [vmem:[#allocation5 + $0x3f8] sm:$0xff]  ;;  %v14569_v2 = vcombine.low %v287_v53, %v295_v54  ;;  %v14571_v3 = vcombine.low %v288_v55, %v296_v57  ;;  %v415_v54 = vld [vmem:[#allocation5 + $0x730] sm:$0xff] }
 0x185   :  { %v14588_v5 = vcombine.high %v304_v0, %v312_v1  ;;  %v423_v55 = vld [vmem:[#allocation5 + $0x770] sm:$0xff]  ;;  %v416_v57 = vld [vmem:[#allocation5 + $0x738] sm:$0xff] }
 0x187   :  { %2018 = vmatpush1.bf16.msra.mxu0 %v14709_v8  ;;  %2061 = vmatpush1.bf16.msra.mxu1 %v14711_v9  ;;  %v320_v8 = vld [vmem:[#allocation5 + $0x438] sm:$0xff] }
 0x188   :  { %2073 = vmatprep.subr.bf16.mxu0 %v14474_v11  ;;  %2116 = vmatprep.subr.bf16.mxu1 %v14476_v12  ;;  %v328_v9 = vld [vmem:[#allocation5 + $0x478] sm:$0xff]  ;;  %v14585_v11 = vcombine.low %v303_v62, %v311_v63  ;;  %v14587_v12 = vcombine.low %v304_v0, %v312_v1  ;;  %v431_v63 = vld [vmem:[#allocation5 + $0x7b0] sm:$0xff] }
 0x189   :  { %v14604_v14 = vcombine.high %v320_v8, %v328_v9  ;;  %v439_v0 = vld [vmem:[#allocation5 + $0x7f0] sm:$0xff]  ;;  %v432_v1 = vld [vmem:[#allocation5 + $0x7b8] sm:$0xff] }
 0x18a   :  { %2020 = vmatmul.mubr.bf16.vlgmr.msra.gmra.mrb[8].mxu0 %v17279_v23  ;;  %2063 = vmatmul.mubr.bf16.vlgmr.msra.gmra.mrb[8].mxu1 %v17279_v23 }
 0x18b   :  { %2074 = vmatpush1.bf16.msra.mxu0 %v14473_v17  ;;  %2117 = vmatpush1.bf16.msra.mxu1 %v14475_v18  ;;  %v336_v17 = vld [vmem:[#allocation5 + $0x4b8] sm:$0xff] }
 0x18c   :  { %2075 = vmatprep.subr.bf16.mxu0 %v14490_v19  ;;  %2118 = vmatprep.subr.bf16.mxu1 %v14492_v20  ;;  %v344_v18 = vld [vmem:[#allocation5 + $0x4f8] sm:$0xff]  ;;  %v14601_v19 = vcombine.low %v319_v6, %v327_v7  ;;  %v14603_v20 = vcombine.low %v320_v8, %v328_v9  ;;  %v2207_v7 = vld [vmem:[#allocation8] sm:$0xff] }
 0x18d   :  { %2105 = vmatprep.mubr.bf16.mxu0 %v16691_v32  ;;  %2148 = vmatprep.mubr.bf16.mxu1 %v16691_v32  ;;  %v14620_v22 = vcombine.high %v336_v17, %v344_v18  ;;  %v367_v32 = vld [vmem:[#allocation5 + $0x5b0] sm:$0xff]  ;;  %v2208_v9 = vld [vmem:[#allocation8 + $0x8] sm:$0xff] }
 0x18e   :  { %v2211_v8 = vld [vmem:[#allocation8 + $0x20] sm:$0xff] }
 0x18f   :  { %2076 = vmatpush1.bf16.msra.mxu0 %v14489_v26  ;;  %2119 = vmatpush1.bf16.msra.mxu1 %v14491_v27  ;;  %v352_v26 = vld [vmem:[#allocation5 + $0x538] sm:$0xff] }
 0x190   :  { %2077 = vmatprep.subr.bf16.mxu0 %v14506_v28  ;;  %2120 = vmatprep.subr.bf16.mxu1 %v14508_v29  ;;  %v360_v27 = vld [vmem:[#allocation5 + $0x578] sm:$0xff]  ;;  %v14617_v28 = vcombine.low %v335_v15, %v343_v16  ;;  %v14619_v29 = vcombine.low %v336_v17, %v344_v18  ;;  %v2215_v16 = vld [vmem:[#allocation8 + $0x40] sm:$0xff] }
 0x191   :  { %v14636_v31 = vcombine.high %v352_v26, %v360_v27  ;;  %v2219_v17 = vld [vmem:[#allocation8 + $0x60] sm:$0xff]  ;;  %v2216_v18 = vld [vmem:[#allocation8 + $0x48] sm:$0xff] }
 0x193   :  { %2078 = vmatpush1.bf16.msra.mxu0 %v14505_v34  ;;  %2121 = vmatpush1.bf16.msra.mxu1 %v14507_v35  ;;  %v376_v34 = vld [vmem:[#allocation5 + $0x5f8] sm:$0xff]  ;;  %v14633_v35 = vcombine.low %v351_v24, %v359_v25  ;;  %v2223_v25 = vld [vmem:[#allocation8 + $0x80] sm:$0xff] }
 0x194   :  { %2079 = vmatprep.subr.bf16.mxu0 %v14522_v36  ;;  %2122 = vmatprep.subr.bf16.mxu1 %v14524_v37  ;;  %v14635_v36 = vcombine.low %v352_v26, %v360_v27  ;;  %v14650_v37 = vcombine.high %v367_v32, %v375_v33  ;;  %v14652_v38 = vcombine.high %v368_v10, %v376_v34  ;;  %v2227_v26 = vld [vmem:[#allocation8 + $0xa0] sm:$0xff]  ;;  %v2224_v27 = vld [vmem:[#allocation8 + $0x88] sm:$0xff] }
 0x197   :  { %2080 = vmatpush1.bf16.msra.mxu0 %v14521_v42  ;;  %2123 = vmatpush1.bf16.msra.mxu1 %v14523_v56  ;;  %v392_v42 = vld [vmem:[#allocation5 + $0x678] sm:$0xff]  ;;  %v14649_v56 = vcombine.low %v367_v32, %v375_v33  ;;  %v2231_v33 = vld [vmem:[#allocation8 + $0xc0] sm:$0xff] }
 0x198   :  { %2081 = vmatprep.subr.bf16.mxu0 %v14538_v43  ;;  %2124 = vmatprep.subr.bf16.mxu1 %v14540_v44  ;;  %v14651_v43 = vcombine.low %v368_v10, %v376_v34  ;;  %v14666_v44 = vcombine.high %v383_v39, %v391_v40  ;;  %v14668_v45 = vcombine.high %v384_v41, %v392_v42  ;;  %v2235_v10 = vld [vmem:[#allocation8 + $0xe0] sm:$0xff]  ;;  %v2232_v34 = vld [vmem:[#allocation8 + $0xc8] sm:$0xff] }
 0x19b   :  { %2082 = vmatpush1.bf16.msra.mxu0 %v14537_v49  ;;  %2125 = vmatpush1.bf16.msra.mxu1 %v14539_v50  ;;  %v408_v49 = vld [vmem:[#allocation5 + $0x6f8] sm:$0xff]  ;;  %v14665_v50 = vcombine.low %v383_v39, %v391_v40  ;;  %v14742_v39 = vcombine.high %v2231_v33, %v2235_v10  ;;  %v2239_v40 = vld [vmem:[#allocation8 + $0x100] sm:$0xff] }
 0x19c   :  { %2083 = vmatprep.subr.bf16.mxu0 %v14554_v51  ;;  %2126 = vmatprep.subr.bf16.mxu1 %v14556_v52  ;;  %v14667_v51 = vcombine.low %v384_v41, %v392_v42  ;;  %v14682_v52 = vcombine.high %v399_v46, %v407_v47  ;;  %v14684_v53 = vcombine.high %v400_v48, %v408_v49  ;;  %v2243_v41 = vld [vmem:[#allocation8 + $0x120] sm:$0xff]  ;;  %v2240_v42 = vld [vmem:[#allocation8 + $0x108] sm:$0xff] }
 0x19f   :  { %2084 = vmatpush1.bf16.msra.mxu0 %v14553_v58  ;;  %2127 = vmatpush1.bf16.msra.mxu1 %v14555_v59  ;;  %v424_v58 = vld [vmem:[#allocation5 + $0x778] sm:$0xff]  ;;  %v14681_v59 = vcombine.low %v399_v46, %v407_v47  ;;  %v14750_v46 = vcombine.high %v2239_v40, %v2243_v41 }
 0x1a0   :  { %2085 = vmatprep.subr.bf16.mxu0 %v14570_v60  ;;  %2128 = vmatprep.subr.bf16.mxu1 %v14572_v61  ;;  %v14683_v60 = vcombine.low %v400_v48, %v408_v49  ;;  %v14698_v61 = vcombine.high %v415_v54, %v423_v55  ;;  %v14700_v62 = vcombine.high %v416_v57, %v424_v58  ;;  %v2247_v48 = vld [vmem:[#allocation8 + $0x140] sm:$0xff] }
 0x1a1   :  { %v2251_v49 = vld [vmem:[#allocation8 + $0x160] sm:$0xff] }
 0x1a3   :  { %2086 = vmatpush1.bf16.msra.mxu0 %v14569_v2  ;;  %2129 = vmatpush1.bf16.msra.mxu1 %v14571_v3  ;;  %v440_v2 = vld [vmem:[#allocation5 + $0x7f8] sm:$0xff]  ;;  %v14697_v3 = vcombine.low %v415_v54, %v423_v55  ;;  %v17290_v54 = vld [vmem:[#allocation7] sm:$0xff] }
 0x1a4   :  { %2087 = vmatprep.subr.bf16.mxu0 %v14586_v4  ;;  %2130 = vmatprep.subr.bf16.mxu1 %v14588_v5  ;;  %v14699_v4 = vcombine.low %v416_v57, %v424_v58  ;;  %v14714_v5 = vcombine.high %v431_v63, %v439_v0  ;;  %v14716_v6 = vcombine.high %v432_v1, %v440_v2 }
 0x1a7   :  { %2088 = vmatpush1.bf16.msra.mxu0 %v14585_v11  ;;  %2131 = vmatpush1.bf16.msra.mxu1 %v14587_v12  ;;  %v2212_v11 = vld [vmem:[#allocation8 + $0x28] sm:$0xff]  ;;  %v14713_v12 = vcombine.low %v431_v63, %v439_v0  ;;  %v2259_v63 = vld [vmem:[#allocation8 + $0x1a0] sm:$0xff] }
 0x1a8   :  { %2089 = vmatprep.subr.bf16.mxu0 %v14602_v13  ;;  %2132 = vmatprep.subr.bf16.mxu1 %v14604_v14  ;;  %v14715_v13 = vcombine.low %v432_v1, %v440_v2  ;;  %v14718_v14 = vcombine.high %v2207_v7, %v2211_v8  ;;  %v14720_v15 = vcombine.high %v2208_v9, %v2212_v11  ;;  %v2256_v1 = vld [vmem:[#allocation8 + $0x188] sm:$0xff] }
 0x1a9   :  { %v2260_v2 = vld [vmem:[#allocation8 + $0x1a8] sm:$0xff] }
 0x1ab   :  { %2090 = vmatpush1.bf16.msra.mxu0 %v14601_v19  ;;  %2133 = vmatpush1.bf16.msra.mxu1 %v14603_v20  ;;  %v2220_v19 = vld [vmem:[#allocation8 + $0x68] sm:$0xff]  ;;  %v14717_v20 = vcombine.low %v2207_v7, %v2211_v8 }
 0x1ac   :  { %2091 = vmatprep.subr.bf16.mxu0 %v14618_v21  ;;  %2134 = vmatprep.subr.bf16.mxu1 %v14620_v22  ;;  %v14719_v21 = vcombine.low %v2208_v9, %v2212_v11  ;;  %v14726_v22 = vcombine.high %v2215_v16, %v2219_v17  ;;  %v14728_v24 = vcombine.high %v2216_v18, %v2220_v19 }
 0x1ad   :  { %v14768_v11 = vcombine.high %v2256_v1, %v2260_v2 }
 0x1af   :  { %2092 = vmatpush1.bf16.msra.mxu0 %v14617_v28  ;;  %2135 = vmatpush1.bf16.msra.mxu1 %v14619_v29  ;;  %v2228_v28 = vld [vmem:[#allocation8 + $0xa8] sm:$0xff]  ;;  %v14725_v29 = vcombine.low %v2215_v16, %v2219_v17 }
 0x1b0   :  { %2093 = vmatprep.subr.bf16.mxu0 %v14634_v30  ;;  %2136 = vmatprep.subr.bf16.mxu1 %v14636_v31  ;;  %v14727_v30 = vcombine.low %v2216_v18, %v2220_v19  ;;  %v14734_v31 = vcombine.high %v2223_v25, %v2227_v26  ;;  %v14736_v32 = vcombine.high %v2224_v27, %v2228_v28  ;;  %v2264_v17 = vld [vmem:[#allocation8 + $0x1c8] sm:$0xff] }
 0x1b1   :  { %v2268_v18 = vld [vmem:[#allocation8 + $0x1e8] sm:$0xff] }
 0x1b3   :  { %2094 = vmatpush1.bf16.msra.mxu0 %v14633_v35  ;;  %2137 = vmatpush1.bf16.msra.mxu1 %v14635_v36  ;;  %v2236_v35 = vld [vmem:[#allocation8 + $0xe8] sm:$0xff]  ;;  %v445_v36 = vlaneseq }
 0x1b4   :  { %2095 = vmatprep.subr.bf16.mxu0 %v14650_v37  ;;  %2138 = vmatprep.subr.bf16.mxu1 %v14652_v38  ;;  %v14733_v37 = vcombine.low %v2223_v25, %v2227_v26  ;;  %v14735_v38 = vcombine.low %v2224_v27, %v2228_v28  ;;  %v14767_v25 = vcombine.low %v2256_v1, %v2260_v2 }
 0x1b7   :  { %2096 = vmatpush1.bf16.msra.mxu0 %v14649_v56  ;;  %2139 = vmatpush1.bf16.msra.mxu1 %v14651_v43  ;;  %v2244_v56 = vld [vmem:[#allocation8 + $0x128] sm:$0xff]  ;;  %v17285_v43 = vshrl.u32 %v445_v36, 7  ;;  %v2271_v36 = vld [vmem:[#allocation8 + $0x200] sm:$0xff] }
 0x1b8   :  { %2097 = vmatprep.subr.bf16.mxu0 %v14666_v44  ;;  %2140 = vmatprep.subr.bf16.mxu1 %v14668_v45  ;;  %v14741_v44 = vcombine.low %v2231_v33, %v2235_v10  ;;  %v14743_v45 = vcombine.low %v2232_v34, %v2236_v35  ;;  %v14752_v47 = vcombine.high %v2240_v42, %v2244_v56 }
 0x1b9   :  { %v17293_v55 = vsub.s32 2, %v17285_v43  ;;  %v17296_v57 = vsub.s32 1, %v17285_v43  ;;  %v14751_v58 = vcombine.low %v2240_v42, %v2244_v56 }
 0x1bb   :  { %2098 = vmatpush1.bf16.msra.mxu0 %v14665_v50  ;;  %2141 = vmatpush1.bf16.msra.mxu1 %v14667_v51  ;;  %v17288_v50 = vsub.s32 0, %v17285_v43  ;;  %v2248_v51 = vld [vmem:[#allocation8 + $0x148] sm:$0xff] }
 0x1bc   :  { %2099 = vmatprep.subr.bf16.mxu0 %v14682_v52  ;;  %2142 = vmatprep.subr.bf16.mxu1 %v14684_v53  ;;  %v2252_v52 = vld [vmem:[#allocation8 + $0x168] sm:$0xff]  ;;  %v14749_v53 = vcombine.low %v2239_v40, %v2243_v41 }
 0x1bd   :  { %v448_v0 = vrot.slane %v17290_v54, %v17288_v50  ;;  %v14759_v7 = vcombine.low %v2248_v51, %v2252_v52  ;;  %v2272_v40 = vld [vmem:[#allocation8 + $0x208] sm:$0xff] }
 0x1be   :  { %v2276_v41 = vld [vmem:[#allocation8 + $0x228] sm:$0xff] }
 0x1bf   :  { %2100 = vmatpush1.bf16.msra.mxu0 %v14681_v59  ;;  %2143 = vmatpush1.bf16.msra.mxu1 %v14683_v60  ;;  %v17299_v59 = vsub.s32 3, %v17285_v43  ;;  %v14758_v60 = vcombine.high %v2247_v48, %v2251_v49  ;;  %v14783_v1 = vcombine.low %v2272_v40, %v2276_v41 }
 0x1c0   :  { %2101 = vmatprep.subr.bf16.mxu0 %v14698_v61  ;;  %2144 = vmatprep.subr.bf16.mxu1 %v14700_v62  ;;  %v14760_v61 = vcombine.high %v2248_v51, %v2252_v52  ;;  %v2255_v62 = vld [vmem:[#allocation8 + $0x180] sm:$0xff] }
 0x1c1   :  { %v14766_v8 = vcombine.high %v2255_v62, %v2259_v63 }
 0x1c3   :  { %2102 = vmatpush1.bf16.msra.mxu0 %v14697_v3  ;;  %2145 = vmatpush1.bf16.msra.mxu1 %v14699_v4  ;;  %v456_v3 = vrot.slane %v17290_v54, %v17293_v55  ;;  %v452_v4 = vrot.slane %v17290_v54, %v17296_v57 }
 0x1c4   :  { %2103 = vmatprep.subr.bf16.mxu0 %v14714_v5  ;;  %2146 = vmatprep.subr.bf16.mxu1 %v14716_v6  ;;  %v14757_v5 = vcombine.low %v2247_v48, %v2251_v49  ;;  %v460_v6 = vrot.slane %v17290_v54, %v17299_v59  ;;  %v14775_v48 = vcombine.low %v2264_v17, %v2268_v18 }
 0x1c7   :  { %2104 = vmatpush1.bf16.msra.mxu0 %v14713_v12  ;;  %2147 = vmatpush1.bf16.msra.mxu1 %v14715_v13  ;;  %v2263_v12 = vld [vmem:[#allocation8 + $0x1c0] sm:$0xff] }
 0x1c8   :  { %5321 = vmatprep.subr.bf16.mxu0 %v14718_v14  ;;  %5493 = vmatprep.subr.bf16.mxu1 %v14720_v15  ;;  %v2267_v13 = vld [vmem:[#allocation8 + $0x1e0] sm:$0xff] }
 0x1ca   :  { %2106 = vmatmul.mubr.bf16.vlgmr.msra.gmra.mrb[12].mxu0 %v17279_v23  ;;  %2149 = vmatmul.mubr.bf16.vlgmr.msra.gmra.mrb[12].mxu1 %v17279_v23  ;;  %v14744_v23 = vcombine.high %v2232_v34, %v2236_v35  ;;  %v14776_v35 = vcombine.high %v2264_v17, %v2268_v18 }
 0x1cb   :  { %5322 = vmatpush1.bf16.msra.mxu0 %v14717_v20  ;;  %5494 = vmatpush1.bf16.msra.mxu1 %v14719_v21 }
 0x1cc   :  { %5323 = vmatprep.subr.bf16.mxu0 %v14726_v22  ;;  %5495 = vmatprep.subr.bf16.mxu1 %v14728_v24  ;;  %v14765_v24 = vcombine.low %v2255_v62, %v2259_v63  ;;  %v2280_v62 = vld [vmem:[#allocation8 + $0x248] sm:$0xff] }
 0x1cd   :  { %v2284_v63 = vld [vmem:[#allocation8 + $0x268] sm:$0xff] }
 0x1cf   :  { %5324 = vmatpush1.bf16.msra.mxu0 %v14725_v29  ;;  %5496 = vmatpush1.bf16.msra.mxu1 %v14727_v30 }
 0x1d0   :  { %5325 = vmatprep.subr.bf16.mxu0 %v14734_v31  ;;  %5497 = vmatprep.subr.bf16.mxu1 %v14736_v32  ;;  %v14774_v31 = vcombine.high %v2263_v12, %v2267_v13 }
 0x1d3   :  { %5326 = vmatpush1.bf16.msra.mxu0 %v14733_v37  ;;  %5498 = vmatpush1.bf16.msra.mxu1 %v14735_v38 }
 0x1d4   :  { %5327 = vmatprep.subr.bf16.mxu0 %v14742_v39  ;;  %5499 = vmatprep.subr.bf16.mxu1 %v14744_v23  ;;  %v2275_v23 = vld [vmem:[#allocation8 + $0x220] sm:$0xff] }
 0x1d5   :  { %v14782_v52 = vcombine.high %v2271_v36, %v2275_v23 }
 0x1d7   :  { %5328 = vmatpush1.bf16.msra.mxu0 %v14741_v44  ;;  %5500 = vmatpush1.bf16.msra.mxu1 %v14743_v45  ;;  %v14773_v45 = vcombine.low %v2263_v12, %v2267_v13  ;;  %v2295_v13 = vld [vmem:[#allocation8 + $0x2c0] sm:$0xff] }
 0x1d8   :  { %5329 = vmatprep.subr.bf16.mxu0 %v14750_v46  ;;  %5501 = vmatprep.subr.bf16.mxu1 %v14752_v47 }
 0x1db   :  { %5330 = vmatpush1.bf16.msra.mxu0 %v14749_v53  ;;  %5502 = vmatpush1.bf16.msra.mxu1 %v14751_v58  ;;  %v14784_v53 = vcombine.high %v2272_v40, %v2276_v41  ;;  %v2279_v58 = vld [vmem:[#allocation8 + $0x240] sm:$0xff] }
 0x1dc   :  { %5331 = vmatprep.subr.bf16.mxu0 %v14758_v60  ;;  %5503 = vmatprep.subr.bf16.mxu1 %v14760_v61  ;;  %v2283_v60 = vld [vmem:[#allocation8 + $0x260] sm:$0xff] }
 0x1dd   :  { %v1849_v9 = vpop.f32.mrb[0].mxu0  ;;  %v1892_v15 = vpop.f32.mrb[0].mxu1  ;;  %v14790_v2 = vcombine.high %v2279_v58, %v2283_v60 }
 0x1de   :  { %v1850_v14 = vadd.f32 %v1849_v9, %v448_v0  ;;  %v1851_v16 = vpop.f32.mrb[1].mxu0  ;;  %v1893_v19 = vadd.f32 %v1892_v15, %v456_v3  ;;  %v1894_v21 = vpop.f32.mrb[1].mxu1  ;;  %v14791_v9 = vcombine.low %v2280_v62, %v2284_v63  ;;  %v2296_v15 = vld [vmem:[#allocation8 + $0x2c8] sm:$0xff] }
 0x1df   :  { %v1852_v20 = vadd.f32 %v1851_v16, %v452_v4  ;;  %v1853_v22 = vpop.f32.mrb[2].mxu0  ;;  %5332 = vmatpush1.bf16.msra.mxu0 %v14757_v5  ;;  %v1895_v27 = vadd.f32 %v1894_v21, %v460_v6  ;;  %v1896_v29 = vpop.f32.mrb[2].mxu1  ;;  %5504 = vmatpush1.bf16.msra.mxu1 %v14759_v7  ;;  %v2291_v5 = vld [vmem:[#allocation8 + $0x2a0] sm:$0xff]  ;;  %v2292_v7 = vld [vmem:[#allocation8 + $0x2a8] sm:$0xff] }
 0x1e0   :  { %v2159_v26 = vmax.f32 %v1850_v14, 0.0  ;;  %v1854_v28 = vadd.f32 %v1853_v22, %v448_v0  ;;  %v1855_v30 = vpop.f32.mrb[3].mxu0  ;;  %5333 = vmatprep.subr.bf16.mxu0 %v14766_v8  ;;  %v2161_v32 = vmax.f32 %v1893_v19, 0.0  ;;  %v1897_v33 = vadd.f32 %v1896_v29, %v456_v3  ;;  %v1898_v34 = vpop.f32.mrb[3].mxu1  ;;  %5505 = vmatprep.subr.bf16.mxu1 %v14768_v11  ;;  %v2299_v14 = vld [vmem:[#allocation8 + $0x2e0] sm:$0xff]  ;;  %v2300_v16 = vld [vmem:[#allocation8 + $0x2e8] sm:$0xff] }
 0x1e1   :  { %v1856_v10 = vadd.f32 %v1855_v30, %v452_v4  ;;  %v2162_v37 = vmax.f32 %v1895_v27, 0.0  ;;  %v1899_v39 = vadd.f32 %v1898_v34, %v460_v6  ;;  %v2160_v42 = vmax.f32 %v1852_v20, 0.0  ;;  %v2287_v4 = vld [vmem:[#allocation8 + $0x280] sm:$0xff]  ;;  %v2288_v6 = vld [vmem:[#allocation8 + $0x288] sm:$0xff] }
 0x1e2   :  { %v2175_v38 = vmax.f32 %v1854_v28, 0.0  ;;  %v2177_v56 = vmax.f32 %v1897_v33, 0.0  ;;  %v14781_v0 = vcombine.low %v2271_v36, %v2275_v23  ;;  %v14792_v3 = vcombine.high %v2280_v62, %v2284_v63  ;;  %v2303_v21 = vld [vmem:[#allocation8 + $0x300] sm:$0xff]  ;;  %v2316_v33 = vld [vmem:[#allocation8 + $0x368] sm:$0xff] }
 0x1e3   :  { %v2176_v44 = vmax.f32 %v1856_v10, 0.0  ;;  %5334 = vmatpush1.bf16.msra.mxu0 %v14765_v24  ;;  %v2178_v47 = vmax.f32 %v1899_v39, 0.0  ;;  %5506 = vmatpush1.bf16.msra.mxu1 %v14767_v25  ;;  %v14789_v8 = vcombine.low %v2279_v58, %v2283_v60  ;;  %v14798_v11 = vcombine.high %v2287_v4, %v2291_v5  ;;  %v2307_v22 = vld [vmem:[#allocation8 + $0x320] sm:$0xff]  ;;  %v2304_v24 = vld [vmem:[#allocation8 + $0x308] sm:$0xff] }
 0x1e4   :  { %v17309_v46 = vpack.c.bf16 %v2175_v38, %v2159_v26  ;;  %5335 = vmatprep.subr.bf16.mxu0 %v14774_v31  ;;  %v17311_v49 = vpack.c.bf16 %v2177_v56, %v2161_v32  ;;  %5507 = vmatprep.subr.bf16.mxu1 %v14776_v35  ;;  %v14800_v12 = vcombine.high %v2288_v6, %v2292_v7  ;;  %v2308_v25 = vld [vmem:[#allocation8 + $0x328] sm:$0xff]  ;;  %v2311_v30 = vld [vmem:[#allocation8 + $0x340] sm:$0xff] }
 0x1e5   :  { %v17313_v51 = vpack.c.bf16 %v2176_v44, %v2160_v42  ;;  %v17315_v61 = vpack.c.bf16 %v2178_v47, %v2162_v37  ;;  %v14797_v17 = vcombine.low %v2287_v4, %v2291_v5  ;;  %v14799_v18 = vcombine.low %v2288_v6, %v2292_v7  ;;  %v2315_v31 = vld [vmem:[#allocation8 + $0x360] sm:$0xff]  ;;  %v2312_v32 = vld [vmem:[#allocation8 + $0x348] sm:$0xff] }
 0x1e6   :  { %v14806_v19 = vcombine.high %v2295_v13, %v2299_v14  ;;  %v14808_v20 = vcombine.high %v2296_v15, %v2300_v16  ;;  %v14805_v26 = vcombine.low %v2295_v13, %v2299_v14  ;;  %v14807_v27 = vcombine.low %v2296_v15, %v2300_v16  ;;  %v2319_v37 = vld [vmem:[#allocation8 + $0x380] sm:$0xff]  ;;  %v2320_v39 = vld [vmem:[#allocation8 + $0x388] sm:$0xff] }
 0x1e7   :  { %5336 = vmatpush1.bf16.msra.mxu0 %v14773_v45  ;;  %5353 = vmatprep.mubr.bf16.mxu0 %v17313_v51  ;;  %v14814_v28 = vcombine.high %v2303_v21, %v2307_v22  ;;  %v14816_v29 = vcombine.high %v2304_v24, %v2308_v25  ;;  %v14813_v10 = vcombine.low %v2303_v21, %v2307_v22  ;;  %v2323_v38 = vld [vmem:[#allocation8 + $0x3a0] sm:$0xff]  ;;  %v2324_v23 = vld [vmem:[#allocation8 + $0x3a8] sm:$0xff] }
 0x1e8   :  { %5508 = vmatpush1.bf16.msra.mxu1 %v14775_v48  ;;  %5525 = vmatprep.mubr.bf16.mxu1 %v17313_v51  ;;  %v14815_v34 = vcombine.low %v2304_v24, %v2308_v25  ;;  %v14822_v35 = vcombine.high %v2311_v30, %v2315_v31  ;;  %v14824_v36 = vcombine.high %v2312_v32, %v2316_v33  ;;  %v2327_v44 = vld [vmem:[#allocation8 + $0x3c0] sm:$0xff]  ;;  %v2328_v47 = vld [vmem:[#allocation8 + $0x3c8] sm:$0xff] }
 0x1e9   :  { %5337 = vmatprep.subr.bf16.mxu0 %v14782_v52  ;;  %5509 = vmatprep.subr.bf16.mxu1 %v14784_v53  ;;  %v14821_v40 = vcombine.low %v2311_v30, %v2315_v31  ;;  %v14823_v41 = vcombine.low %v2312_v32, %v2316_v33  ;;  %v14830_v42 = vcombine.high %v2319_v37, %v2323_v38  ;;  %v2331_v45 = vld [vmem:[#allocation8 + $0x3e0] sm:$0xff]  ;;  %v2332_v48 = vld [vmem:[#allocation8 + $0x3e8] sm:$0xff] }
 0x1ea   :  { %v14832_v56 = vcombine.high %v2320_v39, %v2324_v23  ;;  %v14829_v52 = vcombine.low %v2319_v37, %v2323_v38  ;;  %v14831_v53 = vcombine.low %v2320_v39, %v2324_v23  ;;  %v14838_v58 = vcombine.high %v2327_v44, %v2331_v45  ;;  %v2335_v62 = vld [vmem:[#allocation8 + $0x400] sm:$0xff] }
 0x1eb   :  { %5338 = vmatpush1.bf16.msra.mxu0 %v14781_v0  ;;  %v14840_v60 = vcombine.high %v2328_v47, %v2332_v48  ;;  %v2339_v63 = vld [vmem:[#allocation8 + $0x420] sm:$0xff]  ;;  %v2336_v0 = vld [vmem:[#allocation8 + $0x408] sm:$0xff] }
 0x1ec   :  { %5510 = vmatpush1.bf16.msra.mxu1 %v14783_v1  ;;  %5339 = vmatprep.subr.bf16.mxu0 %v14790_v2  ;;  %v2340_v1 = vld [vmem:[#allocation8 + $0x428] sm:$0xff]  ;;  %v14837_v2 = vcombine.low %v2327_v44, %v2331_v45  ;;  %v14846_v4 = vcombine.high %v2335_v62, %v2339_v63  ;;  %v2343_v6 = vld [vmem:[#allocation8 + $0x440] sm:$0xff]  ;;  %v17327_v44 = vsub.s32 6, %v17285_v43  ;;  %v17330_v45 = vsub.s32 5, %v17285_v43 }
 0x1ed   :  { %5511 = vmatprep.subr.bf16.mxu1 %v14792_v3  ;;  %v14839_v3 = vcombine.low %v2328_v47, %v2332_v48  ;;  %v14848_v5 = vcombine.high %v2336_v0, %v2340_v1  ;;  %v2347_v7 = vld [vmem:[#allocation8 + $0x460] sm:$0xff]  ;;  %v17333_v48 = vsub.s32 7, %v17285_v43 }
 0x1ee   :  { %v14854_v13 = vcombine.high %v2343_v6, %v2347_v7  ;;  %v2351_v14 = vld [vmem:[#allocation8 + $0x480] sm:$0xff] }
 0x1ef   :  { %5340 = vmatpush1.bf16.msra.mxu0 %v14789_v8  ;;  %v14845_v8 = vcombine.low %v2335_v62, %v2339_v63  ;;  %v2355_v15 = vld [vmem:[#allocation8 + $0x4a0] sm:$0xff]  ;;  %v2384_v63 = vld [vmem:[#allocation8 + $0x588] sm:$0xff] }
 0x1f0   :  { %5512 = vmatpush1.bf16.msra.mxu1 %v14791_v9  ;;  %5341 = vmatprep.subr.bf16.mxu0 %v14798_v11  ;;  %v2344_v9 = vld [vmem:[#allocation8 + $0x448] sm:$0xff]  ;;  %v14862_v21 = vcombine.high %v2351_v14, %v2355_v15  ;;  %v2359_v24 = vld [vmem:[#allocation8 + $0x4c0] sm:$0xff] }
 0x1f1   :  { %5513 = vmatprep.subr.bf16.mxu1 %v14800_v12  ;;  %v2348_v11 = vld [vmem:[#allocation8 + $0x468] sm:$0xff]  ;;  %v14847_v12 = vcombine.low %v2336_v0, %v2340_v1  ;;  %v2363_v25 = vld [vmem:[#allocation8 + $0x4e0] sm:$0xff]  ;;  %v472_v1 = vrot.slane %v17290_v54, %v17327_v44 }
 0x1f2   :  { %v14856_v16 = vcombine.high %v2344_v9, %v2348_v11  ;;  %v14870_v30 = vcombine.high %v2359_v24, %v2363_v25  ;;  %v2367_v32 = vld [vmem:[#allocation8 + $0x500] sm:$0xff]  ;;  %v2388_v0 = vld [vmem:[#allocation8 + $0x5a8] sm:$0xff] }
 0x1f3   :  { %5342 = vmatpush1.bf16.msra.mxu0 %v14797_v17  ;;  %v2352_v17 = vld [vmem:[#allocation8 + $0x488] sm:$0xff]  ;;  %v2371_v33 = vld [vmem:[#allocation8 + $0x520] sm:$0xff] }
 0x1f4   :  { %5514 = vmatpush1.bf16.msra.mxu1 %v14799_v18  ;;  %5343 = vmatprep.subr.bf16.mxu0 %v14806_v19  ;;  %v2356_v18 = vld [vmem:[#allocation8 + $0x4a8] sm:$0xff]  ;;  %v14853_v19 = vcombine.low %v2343_v6, %v2347_v7  ;;  %v14878_v37 = vcombine.high %v2367_v32, %v2371_v33  ;;  %v2375_v39 = vld [vmem:[#allocation8 + $0x540] sm:$0xff]  ;;  %v14896_v7 = vcombine.high %v2384_v63, %v2388_v0 }
 0x1f5   :  { %5515 = vmatprep.subr.bf16.mxu1 %v14808_v20  ;;  %v14855_v20 = vcombine.low %v2344_v9, %v2348_v11  ;;  %v14864_v22 = vcombine.high %v2352_v17, %v2356_v18  ;;  %v2379_v23 = vld [vmem:[#allocation8 + $0x560] sm:$0xff] }
 0x1f6   :  { %v2395_v9 = vld [vmem:[#allocation8 + $0x5e0] sm:$0xff] }
 0x1f7   :  { %5344 = vmatpush1.bf16.msra.mxu0 %v14805_v26  ;;  %v2360_v26 = vld [vmem:[#allocation8 + $0x4c8] sm:$0xff] }
 0x1f8   :  { %5516 = vmatpush1.bf16.msra.mxu1 %v14807_v27  ;;  %5345 = vmatprep.subr.bf16.mxu0 %v14814_v28  ;;  %v2364_v27 = vld [vmem:[#allocation8 + $0x4e8] sm:$0xff]  ;;  %v14861_v28 = vcombine.low %v2351_v14, %v2355_v15 }
 0x1f9   :  { %5517 = vmatprep.subr.bf16.mxu1 %v14816_v29  ;;  %v14863_v29 = vcombine.low %v2352_v17, %v2356_v18  ;;  %v14872_v31 = vcombine.high %v2360_v26, %v2364_v27  ;;  %v2392_v14 = vld [vmem:[#allocation8 + $0x5c8] sm:$0xff] }
 0x1fa   :  { %v2396_v15 = vld [vmem:[#allocation8 + $0x5e8] sm:$0xff] }
 0x1fb   :  { %5346 = vmatpush1.bf16.msra.mxu0 %v14813_v10  ;;  %v2368_v10 = vld [vmem:[#allocation8 + $0x508] sm:$0xff] }
 0x1fc   :  { %5518 = vmatpush1.bf16.msra.mxu1 %v14815_v34  ;;  %5347 = vmatprep.subr.bf16.mxu0 %v14822_v35  ;;  %v2372_v34 = vld [vmem:[#allocation8 + $0x528] sm:$0xff]  ;;  %v14869_v35 = vcombine.low %v2359_v24, %v2363_v25 }
 0x1fd   :  { %5519 = vmatprep.subr.bf16.mxu1 %v14824_v36  ;;  %v14871_v36 = vcombine.low %v2360_v26, %v2364_v27  ;;  %v14880_v38 = vcombine.high %v2368_v10, %v2372_v34  ;;  %v14879_v47 = vcombine.low %v2368_v10, %v2372_v34  ;;  %v2403_v10 = vld [vmem:[#allocation8 + $0x620] sm:$0xff] }
 0x1ff   :  { %5348 = vmatpush1.bf16.msra.mxu0 %v14821_v40  ;;  %v17324_v40 = vsub.s32 4, %v17285_v43  ;;  %v476_v43 = vrot.slane %v17290_v54, %v17333_v48 }
 0x200   :  { %5520 = vmatpush1.bf16.msra.mxu1 %v14823_v41  ;;  %5349 = vmatprep.subr.bf16.mxu0 %v14830_v42  ;;  %v2376_v41 = vld [vmem:[#allocation8 + $0x548] sm:$0xff] }
 0x201   :  { %5521 = vmatprep.subr.bf16.mxu1 %v14832_v56  ;;  %v2380_v42 = vld [vmem:[#allocation8 + $0x568] sm:$0xff]  ;;  %v14877_v56 = vcombine.low %v2367_v32, %v2371_v33  ;;  %v464_v62 = vrot.slane %v17290_v54, %v17324_v40  ;;  %v14904_v32 = vcombine.high %v2392_v14, %v2396_v15  ;;  %v2399_v33 = vld [vmem:[#allocation8 + $0x600] sm:$0xff] }
 0x203   :  { %5350 = vmatpush1.bf16.msra.mxu0 %v14829_v52  ;;  %v14886_v52 = vcombine.high %v2375_v39, %v2379_v23 }
 0x204   :  { %5522 = vmatpush1.bf16.msra.mxu1 %v14831_v53  ;;  %5351 = vmatprep.subr.bf16.mxu0 %v14838_v58  ;;  %v14888_v53 = vcombine.high %v2376_v41, %v2380_v42  ;;  %v2383_v58 = vld [vmem:[#allocation8 + $0x580] sm:$0xff] }
 0x205   :  { %5523 = vmatprep.subr.bf16.mxu1 %v14840_v60  ;;  %v2387_v60 = vld [vmem:[#allocation8 + $0x5a0] sm:$0xff] }
 0x207   :  { %5352 = vmatpush1.bf16.msra.mxu0 %v14837_v2  ;;  %v468_v2 = vrot.slane %v17290_v54, %v17330_v45  ;;  %v14895_v54 = vcombine.low %v2384_v63, %v2388_v0  ;;  %v2407_v63 = vld [vmem:[#allocation8 + $0x640] sm:$0xff] }
 0x208   :  { %5524 = vmatpush1.bf16.msra.mxu1 %v14839_v3  ;;  %5364 = vmatprep.subr.bf16.mxu0 %v14846_v4  ;;  %v14885_v3 = vcombine.low %v2375_v39, %v2379_v23  ;;  %v14887_v4 = vcombine.low %v2376_v41, %v2380_v42  ;;  %v2411_v0 = vld [vmem:[#allocation8 + $0x660] sm:$0xff] }
 0x209   :  { %5536 = vmatprep.subr.bf16.mxu1 %v14848_v5  ;;  %v14894_v5 = vcombine.high %v2383_v58, %v2387_v60 }
 0x20a   :  { %5354 = vmatmul.mubr.bf16.vlgmr.msra.gmra.mrb[16].mxu0 %v17309_v46 }
 0x20b   :  { %5526 = vmatmul.mubr.bf16.vlgmr.msra.gmra.mrb[16].mxu1 %v17309_v46  ;;  %5365 = vmatpush1.bf16.msra.mxu0 %v14845_v8  ;;  %v2391_v8 = vld [vmem:[#allocation8 + $0x5c0] sm:$0xff] }
 0x20c   :  { %5396 = vmatprep.mubr.bf16.mxu0 %v17315_v61  ;;  %5537 = vmatpush1.bf16.msra.mxu1 %v14847_v12  ;;  %v14902_v27 = vcombine.high %v2391_v8, %v2395_v9  ;;  %v14901_v42 = vcombine.low %v2391_v8, %v2395_v9  ;;  %v2419_v8 = vld [vmem:[#allocation8 + $0x6a0] sm:$0xff]  ;;  %v2416_v9 = vld [vmem:[#allocation8 + $0x688] sm:$0xff] }
 0x20d   :  { %5568 = vmatprep.mubr.bf16.mxu1 %v17315_v61  ;;  %5366 = vmatprep.subr.bf16.mxu0 %v14854_v13 }
 0x20e   :  { %5538 = vmatprep.subr.bf16.mxu1 %v14856_v16 }
 0x20f   :  { %5367 = vmatpush1.bf16.msra.mxu0 %v14853_v19 }
 0x210   :  { %5539 = vmatpush1.bf16.msra.mxu1 %v14855_v20  ;;  %5368 = vmatprep.subr.bf16.mxu0 %v14862_v21  ;;  %v14893_v20 = vcombine.low %v2383_v58, %v2387_v60 }
 0x211   :  { %5540 = vmatprep.subr.bf16.mxu1 %v14864_v22 }
 0x213   :  { %5369 = vmatpush1.bf16.msra.mxu0 %v14861_v28 }
 0x214   :  { %5541 = vmatpush1.bf16.msra.mxu1 %v14863_v29  ;;  %5370 = vmatprep.subr.bf16.mxu0 %v14870_v30 }
 0x215   :  { %5542 = vmatprep.subr.bf16.mxu1 %v14872_v31 }
 0x217   :  { %5371 = vmatpush1.bf16.msra.mxu0 %v14869_v35 }
 0x218   :  { %5543 = vmatpush1.bf16.msra.mxu1 %v14871_v36  ;;  %5372 = vmatprep.subr.bf16.mxu0 %v14878_v37  ;;  %v2400_v37 = vld [vmem:[#allocation8 + $0x608] sm:$0xff] }
 0x219   :  { %5544 = vmatprep.subr.bf16.mxu1 %v14880_v38  ;;  %v2404_v38 = vld [vmem:[#allocation8 + $0x628] sm:$0xff] }
 0x21b   :  { %5373 = vmatpush1.bf16.msra.mxu0 %v14877_v56 }
 0x21c   :  { %5545 = vmatpush1.bf16.msra.mxu1 %v14879_v47  ;;  %5374 = vmatprep.subr.bf16.mxu0 %v14886_v52  ;;  %v14903_v52 = vcombine.low %v2392_v14, %v2396_v15 }
 0x21d   :  { %v1935_v6 = vpop.f32.mrb[4].mxu0  ;;  %5546 = vmatprep.subr.bf16.mxu1 %v14888_v53  ;;  %v1978_v12 = vpop.f32.mrb[4].mxu1  ;;  %v14910_v53 = vcombine.high %v2399_v33, %v2403_v10 }
 0x21e   :  { %v1936_v11 = vadd.f32 %v1935_v6, %v464_v62  ;;  %v1937_v13 = vpop.f32.mrb[5].mxu0  ;;  %v1979_v16 = vadd.f32 %v1978_v12, %v472_v1  ;;  %v1980_v18 = vpop.f32.mrb[5].mxu1  ;;  %v14917_v12 = vcombine.low %v2407_v63, %v2411_v0 }
 0x21f   :  { %v1938_v17 = vadd.f32 %v1937_v13, %v468_v2  ;;  %v1939_v19 = vpop.f32.mrb[6].mxu0  ;;  %5375 = vmatpush1.bf16.msra.mxu0 %v14885_v3  ;;  %v1981_v22 = vadd.f32 %v1980_v18, %v476_v43  ;;  %v1982_v25 = vpop.f32.mrb[6].mxu1  ;;  %v2412_v3 = vld [vmem:[#allocation8 + $0x668] sm:$0xff] }
 0x220   :  { %v2163_v21 = vmax.f32 %v1936_v11, 0.0  ;;  %v1940_v24 = vadd.f32 %v1939_v19, %v464_v62  ;;  %5547 = vmatpush1.bf16.msra.mxu1 %v14887_v4  ;;  %v1941_v26 = vpop.f32.mrb[7].mxu0  ;;  %5376 = vmatprep.subr.bf16.mxu0 %v14894_v5  ;;  %v2165_v28 = vmax.f32 %v1979_v16, 0.0  ;;  %v1983_v29 = vadd.f32 %v1982_v25, %v472_v1  ;;  %v1984_v31 = vpop.f32.mrb[7].mxu1  ;;  %v2420_v11 = vld [vmem:[#allocation8 + $0x6a8] sm:$0xff]  ;;  %v2423_v16 = vld [vmem:[#allocation8 + $0x6c0] sm:$0xff] }
 0x221   :  { %v1942_v30 = vadd.f32 %v1941_v26, %v468_v2  ;;  %5548 = vmatprep.subr.bf16.mxu1 %v14896_v7  ;;  %v2166_v34 = vmax.f32 %v1981_v22, 0.0  ;;  %v1985_v36 = vadd.f32 %v1984_v31, %v476_v43  ;;  %v2164_v39 = vmax.f32 %v1938_v17, 0.0  ;;  %v2408_v2 = vld [vmem:[#allocation8 + $0x648] sm:$0xff]  ;;  %v2415_v7 = vld [vmem:[#allocation8 + $0x680] sm:$0xff] }
 0x222   :  { %v2179_v35 = vmax.f32 %v1940_v24, 0.0  ;;  %v2181_v23 = vmax.f32 %v1983_v29, 0.0  ;;  %v14912_v62 = vcombine.high %v2400_v37, %v2404_v38  ;;  %v14909_v43 = vcombine.low %v2399_v33, %v2403_v10  ;;  %v2427_v17 = vld [vmem:[#allocation8 + $0x6e0] sm:$0xff]  ;;  %v2424_v18 = vld [vmem:[#allocation8 + $0x6c8] sm:$0xff] }
 0x223   :  { %v2180_v41 = vmax.f32 %v1942_v30, 0.0  ;;  %5377 = vmatpush1.bf16.msra.mxu0 %v14893_v20  ;;  %v2182_v47 = vmax.f32 %v1985_v36, 0.0  ;;  %v14911_v4 = vcombine.low %v2400_v37, %v2404_v38  ;;  %v14918_v5 = vcombine.high %v2407_v63, %v2411_v0  ;;  %v2428_v19 = vld [vmem:[#allocation8 + $0x6e8] sm:$0xff]  ;;  %v2431_v24 = vld [vmem:[#allocation8 + $0x700] sm:$0xff] }
 0x224   :  { %v17343_v56 = vpack.c.bf16 %v2179_v35, %v2163_v21  ;;  %5549 = vmatpush1.bf16.msra.mxu1 %v14895_v54  ;;  %5378 = vmatprep.subr.bf16.mxu0 %v14902_v27  ;;  %v17345_v58 = vpack.c.bf16 %v2181_v23, %v2165_v28  ;;  %v14920_v6 = vcombine.high %v2408_v2, %v2412_v3  ;;  %v2435_v25 = vld [vmem:[#allocation8 + $0x720] sm:$0xff]  ;;  %v2432_v26 = vld [vmem:[#allocation8 + $0x708] sm:$0xff] }
 0x225   :  { %v17347_v60 = vpack.c.bf16 %v2180_v41, %v2164_v39  ;;  %5550 = vmatprep.subr.bf16.mxu1 %v14904_v32  ;;  %v17349_v1 = vpack.c.bf16 %v2182_v47, %v2166_v34  ;;  %v14919_v13 = vcombine.low %v2408_v2, %v2412_v3  ;;  %v14926_v14 = vcombine.high %v2415_v7, %v2419_v8  ;;  %v2436_v27 = vld [vmem:[#allocation8 + $0x728] sm:$0xff]  ;;  %v2439_v32 = vld [vmem:[#allocation8 + $0x740] sm:$0xff] }
 0x226   :  { %v14928_v15 = vcombine.high %v2416_v9, %v2420_v11  ;;  %v14925_v20 = vcombine.low %v2415_v7, %v2419_v8  ;;  %v14927_v54 = vcombine.low %v2416_v9, %v2420_v11  ;;  %v14934_v21 = vcombine.high %v2423_v16, %v2427_v17  ;;  %v2443_v33 = vld [vmem:[#allocation8 + $0x760] sm:$0xff]  ;;  %v2440_v10 = vld [vmem:[#allocation8 + $0x748] sm:$0xff] }
 0x227   :  { %5379 = vmatpush1.bf16.msra.mxu0 %v14901_v42  ;;  %v14936_v22 = vcombine.high %v2424_v18, %v2428_v19  ;;  %v14933_v28 = vcombine.low %v2423_v16, %v2427_v17  ;;  %v14935_v29 = vcombine.low %v2424_v18, %v2428_v19  ;;  %v14942_v30 = vcombine.high %v2431_v24, %v2435_v25  ;;  %v2444_v34 = vld [vmem:[#allocation8 + $0x768] sm:$0xff]  ;;  %v2447_v39 = vld [vmem:[#allocation8 + $0x780] sm:$0xff] }
 0x228   :  { %5551 = vmatpush1.bf16.msra.mxu1 %v14903_v52  ;;  %5380 = vmatprep.subr.bf16.mxu0 %v14910_v53  ;;  %v14944_v31 = vcombine.high %v2432_v26, %v2436_v27  ;;  %v14941_v35 = vcombine.low %v2431_v24, %v2435_v25  ;;  %v14943_v36 = vcombine.low %v2432_v26, %v2436_v27  ;;  %v2451_v23 = vld [vmem:[#allocation8 + $0x7a0] sm:$0xff]  ;;  %v2448_v41 = vld [vmem:[#allocation8 + $0x788] sm:$0xff] }
 0x229   :  { %5552 = vmatprep.subr.bf16.mxu1 %v14912_v62  ;;  %v14950_v37 = vcombine.high %v2439_v32, %v2443_v33  ;;  %v14952_v38 = vcombine.high %v2440_v10, %v2444_v34  ;;  %v2452_v42 = vld [vmem:[#allocation8 + $0x7a8] sm:$0xff]  ;;  %v14949_v47 = vcombine.low %v2439_v32, %v2443_v33  ;;  %v14951_v52 = vcombine.low %v2440_v10, %v2444_v34  ;;  %v2455_v63 = vld [vmem:[#allocation8 + $0x7c0] sm:$0xff] }
 0x22a   :  { %v14958_v53 = vcombine.high %v2447_v39, %v2451_v23  ;;  %v14960_v62 = vcombine.high %v2448_v41, %v2452_v42  ;;  %v2459_v0 = vld [vmem:[#allocation8 + $0x7e0] sm:$0xff]  ;;  %v2456_v2 = vld [vmem:[#allocation8 + $0x7c8] sm:$0xff] }
 0x22b   :  { %5381 = vmatpush1.bf16.msra.mxu0 %v14909_v43  ;;  %v2460_v3 = vld [vmem:[#allocation8 + $0x7e8] sm:$0xff]  ;;  %v14957_v43 = vcombine.low %v2447_v39, %v2451_v23  ;;  %v2463_v7 = vld [vmem:[#allocation8 + $0x800] sm:$0xff] }
 0x22c   :  { %5553 = vmatpush1.bf16.msra.mxu1 %v14911_v4  ;;  %5382 = vmatprep.subr.bf16.mxu0 %v14918_v5  ;;  %v14959_v4 = vcombine.low %v2448_v41, %v2452_v42  ;;  %v14966_v5 = vcombine.high %v2455_v63, %v2459_v0  ;;  %v2467_v8 = vld [vmem:[#allocation8 + $0x820] sm:$0xff]  ;;  %v2464_v9 = vld [vmem:[#allocation8 + $0x808] sm:$0xff] }
 0x22d   :  { %5554 = vmatprep.subr.bf16.mxu1 %v14920_v6  ;;  %v14968_v6 = vcombine.high %v2456_v2, %v2460_v3  ;;  %v2468_v11 = vld [vmem:[#allocation8 + $0x828] sm:$0xff]  ;;  %v2471_v16 = vld [vmem:[#allocation8 + $0x840] sm:$0xff]  ;;  %v14973_v18 = vcombine.low %v2463_v7, %v2467_v8 }
 0x22e   :  { %v2475_v17 = vld [vmem:[#allocation8 + $0x860] sm:$0xff]  ;;  %v2472_v19 = vld [vmem:[#allocation8 + $0x848] sm:$0xff] }
 0x22f   :  { %5383 = vmatpush1.bf16.msra.mxu0 %v14917_v12  ;;  %v14965_v12 = vcombine.low %v2455_v63, %v2459_v0  ;;  %v2483_v24 = vld [vmem:[#allocation8 + $0x8a0] sm:$0xff]  ;;  %v2480_v26 = vld [vmem:[#allocation8 + $0x888] sm:$0xff] }
 0x230   :  { %5555 = vmatpush1.bf16.msra.mxu1 %v14919_v13  ;;  %5384 = vmatprep.subr.bf16.mxu0 %v14926_v14  ;;  %v14967_v13 = vcombine.low %v2456_v2, %v2460_v3  ;;  %v14974_v14 = vcombine.high %v2463_v7, %v2467_v8  ;;  %v2484_v27 = vld [vmem:[#allocation8 + $0x8a8] sm:$0xff]  ;;  %v2487_v32 = vld [vmem:[#allocation8 + $0x8c0] sm:$0xff] }
 0x231   :  { %5556 = vmatprep.subr.bf16.mxu1 %v14928_v15  ;;  %v14976_v15 = vcombine.high %v2464_v9, %v2468_v11  ;;  %v2491_v33 = vld [vmem:[#allocation8 + $0x8e0] sm:$0xff]  ;;  %v2488_v10 = vld [vmem:[#allocation8 + $0x8c8] sm:$0xff] }
 0x232   :  { %v2492_v34 = vld [vmem:[#allocation8 + $0x8e8] sm:$0xff]  ;;  %v2495_v39 = vld [vmem:[#allocation8 + $0x900] sm:$0xff] }
 0x233   :  { %5385 = vmatpush1.bf16.msra.mxu0 %v14925_v20  ;;  %v2476_v20 = vld [vmem:[#allocation8 + $0x868] sm:$0xff]  ;;  %v2499_v23 = vld [vmem:[#allocation8 + $0x920] sm:$0xff] }
 0x234   :  { %5557 = vmatpush1.bf16.msra.mxu1 %v14927_v54  ;;  %5386 = vmatprep.subr.bf16.mxu0 %v14934_v21  ;;  %v14975_v54 = vcombine.low %v2464_v9, %v2468_v11  ;;  %v14982_v21 = vcombine.high %v2471_v16, %v2475_v17  ;;  %v14984_v25 = vcombine.high %v2472_v19, %v2476_v20  ;;  %v2496_v41 = vld [vmem:[#allocation8 + $0x908] sm:$0xff]  ;;  %v2503_v63 = vld [vmem:[#allocation8 + $0x940] sm:$0xff] }
 0x235   :  { %5558 = vmatprep.subr.bf16.mxu1 %v14936_v22  ;;  %v2479_v22 = vld [vmem:[#allocation8 + $0x880] sm:$0xff]  ;;  %v2500_v42 = vld [vmem:[#allocation8 + $0x928] sm:$0xff] }
 0x236   :  { %v2507_v0 = vld [vmem:[#allocation8 + $0x960] sm:$0xff]  ;;  %v2504_v2 = vld [vmem:[#allocation8 + $0x948] sm:$0xff] }
 0x237   :  { %5387 = vmatpush1.bf16.msra.mxu0 %v14933_v28  ;;  %v14981_v28 = vcombine.low %v2471_v16, %v2475_v17  ;;  %v2508_v3 = vld [vmem:[#allocation8 + $0x968] sm:$0xff]  ;;  %v2511_v8 = vld [vmem:[#allocation8 + $0x980] sm:$0xff]  ;;  %v15013_v16 = vcombine.low %v2503_v63, %v2507_v0 }
 0x238   :  { %5559 = vmatpush1.bf16.msra.mxu1 %v14935_v29  ;;  %5388 = vmatprep.subr.bf16.mxu0 %v14942_v30  ;;  %v14983_v29 = vcombine.low %v2472_v19, %v2476_v20  ;;  %v14990_v30 = vcombine.high %v2479_v22, %v2483_v24  ;;  %v15016_v7 = vcombine.high %v2504_v2, %v2508_v3  ;;  %v2515_v9 = vld [vmem:[#allocation8 + $0x9a0] sm:$0xff] }
 0x239   :  { %5560 = vmatprep.subr.bf16.mxu1 %v14944_v31  ;;  %v14992_v31 = vcombine.high %v2480_v26, %v2484_v27  ;;  %v15022_v19 = vcombine.high %v2511_v8, %v2515_v9 }
 0x23b   :  { %5389 = vmatpush1.bf16.msra.mxu0 %v14941_v35  ;;  %v14989_v35 = vcombine.low %v2479_v22, %v2483_v24  ;;  %v2523_v22 = vld [vmem:[#allocation8 + $0x9e0] sm:$0xff] }
 0x23c   :  { %5561 = vmatpush1.bf16.msra.mxu1 %v14943_v36  ;;  %5390 = vmatprep.subr.bf16.mxu0 %v14950_v37  ;;  %v14991_v36 = vcombine.low %v2480_v26, %v2484_v27  ;;  %v14998_v37 = vcombine.high %v2487_v32, %v2491_v33  ;;  %v2520_v27 = vld [vmem:[#allocation8 + $0x9c8] sm:$0xff] }
 0x23d   :  { %5562 = vmatprep.subr.bf16.mxu1 %v14952_v38  ;;  %v15000_v38 = vcombine.high %v2488_v10, %v2492_v34 }
 0x23f   :  { %5391 = vmatpush1.bf16.msra.mxu0 %v14949_v47  ;;  %v14997_v47 = vcombine.low %v2487_v32, %v2491_v33  ;;  %v15021_v33 = vcombine.low %v2511_v8, %v2515_v9 }
 0x240   :  { %5563 = vmatpush1.bf16.msra.mxu1 %v14951_v52  ;;  %5392 = vmatprep.subr.bf16.mxu0 %v14958_v53  ;;  %v14999_v52 = vcombine.low %v2488_v10, %v2492_v34  ;;  %v15006_v53 = vcombine.high %v2495_v39, %v2499_v23 }
 0x241   :  { %5564 = vmatprep.subr.bf16.mxu1 %v14960_v62  ;;  %v15008_v62 = vcombine.high %v2496_v41, %v2500_v42 }
 0x243   :  { %5393 = vmatpush1.bf16.msra.mxu0 %v14957_v43  ;;  %v15005_v43 = vcombine.low %v2495_v39, %v2499_v23 }
 0x244   :  { %5565 = vmatpush1.bf16.msra.mxu1 %v14959_v4  ;;  %5394 = vmatprep.subr.bf16.mxu0 %v14966_v5  ;;  %v17355_v4 = vld [vmem:[#allocation7 + $0x8] sm:$0xff]  ;;  %v15007_v5 = vcombine.low %v2496_v41, %v2500_v42 }
 0x245   :  { %5566 = vmatprep.subr.bf16.mxu1 %v14968_v6  ;;  %v15014_v6 = vcombine.high %v2503_v63, %v2507_v0  ;;  %v480_v11 = vrot.slane %v17355_v4, %v17288_v50  ;;  %v492_v17 = vrot.slane %v17355_v4, %v17299_v59 }
 0x247   :  { %5395 = vmatpush1.bf16.msra.mxu0 %v14965_v12  ;;  %v2512_v12 = vld [vmem:[#allocation8 + $0x988] sm:$0xff] }
 0x248   :  { %5567 = vmatpush1.bf16.msra.mxu1 %v14967_v13  ;;  %5407 = vmatprep.subr.bf16.mxu0 %v14974_v14  ;;  %v2516_v13 = vld [vmem:[#allocation8 + $0x9a8] sm:$0xff]  ;;  %v488_v14 = vrot.slane %v17355_v4, %v17293_v55 }
 0x249   :  { %5579 = vmatprep.subr.bf16.mxu1 %v14976_v15  ;;  %v484_v15 = vrot.slane %v17355_v4, %v17296_v57  ;;  %v15023_v10 = vcombine.low %v2512_v12, %v2516_v13 }
 0x24a   :  { %5397 = vmatmul.mubr.bf16.vlgmr.msra.gmra.mrb[16].mxu0 %v17311_v49 }
 0x24b   :  { %5569 = vmatmul.mubr.bf16.vlgmr.msra.gmra.mrb[16].mxu1 %v17311_v49  ;;  %5408 = vmatpush1.bf16.msra.mxu0 %v14973_v18  ;;  %v15015_v18 = vcombine.low %v2504_v2, %v2508_v3  ;;  %v2528_v3 = vld [vmem:[#allocation8 + $0xa08] sm:$0xff] }
 0x24c   :  { %5439 = vmatprep.mubr.bf16.mxu0 %v17347_v60  ;;  %5580 = vmatpush1.bf16.msra.mxu1 %v14975_v54  ;;  %v15024_v54 = vcombine.high %v2512_v12, %v2516_v13 }
 0x24d   :  { %5611 = vmatprep.mubr.bf16.mxu1 %v17347_v60  ;;  %5409 = vmatprep.subr.bf16.mxu0 %v14982_v21  ;;  %v2519_v21 = vld [vmem:[#allocation8 + $0x9c0] sm:$0xff] }
 0x24e   :  { %5581 = vmatprep.subr.bf16.mxu1 %v14984_v25  ;;  %v15030_v39 = vcombine.high %v2519_v21, %v2523_v22  ;;  %v15029_v8 = vcombine.low %v2519_v21, %v2523_v22 }
 0x24f   :  { %5410 = vmatpush1.bf16.msra.mxu0 %v14981_v28  ;;  %v2524_v28 = vld [vmem:[#allocation8 + $0x9e8] sm:$0xff] }
 0x250   :  { %5582 = vmatpush1.bf16.msra.mxu1 %v14983_v29  ;;  %5411 = vmatprep.subr.bf16.mxu0 %v14990_v30  ;;  %v15031_v12 = vcombine.low %v2520_v27, %v2524_v28 }
 0x251   :  { %5583 = vmatprep.subr.bf16.mxu1 %v14992_v31 }
 0x253   :  { %5412 = vmatpush1.bf16.msra.mxu0 %v14989_v35 }
 0x254   :  { %5584 = vmatpush1.bf16.msra.mxu1 %v14991_v36  ;;  %5413 = vmatprep.subr.bf16.mxu0 %v14998_v37 }
 0x255   :  { %5585 = vmatprep.subr.bf16.mxu1 %v15000_v38 }
 0x257   :  { %5414 = vmatpush1.bf16.msra.mxu0 %v14997_v47 }
 0x258   :  { %5586 = vmatpush1.bf16.msra.mxu1 %v14999_v52  ;;  %5415 = vmatprep.subr.bf16.mxu0 %v15006_v53  ;;  %v15032_v52 = vcombine.high %v2520_v27, %v2524_v28  ;;  %v2527_v53 = vld [vmem:[#allocation8 + $0xa00] sm:$0xff]  ;;  %v2544_v28 = vld [vmem:[#allocation8 + $0xa88] sm:$0xff] }
 0x259   :  { %5587 = vmatprep.subr.bf16.mxu1 %v15008_v62  ;;  %v2531_v62 = vld [vmem:[#allocation8 + $0xa20] sm:$0xff] }
 0x25a   :  { %v15038_v13 = vcombine.high %v2527_v53, %v2531_v62  ;;  %v15037_v21 = vcombine.low %v2527_v53, %v2531_v62  ;;  %v2547_v27 = vld [vmem:[#allocation8 + $0xaa0] sm:$0xff] }
 0x25b   :  { %5416 = vmatpush1.bf16.msra.mxu0 %v15005_v43  ;;  %v2532_v43 = vld [vmem:[#allocation8 + $0xa28] sm:$0xff] }
 0x25c   :  { %5588 = vmatpush1.bf16.msra.mxu1 %v15007_v5  ;;  %5417 = vmatprep.subr.bf16.mxu0 %v15014_v6  ;;  %v15039_v22 = vcombine.low %v2528_v3, %v2532_v43 }
 0x25d   :  { %v2021_v20 = vpop.f32.mrb[8].mxu0  ;;  %5589 = vmatprep.subr.bf16.mxu1 %v15016_v7  ;;  %v2064_v25 = vpop.f32.mrb[8].mxu1 }
 0x25e   :  { %v2022_v24 = vadd.f32 %v2021_v20, %v480_v11  ;;  %v2023_v26 = vpop.f32.mrb[9].mxu0  ;;  %v2065_v29 = vadd.f32 %v2064_v25, %v488_v14  ;;  %v2066_v31 = vpop.f32.mrb[9].mxu1  ;;  %v2536_v20 = vld [vmem:[#allocation8 + $0xa48] sm:$0xff] }
 0x25f   :  { %v2024_v30 = vadd.f32 %v2023_v26, %v484_v15  ;;  %v2025_v32 = vpop.f32.mrb[10].mxu0  ;;  %5418 = vmatpush1.bf16.msra.mxu0 %v15013_v16  ;;  %v2067_v35 = vadd.f32 %v2066_v31, %v492_v17  ;;  %v2068_v37 = vpop.f32.mrb[10].mxu1  ;;  %v15040_v16 = vcombine.high %v2528_v3, %v2532_v43  ;;  %v2543_v26 = vld [vmem:[#allocation8 + $0xa80] sm:$0xff]  ;;  %v2568_v43 = vld [vmem:[#allocation8 + $0xb48] sm:$0xff] }
 0x260   :  { %v2167_v34 = vmax.f32 %v2022_v24, 0.0  ;;  %v2026_v36 = vadd.f32 %v2025_v32, %v480_v11  ;;  %5590 = vmatpush1.bf16.msra.mxu1 %v15015_v18  ;;  %v2027_v38 = vpop.f32.mrb[11].mxu0  ;;  %5419 = vmatprep.subr.bf16.mxu0 %v15022_v19  ;;  %v2169_v23 = vmax.f32 %v2065_v29, 0.0  ;;  %v2069_v41 = vadd.f32 %v2068_v37, %v488_v14  ;;  %v2070_v47 = vpop.f32.mrb[11].mxu1  ;;  %v2539_v18 = vld [vmem:[#allocation8 + $0xa60] sm:$0xff]  ;;  %v2548_v29 = vld [vmem:[#allocation8 + $0xaa8] sm:$0xff] }
 0x261   :  { %v2028_v42 = vadd.f32 %v2027_v38, %v484_v15  ;;  %5591 = vmatprep.subr.bf16.mxu1 %v15024_v54  ;;  %v2170_v63 = vmax.f32 %v2067_v35, 0.0  ;;  %v2071_v2 = vadd.f32 %v2070_v47, %v492_v17  ;;  %v2168_v5 = vmax.f32 %v2024_v30, 0.0  ;;  %v2535_v17 = vld [vmem:[#allocation8 + $0xa40] sm:$0xff]  ;;  %v2540_v54 = vld [vmem:[#allocation8 + $0xa68] sm:$0xff] }
 0x262   :  { %v2183_v0 = vmax.f32 %v2026_v36, 0.0  ;;  %v2185_v6 = vmax.f32 %v2069_v41, 0.0  ;;  %v15046_v24 = vcombine.high %v2535_v17, %v2539_v18  ;;  %v15048_v25 = vcombine.high %v2536_v20, %v2540_v54  ;;  %v2552_v35 = vld [vmem:[#allocation8 + $0xac8] sm:$0xff]  ;;  %v2559_v41 = vld [vmem:[#allocation8 + $0xb00] sm:$0xff] }
 0x263   :  { %v2184_v7 = vmax.f32 %v2028_v42, 0.0  ;;  %5420 = vmatpush1.bf16.msra.mxu0 %v15021_v33  ;;  %v2186_v11 = vmax.f32 %v2071_v2, 0.0  ;;  %v15045_v30 = vcombine.low %v2535_v17, %v2539_v18  ;;  %v15047_v31 = vcombine.low %v2536_v20, %v2540_v54  ;;  %v2556_v36 = vld [vmem:[#allocation8 + $0xae8] sm:$0xff]  ;;  %v2563_v42 = vld [vmem:[#allocation8 + $0xb20] sm:$0xff] }
 0x264   :  { %v17365_v9 = vpack.c.bf16 %v2183_v0, %v2167_v34  ;;  %5592 = vmatpush1.bf16.msra.mxu1 %v15023_v10  ;;  %5421 = vmatprep.subr.bf16.mxu0 %v15030_v39  ;;  %v17367_v14 = vpack.c.bf16 %v2185_v6, %v2169_v23  ;;  %v15054_v32 = vcombine.high %v2543_v26, %v2547_v27  ;;  %v2551_v10 = vld [vmem:[#allocation8 + $0xac0] sm:$0xff]  ;;  %v2560_v47 = vld [vmem:[#allocation8 + $0xb08] sm:$0xff] }
 0x265   :  { %v17369_v15 = vpack.c.bf16 %v2184_v7, %v2168_v5  ;;  %5593 = vmatprep.subr.bf16.mxu1 %v15032_v52  ;;  %v17371_v19 = vpack.c.bf16 %v2186_v11, %v2170_v63  ;;  %v15056_v33 = vcombine.high %v2544_v28, %v2548_v29  ;;  %v2555_v34 = vld [vmem:[#allocation8 + $0xae0] sm:$0xff]  ;;  %v15053_v37 = vcombine.low %v2543_v26, %v2547_v27  ;;  %v2564_v52 = vld [vmem:[#allocation8 + $0xb28] sm:$0xff] }
 0x266   :  { %v15055_v38 = vcombine.low %v2544_v28, %v2548_v29  ;;  %v15062_v39 = vcombine.high %v2551_v10, %v2555_v34  ;;  %v15064_v23 = vcombine.high %v2552_v35, %v2556_v36  ;;  %v15061_v53 = vcombine.low %v2551_v10, %v2555_v34  ;;  %v2567_v2 = vld [vmem:[#allocation8 + $0xb40] sm:$0xff]  ;;  %v2572_v5 = vld [vmem:[#allocation8 + $0xb68] sm:$0xff] }
 0x267   :  { %5422 = vmatpush1.bf16.msra.mxu0 %v15029_v8  ;;  %v15063_v62 = vcombine.low %v2552_v35, %v2556_v36  ;;  %v15070_v63 = vcombine.high %v2559_v41, %v2563_v42  ;;  %v15072_v0 = vcombine.high %v2560_v47, %v2564_v52  ;;  %v2571_v3 = vld [vmem:[#allocation8 + $0xb60] sm:$0xff]  ;;  %v15069_v6 = vcombine.low %v2559_v41, %v2563_v42  ;;  %v2580_v17 = vld [vmem:[#allocation8 + $0xba8] sm:$0xff] }
 0x268   :  { %5594 = vmatpush1.bf16.msra.mxu1 %v15031_v12  ;;  %5423 = vmatprep.subr.bf16.mxu0 %v15038_v13  ;;  %v15071_v7 = vcombine.low %v2560_v47, %v2564_v52  ;;  %v15078_v8 = vcombine.high %v2567_v2, %v2571_v3  ;;  %v15080_v11 = vcombine.high %v2568_v43, %v2572_v5  ;;  %v2575_v12 = vld [vmem:[#allocation8 + $0xb80] sm:$0xff]  ;;  %v2588_v26 = vld [vmem:[#allocation8 + $0xbe8] sm:$0xff] }
 0x269   :  { %5595 = vmatprep.subr.bf16.mxu1 %v15040_v16  ;;  %v2579_v13 = vld [vmem:[#allocation8 + $0xba0] sm:$0xff]  ;;  %v2576_v16 = vld [vmem:[#allocation8 + $0xb88] sm:$0xff]  ;;  %v15077_v18 = vcombine.low %v2567_v2, %v2571_v3  ;;  %v15079_v20 = vcombine.low %v2568_v43, %v2572_v5 }
 0x26a   :  { %v15086_v54 = vcombine.high %v2575_v12, %v2579_v13  ;;  %v15085_v27 = vcombine.low %v2575_v12, %v2579_v13  ;;  %v15087_v28 = vcombine.low %v2576_v16, %v2580_v17  ;;  %v2596_v10 = vld [vmem:[#allocation8 + $0xc28] sm:$0xff] }
 0x26b   :  { %5424 = vmatpush1.bf16.msra.mxu0 %v15037_v21  ;;  %v15088_v21 = vcombine.high %v2576_v16, %v2580_v17  ;;  %v2600_v41 = vld [vmem:[#allocation8 + $0xc48] sm:$0xff] }
 0x26c   :  { %5596 = vmatpush1.bf16.msra.mxu1 %v15039_v22  ;;  %5425 = vmatprep.subr.bf16.mxu0 %v15046_v24  ;;  %v2583_v22 = vld [vmem:[#allocation8 + $0xbc0] sm:$0xff]  ;;  %v2604_v42 = vld [vmem:[#allocation8 + $0xc68] sm:$0xff] }
 0x26d   :  { %5597 = vmatprep.subr.bf16.mxu1 %v15048_v25  ;;  %v2587_v24 = vld [vmem:[#allocation8 + $0xbe0] sm:$0xff]  ;;  %v2584_v25 = vld [vmem:[#allocation8 + $0xbc8] sm:$0xff]  ;;  %v15111_v43 = vcombine.low %v2600_v41, %v2604_v42 }
 0x26e   :  { %v15094_v29 = vcombine.high %v2583_v22, %v2587_v24  ;;  %v15093_v34 = vcombine.low %v2583_v22, %v2587_v24  ;;  %v15095_v35 = vcombine.low %v2584_v25, %v2588_v26  ;;  %v2612_v2 = vld [vmem:[#allocation8 + $0xca8] sm:$0xff] }
 0x26f   :  { %5426 = vmatpush1.bf16.msra.mxu0 %v15045_v30  ;;  %v15096_v30 = vcombine.high %v2584_v25, %v2588_v26  ;;  %v2620_v12 = vld [vmem:[#allocation8 + $0xce8] sm:$0xff] }
 0x270   :  { %5598 = vmatpush1.bf16.msra.mxu1 %v15047_v31  ;;  %5427 = vmatprep.subr.bf16.mxu0 %v15054_v32  ;;  %v2591_v31 = vld [vmem:[#allocation8 + $0xc00] sm:$0xff]  ;;  %v2628_v22 = vld [vmem:[#allocation8 + $0xd28] sm:$0xff] }
 0x271   :  { %5599 = vmatprep.subr.bf16.mxu1 %v15056_v33  ;;  %v2595_v32 = vld [vmem:[#allocation8 + $0xc20] sm:$0xff]  ;;  %v2592_v33 = vld [vmem:[#allocation8 + $0xc08] sm:$0xff] }
 0x272   :  { %v15102_v36 = vcombine.high %v2591_v31, %v2595_v32  ;;  %v15103_v47 = vcombine.low %v2592_v33, %v2596_v10 }
 0x273   :  { %5428 = vmatpush1.bf16.msra.mxu0 %v15053_v37  ;;  %v15104_v37 = vcombine.high %v2592_v33, %v2596_v10 }
 0x274   :  { %5600 = vmatpush1.bf16.msra.mxu1 %v15055_v38  ;;  %5429 = vmatprep.subr.bf16.mxu0 %v15062_v39  ;;  %v2599_v38 = vld [vmem:[#allocation8 + $0xc40] sm:$0xff] }
 0x275   :  { %5601 = vmatprep.subr.bf16.mxu1 %v15064_v23  ;;  %v2603_v39 = vld [vmem:[#allocation8 + $0xc60] sm:$0xff]  ;;  %v15101_v23 = vcombine.low %v2591_v31, %v2595_v32  ;;  %v2636_v31 = vld [vmem:[#allocation8 + $0xd68] sm:$0xff] }
 0x276   :  { %v15110_v52 = vcombine.high %v2599_v38, %v2603_v39  ;;  %v15109_v3 = vcombine.low %v2599_v38, %v2603_v39  ;;  %v2640_v38 = vld [vmem:[#allocation8 + $0xd88] sm:$0xff] }
 0x277   :  { %5430 = vmatpush1.bf16.msra.mxu0 %v15061_v53  ;;  %v2607_v53 = vld [vmem:[#allocation8 + $0xc80] sm:$0xff]  ;;  %v2644_v39 = vld [vmem:[#allocation8 + $0xda8] sm:$0xff] }
 0x278   :  { %5602 = vmatpush1.bf16.msra.mxu1 %v15063_v62  ;;  %5431 = vmatprep.subr.bf16.mxu0 %v15070_v63  ;;  %v2611_v62 = vld [vmem:[#allocation8 + $0xca0] sm:$0xff]  ;;  %v15112_v63 = vcombine.high %v2600_v41, %v2604_v42  ;;  %v500_v41 = vrot.slane %v17355_v4, %v17330_v45 }
 0x279   :  { %5603 = vmatprep.subr.bf16.mxu1 %v15072_v0  ;;  %v2608_v0 = vld [vmem:[#allocation8 + $0xc88] sm:$0xff]  ;;  %v15118_v5 = vcombine.high %v2607_v53, %v2611_v62  ;;  %v15117_v13 = vcombine.low %v2607_v53, %v2611_v62 }
 0x27a   :  { %v15119_v16 = vcombine.low %v2608_v0, %v2612_v2 }
 0x27b   :  { %5432 = vmatpush1.bf16.msra.mxu0 %v15069_v6  ;;  %v15120_v6 = vcombine.high %v2608_v0, %v2612_v2  ;;  %v2647_v0 = vld [vmem:[#allocation8 + $0xdc0] sm:$0xff] }
 0x27c   :  { %5604 = vmatpush1.bf16.msra.mxu1 %v15071_v7  ;;  %5433 = vmatprep.subr.bf16.mxu0 %v15078_v8  ;;  %v2615_v7 = vld [vmem:[#allocation8 + $0xcc0] sm:$0xff] }
 0x27d   :  { %5605 = vmatprep.subr.bf16.mxu1 %v15080_v11  ;;  %v2619_v8 = vld [vmem:[#allocation8 + $0xce0] sm:$0xff]  ;;  %v2616_v11 = vld [vmem:[#allocation8 + $0xcc8] sm:$0xff] }
 0x27e   :  { %v15126_v17 = vcombine.high %v2615_v7, %v2619_v8  ;;  %v15125_v24 = vcombine.low %v2615_v7, %v2619_v8  ;;  %v15127_v25 = vcombine.low %v2616_v11, %v2620_v12  ;;  %v2651_v2 = vld [vmem:[#allocation8 + $0xde0] sm:$0xff]  ;;  %v2652_v7 = vld [vmem:[#allocation8 + $0xde8] sm:$0xff] }
 0x27f   :  { %5434 = vmatpush1.bf16.msra.mxu0 %v15077_v18  ;;  %v15128_v18 = vcombine.high %v2616_v11, %v2620_v12 }
 0x280   :  { %5606 = vmatpush1.bf16.msra.mxu1 %v15079_v20  ;;  %5435 = vmatprep.subr.bf16.mxu0 %v15086_v54  ;;  %v2623_v20 = vld [vmem:[#allocation8 + $0xd00] sm:$0xff] }
 0x281   :  { %5607 = vmatprep.subr.bf16.mxu1 %v15088_v21  ;;  %v2627_v54 = vld [vmem:[#allocation8 + $0xd20] sm:$0xff]  ;;  %v2624_v21 = vld [vmem:[#allocation8 + $0xd08] sm:$0xff] }
 0x282   :  { %v15134_v26 = vcombine.high %v2623_v20, %v2627_v54  ;;  %v15133_v32 = vcombine.low %v2623_v20, %v2627_v54  ;;  %v15135_v33 = vcombine.low %v2624_v21, %v2628_v22 }
 0x283   :  { %5436 = vmatpush1.bf16.msra.mxu0 %v15085_v27  ;;  %v15136_v27 = vcombine.high %v2624_v21, %v2628_v22  ;;  %v15158_v22 = vcombine.high %v2647_v0, %v2651_v2 }
 0x284   :  { %5608 = vmatpush1.bf16.msra.mxu1 %v15087_v28  ;;  %5437 = vmatprep.subr.bf16.mxu0 %v15094_v29  ;;  %v2631_v28 = vld [vmem:[#allocation8 + $0xd40] sm:$0xff] }
 0x285   :  { %5609 = vmatprep.subr.bf16.mxu1 %v15096_v30  ;;  %v2635_v29 = vld [vmem:[#allocation8 + $0xd60] sm:$0xff]  ;;  %v2632_v30 = vld [vmem:[#allocation8 + $0xd48] sm:$0xff] }
 0x286   :  { %v15142_v10 = vcombine.high %v2631_v28, %v2635_v29  ;;  %v15141_v42 = vcombine.low %v2631_v28, %v2635_v29  ;;  %v2655_v29 = vld [vmem:[#allocation8 + $0xe00] sm:$0xff] }
 0x287   :  { %5438 = vmatpush1.bf16.msra.mxu0 %v15093_v34  ;;  %v15144_v34 = vcombine.high %v2632_v30, %v2636_v31 }
 0x288   :  { %5610 = vmatpush1.bf16.msra.mxu1 %v15095_v35  ;;  %5450 = vmatprep.subr.bf16.mxu0 %v15102_v36  ;;  %v2639_v35 = vld [vmem:[#allocation8 + $0xd80] sm:$0xff] }
 0x289   :  { %5622 = vmatprep.subr.bf16.mxu1 %v15104_v37  ;;  %v2643_v36 = vld [vmem:[#allocation8 + $0xda0] sm:$0xff]  ;;  %v496_v37 = vrot.slane %v17355_v4, %v17324_v40 }
 0x28a   :  { %5440 = vmatmul.mubr.bf16.vlgmr.msra.gmra.mrb[16].mxu0 %v17343_v56  ;;  %v15150_v53 = vcombine.high %v2639_v35, %v2643_v36 }
 0x28b   :  { %5612 = vmatmul.mubr.bf16.vlgmr.msra.gmra.mrb[16].mxu1 %v17343_v56  ;;  %5451 = vmatpush1.bf16.msra.mxu0 %v15101_v23  ;;  %v504_v23 = vrot.slane %v17355_v4, %v17327_v44 }
 0x28c   :  { %5482 = vmatprep.mubr.bf16.mxu0 %v17349_v1  ;;  %5623 = vmatpush1.bf16.msra.mxu1 %v15103_v47  ;;  %v508_v47 = vrot.slane %v17355_v4, %v17333_v48  ;;  %v15151_v4 = vcombine.low %v2640_v38, %v2644_v39 }
 0x28d   :  { %5654 = vmatprep.mubr.bf16.mxu1 %v17349_v1  ;;  %5452 = vmatprep.subr.bf16.mxu0 %v15110_v52  ;;  %v15143_v52 = vcombine.low %v2632_v30, %v2636_v31  ;;  %v2659_v30 = vld [vmem:[#allocation8 + $0xe20] sm:$0xff] }
 0x28e   :  { %5624 = vmatprep.subr.bf16.mxu1 %v15112_v63  ;;  %v15152_v63 = vcombine.high %v2640_v38, %v2644_v39  ;;  %v15157_v38 = vcombine.low %v2647_v0, %v2651_v2  ;;  %v15165_v0 = vcombine.low %v2655_v29, %v2659_v30 }
 0x28f   :  { %5453 = vmatpush1.bf16.msra.mxu0 %v15109_v3 }
 0x290   :  { %5625 = vmatpush1.bf16.msra.mxu1 %v15111_v43  ;;  %5454 = vmatprep.subr.bf16.mxu0 %v15118_v5 }
 0x291   :  { %5626 = vmatprep.subr.bf16.mxu1 %v15120_v6  ;;  %v2648_v6 = vld [vmem:[#allocation8 + $0xdc8] sm:$0xff] }
 0x292   :  { %v15160_v28 = vcombine.high %v2648_v6, %v2652_v7 }
 0x293   :  { %5455 = vmatpush1.bf16.msra.mxu0 %v15117_v13 }
 0x294   :  { %5627 = vmatpush1.bf16.msra.mxu1 %v15119_v16  ;;  %5456 = vmatprep.subr.bf16.mxu0 %v15126_v17  ;;  %v15149_v16 = vcombine.low %v2639_v35, %v2643_v36 }
 0x295   :  { %5628 = vmatprep.subr.bf16.mxu1 %v15128_v18 }
 0x297   :  { %5457 = vmatpush1.bf16.msra.mxu0 %v15125_v24 }
 0x298   :  { %5629 = vmatpush1.bf16.msra.mxu1 %v15127_v25  ;;  %5458 = vmatprep.subr.bf16.mxu0 %v15134_v26 }
 0x299   :  { %5630 = vmatprep.subr.bf16.mxu1 %v15136_v27 }
 0x29b   :  { %5459 = vmatpush1.bf16.msra.mxu0 %v15133_v32 }
 0x29c   :  { %5631 = vmatpush1.bf16.msra.mxu1 %v15135_v33  ;;  %5460 = vmatprep.subr.bf16.mxu0 %v15142_v10  ;;  %v2656_v10 = vld [vmem:[#allocation8 + $0xe08] sm:$0xff] }
 0x29d   :  { %v2107_v62 = vpop.f32.mrb[12].mxu0  ;;  %5632 = vmatprep.subr.bf16.mxu1 %v15144_v34  ;;  %v2150_v43 = vpop.f32.mrb[12].mxu1  ;;  %v2660_v34 = vld [vmem:[#allocation8 + $0xe28] sm:$0xff] }
 0x29e   :  { %v2108_v3 = vadd.f32 %v2107_v62, %v496_v37  ;;  %v2109_v5 = vpop.f32.mrb[13].mxu0  ;;  %v2151_v8 = vadd.f32 %v2150_v43, %v504_v23  ;;  %v2152_v12 = vpop.f32.mrb[13].mxu1  ;;  %v2663_v62 = vld [vmem:[#allocation8 + $0xe40] sm:$0xff]  ;;  %v2664_v43 = vld [vmem:[#allocation8 + $0xe48] sm:$0xff]  ;;  %v15167_v2 = vcombine.low %v2656_v10, %v2660_v34 }
 0x29f   :  { %v2110_v11 = vadd.f32 %v2109_v5, %v500_v41  ;;  %v2111_v13 = vpop.f32.mrb[14].mxu0  ;;  %5461 = vmatpush1.bf16.msra.mxu0 %v15141_v42  ;;  %v2153_v18 = vadd.f32 %v2152_v12, %v508_v47  ;;  %v2154_v54 = vpop.f32.mrb[14].mxu1  ;;  %v2668_v5 = vld [vmem:[#allocation8 + $0xe68] sm:$0xff] }
 0x2a0   :  { %v2171_v17 = vmax.f32 %v2108_v3, 0.0  ;;  %v2112_v20 = vadd.f32 %v2111_v13, %v496_v37  ;;  %5633 = vmatpush1.bf16.msra.mxu1 %v15143_v52  ;;  %v2113_v21 = vpop.f32.mrb[15].mxu0  ;;  %5462 = vmatprep.subr.bf16.mxu0 %v15150_v53  ;;  %v2173_v24 = vmax.f32 %v2151_v8, 0.0  ;;  %v2155_v25 = vadd.f32 %v2154_v54, %v504_v23  ;;  %v2156_v27 = vpop.f32.mrb[15].mxu1  ;;  %v2672_v12 = vld [vmem:[#allocation8 + $0xe88] sm:$0xff]  ;;  %v2683_v54 = vld [vmem:[#allocation8 + $0xee0] sm:$0xff] }
 0x2a1   :  { %v2114_v26 = vadd.f32 %v2113_v21, %v500_v41  ;;  %5634 = vmatprep.subr.bf16.mxu1 %v15152_v63  ;;  %v2174_v31 = vmax.f32 %v2153_v18, 0.0  ;;  %v2157_v33 = vadd.f32 %v2156_v27, %v508_v47  ;;  %v2172_v35 = vmax.f32 %v2110_v11, 0.0  ;;  %v2667_v63 = vld [vmem:[#allocation8 + $0xe60] sm:$0xff]  ;;  %v2676_v13 = vld [vmem:[#allocation8 + $0xea8] sm:$0xff] }
 0x2a2   :  { %v2187_v32 = vmax.f32 %v2112_v20, 0.0  ;;  %v2189_v36 = vmax.f32 %v2155_v25, 0.0  ;;  %v15159_v23 = vcombine.low %v2648_v6, %v2652_v7  ;;  %v15166_v41 = vcombine.high %v2655_v29, %v2659_v30  ;;  %v2671_v7 = vld [vmem:[#allocation8 + $0xe80] sm:$0xff]  ;;  %v2680_v21 = vld [vmem:[#allocation8 + $0xec8] sm:$0xff] }
 0x2a3   :  { %v2188_v37 = vmax.f32 %v2114_v26, 0.0  ;;  %5463 = vmatpush1.bf16.msra.mxu0 %v15149_v16  ;;  %v2190_v42 = vmax.f32 %v2157_v33, 0.0  ;;  %v15168_v47 = vcombine.high %v2656_v10, %v2660_v34  ;;  %v15174_v8 = vcombine.high %v2663_v62, %v2667_v63  ;;  %v2675_v11 = vld [vmem:[#allocation8 + $0xea0] sm:$0xff]  ;;  %v2688_v30 = vld [vmem:[#allocation8 + $0xf08] sm:$0xff] }
 0x2a4   :  { %v17385_v39 = vpack.c.bf16 %v2187_v32, %v2171_v17  ;;  %5635 = vmatpush1.bf16.msra.mxu1 %v15151_v4  ;;  %5464 = vmatprep.subr.bf16.mxu0 %v15158_v22  ;;  %v17387_v52 = vpack.c.bf16 %v2189_v36, %v2173_v24  ;;  %v15176_v6 = vcombine.high %v2664_v43, %v2668_v5  ;;  %v2679_v20 = vld [vmem:[#allocation8 + $0xec0] sm:$0xff]  ;;  %v2684_v22 = vld [vmem:[#allocation8 + $0xee8] sm:$0xff] }
 0x2a5   :  { %v17389_v53 = vpack.c.bf16 %v2188_v37, %v2172_v35  ;;  %5636 = vmatprep.subr.bf16.mxu1 %v15160_v28  ;;  %v17391_v3 = vpack.c.bf16 %v2190_v42, %v2174_v31  ;;  %v15173_v16 = vcombine.low %v2663_v62, %v2667_v63  ;;  %v15175_v4 = vcombine.low %v2664_v43, %v2668_v5  ;;  %v2687_v28 = vld [vmem:[#allocation8 + $0xf00] sm:$0xff]  ;;  %v2692_v31 = vld [vmem:[#allocation8 + $0xf28] sm:$0xff] }
 0x2a6   :  { %v15182_v17 = vcombine.high %v2671_v7, %v2675_v11  ;;  %v15184_v18 = vcombine.high %v2672_v12, %v2676_v13  ;;  %v15181_v24 = vcombine.low %v2671_v7, %v2675_v11  ;;  %v15183_v25 = vcombine.low %v2672_v12, %v2676_v13  ;;  %v2691_v29 = vld [vmem:[#allocation8 + $0xf20] sm:$0xff]  ;;  %v2696_v37 = vld [vmem:[#allocation8 + $0xf48] sm:$0xff] }
 0x2a7   :  { %5465 = vmatpush1.bf16.msra.mxu0 %v15157_v38  ;;  %v15190_v26 = vcombine.high %v2679_v20, %v2683_v54  ;;  %v15192_v27 = vcombine.high %v2680_v21, %v2684_v22  ;;  %v15189_v32 = vcombine.low %v2679_v20, %v2683_v54  ;;  %v15191_v33 = vcombine.low %v2680_v21, %v2684_v22  ;;  %v2695_v35 = vld [vmem:[#allocation8 + $0xf40] sm:$0xff]  ;;  %v2700_v38 = vld [vmem:[#allocation8 + $0xf68] sm:$0xff]  ;;  %v2209_v20 = vld [vmem:[#allocation8 + $0x10] sm:$0xff] }
 0x2a8   :  { %5637 = vmatpush1.bf16.msra.mxu1 %v15159_v23  ;;  %5466 = vmatprep.subr.bf16.mxu0 %v15166_v41  ;;  %v15198_v10 = vcombine.high %v2687_v28, %v2691_v29  ;;  %v15200_v34 = vcombine.high %v2688_v30, %v2692_v31  ;;  %v2699_v36 = vld [vmem:[#allocation8 + $0xf60] sm:$0xff]  ;;  %v15197_v42 = vcombine.low %v2687_v28, %v2691_v29  ;;  %v2704_v43 = vld [vmem:[#allocation8 + $0xf88] sm:$0xff]  ;;  %v2213_v54 = vld [vmem:[#allocation8 + $0x30] sm:$0xff] }
 0x2a9   :  { %5638 = vmatprep.subr.bf16.mxu1 %v15168_v47  ;;  %v15199_v23 = vcombine.low %v2688_v30, %v2692_v31  ;;  %v15206_v41 = vcombine.high %v2695_v35, %v2699_v36  ;;  %v15208_v47 = vcombine.high %v2696_v37, %v2700_v38  ;;  %v2703_v62 = vld [vmem:[#allocation8 + $0xf80] sm:$0xff]  ;;  %v2708_v5 = vld [vmem:[#allocation8 + $0xfa8] sm:$0xff]  ;;  %v2210_v21 = vld [vmem:[#allocation8 + $0x18] sm:$0xff]  ;;  %v14721_v30 = vcombine.low %v2209_v20, %v2213_v54 }
 0x2aa   :  { %v2707_v63 = vld [vmem:[#allocation8 + $0xfa0] sm:$0xff]  ;;  %v2712_v12 = vld [vmem:[#allocation8 + $0xfc8] sm:$0xff]  ;;  %v2214_v22 = vld [vmem:[#allocation8 + $0x38] sm:$0xff] }
 0x2ab   :  { %5467 = vmatpush1.bf16.msra.mxu0 %v15165_v0  ;;  %v15205_v0 = vcombine.low %v2695_v35, %v2699_v36  ;;  %v2711_v7 = vld [vmem:[#allocation8 + $0xfc0] sm:$0xff]  ;;  %v2716_v13 = vld [vmem:[#allocation8 + $0xfe8] sm:$0xff]  ;;  %v2217_v28 = vld [vmem:[#allocation8 + $0x50] sm:$0xff] }
 0x2ac   :  { %5639 = vmatpush1.bf16.msra.mxu1 %v15167_v2  ;;  %5468 = vmatprep.subr.bf16.mxu0 %v15174_v8  ;;  %v15207_v2 = vcombine.low %v2696_v37, %v2700_v38  ;;  %v15214_v8 = vcombine.high %v2703_v62, %v2707_v63  ;;  %v2715_v11 = vld [vmem:[#allocation8 + $0xfe0] sm:$0xff]  ;;  %v2221_v29 = vld [vmem:[#allocation8 + $0x70] sm:$0xff]  ;;  %v2218_v31 = vld [vmem:[#allocation8 + $0x58] sm:$0xff] }
 0x2ad   :  { %5640 = vmatprep.subr.bf16.mxu1 %v15176_v6  ;;  %v15216_v6 = vcombine.high %v2704_v43, %v2708_v5  ;;  %v2229_v35 = vld [vmem:[#allocation8 + $0xb0] sm:$0xff]  ;;  %v2226_v37 = vld [vmem:[#allocation8 + $0x98] sm:$0xff] }
 0x2ae   :  { %v2230_v38 = vld [vmem:[#allocation8 + $0xb8] sm:$0xff] }
 0x2af   :  { %5469 = vmatpush1.bf16.msra.mxu0 %v15173_v16  ;;  %v15213_v16 = vcombine.low %v2703_v62, %v2707_v63  ;;  %v2233_v62 = vld [vmem:[#allocation8 + $0xd0] sm:$0xff] }
 0x2b0   :  { %5641 = vmatpush1.bf16.msra.mxu1 %v15175_v4  ;;  %5470 = vmatprep.subr.bf16.mxu0 %v15182_v17  ;;  %v15215_v4 = vcombine.low %v2704_v43, %v2708_v5  ;;  %v15222_v17 = vcombine.high %v2711_v7, %v2715_v11  ;;  %v2237_v63 = vld [vmem:[#allocation8 + $0xf0] sm:$0xff]  ;;  %v2234_v43 = vld [vmem:[#allocation8 + $0xd8] sm:$0xff] }
 0x2b1   :  { %5642 = vmatprep.subr.bf16.mxu1 %v15184_v18  ;;  %v15224_v18 = vcombine.high %v2712_v12, %v2716_v13  ;;  %v2238_v5 = vld [vmem:[#allocation8 + $0xf8] sm:$0xff] }
 0x2b3   :  { %5471 = vmatpush1.bf16.msra.mxu0 %v15181_v24  ;;  %v15221_v24 = vcombine.low %v2711_v7, %v2715_v11  ;;  %v2241_v7 = vld [vmem:[#allocation8 + $0x110] sm:$0xff] }
 0x2b4   :  { %5643 = vmatpush1.bf16.msra.mxu1 %v15183_v25  ;;  %5472 = vmatprep.subr.bf16.mxu0 %v15190_v26  ;;  %v15223_v25 = vcombine.low %v2712_v12, %v2716_v13  ;;  %v14722_v26 = vcombine.high %v2209_v20, %v2213_v54  ;;  %v2245_v11 = vld [vmem:[#allocation8 + $0x130] sm:$0xff]  ;;  %v2242_v12 = vld [vmem:[#allocation8 + $0x118] sm:$0xff] }
 0x2b5   :  { %5644 = vmatprep.subr.bf16.mxu1 %v15192_v27  ;;  %v14724_v27 = vcombine.high %v2210_v21, %v2214_v22  ;;  %v2246_v13 = vld [vmem:[#allocation8 + $0x138] sm:$0xff]  ;;  %v2253_v20 = vld [vmem:[#allocation8 + $0x170] sm:$0xff] }
 0x2b6   :  { %v2250_v54 = vld [vmem:[#allocation8 + $0x158] sm:$0xff] }
 0x2b7   :  { %5473 = vmatpush1.bf16.msra.mxu0 %v15189_v32  ;;  %v2222_v32 = vld [vmem:[#allocation8 + $0x78] sm:$0xff] }
 0x2b8   :  { %5645 = vmatpush1.bf16.msra.mxu1 %v15191_v33  ;;  %5474 = vmatprep.subr.bf16.mxu0 %v15198_v10  ;;  %v14723_v33 = vcombine.low %v2210_v21, %v2214_v22  ;;  %v14730_v10 = vcombine.high %v2217_v28, %v2221_v29  ;;  %v14732_v36 = vcombine.high %v2218_v31, %v2222_v32  ;;  %v2254_v21 = vld [vmem:[#allocation8 + $0x178] sm:$0xff] }
 0x2b9   :  { %5646 = vmatprep.subr.bf16.mxu1 %v15200_v34  ;;  %v2225_v34 = vld [vmem:[#allocation8 + $0x90] sm:$0xff]  ;;  %v14753_v22 = vcombine.low %v2241_v7, %v2245_v11 }
 0x2bb   :  { %5475 = vmatpush1.bf16.msra.mxu0 %v15197_v42  ;;  %v14729_v42 = vcombine.low %v2217_v28, %v2221_v29  ;;  %v2261_v28 = vld [vmem:[#allocation8 + $0x1b0] sm:$0xff]  ;;  %v2258_v29 = vld [vmem:[#allocation8 + $0x198] sm:$0xff] }
 0x2bc   :  { %5647 = vmatpush1.bf16.msra.mxu1 %v15199_v23  ;;  %5476 = vmatprep.subr.bf16.mxu0 %v15206_v41  ;;  %v14731_v23 = vcombine.low %v2218_v31, %v2222_v32  ;;  %v14738_v41 = vcombine.high %v2225_v34, %v2229_v35  ;;  %v14763_v32 = vcombine.low %v2250_v54, %v2254_v21 }
 0x2bd   :  { %5648 = vmatprep.subr.bf16.mxu1 %v15208_v47  ;;  %v14740_v47 = vcombine.high %v2226_v37, %v2230_v38 }
 0x2bf   :  { %5477 = vmatpush1.bf16.msra.mxu0 %v15205_v0  ;;  %v14737_v0 = vcombine.low %v2225_v34, %v2229_v35  ;;  %v2265_v34 = vld [vmem:[#allocation8 + $0x1d0] sm:$0xff] }
 0x2c0   :  { %5649 = vmatpush1.bf16.msra.mxu1 %v15207_v2  ;;  %5478 = vmatprep.subr.bf16.mxu0 %v15214_v8  ;;  %v14739_v2 = vcombine.low %v2226_v37, %v2230_v38  ;;  %v14746_v8 = vcombine.high %v2233_v62, %v2237_v63  ;;  %v2269_v35 = vld [vmem:[#allocation8 + $0x1f0] sm:$0xff]  ;;  %v2270_v37 = vld [vmem:[#allocation8 + $0x1f8] sm:$0xff] }
 0x2c1   :  { %5650 = vmatprep.subr.bf16.mxu1 %v15216_v6  ;;  %v14748_v6 = vcombine.high %v2234_v43, %v2238_v5 }
 0x2c3   :  { %5479 = vmatpush1.bf16.msra.mxu0 %v15213_v16  ;;  %v14747_v16 = vcombine.low %v2234_v43, %v2238_v5  ;;  %v2278_v43 = vld [vmem:[#allocation8 + $0x238] sm:$0xff]  ;;  %v14777_v5 = vcombine.low %v2265_v34, %v2269_v35 }
 0x2c4   :  { %5651 = vmatpush1.bf16.msra.mxu1 %v15215_v4  ;;  %5480 = vmatprep.subr.bf16.mxu0 %v15222_v17  ;;  %v14754_v4 = vcombine.high %v2241_v7, %v2245_v11  ;;  %v14756_v17 = vcombine.high %v2242_v12, %v2246_v13  ;;  %v2285_v7 = vld [vmem:[#allocation8 + $0x270] sm:$0xff]  ;;  %v2282_v11 = vld [vmem:[#allocation8 + $0x258] sm:$0xff] }
 0x2c5   :  { %5652 = vmatprep.subr.bf16.mxu1 %v15224_v18  ;;  %v2249_v18 = vld [vmem:[#allocation8 + $0x150] sm:$0xff] }
 0x2c6   :  { %v14761_v31 = vcombine.low %v2249_v18, %v2253_v20 }
 0x2c7   :  { %5481 = vmatpush1.bf16.msra.mxu0 %v15221_v24  ;;  %v14755_v24 = vcombine.low %v2242_v12, %v2246_v13  ;;  %v2286_v12 = vld [vmem:[#allocation8 + $0x278] sm:$0xff] }
 0x2c8   :  { %5653 = vmatpush1.bf16.msra.mxu1 %v15223_v25  ;;  %5665 = vmatprep.subr.bf16.mxu0 %v14722_v26  ;;  %v14762_v25 = vcombine.high %v2249_v18, %v2253_v20  ;;  %v14764_v26 = vcombine.high %v2250_v54, %v2254_v21  ;;  %v2293_v18 = vld [vmem:[#allocation8 + $0x2b0] sm:$0xff]  ;;  %v2290_v20 = vld [vmem:[#allocation8 + $0x298] sm:$0xff] }
 0x2c9   :  { %5837 = vmatprep.subr.bf16.mxu1 %v14724_v27  ;;  %v2257_v27 = vld [vmem:[#allocation8 + $0x190] sm:$0xff]  ;;  %v2294_v54 = vld [vmem:[#allocation8 + $0x2b8] sm:$0xff] }
 0x2ca   :  { %5483 = vmatmul.mubr.bf16.vlgmr.msra.gmra.mrb[16].mxu0 %v17345_v58  ;;  %v14769_v38 = vcombine.low %v2257_v27, %v2261_v28 }
 0x2cb   :  { %5655 = vmatmul.mubr.bf16.vlgmr.msra.gmra.mrb[16].mxu1 %v17345_v58  ;;  %5666 = vmatpush1.bf16.msra.mxu0 %v14721_v30  ;;  %v2262_v30 = vld [vmem:[#allocation8 + $0x1b8] sm:$0xff] }
 0x2cc   :  { %5697 = vmatprep.mubr.bf16.mxu0 %v17313_v51  ;;  %5838 = vmatpush1.bf16.msra.mxu1 %v14723_v33  ;;  %v14770_v33 = vcombine.high %v2257_v27, %v2261_v28  ;;  %v2301_v27 = vld [vmem:[#allocation8 + $0x2f0] sm:$0xff]  ;;  %v2298_v28 = vld [vmem:[#allocation8 + $0x2d8] sm:$0xff] }
 0x2cd   :  { %5869 = vmatprep.mubr.bf16.mxu1 %v17313_v51  ;;  %5667 = vmatprep.subr.bf16.mxu0 %v14730_v10  ;;  %v14745_v51 = vcombine.low %v2233_v62, %v2237_v63  ;;  %v14772_v10 = vcombine.high %v2258_v29, %v2262_v30  ;;  %v2277_v62 = vld [vmem:[#allocation8 + $0x230] sm:$0xff]  ;;  %v2274_v63 = vld [vmem:[#allocation8 + $0x218] sm:$0xff] }
 0x2ce   :  { %5839 = vmatprep.subr.bf16.mxu1 %v14732_v36  ;;  %v2266_v36 = vld [vmem:[#allocation8 + $0x1d8] sm:$0xff] }
 0x2cf   :  { %5668 = vmatpush1.bf16.msra.mxu0 %v14729_v42  ;;  %v14771_v42 = vcombine.low %v2258_v29, %v2262_v30  ;;  %v2302_v29 = vld [vmem:[#allocation8 + $0x2f8] sm:$0xff] }
 0x2d0   :  { %5840 = vmatpush1.bf16.msra.mxu1 %v14731_v23  ;;  %5669 = vmatprep.subr.bf16.mxu0 %v14738_v41  ;;  %v14778_v23 = vcombine.high %v2265_v34, %v2269_v35  ;;  %v14780_v41 = vcombine.high %v2266_v36, %v2270_v37  ;;  %v2309_v34 = vld [vmem:[#allocation8 + $0x330] sm:$0xff]  ;;  %v2306_v35 = vld [vmem:[#allocation8 + $0x318] sm:$0xff] }
 0x2d1   :  { %5841 = vmatprep.subr.bf16.mxu1 %v14740_v47  ;;  %v2273_v47 = vld [vmem:[#allocation8 + $0x210] sm:$0xff] }
 0x2d2   :  { %v14785_v13 = vcombine.low %v2273_v47, %v2277_v62 }
 0x2d3   :  { %5670 = vmatpush1.bf16.msra.mxu0 %v14737_v0  ;;  %v14779_v0 = vcombine.low %v2266_v36, %v2270_v37  ;;  %v2310_v36 = vld [vmem:[#allocation8 + $0x338] sm:$0xff] }
 0x2d4   :  { %5842 = vmatpush1.bf16.msra.mxu1 %v14739_v2  ;;  %5671 = vmatprep.subr.bf16.mxu0 %v14746_v8  ;;  %v14786_v2 = vcombine.high %v2273_v47, %v2277_v62  ;;  %v14788_v8 = vcombine.high %v2274_v63, %v2278_v43  ;;  %v2317_v47 = vld [vmem:[#allocation8 + $0x370] sm:$0xff]  ;;  %v2314_v62 = vld [vmem:[#allocation8 + $0x358] sm:$0xff] }
 0x2d5   :  { %5843 = vmatprep.subr.bf16.mxu1 %v14748_v6  ;;  %v2281_v6 = vld [vmem:[#allocation8 + $0x250] sm:$0xff] }
 0x2d6   :  { %v14793_v21 = vcombine.low %v2281_v6, %v2285_v7 }
 0x2d7   :  { %5672 = vmatpush1.bf16.msra.mxu0 %v14745_v51  ;;  %v14787_v51 = vcombine.low %v2274_v63, %v2278_v43  ;;  %v2318_v63 = vld [vmem:[#allocation8 + $0x378] sm:$0xff] }
 0x2d8   :  { %5844 = vmatpush1.bf16.msra.mxu1 %v14747_v16  ;;  %5673 = vmatprep.subr.bf16.mxu0 %v14754_v4  ;;  %v14794_v16 = vcombine.high %v2281_v6, %v2285_v7  ;;  %v14796_v4 = vcombine.high %v2282_v11, %v2286_v12  ;;  %v2325_v6 = vld [vmem:[#allocation8 + $0x3b0] sm:$0xff]  ;;  %v2322_v7 = vld [vmem:[#allocation8 + $0x398] sm:$0xff] }
 0x2d9   :  { %5845 = vmatprep.subr.bf16.mxu1 %v14756_v17  ;;  %v2289_v17 = vld [vmem:[#allocation8 + $0x290] sm:$0xff] }
 0x2da   :  { %v14801_v30 = vcombine.low %v2289_v17, %v2293_v18 }
 0x2db   :  { %5674 = vmatpush1.bf16.msra.mxu0 %v14753_v22  ;;  %v14795_v22 = vcombine.low %v2282_v11, %v2286_v12  ;;  %v2326_v11 = vld [vmem:[#allocation8 + $0x3b8] sm:$0xff] }
 0x2dc   :  { %5846 = vmatpush1.bf16.msra.mxu1 %v14755_v24  ;;  %5675 = vmatprep.subr.bf16.mxu0 %v14762_v25  ;;  %v14802_v24 = vcombine.high %v2289_v17, %v2293_v18  ;;  %v14804_v25 = vcombine.high %v2290_v20, %v2294_v54  ;;  %v2333_v17 = vld [vmem:[#allocation8 + $0x3f0] sm:$0xff]  ;;  %v2330_v18 = vld [vmem:[#allocation8 + $0x3d8] sm:$0xff] }
 0x2dd   :  { %5847 = vmatprep.subr.bf16.mxu1 %v14764_v26  ;;  %v2297_v26 = vld [vmem:[#allocation8 + $0x2d0] sm:$0xff] }
 0x2de   :  { %v14809_v37 = vcombine.low %v2297_v26, %v2301_v27 }
 0x2df   :  { %5676 = vmatpush1.bf16.msra.mxu0 %v14761_v31  ;;  %v14803_v31 = vcombine.low %v2290_v20, %v2294_v54  ;;  %v2334_v20 = vld [vmem:[#allocation8 + $0x3f8] sm:$0xff] }
 0x2e0   :  { %5848 = vmatpush1.bf16.msra.mxu1 %v14763_v32  ;;  %5677 = vmatprep.subr.bf16.mxu0 %v14770_v33  ;;  %v14810_v32 = vcombine.high %v2297_v26, %v2301_v27  ;;  %v14812_v33 = vcombine.high %v2298_v28, %v2302_v29  ;;  %v2341_v26 = vld [vmem:[#allocation8 + $0x430] sm:$0xff]  ;;  %v2338_v27 = vld [vmem:[#allocation8 + $0x418] sm:$0xff] }
 0x2e1   :  { %5849 = vmatprep.subr.bf16.mxu1 %v14772_v10  ;;  %v2305_v10 = vld [vmem:[#allocation8 + $0x310] sm:$0xff] }
 0x2e2   :  { %v14817_v43 = vcombine.low %v2305_v10, %v2309_v34 }
 0x2e3   :  { %5678 = vmatpush1.bf16.msra.mxu0 %v14769_v38  ;;  %v14811_v38 = vcombine.low %v2298_v28, %v2302_v29  ;;  %v2342_v28 = vld [vmem:[#allocation8 + $0x438] sm:$0xff] }
 0x2e4   :  { %5850 = vmatpush1.bf16.msra.mxu1 %v14771_v42  ;;  %5679 = vmatprep.subr.bf16.mxu0 %v14778_v23  ;;  %v14818_v42 = vcombine.high %v2305_v10, %v2309_v34  ;;  %v14820_v23 = vcombine.high %v2306_v35, %v2310_v36  ;;  %v2349_v10 = vld [vmem:[#allocation8 + $0x470] sm:$0xff] }
 0x2e5   :  { %5851 = vmatprep.subr.bf16.mxu1 %v14780_v41  ;;  %v2313_v41 = vld [vmem:[#allocation8 + $0x350] sm:$0xff] }
 0x2e6   :  { %v14825_v12 = vcombine.low %v2313_v41, %v2317_v47 }
 0x2e7   :  { %5680 = vmatpush1.bf16.msra.mxu0 %v14777_v5  ;;  %v14819_v5 = vcombine.low %v2306_v35, %v2310_v36  ;;  %v2346_v35 = vld [vmem:[#allocation8 + $0x458] sm:$0xff] }
 0x2e8   :  { %5852 = vmatpush1.bf16.msra.mxu1 %v14779_v0  ;;  %5681 = vmatprep.subr.bf16.mxu0 %v14786_v2  ;;  %v14826_v0 = vcombine.high %v2313_v41, %v2317_v47  ;;  %v14828_v2 = vcombine.high %v2314_v62, %v2318_v63  ;;  %v2350_v36 = vld [vmem:[#allocation8 + $0x478] sm:$0xff] }
 0x2e9   :  { %5853 = vmatprep.subr.bf16.mxu1 %v14788_v8  ;;  %v2321_v8 = vld [vmem:[#allocation8 + $0x390] sm:$0xff]  ;;  %v14860_v41 = vcombine.high %v2346_v35, %v2350_v36  ;;  %v2354_v47 = vld [vmem:[#allocation8 + $0x498] sm:$0xff] }
 0x2ea   :  { %v14833_v54 = vcombine.low %v2321_v8, %v2325_v6 }
 0x2eb   :  { %5682 = vmatpush1.bf16.msra.mxu0 %v14785_v13  ;;  %v14827_v13 = vcombine.low %v2314_v62, %v2318_v63  ;;  %v2358_v62 = vld [vmem:[#allocation8 + $0x4b8] sm:$0xff] }
 0x2ec   :  { %5854 = vmatpush1.bf16.msra.mxu1 %v14787_v51  ;;  %5683 = vmatprep.subr.bf16.mxu0 %v14794_v16  ;;  %v14834_v51 = vcombine.high %v2321_v8, %v2325_v6  ;;  %v14836_v16 = vcombine.high %v2322_v7, %v2326_v11  ;;  %v2365_v8 = vld [vmem:[#allocation8 + $0x4f0] sm:$0xff]  ;;  %v2362_v6 = vld [vmem:[#allocation8 + $0x4d8] sm:$0xff] }
 0x2ed   :  { %5855 = vmatprep.subr.bf16.mxu1 %v14796_v4  ;;  %v2329_v4 = vld [vmem:[#allocation8 + $0x3d0] sm:$0xff] }
 0x2ee   :  { %v14841_v29 = vcombine.low %v2329_v4, %v2333_v17 }
 0x2ef   :  { %5684 = vmatpush1.bf16.msra.mxu0 %v14793_v21  ;;  %v14835_v21 = vcombine.low %v2322_v7, %v2326_v11  ;;  %v2366_v7 = vld [vmem:[#allocation8 + $0x4f8] sm:$0xff] }
 0x2f0   :  { %5856 = vmatpush1.bf16.msra.mxu1 %v14795_v22  ;;  %5685 = vmatprep.subr.bf16.mxu0 %v14802_v24  ;;  %v14842_v22 = vcombine.high %v2329_v4, %v2333_v17  ;;  %v14844_v24 = vcombine.high %v2330_v18, %v2334_v20  ;;  %v2370_v4 = vld [vmem:[#allocation8 + $0x518] sm:$0xff] }
 0x2f1   :  { %5857 = vmatprep.subr.bf16.mxu1 %v14804_v25  ;;  %v2337_v25 = vld [vmem:[#allocation8 + $0x410] sm:$0xff]  ;;  %v2374_v17 = vld [vmem:[#allocation8 + $0x538] sm:$0xff] }
 0x2f2   :  { %v14849_v34 = vcombine.low %v2337_v25, %v2341_v26 }
 0x2f3   :  { %5686 = vmatpush1.bf16.msra.mxu0 %v14801_v30  ;;  %v14843_v30 = vcombine.low %v2330_v18, %v2334_v20  ;;  %v14875_v18 = vcombine.low %v2362_v6, %v2366_v7 }
 0x2f4   :  { %5858 = vmatpush1.bf16.msra.mxu1 %v14803_v31  ;;  %5687 = vmatprep.subr.bf16.mxu0 %v14810_v32  ;;  %v14850_v31 = vcombine.high %v2337_v25, %v2341_v26  ;;  %v14852_v32 = vcombine.high %v2338_v27, %v2342_v28  ;;  %v2382_v25 = vld [vmem:[#allocation8 + $0x578] sm:$0xff] }
 0x2f5   :  { %5859 = vmatprep.subr.bf16.mxu1 %v14812_v33  ;;  %v2345_v33 = vld [vmem:[#allocation8 + $0x450] sm:$0xff] }
 0x2f6   :  { %v14857_v63 = vcombine.low %v2345_v33, %v2349_v10 }
 0x2f7   :  { %5688 = vmatpush1.bf16.msra.mxu0 %v14809_v37  ;;  %v14851_v37 = vcombine.low %v2338_v27, %v2342_v28  ;;  %v14883_v27 = vcombine.low %v2370_v4, %v2374_v17 }
 0x2f8   :  { %5860 = vmatpush1.bf16.msra.mxu1 %v14811_v38  ;;  %5689 = vmatprep.subr.bf16.mxu0 %v14818_v42  ;;  %v14858_v38 = vcombine.high %v2345_v33, %v2349_v10  ;;  %v2353_v42 = vld [vmem:[#allocation8 + $0x490] sm:$0xff]  ;;  %v2390_v33 = vld [vmem:[#allocation8 + $0x5b8] sm:$0xff] }
 0x2f9   :  { %5861 = vmatprep.subr.bf16.mxu1 %v14820_v23  ;;  %v2357_v23 = vld [vmem:[#allocation8 + $0x4b0] sm:$0xff] }
 0x2fa   :  { %v14865_v11 = vcombine.low %v2353_v42, %v2357_v23 }
 0x2fb   :  { %5690 = vmatpush1.bf16.msra.mxu0 %v14817_v43  ;;  %v14859_v43 = vcombine.low %v2346_v35, %v2350_v36 }
 0x2fc   :  { %5862 = vmatpush1.bf16.msra.mxu1 %v14819_v5  ;;  %5691 = vmatprep.subr.bf16.mxu0 %v14826_v0  ;;  %v14866_v5 = vcombine.high %v2353_v42, %v2357_v23  ;;  %v14868_v0 = vcombine.high %v2354_v47, %v2358_v62  ;;  %v2394_v42 = vld [vmem:[#allocation8 + $0x5d8] sm:$0xff] }
 0x2fd   :  { %5863 = vmatprep.subr.bf16.mxu1 %v14828_v2  ;;  %v2361_v2 = vld [vmem:[#allocation8 + $0x4d0] sm:$0xff]  ;;  %v2398_v23 = vld [vmem:[#allocation8 + $0x5f8] sm:$0xff] }
 0x2ff   :  { %5692 = vmatpush1.bf16.msra.mxu0 %v14825_v12  ;;  %v14874_v12 = vcombine.high %v2361_v2, %v2365_v8 }
 0x300   :  { %5864 = vmatpush1.bf16.msra.mxu1 %v14827_v13  ;;  %5693 = vmatprep.subr.bf16.mxu0 %v14834_v51  ;;  %v14876_v13 = vcombine.high %v2362_v6, %v2366_v7  ;;  %v2369_v51 = vld [vmem:[#allocation8 + $0x510] sm:$0xff]  ;;  %v14907_v6 = vcombine.low %v2394_v42, %v2398_v23 }
 0x301   :  { %5865 = vmatprep.subr.bf16.mxu1 %v14836_v16  ;;  %v2373_v16 = vld [vmem:[#allocation8 + $0x530] sm:$0xff] }
 0x302   :  { %v14882_v20 = vcombine.high %v2369_v51, %v2373_v16  ;;  %v14881_v26 = vcombine.low %v2369_v51, %v2373_v16  ;;  %v2414_v51 = vld [vmem:[#allocation8 + $0x678] sm:$0xff] }
 0x303   :  { %5694 = vmatpush1.bf16.msra.mxu0 %v14833_v54  ;;  %v14884_v54 = vcombine.high %v2370_v4, %v2374_v17 }
 0x304   :  { %5866 = vmatpush1.bf16.msra.mxu1 %v14835_v21  ;;  %5695 = vmatprep.subr.bf16.mxu0 %v14842_v22  ;;  %v2377_v21 = vld [vmem:[#allocation8 + $0x550] sm:$0xff] }
 0x305   :  { %5867 = vmatprep.subr.bf16.mxu1 %v14844_v24  ;;  %v2381_v22 = vld [vmem:[#allocation8 + $0x570] sm:$0xff]  ;;  %v2378_v24 = vld [vmem:[#allocation8 + $0x558] sm:$0xff] }
 0x306   :  { %v14890_v28 = vcombine.high %v2377_v21, %v2381_v22  ;;  %v14889_v10 = vcombine.low %v2377_v21, %v2381_v22  ;;  %v2422_v21 = vld [vmem:[#allocation8 + $0x6b8] sm:$0xff] }
 0x307   :  { %5696 = vmatpush1.bf16.msra.mxu0 %v14841_v29  ;;  %v14892_v29 = vcombine.high %v2378_v24, %v2382_v25 }
 0x308   :  { %5868 = vmatpush1.bf16.msra.mxu1 %v14843_v30  ;;  %5708 = vmatprep.subr.bf16.mxu0 %v14850_v31  ;;  %v2385_v30 = vld [vmem:[#allocation8 + $0x590] sm:$0xff] }
 0x309   :  { %5880 = vmatprep.subr.bf16.mxu1 %v14852_v32  ;;  %v2389_v31 = vld [vmem:[#allocation8 + $0x5b0] sm:$0xff]  ;;  %v2386_v32 = vld [vmem:[#allocation8 + $0x598] sm:$0xff] }
 0x30a   :  { %5698 = vmatmul.mubr.bf16.vlgmr.msra.gmra.mrb[20].mxu0 %v17309_v46  ;;  %v14898_v35 = vcombine.high %v2385_v30, %v2389_v31  ;;  %v14900_v36 = vcombine.high %v2386_v32, %v2390_v33 }
 0x30b   :  { %5870 = vmatmul.mubr.bf16.vlgmr.msra.gmra.mrb[20].mxu1 %v17309_v46  ;;  %5709 = vmatpush1.bf16.msra.mxu0 %v14849_v34  ;;  %v14867_v46 = vcombine.low %v2354_v47, %v2358_v62  ;;  %v14891_v34 = vcombine.low %v2378_v24, %v2382_v25  ;;  %v14899_v47 = vcombine.low %v2386_v32, %v2390_v33 }
 0x30c   :  { %5740 = vmatprep.mubr.bf16.mxu0 %v17315_v61  ;;  %5881 = vmatpush1.bf16.msra.mxu1 %v14851_v37  ;;  %v2393_v37 = vld [vmem:[#allocation8 + $0x5d0] sm:$0xff] }
 0x30d   :  { %5912 = vmatprep.mubr.bf16.mxu1 %v17315_v61  ;;  %5710 = vmatprep.subr.bf16.mxu0 %v14858_v38  ;;  %v14873_v61 = vcombine.low %v2361_v2, %v2365_v8  ;;  %v2397_v38 = vld [vmem:[#allocation8 + $0x5f0] sm:$0xff]  ;;  %v2406_v2 = vld [vmem:[#allocation8 + $0x638] sm:$0xff] }
 0x30e   :  { %5882 = vmatprep.subr.bf16.mxu1 %v14860_v41  ;;  %v14897_v41 = vcombine.low %v2385_v30, %v2389_v31  ;;  %v14906_v62 = vcombine.high %v2393_v37, %v2397_v38  ;;  %v14905_v8 = vcombine.low %v2393_v37, %v2397_v38  ;;  %v2430_v30 = vld [vmem:[#allocation8 + $0x6f8] sm:$0xff] }
 0x30f   :  { %5711 = vmatpush1.bf16.msra.mxu0 %v14857_v63  ;;  %v14908_v63 = vcombine.high %v2394_v42, %v2398_v23  ;;  %v2438_v37 = vld [vmem:[#allocation8 + $0x738] sm:$0xff] }
 0x310   :  { %5883 = vmatpush1.bf16.msra.mxu1 %v14859_v43  ;;  %5712 = vmatprep.subr.bf16.mxu0 %v14866_v5  ;;  %v2401_v43 = vld [vmem:[#allocation8 + $0x610] sm:$0xff] }
 0x311   :  { %5884 = vmatprep.subr.bf16.mxu1 %v14868_v0  ;;  %v2405_v5 = vld [vmem:[#allocation8 + $0x630] sm:$0xff]  ;;  %v2402_v0 = vld [vmem:[#allocation8 + $0x618] sm:$0xff] }
 0x312   :  { %v14914_v7 = vcombine.high %v2401_v43, %v2405_v5  ;;  %v14913_v16 = vcombine.low %v2401_v43, %v2405_v5  ;;  %v14915_v4 = vcombine.low %v2402_v0, %v2406_v2  ;;  %v2446_v43 = vld [vmem:[#allocation8 + $0x778] sm:$0xff] }
 0x313   :  { %5713 = vmatpush1.bf16.msra.mxu0 %v14865_v11  ;;  %v14916_v11 = vcombine.high %v2402_v0, %v2406_v2 }
 0x314   :  { %5885 = vmatpush1.bf16.msra.mxu1 %v14867_v46  ;;  %5714 = vmatprep.subr.bf16.mxu0 %v14874_v12  ;;  %v2409_v46 = vld [vmem:[#allocation8 + $0x650] sm:$0xff] }
 0x315   :  { %5886 = vmatprep.subr.bf16.mxu1 %v14876_v13  ;;  %v2413_v12 = vld [vmem:[#allocation8 + $0x670] sm:$0xff]  ;;  %v2410_v13 = vld [vmem:[#allocation8 + $0x658] sm:$0xff] }
 0x316   :  { %v14922_v17 = vcombine.high %v2409_v46, %v2413_v12  ;;  %v14921_v22 = vcombine.low %v2409_v46, %v2413_v12  ;;  %v14923_v24 = vcombine.low %v2410_v13, %v2414_v51  ;;  %v2454_v46 = vld [vmem:[#allocation8 + $0x7b8] sm:$0xff] }
 0x317   :  { %5715 = vmatpush1.bf16.msra.mxu0 %v14873_v61  ;;  %v14924_v61 = vcombine.high %v2410_v13, %v2414_v51 }
 0x318   :  { %5887 = vmatpush1.bf16.msra.mxu1 %v14875_v18  ;;  %5716 = vmatprep.subr.bf16.mxu0 %v14882_v20  ;;  %v2417_v18 = vld [vmem:[#allocation8 + $0x690] sm:$0xff] }
 0x319   :  { %5888 = vmatprep.subr.bf16.mxu1 %v14884_v54  ;;  %v2421_v20 = vld [vmem:[#allocation8 + $0x6b0] sm:$0xff]  ;;  %v2418_v54 = vld [vmem:[#allocation8 + $0x698] sm:$0xff] }
 0x31a   :  { %v14930_v25 = vcombine.high %v2417_v18, %v2421_v20  ;;  %v14929_v31 = vcombine.low %v2417_v18, %v2421_v20  ;;  %v14931_v32 = vcombine.low %v2418_v54, %v2422_v21  ;;  %v2462_v18 = vld [vmem:[#allocation8 + $0x7f8] sm:$0xff] }
 0x31b   :  { %5717 = vmatpush1.bf16.msra.mxu0 %v14881_v26  ;;  %v14932_v26 = vcombine.high %v2418_v54, %v2422_v21 }
 0x31c   :  { %5889 = vmatpush1.bf16.msra.mxu1 %v14883_v27  ;;  %5718 = vmatprep.subr.bf16.mxu0 %v14890_v28  ;;  %v2425_v27 = vld [vmem:[#allocation8 + $0x6d0] sm:$0xff] }
 0x31d   :  { %5890 = vmatprep.subr.bf16.mxu1 %v14892_v29  ;;  %v2429_v28 = vld [vmem:[#allocation8 + $0x6f0] sm:$0xff]  ;;  %v2426_v29 = vld [vmem:[#allocation8 + $0x6d8] sm:$0xff] }
 0x31e   :  { %v14938_v33 = vcombine.high %v2425_v27, %v2429_v28  ;;  %v14937_v38 = vcombine.low %v2425_v27, %v2429_v28  ;;  %v14939_v42 = vcombine.low %v2426_v29, %v2430_v30  ;;  %v2470_v27 = vld [vmem:[#allocation8 + $0x838] sm:$0xff] }
 0x31f   :  { %5719 = vmatpush1.bf16.msra.mxu0 %v14889_v10  ;;  %v14940_v10 = vcombine.high %v2426_v29, %v2430_v30 }
 0x320   :  { %5891 = vmatpush1.bf16.msra.mxu1 %v14891_v34  ;;  %5720 = vmatprep.subr.bf16.mxu0 %v14898_v35  ;;  %v2433_v34 = vld [vmem:[#allocation8 + $0x710] sm:$0xff] }
 0x321   :  { %5892 = vmatprep.subr.bf16.mxu1 %v14900_v36  ;;  %v2437_v35 = vld [vmem:[#allocation8 + $0x730] sm:$0xff]  ;;  %v2434_v36 = vld [vmem:[#allocation8 + $0x718] sm:$0xff] }
 0x322   :  { %v14946_v23 = vcombine.high %v2433_v34, %v2437_v35  ;;  %v14945_v5 = vcombine.low %v2433_v34, %v2437_v35  ;;  %v14947_v0 = vcombine.low %v2434_v36, %v2438_v37  ;;  %v2474_v34 = vld [vmem:[#allocation8 + $0x858] sm:$0xff] }
 0x323   :  { %5721 = vmatpush1.bf16.msra.mxu0 %v14897_v41  ;;  %v14948_v41 = vcombine.high %v2434_v36, %v2438_v37  ;;  %v2478_v35 = vld [vmem:[#allocation8 + $0x878] sm:$0xff] }
 0x324   :  { %5893 = vmatpush1.bf16.msra.mxu1 %v14899_v47  ;;  %5722 = vmatprep.subr.bf16.mxu0 %v14906_v62  ;;  %v2441_v47 = vld [vmem:[#allocation8 + $0x750] sm:$0xff] }
 0x325   :  { %5894 = vmatprep.subr.bf16.mxu1 %v14908_v63  ;;  %v2445_v62 = vld [vmem:[#allocation8 + $0x770] sm:$0xff]  ;;  %v2442_v63 = vld [vmem:[#allocation8 + $0x758] sm:$0xff] }
 0x326   :  { %v14954_v2 = vcombine.high %v2441_v47, %v2445_v62  ;;  %v14953_v12 = vcombine.low %v2441_v47, %v2445_v62  ;;  %v14955_v13 = vcombine.low %v2442_v63, %v2446_v43  ;;  %v2486_v47 = vld [vmem:[#allocation8 + $0x8b8] sm:$0xff] }
 0x327   :  { %5723 = vmatpush1.bf16.msra.mxu0 %v14905_v8  ;;  %v14956_v8 = vcombine.high %v2442_v63, %v2446_v43  ;;  %v14987_v63 = vcombine.low %v2474_v34, %v2478_v35 }
 0x328   :  { %5895 = vmatpush1.bf16.msra.mxu1 %v14907_v6  ;;  %5724 = vmatprep.subr.bf16.mxu0 %v14914_v7  ;;  %v2449_v6 = vld [vmem:[#allocation8 + $0x790] sm:$0xff] }
 0x329   :  { %5896 = vmatprep.subr.bf16.mxu1 %v14916_v11  ;;  %v2453_v7 = vld [vmem:[#allocation8 + $0x7b0] sm:$0xff]  ;;  %v2450_v11 = vld [vmem:[#allocation8 + $0x798] sm:$0xff] }
 0x32a   :  { %v14962_v51 = vcombine.high %v2449_v6, %v2453_v7  ;;  %v14961_v20 = vcombine.low %v2449_v6, %v2453_v7  ;;  %v14963_v54 = vcombine.low %v2450_v11, %v2454_v46  ;;  %v2494_v6 = vld [vmem:[#allocation8 + $0x8f8] sm:$0xff] }
 0x32b   :  { %5725 = vmatpush1.bf16.msra.mxu0 %v14913_v16  ;;  %v14964_v16 = vcombine.high %v2450_v11, %v2454_v46 }
 0x32c   :  { %5897 = vmatpush1.bf16.msra.mxu1 %v14915_v4  ;;  %5726 = vmatprep.subr.bf16.mxu0 %v14922_v17  ;;  %v2457_v4 = vld [vmem:[#allocation8 + $0x7d0] sm:$0xff] }
 0x32d   :  { %5898 = vmatprep.subr.bf16.mxu1 %v14924_v61  ;;  %v2461_v17 = vld [vmem:[#allocation8 + $0x7f0] sm:$0xff]  ;;  %v2458_v61 = vld [vmem:[#allocation8 + $0x7d8] sm:$0xff] }
 0x32e   :  { %v14970_v21 = vcombine.high %v2457_v4, %v2461_v17  ;;  %v14969_v28 = vcombine.low %v2457_v4, %v2461_v17  ;;  %v14971_v29 = vcombine.low %v2458_v61, %v2462_v18 }
 0x32f   :  { %5727 = vmatpush1.bf16.msra.mxu0 %v14921_v22  ;;  %v14972_v22 = vcombine.high %v2458_v61, %v2462_v18  ;;  %v2505_v18 = vld [vmem:[#allocation8 + $0x950] sm:$0xff] }
 0x330   :  { %5899 = vmatpush1.bf16.msra.mxu1 %v14923_v24  ;;  %5728 = vmatprep.subr.bf16.mxu0 %v14930_v25  ;;  %v2465_v24 = vld [vmem:[#allocation8 + $0x810] sm:$0xff] }
 0x331   :  { %5900 = vmatprep.subr.bf16.mxu1 %v14932_v26  ;;  %v2469_v25 = vld [vmem:[#allocation8 + $0x830] sm:$0xff]  ;;  %v2466_v26 = vld [vmem:[#allocation8 + $0x818] sm:$0xff] }
 0x332   :  { %v14978_v30 = vcombine.high %v2465_v24, %v2469_v25  ;;  %v14979_v36 = vcombine.low %v2466_v26, %v2470_v27 }
 0x333   :  { %5729 = vmatpush1.bf16.msra.mxu0 %v14929_v31  ;;  %v14980_v31 = vcombine.high %v2466_v26, %v2470_v27  ;;  %v2513_v27 = vld [vmem:[#allocation8 + $0x990] sm:$0xff] }
 0x334   :  { %5901 = vmatpush1.bf16.msra.mxu1 %v14931_v32  ;;  %5730 = vmatprep.subr.bf16.mxu0 %v14938_v33  ;;  %v2473_v32 = vld [vmem:[#allocation8 + $0x850] sm:$0xff] }
 0x335   :  { %5902 = vmatprep.subr.bf16.mxu1 %v14940_v10  ;;  %v2477_v33 = vld [vmem:[#allocation8 + $0x870] sm:$0xff]  ;;  %v14977_v10 = vcombine.low %v2465_v24, %v2469_v25 }
 0x336   :  { %v14986_v37 = vcombine.high %v2473_v32, %v2477_v33  ;;  %v14985_v62 = vcombine.low %v2473_v32, %v2477_v33 }
 0x337   :  { %5731 = vmatpush1.bf16.msra.mxu0 %v14937_v38  ;;  %v2481_v38 = vld [vmem:[#allocation8 + $0x890] sm:$0xff] }
 0x338   :  { %5903 = vmatpush1.bf16.msra.mxu1 %v14939_v42  ;;  %5732 = vmatprep.subr.bf16.mxu0 %v14946_v23  ;;  %v2485_v42 = vld [vmem:[#allocation8 + $0x8b0] sm:$0xff]  ;;  %v14988_v23 = vcombine.high %v2474_v34, %v2478_v35 }
 0x339   :  { %5904 = vmatprep.subr.bf16.mxu1 %v14948_v41  ;;  %v2482_v41 = vld [vmem:[#allocation8 + $0x898] sm:$0xff]  ;;  %v14994_v43 = vcombine.high %v2481_v38, %v2485_v42  ;;  %v14993_v7 = vcombine.low %v2481_v38, %v2485_v42  ;;  %v2521_v34 = vld [vmem:[#allocation8 + $0x9d0] sm:$0xff] }
 0x33a   :  { %v2525_v35 = vld [vmem:[#allocation8 + $0x9f0] sm:$0xff] }
 0x33b   :  { %5733 = vmatpush1.bf16.msra.mxu0 %v14945_v5  ;;  %v14996_v5 = vcombine.high %v2482_v41, %v2486_v47 }
 0x33c   :  { %5905 = vmatpush1.bf16.msra.mxu1 %v14947_v0  ;;  %5734 = vmatprep.subr.bf16.mxu0 %v14954_v2  ;;  %v2489_v0 = vld [vmem:[#allocation8 + $0x8d0] sm:$0xff] }
 0x33d   :  { %5906 = vmatprep.subr.bf16.mxu1 %v14956_v8  ;;  %v2493_v2 = vld [vmem:[#allocation8 + $0x8f0] sm:$0xff]  ;;  %v2490_v8 = vld [vmem:[#allocation8 + $0x8d8] sm:$0xff] }
 0x33e   :  { %v15002_v11 = vcombine.high %v2489_v0, %v2493_v2  ;;  %v15004_v46 = vcombine.high %v2490_v8, %v2494_v6  ;;  %v15003_v4 = vcombine.low %v2490_v8, %v2494_v6  ;;  %v2537_v6 = vld [vmem:[#allocation8 + $0xa50] sm:$0xff] }
 0x33f   :  { %5735 = vmatpush1.bf16.msra.mxu0 %v14953_v12  ;;  %v2497_v12 = vld [vmem:[#allocation8 + $0x910] sm:$0xff] }
 0x340   :  { %5907 = vmatpush1.bf16.msra.mxu1 %v14955_v13  ;;  %5736 = vmatprep.subr.bf16.mxu0 %v14962_v51  ;;  %v2501_v13 = vld [vmem:[#allocation8 + $0x930] sm:$0xff]  ;;  %v2498_v51 = vld [vmem:[#allocation8 + $0x918] sm:$0xff] }
 0x341   :  { %5908 = vmatprep.subr.bf16.mxu1 %v14964_v16  ;;  %v2502_v16 = vld [vmem:[#allocation8 + $0x938] sm:$0xff]  ;;  %v15010_v17 = vcombine.high %v2497_v12, %v2501_v13 }
 0x342   :  { %v15012_v61 = vcombine.high %v2498_v51, %v2502_v16  ;;  %v15011_v24 = vcombine.low %v2498_v51, %v2502_v16  ;;  %v2545_v16 = vld [vmem:[#allocation8 + $0xa90] sm:$0xff] }
 0x343   :  { %5737 = vmatpush1.bf16.msra.mxu0 %v14961_v20  ;;  %v2509_v20 = vld [vmem:[#allocation8 + $0x970] sm:$0xff] }
 0x344   :  { %5909 = vmatpush1.bf16.msra.mxu1 %v14963_v54  ;;  %5738 = vmatprep.subr.bf16.mxu0 %v14970_v21  ;;  %v2506_v54 = vld [vmem:[#allocation8 + $0x958] sm:$0xff]  ;;  %v15018_v25 = vcombine.high %v2505_v18, %v2509_v20 }
 0x345   :  { %5910 = vmatprep.subr.bf16.mxu1 %v14972_v22  ;;  %v2510_v21 = vld [vmem:[#allocation8 + $0x978] sm:$0xff]  ;;  %v15009_v22 = vcombine.low %v2497_v12, %v2501_v13 }
 0x346   :  { %v15020_v26 = vcombine.high %v2506_v54, %v2510_v21  ;;  %v15019_v32 = vcombine.low %v2506_v54, %v2510_v21  ;;  %v2553_v21 = vld [vmem:[#allocation8 + $0xad0] sm:$0xff] }
 0x347   :  { %5739 = vmatpush1.bf16.msra.mxu0 %v14969_v28  ;;  %v2517_v28 = vld [vmem:[#allocation8 + $0x9b0] sm:$0xff] }
 0x348   :  { %5911 = vmatpush1.bf16.msra.mxu1 %v14971_v29  ;;  %5751 = vmatprep.subr.bf16.mxu0 %v14978_v30  ;;  %v2514_v29 = vld [vmem:[#allocation8 + $0x998] sm:$0xff]  ;;  %v15026_v33 = vcombine.high %v2513_v27, %v2517_v28  ;;  %v15025_v38 = vcombine.low %v2513_v27, %v2517_v28 }
 0x349   :  { %5923 = vmatprep.subr.bf16.mxu1 %v14980_v31  ;;  %v2518_v30 = vld [vmem:[#allocation8 + $0x9b8] sm:$0xff]  ;;  %v15017_v31 = vcombine.low %v2505_v18, %v2509_v20 }
 0x34a   :  { %5741 = vmatmul.mubr.bf16.vlgmr.msra.gmra.mrb[20].mxu0 %v17311_v49  ;;  %v15027_v42 = vcombine.low %v2514_v29, %v2518_v30 }
 0x34b   :  { %5913 = vmatmul.mubr.bf16.vlgmr.msra.gmra.mrb[20].mxu1 %v17311_v49  ;;  %5752 = vmatpush1.bf16.msra.mxu0 %v14977_v10  ;;  %v14995_v49 = vcombine.low %v2482_v41, %v2486_v47  ;;  %v15028_v10 = vcombine.high %v2514_v29, %v2518_v30  ;;  %v2529_v47 = vld [vmem:[#allocation8 + $0xa10] sm:$0xff] }
 0x34c   :  { %5783 = vmatprep.mubr.bf16.mxu0 %v17347_v60  ;;  %5924 = vmatpush1.bf16.msra.mxu1 %v14979_v36  ;;  %v2522_v36 = vld [vmem:[#allocation8 + $0x9d8] sm:$0xff]  ;;  %v2561_v30 = vld [vmem:[#allocation8 + $0xb10] sm:$0xff] }
 0x34d   :  { %5955 = vmatprep.mubr.bf16.mxu1 %v17347_v60  ;;  %5753 = vmatprep.subr.bf16.mxu0 %v14986_v37  ;;  %v15001_v60 = vcombine.low %v2489_v0, %v2493_v2  ;;  %v2526_v37 = vld [vmem:[#allocation8 + $0x9f8] sm:$0xff] }
 0x34e   :  { %5925 = vmatprep.subr.bf16.mxu1 %v14988_v23  ;;  %v15034_v23 = vcombine.high %v2521_v34, %v2525_v35  ;;  %v15036_v41 = vcombine.high %v2522_v36, %v2526_v37  ;;  %v15035_v0 = vcombine.low %v2522_v36, %v2526_v37  ;;  %v2569_v37 = vld [vmem:[#allocation8 + $0xb50] sm:$0xff] }
 0x34f   :  { %5754 = vmatpush1.bf16.msra.mxu0 %v14985_v62  ;;  %v2533_v62 = vld [vmem:[#allocation8 + $0xa30] sm:$0xff] }
 0x350   :  { %5926 = vmatpush1.bf16.msra.mxu1 %v14987_v63  ;;  %5755 = vmatprep.subr.bf16.mxu0 %v14994_v43  ;;  %v2530_v63 = vld [vmem:[#allocation8 + $0xa18] sm:$0xff]  ;;  %v15042_v2 = vcombine.high %v2529_v47, %v2533_v62 }
 0x351   :  { %5927 = vmatprep.subr.bf16.mxu1 %v14996_v5  ;;  %v2534_v43 = vld [vmem:[#allocation8 + $0xa38] sm:$0xff]  ;;  %v15033_v5 = vcombine.low %v2521_v34, %v2525_v35 }
 0x352   :  { %v15044_v8 = vcombine.high %v2530_v63, %v2534_v43  ;;  %v15043_v12 = vcombine.low %v2530_v63, %v2534_v43  ;;  %v2577_v43 = vld [vmem:[#allocation8 + $0xb90] sm:$0xff] }
 0x353   :  { %5756 = vmatpush1.bf16.msra.mxu0 %v14993_v7  ;;  %v2541_v7 = vld [vmem:[#allocation8 + $0xa70] sm:$0xff] }
 0x354   :  { %5928 = vmatpush1.bf16.msra.mxu1 %v14995_v49  ;;  %5757 = vmatprep.subr.bf16.mxu0 %v15002_v11  ;;  %v2538_v49 = vld [vmem:[#allocation8 + $0xa58] sm:$0xff]  ;;  %v15050_v13 = vcombine.high %v2537_v6, %v2541_v7 }
 0x355   :  { %5929 = vmatprep.subr.bf16.mxu1 %v15004_v46  ;;  %v2542_v11 = vld [vmem:[#allocation8 + $0xa78] sm:$0xff]  ;;  %v15041_v46 = vcombine.low %v2529_v47, %v2533_v62 }
 0x356   :  { %v15052_v51 = vcombine.high %v2538_v49, %v2542_v11  ;;  %v15051_v18 = vcombine.low %v2538_v49, %v2542_v11  ;;  %v2585_v11 = vld [vmem:[#allocation8 + $0xbd0] sm:$0xff] }
 0x357   :  { %5758 = vmatpush1.bf16.msra.mxu0 %v15001_v60  ;;  %v2549_v60 = vld [vmem:[#allocation8 + $0xab0] sm:$0xff] }
 0x358   :  { %5930 = vmatpush1.bf16.msra.mxu1 %v15003_v4  ;;  %5759 = vmatprep.subr.bf16.mxu0 %v15010_v17  ;;  %v2546_v4 = vld [vmem:[#allocation8 + $0xa98] sm:$0xff]  ;;  %v15058_v20 = vcombine.high %v2545_v16, %v2549_v60 }
 0x359   :  { %5931 = vmatprep.subr.bf16.mxu1 %v15012_v61  ;;  %v2550_v17 = vld [vmem:[#allocation8 + $0xab8] sm:$0xff]  ;;  %v15049_v61 = vcombine.low %v2537_v6, %v2541_v7 }
 0x35a   :  { %v15060_v54 = vcombine.high %v2546_v4, %v2550_v17  ;;  %v15059_v27 = vcombine.low %v2546_v4, %v2550_v17  ;;  %v2593_v17 = vld [vmem:[#allocation8 + $0xc10] sm:$0xff] }
 0x35b   :  { %5760 = vmatpush1.bf16.msra.mxu0 %v15009_v22  ;;  %v2557_v22 = vld [vmem:[#allocation8 + $0xaf0] sm:$0xff] }
 0x35c   :  { %5932 = vmatpush1.bf16.msra.mxu1 %v15011_v24  ;;  %5761 = vmatprep.subr.bf16.mxu0 %v15018_v25  ;;  %v2554_v24 = vld [vmem:[#allocation8 + $0xad8] sm:$0xff]  ;;  %v15066_v28 = vcombine.high %v2553_v21, %v2557_v22 }
 0x35d   :  { %5933 = vmatprep.subr.bf16.mxu1 %v15020_v26  ;;  %v2558_v25 = vld [vmem:[#allocation8 + $0xaf8] sm:$0xff]  ;;  %v15057_v26 = vcombine.low %v2545_v16, %v2549_v60 }
 0x35e   :  { %v15068_v29 = vcombine.high %v2554_v24, %v2558_v25  ;;  %v15067_v34 = vcombine.low %v2554_v24, %v2558_v25  ;;  %v2601_v25 = vld [vmem:[#allocation8 + $0xc50] sm:$0xff] }
 0x35f   :  { %5762 = vmatpush1.bf16.msra.mxu0 %v15017_v31  ;;  %v2565_v31 = vld [vmem:[#allocation8 + $0xb30] sm:$0xff] }
 0x360   :  { %5934 = vmatpush1.bf16.msra.mxu1 %v15019_v32  ;;  %5763 = vmatprep.subr.bf16.mxu0 %v15026_v33  ;;  %v2562_v32 = vld [vmem:[#allocation8 + $0xb18] sm:$0xff]  ;;  %v15074_v35 = vcombine.high %v2561_v30, %v2565_v31 }
 0x361   :  { %5935 = vmatprep.subr.bf16.mxu1 %v15028_v10  ;;  %v2566_v33 = vld [vmem:[#allocation8 + $0xb38] sm:$0xff]  ;;  %v15065_v10 = vcombine.low %v2553_v21, %v2557_v22 }
 0x362   :  { %v15076_v36 = vcombine.high %v2562_v32, %v2566_v33  ;;  %v15075_v47 = vcombine.low %v2562_v32, %v2566_v33  ;;  %v2609_v32 = vld [vmem:[#allocation8 + $0xc90] sm:$0xff] }
 0x363   :  { %5764 = vmatpush1.bf16.msra.mxu0 %v15025_v38  ;;  %v2573_v38 = vld [vmem:[#allocation8 + $0xb70] sm:$0xff] }
 0x364   :  { %5936 = vmatpush1.bf16.msra.mxu1 %v15027_v42  ;;  %5765 = vmatprep.subr.bf16.mxu0 %v15034_v23  ;;  %v2570_v42 = vld [vmem:[#allocation8 + $0xb58] sm:$0xff]  ;;  %v15082_v62 = vcombine.high %v2569_v37, %v2573_v38  ;;  %v2613_v33 = vld [vmem:[#allocation8 + $0xcb0] sm:$0xff] }
 0x365   :  { %5937 = vmatprep.subr.bf16.mxu1 %v15036_v41  ;;  %v2574_v23 = vld [vmem:[#allocation8 + $0xb78] sm:$0xff]  ;;  %v15073_v41 = vcombine.low %v2561_v30, %v2565_v31 }
 0x366   :  { %v15084_v63 = vcombine.high %v2570_v42, %v2574_v23  ;;  %v15083_v6 = vcombine.low %v2570_v42, %v2574_v23  ;;  %v2617_v23 = vld [vmem:[#allocation8 + $0xcd0] sm:$0xff] }
 0x367   :  { %5766 = vmatpush1.bf16.msra.mxu0 %v15033_v5  ;;  %v2581_v5 = vld [vmem:[#allocation8 + $0xbb0] sm:$0xff] }
 0x368   :  { %5938 = vmatpush1.bf16.msra.mxu1 %v15035_v0  ;;  %5767 = vmatprep.subr.bf16.mxu0 %v15042_v2  ;;  %v2578_v0 = vld [vmem:[#allocation8 + $0xb98] sm:$0xff]  ;;  %v15090_v7 = vcombine.high %v2577_v43, %v2581_v5 }
 0x369   :  { %5939 = vmatprep.subr.bf16.mxu1 %v15044_v8  ;;  %v2582_v2 = vld [vmem:[#allocation8 + $0xbb8] sm:$0xff]  ;;  %v15081_v8 = vcombine.low %v2569_v37, %v2573_v38  ;;  %v15122_v38 = vcombine.high %v2609_v32, %v2613_v33 }
 0x36a   :  { %v15092_v49 = vcombine.high %v2578_v0, %v2582_v2  ;;  %v15091_v16 = vcombine.low %v2578_v0, %v2582_v2  ;;  %v2625_v0 = vld [vmem:[#allocation8 + $0xd10] sm:$0xff] }
 0x36b   :  { %5768 = vmatpush1.bf16.msra.mxu0 %v15041_v46  ;;  %v2589_v46 = vld [vmem:[#allocation8 + $0xbf0] sm:$0xff] }
 0x36c   :  { %5940 = vmatpush1.bf16.msra.mxu1 %v15043_v12  ;;  %5769 = vmatprep.subr.bf16.mxu0 %v15050_v13  ;;  %v2586_v12 = vld [vmem:[#allocation8 + $0xbd8] sm:$0xff]  ;;  %v15098_v60 = vcombine.high %v2585_v11, %v2589_v46  ;;  %v2629_v2 = vld [vmem:[#allocation8 + $0xd30] sm:$0xff] }
 0x36d   :  { %5941 = vmatprep.subr.bf16.mxu1 %v15052_v51  ;;  %v2590_v13 = vld [vmem:[#allocation8 + $0xbf8] sm:$0xff]  ;;  %v15089_v51 = vcombine.low %v2577_v43, %v2581_v5 }
 0x36e   :  { %v15100_v4 = vcombine.high %v2586_v12, %v2590_v13  ;;  %v15099_v21 = vcombine.low %v2586_v12, %v2590_v13  ;;  %v2637_v12 = vld [vmem:[#allocation8 + $0xd70] sm:$0xff]  ;;  %v2634_v13 = vld [vmem:[#allocation8 + $0xd58] sm:$0xff] }
 0x36f   :  { %5770 = vmatpush1.bf16.msra.mxu0 %v15049_v61  ;;  %v2597_v61 = vld [vmem:[#allocation8 + $0xc30] sm:$0xff] }
 0x370   :  { %5942 = vmatpush1.bf16.msra.mxu1 %v15051_v18  ;;  %5771 = vmatprep.subr.bf16.mxu0 %v15058_v20  ;;  %v2594_v18 = vld [vmem:[#allocation8 + $0xc18] sm:$0xff]  ;;  %v15106_v22 = vcombine.high %v2593_v17, %v2597_v61 }
 0x371   :  { %5943 = vmatprep.subr.bf16.mxu1 %v15060_v54  ;;  %v2598_v20 = vld [vmem:[#allocation8 + $0xc38] sm:$0xff]  ;;  %v15097_v54 = vcombine.low %v2585_v11, %v2589_v46  ;;  %v2633_v46 = vld [vmem:[#allocation8 + $0xd50] sm:$0xff] }
 0x372   :  { %v15108_v24 = vcombine.high %v2594_v18, %v2598_v20  ;;  %v15107_v30 = vcombine.low %v2594_v18, %v2598_v20  ;;  %v2641_v18 = vld [vmem:[#allocation8 + $0xd90] sm:$0xff] }
 0x373   :  { %5772 = vmatpush1.bf16.msra.mxu0 %v15057_v26  ;;  %v2605_v26 = vld [vmem:[#allocation8 + $0xc70] sm:$0xff] }
 0x374   :  { %5944 = vmatpush1.bf16.msra.mxu1 %v15059_v27  ;;  %5773 = vmatprep.subr.bf16.mxu0 %v15066_v28  ;;  %v15105_v27 = vcombine.low %v2593_v17, %v2597_v61  ;;  %v2602_v28 = vld [vmem:[#allocation8 + $0xc58] sm:$0xff]  ;;  %v15114_v31 = vcombine.high %v2601_v25, %v2605_v26  ;;  %v15146_v17 = vcombine.high %v2633_v46, %v2637_v12  ;;  %v2645_v20 = vld [vmem:[#allocation8 + $0xdb0] sm:$0xff] }
 0x375   :  { %5945 = vmatprep.subr.bf16.mxu1 %v15068_v29  ;;  %v2606_v29 = vld [vmem:[#allocation8 + $0xc78] sm:$0xff] }
 0x376   :  { %v15115_v37 = vcombine.low %v2602_v28, %v2606_v29 }
 0x377   :  { %5774 = vmatpush1.bf16.msra.mxu0 %v15065_v10  ;;  %v15116_v10 = vcombine.high %v2602_v28, %v2606_v29  ;;  %v15154_v29 = vcombine.high %v2641_v18, %v2645_v20 }
 0x378   :  { %5946 = vmatpush1.bf16.msra.mxu1 %v15067_v34  ;;  %5775 = vmatprep.subr.bf16.mxu0 %v15074_v35  ;;  %v2610_v34 = vld [vmem:[#allocation8 + $0xc98] sm:$0xff] }
 0x379   :  { %5947 = vmatprep.subr.bf16.mxu1 %v15076_v36  ;;  %v2614_v35 = vld [vmem:[#allocation8 + $0xcb8] sm:$0xff]  ;;  %v15113_v36 = vcombine.low %v2601_v25, %v2605_v26  ;;  %v15145_v26 = vcombine.low %v2633_v46, %v2637_v12  ;;  %v2657_v46 = vld [vmem:[#allocation8 + $0xe10] sm:$0xff] }
 0x37a   :  { %v15124_v42 = vcombine.high %v2610_v34, %v2614_v35  ;;  %v2661_v12 = vld [vmem:[#allocation8 + $0xe30] sm:$0xff] }
 0x37b   :  { %5776 = vmatpush1.bf16.msra.mxu0 %v15073_v41  ;;  %v2621_v41 = vld [vmem:[#allocation8 + $0xcf0] sm:$0xff] }
 0x37c   :  { %5948 = vmatpush1.bf16.msra.mxu1 %v15075_v47  ;;  %5777 = vmatprep.subr.bf16.mxu0 %v15082_v62  ;;  %v2618_v47 = vld [vmem:[#allocation8 + $0xcd8] sm:$0xff]  ;;  %v15130_v43 = vcombine.high %v2617_v23, %v2621_v41 }
 0x37d   :  { %5949 = vmatprep.subr.bf16.mxu1 %v15084_v63  ;;  %v2622_v62 = vld [vmem:[#allocation8 + $0xcf8] sm:$0xff]  ;;  %v15121_v63 = vcombine.low %v2609_v32, %v2613_v33 }
 0x37e   :  { %v15132_v5 = vcombine.high %v2618_v47, %v2622_v62 }
 0x37f   :  { %5778 = vmatpush1.bf16.msra.mxu0 %v15081_v8  ;;  %v2626_v8 = vld [vmem:[#allocation8 + $0xd18] sm:$0xff] }
 0x380   :  { %5950 = vmatpush1.bf16.msra.mxu1 %v15083_v6  ;;  %5779 = vmatprep.subr.bf16.mxu0 %v15090_v7  ;;  %v2630_v6 = vld [vmem:[#allocation8 + $0xd38] sm:$0xff]  ;;  %v15131_v7 = vcombine.low %v2618_v47, %v2622_v62 }
 0x381   :  { %5951 = vmatprep.subr.bf16.mxu1 %v15092_v49  ;;  %v15138_v49 = vcombine.high %v2625_v0, %v2629_v2  ;;  %v15140_v11 = vcombine.high %v2626_v8, %v2630_v6 }
 0x383   :  { %5780 = vmatpush1.bf16.msra.mxu0 %v15089_v51  ;;  %v2638_v51 = vld [vmem:[#allocation8 + $0xd78] sm:$0xff] }
 0x384   :  { %5952 = vmatpush1.bf16.msra.mxu1 %v15091_v16  ;;  %5781 = vmatprep.subr.bf16.mxu0 %v15098_v60  ;;  %v15137_v16 = vcombine.low %v2625_v0, %v2629_v2  ;;  %v2719_v60 = vld [vmem:[#allocation10] sm:$0xff]  ;;  %v15148_v61 = vcombine.high %v2634_v13, %v2638_v51  ;;  %v15147_v28 = vcombine.low %v2634_v13, %v2638_v51 }
 0x385   :  { %5953 = vmatprep.subr.bf16.mxu1 %v15100_v4  ;;  %v15139_v4 = vcombine.low %v2626_v8, %v2630_v6  ;;  %v2728_v25 = vrot.slane %v2719_v60, %v17296_v57 }
 0x387   :  { %5782 = vmatpush1.bf16.msra.mxu0 %v15097_v54  ;;  %v2724_v54 = vrot.slane %v2719_v60, %v17288_v50 }
 0x388   :  { %5954 = vmatpush1.bf16.msra.mxu1 %v15099_v21  ;;  %5794 = vmatprep.subr.bf16.mxu0 %v15106_v22  ;;  %v2642_v21 = vld [vmem:[#allocation8 + $0xd98] sm:$0xff] }
 0x389   :  { %5966 = vmatprep.subr.bf16.mxu1 %v15108_v24  ;;  %v2646_v22 = vld [vmem:[#allocation8 + $0xdb8] sm:$0xff]  ;;  %v2732_v24 = vrot.slane %v2719_v60, %v17293_v55 }
 0x38a   :  { %5784 = vmatmul.mubr.bf16.vlgmr.msra.gmra.mrb[20].mxu0 %v17343_v56  ;;  %v15156_v33 = vcombine.high %v2642_v21, %v2646_v22  ;;  %v15155_v62 = vcombine.low %v2642_v21, %v2646_v22  ;;  %v15170_v22 = vcombine.high %v2657_v46, %v2661_v12 }
 0x38b   :  { %5956 = vmatmul.mubr.bf16.vlgmr.msra.gmra.mrb[20].mxu1 %v17343_v56  ;;  %5795 = vmatpush1.bf16.msra.mxu0 %v15105_v27  ;;  %v15123_v56 = vcombine.low %v2610_v34, %v2614_v35  ;;  %v2736_v27 = vrot.slane %v2719_v60, %v17299_v59  ;;  %v2654_v34 = vld [vmem:[#allocation8 + $0xdf8] sm:$0xff] }
 0x38c   :  { %5826 = vmatprep.mubr.bf16.mxu0 %v17349_v1  ;;  %5967 = vmatpush1.bf16.msra.mxu1 %v15107_v30  ;;  %v17413_v30 = vld [vmem:[#allocation8 + $0xdd0] sm:$0xff]  ;;  %v2658_v60 = vld [vmem:[#allocation8 + $0xe18] sm:$0xff] }
 0x38d   :  { %5998 = vmatprep.mubr.bf16.mxu1 %v17349_v1  ;;  %5796 = vmatprep.subr.bf16.mxu0 %v15114_v31  ;;  %v15129_v1 = vcombine.low %v2617_v23, %v2621_v41  ;;  %v17415_v31 = vld [vmem:[#allocation8 + $0xdf0] sm:$0xff] }
 0x38e   :  { %5968 = vmatprep.subr.bf16.mxu1 %v15116_v10  ;;  %v17417_v10 = vld [vmem:[#allocation8 + $0xdd8] sm:$0xff] }
 0x38f   :  { %5797 = vmatpush1.bf16.msra.mxu0 %v15113_v36  ;;  %v15164_v8 = vcombine.high %v17417_v10, %v2654_v34  ;;  %v15163_v21 = vcombine.low %v17417_v10, %v2654_v34 }
 0x390   :  { %5969 = vmatpush1.bf16.msra.mxu1 %v15115_v37  ;;  %5798 = vmatprep.subr.bf16.mxu0 %v15122_v38  ;;  %v15153_v38 = vcombine.low %v2641_v18, %v2645_v20  ;;  %v15161_v18 = vcombine.low %v17413_v30, %v17415_v31 }
 0x391   :  { %5970 = vmatprep.subr.bf16.mxu1 %v15124_v42 }
 0x393   :  { %5799 = vmatpush1.bf16.msra.mxu0 %v15121_v63  ;;  %v15162_v63 = vcombine.high %v17413_v30, %v17415_v31  ;;  %v2666_v30 = vld [vmem:[#allocation8 + $0xe58] sm:$0xff] }
 0x394   :  { %5971 = vmatpush1.bf16.msra.mxu1 %v15123_v56  ;;  %5800 = vmatprep.subr.bf16.mxu0 %v15130_v43  ;;  %v2670_v31 = vld [vmem:[#allocation8 + $0xe78] sm:$0xff] }
 0x395   :  { %5972 = vmatprep.subr.bf16.mxu1 %v15132_v5  ;;  %v15180_v34 = vcombine.high %v2666_v30, %v2670_v31 }
 0x397   :  { %5801 = vmatpush1.bf16.msra.mxu0 %v15129_v1 }
 0x398   :  { %5973 = vmatpush1.bf16.msra.mxu1 %v15131_v7  ;;  %5802 = vmatprep.subr.bf16.mxu0 %v15138_v49 }
 0x399   :  { %5974 = vmatprep.subr.bf16.mxu1 %v15140_v11 }
 0x39b   :  { %5803 = vmatpush1.bf16.msra.mxu0 %v15137_v16 }
 0x39c   :  { %5975 = vmatpush1.bf16.msra.mxu1 %v15139_v4  ;;  %5804 = vmatprep.subr.bf16.mxu0 %v15146_v17  ;;  %v2662_v4 = vld [vmem:[#allocation8 + $0xe38] sm:$0xff] }
 0x39d   :  { %v5484_v32 = vpop.f32.mrb[16].mxu0  ;;  %5976 = vmatprep.subr.bf16.mxu1 %v15148_v61 }
 0x39e   :  { %v16406_v35 = vadd.f32 %v5484_v32, %v2724_v54  ;;  %v5656_v36 = vpop.f32.mrb[16].mxu1  ;;  %v5486_v37 = vpop.f32.mrb[17].mxu0  ;;  %v15169_v32 = vcombine.low %v2657_v46, %v2661_v12 }
 0x39f   :  { %v16410_v42 = vadd.f32 %v5656_v36, %v2732_v24  ;;  %v16407_v23 = vadd.f32 %v5486_v37, %v2728_v25  ;;  %v5658_v41 = vpop.f32.mrb[17].mxu1  ;;  %v5488_v47 = vpop.f32.mrb[18].mxu0  ;;  %5805 = vmatpush1.bf16.msra.mxu0 %v15145_v26  ;;  %v15172_v26 = vcombine.high %v2658_v60, %v2662_v4  ;;  %v2677_v36 = vld [vmem:[#allocation8 + $0xeb0] sm:$0xff]  ;;  %v2674_v37 = vld [vmem:[#allocation8 + $0xe98] sm:$0xff] }
 0x3a0   :  { %v6009_v56 = vmax.f32 %v16406_v35, 0.0  ;;  %v16411_v43 = vadd.f32 %v5658_v41, %v2736_v27  ;;  %v16408_v5 = vadd.f32 %v5488_v47, %v2724_v54  ;;  %v5660_v0 = vpop.f32.mrb[18].mxu1  ;;  %5977 = vmatpush1.bf16.msra.mxu1 %v15147_v28  ;;  %v5490_v2 = vpop.f32.mrb[19].mxu0  ;;  %5806 = vmatprep.subr.bf16.mxu0 %v15154_v29  ;;  %v2669_v28 = vld [vmem:[#allocation8 + $0xe70] sm:$0xff] }
 0x3a1   :  { %v6011_v6 = vmax.f32 %v16410_v42, 0.0  ;;  %v6010_v1 = vmax.f32 %v16407_v23, 0.0  ;;  %v16412_v7 = vadd.f32 %v5660_v0, %v2732_v24  ;;  %v16409_v49 = vadd.f32 %v5490_v2, %v2728_v25  ;;  %v5662_v11 = vpop.f32.mrb[19].mxu1  ;;  %5978 = vmatprep.subr.bf16.mxu1 %v15156_v33  ;;  %v2673_v35 = vld [vmem:[#allocation8 + $0xe90] sm:$0xff] }
 0x3a2   :  { %9843 = vst [vmem:[#allocation20] sm:$0xff] %v6009_v56  ;;  %v6012_v13 = vmax.f32 %v16411_v43, 0.0  ;;  %v6017_v51 = vmax.f32 %v16408_v5, 0.0  ;;  %v16413_v16 = vadd.f32 %v5662_v11, %v2736_v27  ;;  %v2665_v27 = vld [vmem:[#allocation8 + $0xe50] sm:$0xff]  ;;  %v15171_v33 = vcombine.low %v2658_v60, %v2662_v4  ;;  %v2686_v43 = vld [vmem:[#allocation8 + $0xef8] sm:$0xff] }
 0x3a3   :  { %9845 = vst [vmem:[#allocation20 + $0x10] sm:$0xff] %v6011_v6  ;;  %9844 = vst [vmem:[#allocation20 + $0x8] sm:$0xff] %v6010_v1  ;;  %v6019_v17 = vmax.f32 %v16412_v7, 0.0  ;;  %v6018_v61 = vmax.f32 %v16409_v49, 0.0  ;;  %5807 = vmatpush1.bf16.msra.mxu0 %v15153_v38  ;;  %v15178_v10 = vcombine.high %v2665_v27, %v2669_v28  ;;  %v2678_v38 = vld [vmem:[#allocation8 + $0xeb8] sm:$0xff]  ;;  %v15177_v42 = vcombine.low %v2665_v27, %v2669_v28 }
 0x3a4   :  { %9846 = vst [vmem:[#allocation20 + $0x18] sm:$0xff] %v6012_v13  ;;  %9851 = vst [vmem:[#allocation20 + $0x40] sm:$0xff] %v6017_v51  ;;  %v17424_v20 = vpack.c.bf16 %v6017_v51, %v6009_v56  ;;  %v6020_v54 = vmax.f32 %v16413_v16, 0.0  ;;  %5979 = vmatpush1.bf16.msra.mxu1 %v15155_v62  ;;  %5808 = vmatprep.subr.bf16.mxu0 %v15162_v63  ;;  %v15179_v23 = vcombine.low %v2666_v30, %v2670_v31  ;;  %v2681_v62 = vld [vmem:[#allocation8 + $0xed0] sm:$0xff]  ;;  %v2682_v56 = vld [vmem:[#allocation8 + $0xed8] sm:$0xff] }
 0x3a5   :  { %9853 = vst [vmem:[#allocation20 + $0x50] sm:$0xff] %v6019_v17  ;;  %v17427_v24 = vpack.c.bf16 %v6019_v17, %v6011_v6  ;;  %9852 = vst [vmem:[#allocation20 + $0x48] sm:$0xff] %v6018_v61  ;;  %v17429_v25 = vpack.c.bf16 %v6018_v61, %v6010_v1  ;;  %5980 = vmatprep.subr.bf16.mxu1 %v15164_v8  ;;  %v15186_v41 = vcombine.high %v2673_v35, %v2677_v36  ;;  %v2685_v63 = vld [vmem:[#allocation8 + $0xef0] sm:$0xff]  ;;  %v2690_v7 = vld [vmem:[#allocation8 + $0xf18] sm:$0xff] }
 0x3a6   :  { %9854 = vst [vmem:[#allocation20 + $0x58] sm:$0xff] %v6020_v54  ;;  %v17431_v29 = vpack.c.bf16 %v6020_v54, %v6012_v13  ;;  %v15188_v47 = vcombine.high %v2674_v37, %v2678_v38  ;;  %v15185_v5 = vcombine.low %v2673_v35, %v2677_v36  ;;  %v15187_v0 = vcombine.low %v2674_v37, %v2678_v38  ;;  %v2689_v6 = vld [vmem:[#allocation8 + $0xf10] sm:$0xff]  ;;  %v2694_v49 = vld [vmem:[#allocation8 + $0xf38] sm:$0xff] }
 0x3a7   :  { %5809 = vmatpush1.bf16.msra.mxu0 %v15161_v18  ;;  %v15194_v2 = vcombine.high %v2681_v62, %v2685_v63  ;;  %v15196_v8 = vcombine.high %v2682_v56, %v2686_v43  ;;  %v2693_v1 = vld [vmem:[#allocation8 + $0xf30] sm:$0xff]  ;;  %v15193_v11 = vcombine.low %v2681_v62, %v2685_v63  ;;  %v15195_v46 = vcombine.low %v2682_v56, %v2686_v43  ;;  %v2698_v60 = vld [vmem:[#allocation8 + $0xf58] sm:$0xff] }
 0x3a8   :  { %5981 = vmatpush1.bf16.msra.mxu1 %v15163_v21  ;;  %5810 = vmatprep.subr.bf16.mxu0 %v15170_v22  ;;  %v15202_v12 = vcombine.high %v2689_v6, %v2693_v1  ;;  %v15204_v13 = vcombine.high %v2690_v7, %v2694_v49  ;;  %v2697_v51 = vld [vmem:[#allocation8 + $0xf50] sm:$0xff]  ;;  %v2702_v4 = vld [vmem:[#allocation8 + $0xf78] sm:$0xff]  ;;  %v15201_v17 = vcombine.low %v2689_v6, %v2693_v1 }
 0x3a9   :  { %5982 = vmatprep.subr.bf16.mxu1 %v15172_v26  ;;  %v2701_v16 = vld [vmem:[#allocation8 + $0xf70] sm:$0xff]  ;;  %v15203_v61 = vcombine.low %v2690_v7, %v2694_v49  ;;  %v15212_v54 = vcombine.high %v2698_v60, %v2702_v4  ;;  %v2706_v26 = vld [vmem:[#allocation8 + $0xf98] sm:$0xff]  ;;  %v15211_v30 = vcombine.low %v2698_v60, %v2702_v4 }
 0x3aa   :  { %v15210_v18 = vcombine.high %v2697_v51, %v2701_v16  ;;  %v2705_v21 = vld [vmem:[#allocation8 + $0xf90] sm:$0xff]  ;;  %v2710_v27 = vld [vmem:[#allocation8 + $0xfb8] sm:$0xff]  ;;  %v15209_v28 = vcombine.low %v2697_v51, %v2701_v16 }
 0x3ab   :  { %5811 = vmatpush1.bf16.msra.mxu0 %v15169_v32  ;;  %v2709_v22 = vld [vmem:[#allocation8 + $0xfb0] sm:$0xff]  ;;  %v15220_v32 = vcombine.high %v2706_v26, %v2710_v27  ;;  %v2718_v35 = vld [vmem:[#allocation8 + $0xff8] sm:$0xff]  ;;  %v15219_v37 = vcombine.low %v2706_v26, %v2710_v27 }
 0x3ac   :  { %5983 = vmatpush1.bf16.msra.mxu1 %v15171_v33  ;;  %5812 = vmatprep.subr.bf16.mxu0 %v15178_v10  ;;  %v15218_v31 = vcombine.high %v2705_v21, %v2709_v22  ;;  %v2713_v33 = vld [vmem:[#allocation8 + $0xfd0] sm:$0xff]  ;;  %v15217_v36 = vcombine.low %v2705_v21, %v2709_v22 }
 0x3ad   :  { %5984 = vmatprep.subr.bf16.mxu1 %v15180_v34  ;;  %v2717_v10 = vld [vmem:[#allocation8 + $0xff0] sm:$0xff]  ;;  %v2714_v34 = vld [vmem:[#allocation8 + $0xfd8] sm:$0xff] }
 0x3ae   :  { %v15226_v38 = vcombine.high %v2713_v33, %v2717_v10  ;;  %v6030_v62 = vld [vmem:[#allocation11 + $0x28] sm:$0xff]  ;;  %v15225_v63 = vcombine.low %v2713_v33, %v2717_v10  ;;  %v15227_v56 = vcombine.low %v2714_v34, %v2718_v35 }
 0x3af   :  { %5813 = vmatpush1.bf16.msra.mxu0 %v15177_v42  ;;  %v15228_v42 = vcombine.high %v2714_v34, %v2718_v35  ;;  %v6034_v6 = vld [vmem:[#allocation11 + $0x48] sm:$0xff] }
 0x3b0   :  { %5985 = vmatpush1.bf16.msra.mxu1 %v15179_v23  ;;  %5814 = vmatprep.subr.bf16.mxu0 %v15186_v41  ;;  %v6025_v23 = vld [vmem:[#allocation11] sm:$0xff]  ;;  %v6038_v1 = vld [vmem:[#allocation11 + $0x68] sm:$0xff] }
 0x3b1   :  { %5986 = vmatprep.subr.bf16.mxu1 %v15188_v47  ;;  %v6029_v41 = vld [vmem:[#allocation11 + $0x20] sm:$0xff]  ;;  %v6026_v47 = vld [vmem:[#allocation11 + $0x8] sm:$0xff]  ;;  %v15239_v60 = vcombine.low %v6034_v6, %v6038_v1 }
 0x3b2   :  { %v15230_v43 = vcombine.high %v6025_v23, %v6029_v41  ;;  %v15231_v7 = vcombine.low %v6026_v47, %v6030_v62  ;;  %v6046_v51 = vld [vmem:[#allocation11 + $0xa8] sm:$0xff] }
 0x3b3   :  { %5815 = vmatpush1.bf16.msra.mxu0 %v15185_v5  ;;  %v15232_v5 = vcombine.high %v6026_v47, %v6030_v62  ;;  %v6054_v21 = vld [vmem:[#allocation11 + $0xe8] sm:$0xff] }
 0x3b4   :  { %5987 = vmatpush1.bf16.msra.mxu1 %v15187_v0  ;;  %5816 = vmatprep.subr.bf16.mxu0 %v15194_v2  ;;  %v6033_v0 = vld [vmem:[#allocation11 + $0x40] sm:$0xff] }
 0x3b5   :  { %5988 = vmatprep.subr.bf16.mxu1 %v15196_v8  ;;  %v6037_v2 = vld [vmem:[#allocation11 + $0x60] sm:$0xff]  ;;  %v15229_v8 = vcombine.low %v6025_v23, %v6029_v41 }
 0x3b6   :  { %v15238_v49 = vcombine.high %v6033_v0, %v6037_v2  ;;  %v15237_v16 = vcombine.low %v6033_v0, %v6037_v2 }
 0x3b7   :  { %5817 = vmatpush1.bf16.msra.mxu0 %v15193_v11  ;;  %v6041_v11 = vld [vmem:[#allocation11 + $0x80] sm:$0xff] }
 0x3b8   :  { %5989 = vmatpush1.bf16.msra.mxu1 %v15195_v46  ;;  %5818 = vmatprep.subr.bf16.mxu0 %v15202_v12  ;;  %v6045_v46 = vld [vmem:[#allocation11 + $0xa0] sm:$0xff]  ;;  %v15240_v12 = vcombine.high %v6034_v6, %v6038_v1 }
 0x3b9   :  { %5990 = vmatprep.subr.bf16.mxu1 %v15204_v13  ;;  %v6042_v13 = vld [vmem:[#allocation11 + $0x88] sm:$0xff]  ;;  %v15246_v4 = vcombine.high %v6041_v11, %v6045_v46  ;;  %v15245_v22 = vcombine.low %v6041_v11, %v6045_v46  ;;  %v6081_v1 = vld [vmem:[#allocation11 + $0x1c0] sm:$0xff] }
 0x3ba   :  { %v6086_v11 = vld [vmem:[#allocation11 + $0x1e8] sm:$0xff] }
 0x3bb   :  { %5819 = vmatpush1.bf16.msra.mxu0 %v15201_v17  ;;  %v15248_v17 = vcombine.high %v6042_v13, %v6046_v51 }
 0x3bc   :  { %5991 = vmatpush1.bf16.msra.mxu1 %v15203_v61  ;;  %5820 = vmatprep.subr.bf16.mxu0 %v15210_v18  ;;  %v6049_v61 = vld [vmem:[#allocation11 + $0xc0] sm:$0xff] }
 0x3bd   :  { %5992 = vmatprep.subr.bf16.mxu1 %v15212_v54  ;;  %v6053_v18 = vld [vmem:[#allocation11 + $0xe0] sm:$0xff]  ;;  %v6050_v54 = vld [vmem:[#allocation11 + $0xc8] sm:$0xff] }
 0x3be   :  { %v15254_v26 = vcombine.high %v6049_v61, %v6053_v18  ;;  %v15256_v27 = vcombine.high %v6050_v54, %v6054_v21  ;;  %v15253_v33 = vcombine.low %v6049_v61, %v6053_v18  ;;  %v15255_v10 = vcombine.low %v6050_v54, %v6054_v21 }
 0x3bf   :  { %5821 = vmatpush1.bf16.msra.mxu0 %v15209_v28  ;;  %v6057_v28 = vld [vmem:[#allocation11 + $0x100] sm:$0xff] }
 0x3c0   :  { %5993 = vmatpush1.bf16.msra.mxu1 %v15211_v30  ;;  %5822 = vmatprep.subr.bf16.mxu0 %v15218_v31  ;;  %v6061_v30 = vld [vmem:[#allocation11 + $0x120] sm:$0xff]  ;;  %v6058_v31 = vld [vmem:[#allocation11 + $0x108] sm:$0xff] }
 0x3c1   :  { %5994 = vmatprep.subr.bf16.mxu1 %v15220_v32  ;;  %v6062_v32 = vld [vmem:[#allocation11 + $0x128] sm:$0xff]  ;;  %v15262_v34 = vcombine.high %v6057_v28, %v6061_v30  ;;  %v15261_v23 = vcombine.low %v6057_v28, %v6061_v30 }
 0x3c2   :  { %v15264_v35 = vcombine.high %v6058_v31, %v6062_v32  ;;  %v15263_v41 = vcombine.low %v6058_v31, %v6062_v32 }
 0x3c3   :  { %5823 = vmatpush1.bf16.msra.mxu0 %v15217_v36  ;;  %v6065_v36 = vld [vmem:[#allocation11 + $0x140] sm:$0xff] }
 0x3c4   :  { %5995 = vmatpush1.bf16.msra.mxu1 %v15219_v37  ;;  %5824 = vmatprep.subr.bf16.mxu0 %v15226_v38  ;;  %v6069_v37 = vld [vmem:[#allocation11 + $0x160] sm:$0xff]  ;;  %v6066_v38 = vld [vmem:[#allocation11 + $0x148] sm:$0xff] }
 0x3c5   :  { %5996 = vmatprep.subr.bf16.mxu1 %v15228_v42  ;;  %v6070_v42 = vld [vmem:[#allocation11 + $0x168] sm:$0xff]  ;;  %v15270_v47 = vcombine.high %v6065_v36, %v6069_v37  ;;  %v15269_v0 = vcombine.low %v6065_v36, %v6069_v37 }
 0x3c6   :  { %v15272_v62 = vcombine.high %v6066_v38, %v6070_v42  ;;  %v15271_v2 = vcombine.low %v6066_v38, %v6070_v42 }
 0x3c7   :  { %5825 = vmatpush1.bf16.msra.mxu0 %v15225_v63  ;;  %v6073_v63 = vld [vmem:[#allocation11 + $0x180] sm:$0xff] }
 0x3c8   :  { %5997 = vmatpush1.bf16.msra.mxu1 %v15227_v56  ;;  %9139 = vmatprep.subr.bf16.mxu0 %v15230_v43  ;;  %v6077_v56 = vld [vmem:[#allocation11 + $0x1a0] sm:$0xff]  ;;  %v6074_v43 = vld [vmem:[#allocation11 + $0x188] sm:$0xff] }
 0x3c9   :  { %9311 = vmatprep.subr.bf16.mxu1 %v15232_v5  ;;  %v6078_v5 = vld [vmem:[#allocation11 + $0x1a8] sm:$0xff]  ;;  %v15277_v46 = vcombine.low %v6073_v63, %v6077_v56 }
 0x3ca   :  { %5827 = vmatmul.mubr.bf16.vlgmr.msra.gmra.mrb[20].mxu0 %v17345_v58  ;;  %v15280_v6 = vcombine.high %v6074_v43, %v6078_v5 }
 0x3cb   :  { %5999 = vmatmul.mubr.bf16.vlgmr.msra.gmra.mrb[20].mxu1 %v17345_v58  ;;  %9140 = vmatpush1.bf16.msra.mxu0 %v15229_v8  ;;  %v15247_v58 = vcombine.low %v6042_v13, %v6046_v51  ;;  %v15278_v8 = vcombine.high %v6073_v63, %v6077_v56 }
 0x3cc   :  { %9171 = vmatprep.mubr.bf16.mxu0 %v17369_v15  ;;  %9312 = vmatpush1.bf16.msra.mxu1 %v15231_v7  ;;  %v6085_v7 = vld [vmem:[#allocation11 + $0x1e0] sm:$0xff] }
 0x3cd   :  { %9343 = vmatprep.mubr.bf16.mxu1 %v17369_v15  ;;  %9141 = vmatprep.subr.bf16.mxu0 %v15238_v49  ;;  %v6082_v49 = vld [vmem:[#allocation11 + $0x1c8] sm:$0xff]  ;;  %v15286_v13 = vcombine.high %v6081_v1, %v6085_v7  ;;  %v15285_v61 = vcombine.low %v6081_v1, %v6085_v7 }
 0x3ce   :  { %9313 = vmatprep.subr.bf16.mxu1 %v15240_v12  ;;  %v15279_v12 = vcombine.low %v6074_v43, %v6078_v5  ;;  %v15288_v51 = vcombine.high %v6082_v49, %v6086_v11  ;;  %v15287_v18 = vcombine.low %v6082_v49, %v6086_v11 }
 0x3cf   :  { %9142 = vmatpush1.bf16.msra.mxu0 %v15237_v16  ;;  %v6089_v16 = vld [vmem:[#allocation11 + $0x200] sm:$0xff] }
 0x3d0   :  { %9314 = vmatpush1.bf16.msra.mxu1 %v15239_v60  ;;  %9143 = vmatprep.subr.bf16.mxu0 %v15246_v4  ;;  %v6093_v60 = vld [vmem:[#allocation11 + $0x220] sm:$0xff]  ;;  %v6090_v4 = vld [vmem:[#allocation11 + $0x208] sm:$0xff] }
 0x3d1   :  { %9315 = vmatprep.subr.bf16.mxu1 %v15248_v17  ;;  %v6094_v17 = vld [vmem:[#allocation11 + $0x228] sm:$0xff]  ;;  %v15294_v54 = vcombine.high %v6089_v16, %v6093_v60  ;;  %v15293_v28 = vcombine.low %v6089_v16, %v6093_v60 }
 0x3d2   :  { %v15296_v21 = vcombine.high %v6090_v4, %v6094_v17  ;;  %v15295_v30 = vcombine.low %v6090_v4, %v6094_v17 }
 0x3d3   :  { %9144 = vmatpush1.bf16.msra.mxu0 %v15245_v22  ;;  %v6097_v22 = vld [vmem:[#allocation11 + $0x240] sm:$0xff] }
 0x3d4   :  { %9316 = vmatpush1.bf16.msra.mxu1 %v15247_v58  ;;  %9145 = vmatprep.subr.bf16.mxu0 %v15254_v26  ;;  %v6101_v58 = vld [vmem:[#allocation11 + $0x260] sm:$0xff]  ;;  %v6098_v26 = vld [vmem:[#allocation11 + $0x248] sm:$0xff] }
 0x3d5   :  { %9317 = vmatprep.subr.bf16.mxu1 %v15256_v27  ;;  %v6102_v27 = vld [vmem:[#allocation11 + $0x268] sm:$0xff]  ;;  %v15302_v31 = vcombine.high %v6097_v22, %v6101_v58  ;;  %v15301_v36 = vcombine.low %v6097_v22, %v6101_v58 }
 0x3d6   :  { %v15304_v32 = vcombine.high %v6098_v26, %v6102_v27  ;;  %v15303_v37 = vcombine.low %v6098_v26, %v6102_v27 }
 0x3d7   :  { %9146 = vmatpush1.bf16.msra.mxu0 %v15253_v33  ;;  %v6105_v33 = vld [vmem:[#allocation11 + $0x280] sm:$0xff] }
 0x3d8   :  { %9318 = vmatpush1.bf16.msra.mxu1 %v15255_v10  ;;  %9147 = vmatprep.subr.bf16.mxu0 %v15262_v34  ;;  %v6109_v10 = vld [vmem:[#allocation11 + $0x2a0] sm:$0xff]  ;;  %v6106_v34 = vld [vmem:[#allocation11 + $0x288] sm:$0xff] }
 0x3d9   :  { %9319 = vmatprep.subr.bf16.mxu1 %v15264_v35  ;;  %v6110_v35 = vld [vmem:[#allocation11 + $0x2a8] sm:$0xff]  ;;  %v15310_v38 = vcombine.high %v6105_v33, %v6109_v10  ;;  %v15309_v63 = vcombine.low %v6105_v33, %v6109_v10 }
 0x3da   :  { %v15312_v42 = vcombine.high %v6106_v34, %v6110_v35  ;;  %v15311_v56 = vcombine.low %v6106_v34, %v6110_v35 }
 0x3db   :  { %9148 = vmatpush1.bf16.msra.mxu0 %v15261_v23  ;;  %v6113_v23 = vld [vmem:[#allocation11 + $0x2c0] sm:$0xff] }
 0x3dc   :  { %9320 = vmatpush1.bf16.msra.mxu1 %v15263_v41  ;;  %9149 = vmatprep.subr.bf16.mxu0 %v15270_v47  ;;  %v6117_v41 = vld [vmem:[#allocation11 + $0x2e0] sm:$0xff]  ;;  %v6114_v47 = vld [vmem:[#allocation11 + $0x2c8] sm:$0xff] }
 0x3dd   :  { %9321 = vmatprep.subr.bf16.mxu1 %v15272_v62  ;;  %v6118_v62 = vld [vmem:[#allocation11 + $0x2e8] sm:$0xff]  ;;  %v15318_v43 = vcombine.high %v6113_v23, %v6117_v41  ;;  %v15317_v1 = vcombine.low %v6113_v23, %v6117_v41 }
 0x3de   :  { %v15320_v5 = vcombine.high %v6114_v47, %v6118_v62  ;;  %v15319_v7 = vcombine.low %v6114_v47, %v6118_v62 }
 0x3df   :  { %9150 = vmatpush1.bf16.msra.mxu0 %v15269_v0  ;;  %v6121_v0 = vld [vmem:[#allocation11 + $0x300] sm:$0xff] }
 0x3e0   :  { %9322 = vmatpush1.bf16.msra.mxu1 %v15271_v2  ;;  %9151 = vmatprep.subr.bf16.mxu0 %v15278_v8  ;;  %v6125_v2 = vld [vmem:[#allocation11 + $0x320] sm:$0xff]  ;;  %v6122_v8 = vld [vmem:[#allocation11 + $0x308] sm:$0xff] }
 0x3e1   :  { %9323 = vmatprep.subr.bf16.mxu1 %v15280_v6  ;;  %v6126_v6 = vld [vmem:[#allocation11 + $0x328] sm:$0xff]  ;;  %v15326_v49 = vcombine.high %v6121_v0, %v6125_v2  ;;  %v15325_v16 = vcombine.low %v6121_v0, %v6125_v2 }
 0x3e2   :  { %v15328_v11 = vcombine.high %v6122_v8, %v6126_v6  ;;  %v15327_v60 = vcombine.low %v6122_v8, %v6126_v6  ;;  %v6166_v0 = vld [vmem:[#allocation11 + $0x468] sm:$0xff]  ;;  %v6169_v6 = vld [vmem:[#allocation11 + $0x480] sm:$0xff] }
 0x3e3   :  { %9152 = vmatpush1.bf16.msra.mxu0 %v15277_v46  ;;  %v6129_v46 = vld [vmem:[#allocation11 + $0x340] sm:$0xff] }
 0x3e4   :  { %9324 = vmatpush1.bf16.msra.mxu1 %v15279_v12  ;;  %9153 = vmatprep.subr.bf16.mxu0 %v15286_v13  ;;  %v6133_v12 = vld [vmem:[#allocation11 + $0x360] sm:$0xff]  ;;  %v6130_v13 = vld [vmem:[#allocation11 + $0x348] sm:$0xff] }
 0x3e5   :  { %9325 = vmatprep.subr.bf16.mxu1 %v15288_v51  ;;  %v6134_v51 = vld [vmem:[#allocation11 + $0x368] sm:$0xff]  ;;  %v15334_v4 = vcombine.high %v6129_v46, %v6133_v12  ;;  %v15333_v22 = vcombine.low %v6129_v46, %v6133_v12 }
 0x3e6   :  { %v15336_v17 = vcombine.high %v6130_v13, %v6134_v51  ;;  %v15335_v58 = vcombine.low %v6130_v13, %v6134_v51 }
 0x3e7   :  { %9154 = vmatpush1.bf16.msra.mxu0 %v15285_v61  ;;  %v6137_v61 = vld [vmem:[#allocation11 + $0x380] sm:$0xff] }
 0x3e8   :  { %9326 = vmatpush1.bf16.msra.mxu1 %v15287_v18  ;;  %9155 = vmatprep.subr.bf16.mxu0 %v15294_v54  ;;  %v6141_v18 = vld [vmem:[#allocation11 + $0x3a0] sm:$0xff]  ;;  %v6138_v54 = vld [vmem:[#allocation11 + $0x388] sm:$0xff] }
 0x3e9   :  { %9327 = vmatprep.subr.bf16.mxu1 %v15296_v21  ;;  %v6142_v21 = vld [vmem:[#allocation11 + $0x3a8] sm:$0xff]  ;;  %v15342_v26 = vcombine.high %v6137_v61, %v6141_v18  ;;  %v15341_v33 = vcombine.low %v6137_v61, %v6141_v18 }
 0x3ea   :  { %v15344_v27 = vcombine.high %v6138_v54, %v6142_v21  ;;  %v15343_v10 = vcombine.low %v6138_v54, %v6142_v21 }
 0x3eb   :  { %9156 = vmatpush1.bf16.msra.mxu0 %v15293_v28  ;;  %v6145_v28 = vld [vmem:[#allocation11 + $0x3c0] sm:$0xff] }
 0x3ec   :  { %9328 = vmatpush1.bf16.msra.mxu1 %v15295_v30  ;;  %9157 = vmatprep.subr.bf16.mxu0 %v15302_v31  ;;  %v6149_v30 = vld [vmem:[#allocation11 + $0x3e0] sm:$0xff]  ;;  %v6146_v31 = vld [vmem:[#allocation11 + $0x3c8] sm:$0xff] }
 0x3ed   :  { %9329 = vmatprep.subr.bf16.mxu1 %v15304_v32  ;;  %v6150_v32 = vld [vmem:[#allocation11 + $0x3e8] sm:$0xff]  ;;  %v15350_v34 = vcombine.high %v6145_v28, %v6149_v30  ;;  %v15349_v23 = vcombine.low %v6145_v28, %v6149_v30 }
 0x3ee   :  { %v15352_v35 = vcombine.high %v6146_v31, %v6150_v32  ;;  %v15351_v41 = vcombine.low %v6146_v31, %v6150_v32 }
 0x3ef   :  { %9158 = vmatpush1.bf16.msra.mxu0 %v15301_v36  ;;  %v6153_v36 = vld [vmem:[#allocation11 + $0x400] sm:$0xff] }
 0x3f0   :  { %9330 = vmatpush1.bf16.msra.mxu1 %v15303_v37  ;;  %9159 = vmatprep.subr.bf16.mxu0 %v15310_v38  ;;  %v6157_v37 = vld [vmem:[#allocation11 + $0x420] sm:$0xff]  ;;  %v6154_v38 = vld [vmem:[#allocation11 + $0x408] sm:$0xff] }
 0x3f1   :  { %9331 = vmatprep.subr.bf16.mxu1 %v15312_v42  ;;  %v6158_v42 = vld [vmem:[#allocation11 + $0x428] sm:$0xff]  ;;  %v15358_v47 = vcombine.high %v6153_v36, %v6157_v37 }
 0x3f2   :  { %v15360_v62 = vcombine.high %v6154_v38, %v6158_v42  ;;  %v15359_v2 = vcombine.low %v6154_v38, %v6158_v42 }
 0x3f3   :  { %9160 = vmatpush1.bf16.msra.mxu0 %v15309_v63  ;;  %v6161_v63 = vld [vmem:[#allocation11 + $0x440] sm:$0xff] }
 0x3f4   :  { %9332 = vmatpush1.bf16.msra.mxu1 %v15311_v56  ;;  %9161 = vmatprep.subr.bf16.mxu0 %v15318_v43  ;;  %v6165_v56 = vld [vmem:[#allocation11 + $0x460] sm:$0xff]  ;;  %v15357_v43 = vcombine.low %v6153_v36, %v6157_v37 }
 0x3f5   :  { %9333 = vmatprep.subr.bf16.mxu1 %v15320_v5  ;;  %v6162_v5 = vld [vmem:[#allocation11 + $0x448] sm:$0xff]  ;;  %v15366_v8 = vcombine.high %v6161_v63, %v6165_v56  ;;  %v15365_v46 = vcombine.low %v6161_v63, %v6165_v56 }
 0x3f6   :  { %v15367_v12 = vcombine.low %v6162_v5, %v6166_v0 }
 0x3f7   :  { %9162 = vmatpush1.bf16.msra.mxu0 %v15317_v1  ;;  %v6173_v1 = vld [vmem:[#allocation11 + $0x4a0] sm:$0xff] }
 0x3f8   :  { %9334 = vmatpush1.bf16.msra.mxu1 %v15319_v7  ;;  %9163 = vmatprep.subr.bf16.mxu0 %v15326_v49  ;;  %v15368_v7 = vcombine.high %v6162_v5, %v6166_v0  ;;  %v6170_v49 = vld [vmem:[#allocation11 + $0x488] sm:$0xff]  ;;  %v15374_v13 = vcombine.high %v6169_v6, %v6173_v1  ;;  %v15373_v61 = vcombine.low %v6169_v6, %v6173_v1  ;;  %v6209_v0 = vld [vmem:[#allocation11 + $0x5c0] sm:$0xff] }
 0x3f9   :  { %9335 = vmatprep.subr.bf16.mxu1 %v15328_v11  ;;  %v6174_v11 = vld [vmem:[#allocation11 + $0x4a8] sm:$0xff] }
 0x3fa   :  { %v15376_v51 = vcombine.high %v6170_v49, %v6174_v11  ;;  %v15375_v18 = vcombine.low %v6170_v49, %v6174_v11  ;;  %v6214_v6 = vld [vmem:[#allocation11 + $0x5e8] sm:$0xff] }
 0x3fb   :  { %9164 = vmatpush1.bf16.msra.mxu0 %v15325_v16  ;;  %v6177_v16 = vld [vmem:[#allocation11 + $0x4c0] sm:$0xff] }
 0x3fc   :  { %9336 = vmatpush1.bf16.msra.mxu1 %v15327_v60  ;;  %9165 = vmatprep.subr.bf16.mxu0 %v15334_v4  ;;  %v6181_v60 = vld [vmem:[#allocation11 + $0x4e0] sm:$0xff]  ;;  %v6178_v4 = vld [vmem:[#allocation11 + $0x4c8] sm:$0xff] }
 0x3fd   :  { %9337 = vmatprep.subr.bf16.mxu1 %v15336_v17  ;;  %v6182_v17 = vld [vmem:[#allocation11 + $0x4e8] sm:$0xff]  ;;  %v15382_v54 = vcombine.high %v6177_v16, %v6181_v60  ;;  %v15381_v28 = vcombine.low %v6177_v16, %v6181_v60 }
 0x3fe   :  { %v15384_v21 = vcombine.high %v6178_v4, %v6182_v17  ;;  %v15383_v30 = vcombine.low %v6178_v4, %v6182_v17 }
 0x3ff   :  { %9166 = vmatpush1.bf16.msra.mxu0 %v15333_v22  ;;  %v6185_v22 = vld [vmem:[#allocation11 + $0x500] sm:$0xff] }
 0x400   :  { %9338 = vmatpush1.bf16.msra.mxu1 %v15335_v58  ;;  %9167 = vmatprep.subr.bf16.mxu0 %v15342_v26  ;;  %v6189_v58 = vld [vmem:[#allocation11 + $0x520] sm:$0xff]  ;;  %v6186_v26 = vld [vmem:[#allocation11 + $0x508] sm:$0xff] }
 0x401   :  { %9339 = vmatprep.subr.bf16.mxu1 %v15344_v27  ;;  %v6190_v27 = vld [vmem:[#allocation11 + $0x528] sm:$0xff]  ;;  %v15390_v31 = vcombine.high %v6185_v22, %v6189_v58  ;;  %v15389_v36 = vcombine.low %v6185_v22, %v6189_v58 }
 0x402   :  { %v15392_v32 = vcombine.high %v6186_v26, %v6190_v27  ;;  %v15391_v37 = vcombine.low %v6186_v26, %v6190_v27 }
 0x403   :  { %9168 = vmatpush1.bf16.msra.mxu0 %v15341_v33  ;;  %v6193_v33 = vld [vmem:[#allocation11 + $0x540] sm:$0xff] }
 0x404   :  { %9340 = vmatpush1.bf16.msra.mxu1 %v15343_v10  ;;  %9169 = vmatprep.subr.bf16.mxu0 %v15350_v34  ;;  %v6197_v10 = vld [vmem:[#allocation11 + $0x560] sm:$0xff]  ;;  %v6194_v34 = vld [vmem:[#allocation11 + $0x548] sm:$0xff] }
 0x405   :  { %9341 = vmatprep.subr.bf16.mxu1 %v15352_v35  ;;  %v6198_v35 = vld [vmem:[#allocation11 + $0x568] sm:$0xff]  ;;  %v15398_v38 = vcombine.high %v6193_v33, %v6197_v10  ;;  %v15397_v63 = vcombine.low %v6193_v33, %v6197_v10 }
 0x406   :  { %v15400_v42 = vcombine.high %v6194_v34, %v6198_v35  ;;  %v15399_v56 = vcombine.low %v6194_v34, %v6198_v35 }
 0x407   :  { %9170 = vmatpush1.bf16.msra.mxu0 %v15349_v23  ;;  %v6201_v23 = vld [vmem:[#allocation11 + $0x580] sm:$0xff] }
 0x408   :  { %9342 = vmatpush1.bf16.msra.mxu1 %v15351_v41  ;;  %9182 = vmatprep.subr.bf16.mxu0 %v15358_v47  ;;  %v6205_v41 = vld [vmem:[#allocation11 + $0x5a0] sm:$0xff]  ;;  %v6202_v47 = vld [vmem:[#allocation11 + $0x588] sm:$0xff] }
 0x409   :  { %9354 = vmatprep.subr.bf16.mxu1 %v15360_v62  ;;  %v6206_v62 = vld [vmem:[#allocation11 + $0x5a8] sm:$0xff]  ;;  %v15405_v1 = vcombine.low %v6201_v23, %v6205_v41 }
 0x40a   :  { %9172 = vmatmul.mubr.bf16.vlgmr.msra.gmra.mrb[24].mxu0 %v17365_v9  ;;  %v15408_v5 = vcombine.high %v6202_v47, %v6206_v62 }
 0x40b   :  { %9344 = vmatmul.mubr.bf16.vlgmr.msra.gmra.mrb[24].mxu1 %v17365_v9  ;;  %9183 = vmatpush1.bf16.msra.mxu0 %v15357_v43  ;;  %v15406_v43 = vcombine.high %v6201_v23, %v6205_v41 }
 0x40c   :  { %9214 = vmatprep.mubr.bf16.mxu0 %v17371_v19  ;;  %9355 = vmatpush1.bf16.msra.mxu1 %v15359_v2  ;;  %v6213_v2 = vld [vmem:[#allocation11 + $0x5e0] sm:$0xff] }
 0x40d   :  { %9386 = vmatprep.mubr.bf16.mxu1 %v17371_v19  ;;  %9184 = vmatprep.subr.bf16.mxu0 %v15366_v8  ;;  %v6210_v8 = vld [vmem:[#allocation11 + $0x5c8] sm:$0xff]  ;;  %v15414_v49 = vcombine.high %v6209_v0, %v6213_v2  ;;  %v15413_v16 = vcombine.low %v6209_v0, %v6213_v2 }
 0x40e   :  { %9356 = vmatprep.subr.bf16.mxu1 %v15368_v7  ;;  %v15407_v7 = vcombine.low %v6202_v47, %v6206_v62  ;;  %v15416_v11 = vcombine.high %v6210_v8, %v6214_v6  ;;  %v15415_v60 = vcombine.low %v6210_v8, %v6214_v6 }
 0x40f   :  { %9185 = vmatpush1.bf16.msra.mxu0 %v15365_v46  ;;  %v6217_v46 = vld [vmem:[#allocation11 + $0x600] sm:$0xff] }
 0x410   :  { %9357 = vmatpush1.bf16.msra.mxu1 %v15367_v12  ;;  %9186 = vmatprep.subr.bf16.mxu0 %v15374_v13  ;;  %v6221_v12 = vld [vmem:[#allocation11 + $0x620] sm:$0xff]  ;;  %v6218_v13 = vld [vmem:[#allocation11 + $0x608] sm:$0xff] }
 0x411   :  { %9358 = vmatprep.subr.bf16.mxu1 %v15376_v51  ;;  %v6222_v51 = vld [vmem:[#allocation11 + $0x628] sm:$0xff]  ;;  %v15422_v4 = vcombine.high %v6217_v46, %v6221_v12  ;;  %v15421_v22 = vcombine.low %v6217_v46, %v6221_v12 }
 0x412   :  { %v15424_v17 = vcombine.high %v6218_v13, %v6222_v51  ;;  %v15423_v58 = vcombine.low %v6218_v13, %v6222_v51 }
 0x413   :  { %9187 = vmatpush1.bf16.msra.mxu0 %v15373_v61  ;;  %v6225_v61 = vld [vmem:[#allocation11 + $0x640] sm:$0xff] }
 0x414   :  { %9359 = vmatpush1.bf16.msra.mxu1 %v15375_v18  ;;  %9188 = vmatprep.subr.bf16.mxu0 %v15382_v54  ;;  %v6229_v18 = vld [vmem:[#allocation11 + $0x660] sm:$0xff]  ;;  %v6226_v54 = vld [vmem:[#allocation11 + $0x648] sm:$0xff] }
 0x415   :  { %9360 = vmatprep.subr.bf16.mxu1 %v15384_v21  ;;  %v6230_v21 = vld [vmem:[#allocation11 + $0x668] sm:$0xff]  ;;  %v15430_v26 = vcombine.high %v6225_v61, %v6229_v18  ;;  %v15429_v33 = vcombine.low %v6225_v61, %v6229_v18 }
 0x416   :  { %v15432_v27 = vcombine.high %v6226_v54, %v6230_v21  ;;  %v15431_v10 = vcombine.low %v6226_v54, %v6230_v21 }
 0x417   :  { %9189 = vmatpush1.bf16.msra.mxu0 %v15381_v28  ;;  %v6233_v28 = vld [vmem:[#allocation11 + $0x680] sm:$0xff] }
 0x418   :  { %9361 = vmatpush1.bf16.msra.mxu1 %v15383_v30  ;;  %9190 = vmatprep.subr.bf16.mxu0 %v15390_v31  ;;  %v6237_v30 = vld [vmem:[#allocation11 + $0x6a0] sm:$0xff]  ;;  %v6234_v31 = vld [vmem:[#allocation11 + $0x688] sm:$0xff] }
 0x419   :  { %9362 = vmatprep.subr.bf16.mxu1 %v15392_v32  ;;  %v6238_v32 = vld [vmem:[#allocation11 + $0x6a8] sm:$0xff]  ;;  %v15438_v34 = vcombine.high %v6233_v28, %v6237_v30  ;;  %v15437_v23 = vcombine.low %v6233_v28, %v6237_v30 }
 0x41a   :  { %v15440_v35 = vcombine.high %v6234_v31, %v6238_v32  ;;  %v15439_v41 = vcombine.low %v6234_v31, %v6238_v32 }
 0x41b   :  { %9191 = vmatpush1.bf16.msra.mxu0 %v15389_v36  ;;  %v6241_v36 = vld [vmem:[#allocation11 + $0x6c0] sm:$0xff] }
 0x41c   :  { %9363 = vmatpush1.bf16.msra.mxu1 %v15391_v37  ;;  %9192 = vmatprep.subr.bf16.mxu0 %v15398_v38  ;;  %v6245_v37 = vld [vmem:[#allocation11 + $0x6e0] sm:$0xff]  ;;  %v6242_v38 = vld [vmem:[#allocation11 + $0x6c8] sm:$0xff] }
 0x41d   :  { %9364 = vmatprep.subr.bf16.mxu1 %v15400_v42  ;;  %v6246_v42 = vld [vmem:[#allocation11 + $0x6e8] sm:$0xff]  ;;  %v15446_v47 = vcombine.high %v6241_v36, %v6245_v37  ;;  %v15445_v0 = vcombine.low %v6241_v36, %v6245_v37 }
 0x41e   :  { %v15448_v62 = vcombine.high %v6242_v38, %v6246_v42  ;;  %v15447_v2 = vcombine.low %v6242_v38, %v6246_v42 }
 0x41f   :  { %9193 = vmatpush1.bf16.msra.mxu0 %v15397_v63  ;;  %v6249_v63 = vld [vmem:[#allocation11 + $0x700] sm:$0xff] }
 0x420   :  { %9365 = vmatpush1.bf16.msra.mxu1 %v15399_v56  ;;  %9194 = vmatprep.subr.bf16.mxu0 %v15406_v43  ;;  %v6253_v56 = vld [vmem:[#allocation11 + $0x720] sm:$0xff]  ;;  %v6250_v43 = vld [vmem:[#allocation11 + $0x708] sm:$0xff] }
 0x421   :  { %9366 = vmatprep.subr.bf16.mxu1 %v15408_v5  ;;  %v6254_v5 = vld [vmem:[#allocation11 + $0x728] sm:$0xff]  ;;  %v15454_v8 = vcombine.high %v6249_v63, %v6253_v56  ;;  %v15453_v46 = vcombine.low %v6249_v63, %v6253_v56 }
 0x422   :  { %v15456_v6 = vcombine.high %v6250_v43, %v6254_v5  ;;  %v15455_v12 = vcombine.low %v6250_v43, %v6254_v5  ;;  %v6294_v63 = vld [vmem:[#allocation11 + $0x868] sm:$0xff]  ;;  %v6297_v5 = vld [vmem:[#allocation11 + $0x880] sm:$0xff] }
 0x423   :  { %9195 = vmatpush1.bf16.msra.mxu0 %v15405_v1  ;;  %v6257_v1 = vld [vmem:[#allocation11 + $0x740] sm:$0xff] }
 0x424   :  { %9367 = vmatpush1.bf16.msra.mxu1 %v15407_v7  ;;  %9196 = vmatprep.subr.bf16.mxu0 %v15414_v49  ;;  %v6261_v7 = vld [vmem:[#allocation11 + $0x760] sm:$0xff]  ;;  %v6258_v49 = vld [vmem:[#allocation11 + $0x748] sm:$0xff] }
 0x425   :  { %9368 = vmatprep.subr.bf16.mxu1 %v15416_v11  ;;  %v6262_v11 = vld [vmem:[#allocation11 + $0x768] sm:$0xff]  ;;  %v15462_v13 = vcombine.high %v6257_v1, %v6261_v7  ;;  %v15461_v61 = vcombine.low %v6257_v1, %v6261_v7 }
 0x426   :  { %v15464_v51 = vcombine.high %v6258_v49, %v6262_v11  ;;  %v15463_v18 = vcombine.low %v6258_v49, %v6262_v11 }
 0x427   :  { %9197 = vmatpush1.bf16.msra.mxu0 %v15413_v16  ;;  %v6265_v16 = vld [vmem:[#allocation11 + $0x780] sm:$0xff] }
 0x428   :  { %9369 = vmatpush1.bf16.msra.mxu1 %v15415_v60  ;;  %9198 = vmatprep.subr.bf16.mxu0 %v15422_v4  ;;  %v6269_v60 = vld [vmem:[#allocation11 + $0x7a0] sm:$0xff]  ;;  %v6266_v4 = vld [vmem:[#allocation11 + $0x788] sm:$0xff] }
 0x429   :  { %9370 = vmatprep.subr.bf16.mxu1 %v15424_v17  ;;  %v6270_v17 = vld [vmem:[#allocation11 + $0x7a8] sm:$0xff]  ;;  %v15470_v54 = vcombine.high %v6265_v16, %v6269_v60  ;;  %v15469_v28 = vcombine.low %v6265_v16, %v6269_v60 }
 0x42a   :  { %v15472_v21 = vcombine.high %v6266_v4, %v6270_v17  ;;  %v15471_v30 = vcombine.low %v6266_v4, %v6270_v17 }
 0x42b   :  { %9199 = vmatpush1.bf16.msra.mxu0 %v15421_v22  ;;  %v6273_v22 = vld [vmem:[#allocation11 + $0x7c0] sm:$0xff] }
 0x42c   :  { %9371 = vmatpush1.bf16.msra.mxu1 %v15423_v58  ;;  %9200 = vmatprep.subr.bf16.mxu0 %v15430_v26  ;;  %v6277_v58 = vld [vmem:[#allocation11 + $0x7e0] sm:$0xff]  ;;  %v6274_v26 = vld [vmem:[#allocation11 + $0x7c8] sm:$0xff] }
 0x42d   :  { %9372 = vmatprep.subr.bf16.mxu1 %v15432_v27  ;;  %v6278_v27 = vld [vmem:[#allocation11 + $0x7e8] sm:$0xff]  ;;  %v15478_v31 = vcombine.high %v6273_v22, %v6277_v58  ;;  %v15477_v36 = vcombine.low %v6273_v22, %v6277_v58 }
 0x42e   :  { %v15480_v32 = vcombine.high %v6274_v26, %v6278_v27  ;;  %v15479_v37 = vcombine.low %v6274_v26, %v6278_v27 }
 0x42f   :  { %9201 = vmatpush1.bf16.msra.mxu0 %v15429_v33  ;;  %v6281_v33 = vld [vmem:[#allocation11 + $0x800] sm:$0xff] }
 0x430   :  { %9373 = vmatpush1.bf16.msra.mxu1 %v15431_v10  ;;  %9202 = vmatprep.subr.bf16.mxu0 %v15438_v34  ;;  %v6285_v10 = vld [vmem:[#allocation11 + $0x820] sm:$0xff]  ;;  %v6282_v34 = vld [vmem:[#allocation11 + $0x808] sm:$0xff] }
 0x431   :  { %9374 = vmatprep.subr.bf16.mxu1 %v15440_v35  ;;  %v6286_v35 = vld [vmem:[#allocation11 + $0x828] sm:$0xff]  ;;  %v15486_v38 = vcombine.high %v6281_v33, %v6285_v10 }
 0x432   :  { %v15488_v42 = vcombine.high %v6282_v34, %v6286_v35  ;;  %v15487_v56 = vcombine.low %v6282_v34, %v6286_v35 }
 0x433   :  { %9203 = vmatpush1.bf16.msra.mxu0 %v15437_v23  ;;  %v6289_v23 = vld [vmem:[#allocation11 + $0x840] sm:$0xff] }
 0x434   :  { %9375 = vmatpush1.bf16.msra.mxu1 %v15439_v41  ;;  %9204 = vmatprep.subr.bf16.mxu0 %v15446_v47  ;;  %v6293_v41 = vld [vmem:[#allocation11 + $0x860] sm:$0xff]  ;;  %v15485_v47 = vcombine.low %v6281_v33, %v6285_v10 }
 0x435   :  { %9376 = vmatprep.subr.bf16.mxu1 %v15448_v62  ;;  %v6290_v62 = vld [vmem:[#allocation11 + $0x848] sm:$0xff]  ;;  %v15494_v43 = vcombine.high %v6289_v23, %v6293_v41  ;;  %v15493_v1 = vcombine.low %v6289_v23, %v6293_v41 }
 0x436   :  { %v15495_v7 = vcombine.low %v6290_v62, %v6294_v63 }
 0x437   :  { %9205 = vmatpush1.bf16.msra.mxu0 %v15445_v0  ;;  %v6301_v0 = vld [vmem:[#allocation11 + $0x8a0] sm:$0xff] }
 0x438   :  { %9377 = vmatpush1.bf16.msra.mxu1 %v15447_v2  ;;  %9206 = vmatprep.subr.bf16.mxu0 %v15454_v8  ;;  %v15496_v2 = vcombine.high %v6290_v62, %v6294_v63  ;;  %v6298_v8 = vld [vmem:[#allocation11 + $0x888] sm:$0xff]  ;;  %v15502_v49 = vcombine.high %v6297_v5, %v6301_v0  ;;  %v15501_v16 = vcombine.low %v6297_v5, %v6301_v0  ;;  %v6337_v63 = vld [vmem:[#allocation11 + $0x9c0] sm:$0xff] }
 0x439   :  { %9378 = vmatprep.subr.bf16.mxu1 %v15456_v6  ;;  %v6302_v6 = vld [vmem:[#allocation11 + $0x8a8] sm:$0xff] }
 0x43a   :  { %v15504_v11 = vcombine.high %v6298_v8, %v6302_v6  ;;  %v15503_v60 = vcombine.low %v6298_v8, %v6302_v6  ;;  %v6342_v5 = vld [vmem:[#allocation11 + $0x9e8] sm:$0xff] }
 0x43b   :  { %9207 = vmatpush1.bf16.msra.mxu0 %v15453_v46  ;;  %v6305_v46 = vld [vmem:[#allocation11 + $0x8c0] sm:$0xff] }
 0x43c   :  { %9379 = vmatpush1.bf16.msra.mxu1 %v15455_v12  ;;  %9208 = vmatprep.subr.bf16.mxu0 %v15462_v13  ;;  %v6309_v12 = vld [vmem:[#allocation11 + $0x8e0] sm:$0xff]  ;;  %v6306_v13 = vld [vmem:[#allocation11 + $0x8c8] sm:$0xff] }
 0x43d   :  { %9380 = vmatprep.subr.bf16.mxu1 %v15464_v51  ;;  %v6310_v51 = vld [vmem:[#allocation11 + $0x8e8] sm:$0xff]  ;;  %v15510_v4 = vcombine.high %v6305_v46, %v6309_v12  ;;  %v15509_v22 = vcombine.low %v6305_v46, %v6309_v12 }
 0x43e   :  { %v15512_v17 = vcombine.high %v6306_v13, %v6310_v51  ;;  %v15511_v58 = vcombine.low %v6306_v13, %v6310_v51 }
 0x43f   :  { %9209 = vmatpush1.bf16.msra.mxu0 %v15461_v61  ;;  %v6313_v61 = vld [vmem:[#allocation11 + $0x900] sm:$0xff] }
 0x440   :  { %9381 = vmatpush1.bf16.msra.mxu1 %v15463_v18  ;;  %9210 = vmatprep.subr.bf16.mxu0 %v15470_v54  ;;  %v6317_v18 = vld [vmem:[#allocation11 + $0x920] sm:$0xff]  ;;  %v6314_v54 = vld [vmem:[#allocation11 + $0x908] sm:$0xff] }
 0x441   :  { %9382 = vmatprep.subr.bf16.mxu1 %v15472_v21  ;;  %v6318_v21 = vld [vmem:[#allocation11 + $0x928] sm:$0xff]  ;;  %v15518_v26 = vcombine.high %v6313_v61, %v6317_v18  ;;  %v15517_v33 = vcombine.low %v6313_v61, %v6317_v18 }
 0x442   :  { %v15520_v27 = vcombine.high %v6314_v54, %v6318_v21  ;;  %v15519_v10 = vcombine.low %v6314_v54, %v6318_v21 }
 0x443   :  { %9211 = vmatpush1.bf16.msra.mxu0 %v15469_v28  ;;  %v6321_v28 = vld [vmem:[#allocation11 + $0x940] sm:$0xff] }
 0x444   :  { %9383 = vmatpush1.bf16.msra.mxu1 %v15471_v30  ;;  %9212 = vmatprep.subr.bf16.mxu0 %v15478_v31  ;;  %v6325_v30 = vld [vmem:[#allocation11 + $0x960] sm:$0xff]  ;;  %v6322_v31 = vld [vmem:[#allocation11 + $0x948] sm:$0xff] }
 0x445   :  { %9384 = vmatprep.subr.bf16.mxu1 %v15480_v32  ;;  %v6326_v32 = vld [vmem:[#allocation11 + $0x968] sm:$0xff]  ;;  %v15526_v34 = vcombine.high %v6321_v28, %v6325_v30  ;;  %v15525_v23 = vcombine.low %v6321_v28, %v6325_v30 }
 0x446   :  { %v15528_v35 = vcombine.high %v6322_v31, %v6326_v32  ;;  %v15527_v41 = vcombine.low %v6322_v31, %v6326_v32 }
 0x447   :  { %9213 = vmatpush1.bf16.msra.mxu0 %v15477_v36  ;;  %v6329_v36 = vld [vmem:[#allocation11 + $0x980] sm:$0xff] }
 0x448   :  { %9385 = vmatpush1.bf16.msra.mxu1 %v15479_v37  ;;  %9225 = vmatprep.subr.bf16.mxu0 %v15486_v38  ;;  %v6333_v37 = vld [vmem:[#allocation11 + $0x9a0] sm:$0xff]  ;;  %v6330_v38 = vld [vmem:[#allocation11 + $0x988] sm:$0xff] }
 0x449   :  { %9397 = vmatprep.subr.bf16.mxu1 %v15488_v42  ;;  %v6334_v42 = vld [vmem:[#allocation11 + $0x9a8] sm:$0xff]  ;;  %v15533_v0 = vcombine.low %v6329_v36, %v6333_v37 }
 0x44a   :  { %9215 = vmatmul.mubr.bf16.vlgmr.msra.gmra.mrb[24].mxu0 %v17367_v14  ;;  %v15536_v62 = vcombine.high %v6330_v38, %v6334_v42 }
 0x44b   :  { %9387 = vmatmul.mubr.bf16.vlgmr.msra.gmra.mrb[24].mxu1 %v17367_v14  ;;  %9226 = vmatpush1.bf16.msra.mxu0 %v15485_v47  ;;  %v15534_v47 = vcombine.high %v6329_v36, %v6333_v37 }
 0x44c   :  { %9257 = vmatprep.mubr.bf16.mxu0 %v17389_v53  ;;  %9398 = vmatpush1.bf16.msra.mxu1 %v15487_v56  ;;  %v6341_v56 = vld [vmem:[#allocation11 + $0x9e0] sm:$0xff] }
 0x44d   :  { %9429 = vmatprep.mubr.bf16.mxu1 %v17389_v53  ;;  %9227 = vmatprep.subr.bf16.mxu0 %v15494_v43  ;;  %v6338_v43 = vld [vmem:[#allocation11 + $0x9c8] sm:$0xff]  ;;  %v15542_v8 = vcombine.high %v6337_v63, %v6341_v56  ;;  %v15541_v46 = vcombine.low %v6337_v63, %v6341_v56 }
 0x44e   :  { %9399 = vmatprep.subr.bf16.mxu1 %v15496_v2  ;;  %v15535_v2 = vcombine.low %v6330_v38, %v6334_v42  ;;  %v15544_v6 = vcombine.high %v6338_v43, %v6342_v5  ;;  %v15543_v12 = vcombine.low %v6338_v43, %v6342_v5 }
 0x44f   :  { %9228 = vmatpush1.bf16.msra.mxu0 %v15493_v1  ;;  %v6345_v1 = vld [vmem:[#allocation11 + $0xa00] sm:$0xff] }
 0x450   :  { %9400 = vmatpush1.bf16.msra.mxu1 %v15495_v7  ;;  %9229 = vmatprep.subr.bf16.mxu0 %v15502_v49  ;;  %v6349_v7 = vld [vmem:[#allocation11 + $0xa20] sm:$0xff]  ;;  %v6346_v49 = vld [vmem:[#allocation11 + $0xa08] sm:$0xff] }
 0x451   :  { %9401 = vmatprep.subr.bf16.mxu1 %v15504_v11  ;;  %v6350_v11 = vld [vmem:[#allocation11 + $0xa28] sm:$0xff]  ;;  %v15550_v13 = vcombine.high %v6345_v1, %v6349_v7  ;;  %v15549_v61 = vcombine.low %v6345_v1, %v6349_v7 }
 0x452   :  { %v15552_v51 = vcombine.high %v6346_v49, %v6350_v11  ;;  %v15551_v18 = vcombine.low %v6346_v49, %v6350_v11 }
 0x453   :  { %9230 = vmatpush1.bf16.msra.mxu0 %v15501_v16  ;;  %v6353_v16 = vld [vmem:[#allocation11 + $0xa40] sm:$0xff] }
 0x454   :  { %9402 = vmatpush1.bf16.msra.mxu1 %v15503_v60  ;;  %9231 = vmatprep.subr.bf16.mxu0 %v15510_v4  ;;  %v6357_v60 = vld [vmem:[#allocation11 + $0xa60] sm:$0xff]  ;;  %v6354_v4 = vld [vmem:[#allocation11 + $0xa48] sm:$0xff] }
 0x455   :  { %9403 = vmatprep.subr.bf16.mxu1 %v15512_v17  ;;  %v6358_v17 = vld [vmem:[#allocation11 + $0xa68] sm:$0xff]  ;;  %v15558_v54 = vcombine.high %v6353_v16, %v6357_v60  ;;  %v15557_v28 = vcombine.low %v6353_v16, %v6357_v60 }
 0x456   :  { %v15560_v21 = vcombine.high %v6354_v4, %v6358_v17  ;;  %v15559_v30 = vcombine.low %v6354_v4, %v6358_v17 }
 0x457   :  { %9232 = vmatpush1.bf16.msra.mxu0 %v15509_v22  ;;  %v6361_v22 = vld [vmem:[#allocation11 + $0xa80] sm:$0xff] }
 0x458   :  { %9404 = vmatpush1.bf16.msra.mxu1 %v15511_v58  ;;  %9233 = vmatprep.subr.bf16.mxu0 %v15518_v26  ;;  %v6365_v58 = vld [vmem:[#allocation11 + $0xaa0] sm:$0xff]  ;;  %v6362_v26 = vld [vmem:[#allocation11 + $0xa88] sm:$0xff] }
 0x459   :  { %9405 = vmatprep.subr.bf16.mxu1 %v15520_v27  ;;  %v6366_v27 = vld [vmem:[#allocation11 + $0xaa8] sm:$0xff]  ;;  %v15566_v31 = vcombine.high %v6361_v22, %v6365_v58  ;;  %v15565_v36 = vcombine.low %v6361_v22, %v6365_v58 }
 0x45a   :  { %v15568_v32 = vcombine.high %v6362_v26, %v6366_v27  ;;  %v15567_v37 = vcombine.low %v6362_v26, %v6366_v27 }
 0x45b   :  { %9234 = vmatpush1.bf16.msra.mxu0 %v15517_v33  ;;  %v6369_v33 = vld [vmem:[#allocation11 + $0xac0] sm:$0xff] }
 0x45c   :  { %9406 = vmatpush1.bf16.msra.mxu1 %v15519_v10  ;;  %9235 = vmatprep.subr.bf16.mxu0 %v15526_v34  ;;  %v6373_v10 = vld [vmem:[#allocation11 + $0xae0] sm:$0xff]  ;;  %v6370_v34 = vld [vmem:[#allocation11 + $0xac8] sm:$0xff] }
 0x45d   :  { %9407 = vmatprep.subr.bf16.mxu1 %v15528_v35  ;;  %v6374_v35 = vld [vmem:[#allocation11 + $0xae8] sm:$0xff]  ;;  %v15574_v38 = vcombine.high %v6369_v33, %v6373_v10  ;;  %v15573_v63 = vcombine.low %v6369_v33, %v6373_v10 }
 0x45e   :  { %v15576_v42 = vcombine.high %v6370_v34, %v6374_v35  ;;  %v15575_v56 = vcombine.low %v6370_v34, %v6374_v35 }
 0x45f   :  { %9236 = vmatpush1.bf16.msra.mxu0 %v15525_v23  ;;  %v6377_v23 = vld [vmem:[#allocation11 + $0xb00] sm:$0xff] }
 0x460   :  { %9408 = vmatpush1.bf16.msra.mxu1 %v15527_v41  ;;  %9237 = vmatprep.subr.bf16.mxu0 %v15534_v47  ;;  %v6381_v41 = vld [vmem:[#allocation11 + $0xb20] sm:$0xff]  ;;  %v6378_v47 = vld [vmem:[#allocation11 + $0xb08] sm:$0xff] }
 0x461   :  { %9409 = vmatprep.subr.bf16.mxu1 %v15536_v62  ;;  %v6382_v62 = vld [vmem:[#allocation11 + $0xb28] sm:$0xff]  ;;  %v15582_v43 = vcombine.high %v6377_v23, %v6381_v41  ;;  %v15581_v1 = vcombine.low %v6377_v23, %v6381_v41 }
 0x462   :  { %v15584_v5 = vcombine.high %v6378_v47, %v6382_v62  ;;  %v15583_v7 = vcombine.low %v6378_v47, %v6382_v62  ;;  %v6422_v23 = vld [vmem:[#allocation11 + $0xc68] sm:$0xff]  ;;  %v6425_v62 = vld [vmem:[#allocation11 + $0xc80] sm:$0xff] }
 0x463   :  { %9238 = vmatpush1.bf16.msra.mxu0 %v15533_v0  ;;  %v6385_v0 = vld [vmem:[#allocation11 + $0xb40] sm:$0xff] }
 0x464   :  { %9410 = vmatpush1.bf16.msra.mxu1 %v15535_v2  ;;  %9239 = vmatprep.subr.bf16.mxu0 %v15542_v8  ;;  %v6389_v2 = vld [vmem:[#allocation11 + $0xb60] sm:$0xff]  ;;  %v6386_v8 = vld [vmem:[#allocation11 + $0xb48] sm:$0xff] }
 0x465   :  { %9411 = vmatprep.subr.bf16.mxu1 %v15544_v6  ;;  %v6390_v6 = vld [vmem:[#allocation11 + $0xb68] sm:$0xff]  ;;  %v15590_v49 = vcombine.high %v6385_v0, %v6389_v2  ;;  %v15589_v16 = vcombine.low %v6385_v0, %v6389_v2 }
 0x466   :  { %v15592_v11 = vcombine.high %v6386_v8, %v6390_v6  ;;  %v15591_v60 = vcombine.low %v6386_v8, %v6390_v6 }
 0x467   :  { %9240 = vmatpush1.bf16.msra.mxu0 %v15541_v46  ;;  %v6393_v46 = vld [vmem:[#allocation11 + $0xb80] sm:$0xff] }
 0x468   :  { %9412 = vmatpush1.bf16.msra.mxu1 %v15543_v12  ;;  %9241 = vmatprep.subr.bf16.mxu0 %v15550_v13  ;;  %v6397_v12 = vld [vmem:[#allocation11 + $0xba0] sm:$0xff]  ;;  %v6394_v13 = vld [vmem:[#allocation11 + $0xb88] sm:$0xff] }
 0x469   :  { %9413 = vmatprep.subr.bf16.mxu1 %v15552_v51  ;;  %v6398_v51 = vld [vmem:[#allocation11 + $0xba8] sm:$0xff]  ;;  %v15598_v4 = vcombine.high %v6393_v46, %v6397_v12  ;;  %v15597_v22 = vcombine.low %v6393_v46, %v6397_v12 }
 0x46a   :  { %v15600_v17 = vcombine.high %v6394_v13, %v6398_v51  ;;  %v15599_v58 = vcombine.low %v6394_v13, %v6398_v51 }
 0x46b   :  { %9242 = vmatpush1.bf16.msra.mxu0 %v15549_v61  ;;  %v6401_v61 = vld [vmem:[#allocation11 + $0xbc0] sm:$0xff] }
 0x46c   :  { %9414 = vmatpush1.bf16.msra.mxu1 %v15551_v18  ;;  %9243 = vmatprep.subr.bf16.mxu0 %v15558_v54  ;;  %v6405_v18 = vld [vmem:[#allocation11 + $0xbe0] sm:$0xff]  ;;  %v6402_v54 = vld [vmem:[#allocation11 + $0xbc8] sm:$0xff] }
 0x46d   :  { %9415 = vmatprep.subr.bf16.mxu1 %v15560_v21  ;;  %v6406_v21 = vld [vmem:[#allocation11 + $0xbe8] sm:$0xff]  ;;  %v15606_v26 = vcombine.high %v6401_v61, %v6405_v18  ;;  %v15605_v33 = vcombine.low %v6401_v61, %v6405_v18 }
 0x46e   :  { %v15608_v27 = vcombine.high %v6402_v54, %v6406_v21  ;;  %v15607_v10 = vcombine.low %v6402_v54, %v6406_v21 }
 0x46f   :  { %9244 = vmatpush1.bf16.msra.mxu0 %v15557_v28  ;;  %v6409_v28 = vld [vmem:[#allocation11 + $0xc00] sm:$0xff] }
 0x470   :  { %9416 = vmatpush1.bf16.msra.mxu1 %v15559_v30  ;;  %9245 = vmatprep.subr.bf16.mxu0 %v15566_v31  ;;  %v6413_v30 = vld [vmem:[#allocation11 + $0xc20] sm:$0xff]  ;;  %v6410_v31 = vld [vmem:[#allocation11 + $0xc08] sm:$0xff] }
 0x471   :  { %9417 = vmatprep.subr.bf16.mxu1 %v15568_v32  ;;  %v6414_v32 = vld [vmem:[#allocation11 + $0xc28] sm:$0xff]  ;;  %v15614_v34 = vcombine.high %v6409_v28, %v6413_v30 }
 0x472   :  { %v15616_v35 = vcombine.high %v6410_v31, %v6414_v32  ;;  %v15615_v41 = vcombine.low %v6410_v31, %v6414_v32 }
 0x473   :  { %9246 = vmatpush1.bf16.msra.mxu0 %v15565_v36  ;;  %v6417_v36 = vld [vmem:[#allocation11 + $0xc40] sm:$0xff] }
 0x474   :  { %9418 = vmatpush1.bf16.msra.mxu1 %v15567_v37  ;;  %9247 = vmatprep.subr.bf16.mxu0 %v15574_v38  ;;  %v6421_v37 = vld [vmem:[#allocation11 + $0xc60] sm:$0xff]  ;;  %v15613_v38 = vcombine.low %v6409_v28, %v6413_v30 }
 0x475   :  { %9419 = vmatprep.subr.bf16.mxu1 %v15576_v42  ;;  %v6418_v42 = vld [vmem:[#allocation11 + $0xc48] sm:$0xff]  ;;  %v15622_v47 = vcombine.high %v6417_v36, %v6421_v37  ;;  %v15621_v0 = vcombine.low %v6417_v36, %v6421_v37 }
 0x476   :  { %v15623_v2 = vcombine.low %v6418_v42, %v6422_v23  ;;  %v6458_v36 = vld [vmem:[#allocation11 + $0xd88] sm:$0xff] }
 0x477   :  { %9248 = vmatpush1.bf16.msra.mxu0 %v15573_v63  ;;  %v6429_v63 = vld [vmem:[#allocation11 + $0xca0] sm:$0xff]  ;;  %v6462_v37 = vld [vmem:[#allocation11 + $0xda8] sm:$0xff] }
 0x478   :  { %9420 = vmatpush1.bf16.msra.mxu1 %v15575_v56  ;;  %9249 = vmatprep.subr.bf16.mxu0 %v15582_v43  ;;  %v15624_v56 = vcombine.high %v6418_v42, %v6422_v23  ;;  %v6426_v43 = vld [vmem:[#allocation11 + $0xc88] sm:$0xff]  ;;  %v15630_v8 = vcombine.high %v6425_v62, %v6429_v63  ;;  %v15629_v46 = vcombine.low %v6425_v62, %v6429_v63  ;;  %v17453_v63 = vld [vmem:[#allocation11 + $0xdc0] sm:$0xff] }
 0x479   :  { %9421 = vmatprep.subr.bf16.mxu1 %v15584_v5  ;;  %v6430_v5 = vld [vmem:[#allocation11 + $0xca8] sm:$0xff] }
 0x47a   :  { %v15632_v6 = vcombine.high %v6426_v43, %v6430_v5  ;;  %v15631_v12 = vcombine.low %v6426_v43, %v6430_v5  ;;  %v15664_v5 = vcombine.high %v6458_v36, %v6462_v37 }
 0x47b   :  { %9250 = vmatpush1.bf16.msra.mxu0 %v15581_v1  ;;  %v6433_v1 = vld [vmem:[#allocation11 + $0xcc0] sm:$0xff] }
 0x47c   :  { %9422 = vmatpush1.bf16.msra.mxu1 %v15583_v7  ;;  %9251 = vmatprep.subr.bf16.mxu0 %v15590_v49  ;;  %v6437_v7 = vld [vmem:[#allocation11 + $0xce0] sm:$0xff]  ;;  %v6434_v49 = vld [vmem:[#allocation11 + $0xcc8] sm:$0xff] }
 0x47d   :  { %9423 = vmatprep.subr.bf16.mxu1 %v15592_v11  ;;  %v6438_v11 = vld [vmem:[#allocation11 + $0xce8] sm:$0xff]  ;;  %v15638_v13 = vcombine.high %v6433_v1, %v6437_v7  ;;  %v15637_v61 = vcombine.low %v6433_v1, %v6437_v7 }
 0x47e   :  { %v15640_v51 = vcombine.high %v6434_v49, %v6438_v11  ;;  %v15639_v18 = vcombine.low %v6434_v49, %v6438_v11 }
 0x47f   :  { %9252 = vmatpush1.bf16.msra.mxu0 %v15589_v16  ;;  %v6441_v16 = vld [vmem:[#allocation11 + $0xd00] sm:$0xff] }
 0x480   :  { %9424 = vmatpush1.bf16.msra.mxu1 %v15591_v60  ;;  %9253 = vmatprep.subr.bf16.mxu0 %v15598_v4  ;;  %v6445_v60 = vld [vmem:[#allocation11 + $0xd20] sm:$0xff]  ;;  %v6442_v4 = vld [vmem:[#allocation11 + $0xd08] sm:$0xff] }
 0x481   :  { %9425 = vmatprep.subr.bf16.mxu1 %v15600_v17  ;;  %v6446_v17 = vld [vmem:[#allocation11 + $0xd28] sm:$0xff]  ;;  %v15646_v54 = vcombine.high %v6441_v16, %v6445_v60  ;;  %v15645_v28 = vcombine.low %v6441_v16, %v6445_v60 }
 0x482   :  { %v15648_v21 = vcombine.high %v6442_v4, %v6446_v17  ;;  %v15647_v30 = vcombine.low %v6442_v4, %v6446_v17 }
 0x483   :  { %9254 = vmatpush1.bf16.msra.mxu0 %v15597_v22  ;;  %v6449_v22 = vld [vmem:[#allocation11 + $0xd40] sm:$0xff] }
 0x484   :  { %9426 = vmatpush1.bf16.msra.mxu1 %v15599_v58  ;;  %9255 = vmatprep.subr.bf16.mxu0 %v15606_v26  ;;  %v6453_v58 = vld [vmem:[#allocation11 + $0xd60] sm:$0xff]  ;;  %v6450_v26 = vld [vmem:[#allocation11 + $0xd48] sm:$0xff] }
 0x485   :  { %9427 = vmatprep.subr.bf16.mxu1 %v15608_v27  ;;  %v6454_v27 = vld [vmem:[#allocation11 + $0xd68] sm:$0xff]  ;;  %v15654_v31 = vcombine.high %v6449_v22, %v6453_v58  ;;  %v15653_v23 = vcombine.low %v6449_v22, %v6453_v58 }
 0x486   :  { %v15656_v32 = vcombine.high %v6450_v26, %v6454_v27 }
 0x487   :  { %9256 = vmatpush1.bf16.msra.mxu0 %v15605_v33  ;;  %v6457_v33 = vld [vmem:[#allocation11 + $0xd80] sm:$0xff] }
 0x488   :  { %9428 = vmatpush1.bf16.msra.mxu1 %v15607_v10  ;;  %9268 = vmatprep.subr.bf16.mxu0 %v15614_v34  ;;  %v6461_v10 = vld [vmem:[#allocation11 + $0xda0] sm:$0xff]  ;;  %v16692_v34 = vld [vmem:[#allocation10] sm:$0xff] }
 0x489   :  { %9440 = vmatprep.subr.bf16.mxu1 %v15616_v35  ;;  %v2740_v35 = vrot.slane %v16692_v34, %v17324_v40  ;;  %v2744_v42 = vrot.slane %v16692_v34, %v17330_v45  ;;  %v15662_v62 = vcombine.high %v6457_v33, %v6461_v10  ;;  %v15661_v7 = vcombine.low %v6457_v33, %v6461_v10  ;;  %v6474_v33 = vld [vmem:[#allocation11 + $0xe08] sm:$0xff] }
 0x48a   :  { %9258 = vmatmul.mubr.bf16.vlgmr.msra.gmra.mrb[24].mxu0 %v17385_v39  ;;  %v6478_v10 = vld [vmem:[#allocation11 + $0xe28] sm:$0xff] }
 0x48b   :  { %9430 = vmatmul.mubr.bf16.vlgmr.msra.gmra.mrb[24].mxu1 %v17385_v39  ;;  %9269 = vmatpush1.bf16.msra.mxu0 %v15613_v38  ;;  %v2748_v38 = vrot.slane %v16692_v34, %v17327_v44 }
 0x48c   :  { %9300 = vmatprep.mubr.bf16.mxu0 %v17391_v3  ;;  %9441 = vmatpush1.bf16.msra.mxu1 %v15615_v41  ;;  %v2752_v41 = vrot.slane %v16692_v34, %v17333_v48 }
 0x48d   :  { %9472 = vmatprep.mubr.bf16.mxu1 %v17391_v3  ;;  %9270 = vmatprep.subr.bf16.mxu0 %v15622_v47  ;;  %v15655_v47 = vcombine.low %v6450_v26, %v6454_v27  ;;  %v6473_v27 = vld [vmem:[#allocation11 + $0xe00] sm:$0xff] }
 0x48e   :  { %9442 = vmatprep.subr.bf16.mxu1 %v15624_v56  ;;  %v17455_v56 = vld [vmem:[#allocation11 + $0xde0] sm:$0xff] }
 0x48f   :  { %9271 = vmatpush1.bf16.msra.mxu0 %v15621_v0  ;;  %v17457_v0 = vld [vmem:[#allocation11 + $0xdc8] sm:$0xff] }
 0x490   :  { %9443 = vmatpush1.bf16.msra.mxu1 %v15623_v2  ;;  %9272 = vmatprep.subr.bf16.mxu0 %v15630_v8  ;;  %v6470_v2 = vld [vmem:[#allocation11 + $0xde8] sm:$0xff] }
 0x491   :  { %9444 = vmatprep.subr.bf16.mxu1 %v15632_v6 }
 0x493   :  { %9273 = vmatpush1.bf16.msra.mxu0 %v15629_v46 }
 0x494   :  { %9445 = vmatpush1.bf16.msra.mxu1 %v15631_v12  ;;  %9274 = vmatprep.subr.bf16.mxu0 %v15638_v13  ;;  %v15663_v13 = vcombine.low %v6458_v36, %v6462_v37  ;;  %v15669_v36 = vcombine.low %v17453_v63, %v17455_v56 }
 0x495   :  { %9446 = vmatprep.subr.bf16.mxu1 %v15640_v51  ;;  %v15670_v51 = vcombine.high %v17453_v63, %v17455_v56  ;;  %v6485_v63 = vld [vmem:[#allocation11 + $0xe60] sm:$0xff] }
 0x497   :  { %9275 = vmatpush1.bf16.msra.mxu0 %v15637_v61 }
 0x498   :  { %9447 = vmatpush1.bf16.msra.mxu1 %v15639_v18  ;;  %9276 = vmatprep.subr.bf16.mxu0 %v15646_v54  ;;  %v15672_v18 = vcombine.high %v17457_v0, %v6470_v2 }
 0x499   :  { %9448 = vmatprep.subr.bf16.mxu1 %v15648_v21 }
 0x49b   :  { %9277 = vmatpush1.bf16.msra.mxu0 %v15645_v28  ;;  %v6477_v28 = vld [vmem:[#allocation11 + $0xe20] sm:$0xff] }
 0x49c   :  { %9449 = vmatpush1.bf16.msra.mxu1 %v15647_v30  ;;  %9278 = vmatprep.subr.bf16.mxu0 %v15654_v31 }
 0x49d   :  { %v5828_v43 = vpop.f32.mrb[20].mxu0  ;;  %9450 = vmatprep.subr.bf16.mxu1 %v15656_v32 }
 0x49e   :  { %v16414_v8 = vadd.f32 %v5828_v43, %v2740_v35  ;;  %v6000_v6 = vpop.f32.mrb[20].mxu1  ;;  %v5830_v1 = vpop.f32.mrb[21].mxu0  ;;  %v6481_v43 = vld [vmem:[#allocation11 + $0xe40] sm:$0xff] }
 0x49f   :  { %v16418_v49 = vadd.f32 %v6000_v6, %v2748_v38  ;;  %v16415_v11 = vadd.f32 %v5830_v1, %v2744_v42  ;;  %v6002_v46 = vpop.f32.mrb[21].mxu1  ;;  %v5832_v12 = vpop.f32.mrb[22].mxu0  ;;  %9279 = vmatpush1.bf16.msra.mxu0 %v15653_v23  ;;  %v15678_v23 = vcombine.high %v6473_v27, %v6477_v28  ;;  %v15677_v6 = vcombine.low %v6473_v27, %v6477_v28  ;;  %v6506_v27 = vld [vmem:[#allocation11 + $0xf08] sm:$0xff] }
 0x4a0   :  { %v6013_v16 = vmax.f32 %v16414_v8, 0.0  ;;  %v16419_v60 = vadd.f32 %v6002_v46, %v2752_v41  ;;  %v16416_v4 = vadd.f32 %v5832_v12, %v2740_v35  ;;  %v6004_v17 = vpop.f32.mrb[22].mxu1  ;;  %9451 = vmatpush1.bf16.msra.mxu1 %v15655_v47  ;;  %v5834_v61 = vpop.f32.mrb[23].mxu0  ;;  %9280 = vmatprep.subr.bf16.mxu0 %v15662_v62  ;;  %v15680_v62 = vcombine.high %v6474_v33, %v6478_v10  ;;  %v6486_v8 = vld [vmem:[#allocation11 + $0xe68] sm:$0xff] }
 0x4a1   :  { %v6015_v54 = vmax.f32 %v16418_v49, 0.0  ;;  %v6014_v21 = vmax.f32 %v16415_v11, 0.0  ;;  %v16420_v22 = vadd.f32 %v6004_v17, %v2748_v38  ;;  %v16417_v58 = vadd.f32 %v5834_v61, %v2744_v42  ;;  %v6006_v26 = vpop.f32.mrb[23].mxu1  ;;  %9452 = vmatprep.subr.bf16.mxu1 %v15664_v5  ;;  %v6482_v5 = vld [vmem:[#allocation11 + $0xe48] sm:$0xff]  ;;  %v6493_v49 = vld [vmem:[#allocation11 + $0xea0] sm:$0xff] }
 0x4a2   :  { %9847 = vst [vmem:[#allocation20 + $0x20] sm:$0xff] %v6013_v16  ;;  %v6016_v30 = vmax.f32 %v16419_v60, 0.0  ;;  %v6021_v31 = vmax.f32 %v16416_v4, 0.0  ;;  %v16421_v32 = vadd.f32 %v6006_v26, %v2752_v41  ;;  %v15671_v42 = vcombine.low %v17457_v0, %v6470_v2  ;;  %v6490_v11 = vld [vmem:[#allocation11 + $0xe88] sm:$0xff]  ;;  %v6497_v60 = vld [vmem:[#allocation11 + $0xec0] sm:$0xff] }
 0x4a3   :  { %9849 = vst [vmem:[#allocation20 + $0x30] sm:$0xff] %v6015_v54  ;;  %9848 = vst [vmem:[#allocation20 + $0x28] sm:$0xff] %v6014_v21  ;;  %v6023_v34 = vmax.f32 %v16420_v22, 0.0  ;;  %v6022_v35 = vmax.f32 %v16417_v58, 0.0  ;;  %9281 = vmatpush1.bf16.msra.mxu0 %v15661_v7  ;;  %v15679_v0 = vcombine.low %v6474_v33, %v6478_v10  ;;  %v15686_v2 = vcombine.high %v6481_v43, %v6485_v63  ;;  %v6489_v7 = vld [vmem:[#allocation11 + $0xe80] sm:$0xff]  ;;  %v6494_v46 = vld [vmem:[#allocation11 + $0xea8] sm:$0xff] }
 0x4a4   :  { %9850 = vst [vmem:[#allocation20 + $0x38] sm:$0xff] %v6016_v30  ;;  %9855 = vst [vmem:[#allocation20 + $0x60] sm:$0xff] %v6021_v31  ;;  %v17464_v37 = vpack.c.bf16 %v6021_v31, %v6013_v16  ;;  %v6024_v38 = vmax.f32 %v16421_v32, 0.0  ;;  %9453 = vmatpush1.bf16.msra.mxu1 %v15663_v13  ;;  %9282 = vmatprep.subr.bf16.mxu0 %v15670_v51  ;;  %v15688_v1 = vcombine.high %v6482_v5, %v6486_v8  ;;  %v6501_v4 = vld [vmem:[#allocation11 + $0xee0] sm:$0xff]  ;;  %v6498_v17 = vld [vmem:[#allocation11 + $0xec8] sm:$0xff] }
 0x4a5   :  { %9857 = vst [vmem:[#allocation20 + $0x70] sm:$0xff] %v6023_v34  ;;  %v17467_v41 = vpack.c.bf16 %v6023_v34, %v6015_v54  ;;  %9856 = vst [vmem:[#allocation20 + $0x68] sm:$0xff] %v6022_v35  ;;  %v17469_v47 = vpack.c.bf16 %v6022_v35, %v6014_v21  ;;  %9454 = vmatprep.subr.bf16.mxu1 %v15672_v18  ;;  %v15685_v12 = vcombine.low %v6481_v43, %v6485_v63  ;;  %v6502_v61 = vld [vmem:[#allocation11 + $0xee8] sm:$0xff]  ;;  %v6505_v58 = vld [vmem:[#allocation11 + $0xf00] sm:$0xff] }
 0x4a6   :  { %9858 = vst [vmem:[#allocation20 + $0x78] sm:$0xff] %v6024_v38  ;;  %v17471_v56 = vpack.c.bf16 %v6024_v38, %v6016_v30  ;;  %v15687_v13 = vcombine.low %v6482_v5, %v6486_v8  ;;  %v15694_v51 = vcombine.high %v6489_v7, %v6493_v49  ;;  %v15696_v16 = vcombine.high %v6490_v11, %v6494_v46  ;;  %v6509_v26 = vld [vmem:[#allocation11 + $0xf20] sm:$0xff]  ;;  %v6510_v28 = vld [vmem:[#allocation11 + $0xf28] sm:$0xff] }
 0x4a7   :  { %9283 = vmatpush1.bf16.msra.mxu0 %v15669_v36  ;;  %v15693_v18 = vcombine.low %v6489_v7, %v6493_v49  ;;  %v15695_v54 = vcombine.low %v6490_v11, %v6494_v46  ;;  %v15702_v21 = vcombine.high %v6497_v60, %v6501_v4  ;;  %v15704_v22 = vcombine.high %v6498_v17, %v6502_v61  ;;  %v6513_v10 = vld [vmem:[#allocation11 + $0xf40] sm:$0xff]  ;;  %v6514_v35 = vld [vmem:[#allocation11 + $0xf48] sm:$0xff] }
 0x4a8   :  { %9455 = vmatpush1.bf16.msra.mxu1 %v15671_v42  ;;  %9284 = vmatprep.subr.bf16.mxu0 %v15678_v23  ;;  %v15701_v30 = vcombine.low %v6497_v60, %v6501_v4  ;;  %v15703_v31 = vcombine.low %v6498_v17, %v6502_v61  ;;  %v15710_v32 = vcombine.high %v6505_v58, %v6509_v26  ;;  %v6517_v34 = vld [vmem:[#allocation11 + $0xf60] sm:$0xff]  ;;  %v6518_v36 = vld [vmem:[#allocation11 + $0xf68] sm:$0xff]  ;;  %v6027_v60 = vld [vmem:[#allocation11 + $0x10] sm:$0xff] }
 0x4a9   :  { %9456 = vmatprep.subr.bf16.mxu1 %v15680_v62  ;;  %v15712_v33 = vcombine.high %v6506_v27, %v6510_v28  ;;  %v15709_v38 = vcombine.low %v6505_v58, %v6509_v26  ;;  %v15711_v42 = vcombine.low %v6506_v27, %v6510_v28  ;;  %v15718_v23 = vcombine.high %v6513_v10, %v6517_v34  ;;  %v6521_v43 = vld [vmem:[#allocation11 + $0xf80] sm:$0xff]  ;;  %v6522_v5 = vld [vmem:[#allocation11 + $0xf88] sm:$0xff]  ;;  %v6031_v4 = vld [vmem:[#allocation11 + $0x30] sm:$0xff] }
 0x4aa   :  { %v15720_v62 = vcombine.high %v6514_v35, %v6518_v36  ;;  %v6525_v63 = vld [vmem:[#allocation11 + $0xfa0] sm:$0xff]  ;;  %v6526_v8 = vld [vmem:[#allocation11 + $0xfa8] sm:$0xff]  ;;  %v6028_v17 = vld [vmem:[#allocation11 + $0x18] sm:$0xff]  ;;  %v15233_v27 = vcombine.low %v6027_v60, %v6031_v4 }
 0x4ab   :  { %9285 = vmatpush1.bf16.msra.mxu0 %v15677_v6  ;;  %v15717_v6 = vcombine.low %v6513_v10, %v6517_v34  ;;  %v6529_v7 = vld [vmem:[#allocation11 + $0xfc0] sm:$0xff]  ;;  %v6530_v11 = vld [vmem:[#allocation11 + $0xfc8] sm:$0xff]  ;;  %v6032_v61 = vld [vmem:[#allocation11 + $0x38] sm:$0xff] }
 0x4ac   :  { %9457 = vmatpush1.bf16.msra.mxu1 %v15679_v0  ;;  %9286 = vmatprep.subr.bf16.mxu0 %v15686_v2  ;;  %v15719_v0 = vcombine.low %v6514_v35, %v6518_v36  ;;  %v15726_v2 = vcombine.high %v6521_v43, %v6525_v63  ;;  %v6533_v49 = vld [vmem:[#allocation11 + $0xfe0] sm:$0xff]  ;;  %v6534_v46 = vld [vmem:[#allocation11 + $0xfe8] sm:$0xff]  ;;  %v6035_v58 = vld [vmem:[#allocation11 + $0x50] sm:$0xff] }
 0x4ad   :  { %9458 = vmatprep.subr.bf16.mxu1 %v15688_v1  ;;  %v15728_v1 = vcombine.high %v6522_v5, %v6526_v8  ;;  %v6039_v26 = vld [vmem:[#allocation11 + $0x70] sm:$0xff]  ;;  %v6036_v28 = vld [vmem:[#allocation11 + $0x58] sm:$0xff] }
 0x4ae   :  { %v6047_v10 = vld [vmem:[#allocation11 + $0xb0] sm:$0xff]  ;;  %v6044_v35 = vld [vmem:[#allocation11 + $0x98] sm:$0xff] }
 0x4af   :  { %9287 = vmatpush1.bf16.msra.mxu0 %v15685_v12  ;;  %v15725_v12 = vcombine.low %v6521_v43, %v6525_v63  ;;  %v6048_v36 = vld [vmem:[#allocation11 + $0xb8] sm:$0xff]  ;;  %v6051_v43 = vld [vmem:[#allocation11 + $0xd0] sm:$0xff] }
 0x4b0   :  { %9459 = vmatpush1.bf16.msra.mxu1 %v15687_v13  ;;  %9288 = vmatprep.subr.bf16.mxu0 %v15694_v51  ;;  %v15727_v13 = vcombine.low %v6522_v5, %v6526_v8  ;;  %v15734_v51 = vcombine.high %v6529_v7, %v6533_v49  ;;  %v6055_v63 = vld [vmem:[#allocation11 + $0xf0] sm:$0xff]  ;;  %v6052_v5 = vld [vmem:[#allocation11 + $0xd8] sm:$0xff] }
 0x4b1   :  { %9460 = vmatprep.subr.bf16.mxu1 %v15696_v16  ;;  %v15736_v16 = vcombine.high %v6530_v11, %v6534_v46  ;;  %v6056_v8 = vld [vmem:[#allocation11 + $0xf8] sm:$0xff] }
 0x4b3   :  { %9289 = vmatpush1.bf16.msra.mxu0 %v15693_v18  ;;  %v15733_v18 = vcombine.low %v6529_v7, %v6533_v49  ;;  %v6059_v7 = vld [vmem:[#allocation11 + $0x110] sm:$0xff] }
 0x4b4   :  { %9461 = vmatpush1.bf16.msra.mxu1 %v15695_v54  ;;  %9290 = vmatprep.subr.bf16.mxu0 %v15702_v21  ;;  %v15735_v54 = vcombine.low %v6530_v11, %v6534_v46  ;;  %v15234_v21 = vcombine.high %v6027_v60, %v6031_v4  ;;  %v6063_v49 = vld [vmem:[#allocation11 + $0x130] sm:$0xff]  ;;  %v6060_v11 = vld [vmem:[#allocation11 + $0x118] sm:$0xff] }
 0x4b5   :  { %9462 = vmatprep.subr.bf16.mxu1 %v15704_v22  ;;  %v15236_v22 = vcombine.high %v6028_v17, %v6032_v61  ;;  %v6064_v46 = vld [vmem:[#allocation11 + $0x138] sm:$0xff]  ;;  %v6071_v60 = vld [vmem:[#allocation11 + $0x170] sm:$0xff] }
 0x4b6   :  { %v6068_v4 = vld [vmem:[#allocation11 + $0x158] sm:$0xff] }
 0x4b7   :  { %9291 = vmatpush1.bf16.msra.mxu0 %v15701_v30  ;;  %v6040_v30 = vld [vmem:[#allocation11 + $0x78] sm:$0xff] }
 0x4b8   :  { %9463 = vmatpush1.bf16.msra.mxu1 %v15703_v31  ;;  %9292 = vmatprep.subr.bf16.mxu0 %v15710_v32  ;;  %v15235_v31 = vcombine.low %v6028_v17, %v6032_v61  ;;  %v15242_v32 = vcombine.high %v6035_v58, %v6039_v26  ;;  %v15244_v34 = vcombine.high %v6036_v28, %v6040_v30  ;;  %v6072_v17 = vld [vmem:[#allocation11 + $0x178] sm:$0xff] }
 0x4b9   :  { %9464 = vmatprep.subr.bf16.mxu1 %v15712_v33  ;;  %v6043_v33 = vld [vmem:[#allocation11 + $0x90] sm:$0xff]  ;;  %v15265_v61 = vcombine.low %v6059_v7, %v6063_v49 }
 0x4bb   :  { %9293 = vmatpush1.bf16.msra.mxu0 %v15709_v38  ;;  %v15241_v38 = vcombine.low %v6035_v58, %v6039_v26  ;;  %v6079_v58 = vld [vmem:[#allocation11 + $0x1b0] sm:$0xff]  ;;  %v6076_v26 = vld [vmem:[#allocation11 + $0x198] sm:$0xff] }
 0x4bc   :  { %9465 = vmatpush1.bf16.msra.mxu1 %v15711_v42  ;;  %9294 = vmatprep.subr.bf16.mxu0 %v15718_v23  ;;  %v15243_v42 = vcombine.low %v6036_v28, %v6040_v30  ;;  %v15250_v23 = vcombine.high %v6043_v33, %v6047_v10  ;;  %v15275_v30 = vcombine.low %v6068_v4, %v6072_v17 }
 0x4bd   :  { %9466 = vmatprep.subr.bf16.mxu1 %v15720_v62  ;;  %v15252_v62 = vcombine.high %v6044_v35, %v6048_v36 }
 0x4bf   :  { %9295 = vmatpush1.bf16.msra.mxu0 %v15717_v6  ;;  %v15249_v6 = vcombine.low %v6043_v33, %v6047_v10  ;;  %v6083_v33 = vld [vmem:[#allocation11 + $0x1d0] sm:$0xff] }
 0x4c0   :  { %9467 = vmatpush1.bf16.msra.mxu1 %v15719_v0  ;;  %9296 = vmatprep.subr.bf16.mxu0 %v15726_v2  ;;  %v15251_v0 = vcombine.low %v6044_v35, %v6048_v36  ;;  %v15258_v2 = vcombine.high %v6051_v43, %v6055_v63  ;;  %v6087_v10 = vld [vmem:[#allocation11 + $0x1f0] sm:$0xff]  ;;  %v6088_v35 = vld [vmem:[#allocation11 + $0x1f8] sm:$0xff] }
 0x4c1   :  { %9468 = vmatprep.subr.bf16.mxu1 %v15728_v1  ;;  %v15260_v1 = vcombine.high %v6052_v5, %v6056_v8 }
 0x4c3   :  { %9297 = vmatpush1.bf16.msra.mxu0 %v15725_v12  ;;  %v15259_v12 = vcombine.low %v6052_v5, %v6056_v8  ;;  %v6096_v5 = vld [vmem:[#allocation11 + $0x238] sm:$0xff]  ;;  %v15289_v8 = vcombine.low %v6083_v33, %v6087_v10 }
 0x4c4   :  { %9469 = vmatpush1.bf16.msra.mxu1 %v15727_v13  ;;  %9298 = vmatprep.subr.bf16.mxu0 %v15734_v51  ;;  %v15266_v13 = vcombine.high %v6059_v7, %v6063_v49  ;;  %v15268_v51 = vcombine.high %v6060_v11, %v6064_v46  ;;  %v6103_v7 = vld [vmem:[#allocation11 + $0x270] sm:$0xff]  ;;  %v6100_v49 = vld [vmem:[#allocation11 + $0x258] sm:$0xff] }
 0x4c5   :  { %9470 = vmatprep.subr.bf16.mxu1 %v15736_v16  ;;  %v6067_v16 = vld [vmem:[#allocation11 + $0x150] sm:$0xff] }
 0x4c6   :  { %v15273_v28 = vcombine.low %v6067_v16, %v6071_v60 }
 0x4c7   :  { %9299 = vmatpush1.bf16.msra.mxu0 %v15733_v18  ;;  %v15267_v18 = vcombine.low %v6060_v11, %v6064_v46  ;;  %v6104_v11 = vld [vmem:[#allocation11 + $0x278] sm:$0xff] }
 0x4c8   :  { %9471 = vmatpush1.bf16.msra.mxu1 %v15735_v54  ;;  %9483 = vmatprep.subr.bf16.mxu0 %v15234_v21  ;;  %v15274_v54 = vcombine.high %v6067_v16, %v6071_v60  ;;  %v15276_v21 = vcombine.high %v6068_v4, %v6072_v17  ;;  %v6111_v16 = vld [vmem:[#allocation11 + $0x2b0] sm:$0xff]  ;;  %v6108_v60 = vld [vmem:[#allocation11 + $0x298] sm:$0xff] }
 0x4c9   :  { %9655 = vmatprep.subr.bf16.mxu1 %v15236_v22  ;;  %v6075_v22 = vld [vmem:[#allocation11 + $0x190] sm:$0xff]  ;;  %v6112_v4 = vld [vmem:[#allocation11 + $0x2b8] sm:$0xff] }
 0x4ca   :  { %9301 = vmatmul.mubr.bf16.vlgmr.msra.gmra.mrb[24].mxu0 %v17387_v52  ;;  %v15281_v36 = vcombine.low %v6075_v22, %v6079_v58 }
 0x4cb   :  { %9473 = vmatmul.mubr.bf16.vlgmr.msra.gmra.mrb[24].mxu1 %v17387_v52  ;;  %9484 = vmatpush1.bf16.msra.mxu0 %v15233_v27  ;;  %v6080_v27 = vld [vmem:[#allocation11 + $0x1b8] sm:$0xff] }
 0x4cc   :  { %9515 = vmatprep.mubr.bf16.mxu0 %v17369_v15  ;;  %9656 = vmatpush1.bf16.msra.mxu1 %v15235_v31  ;;  %v15282_v31 = vcombine.high %v6075_v22, %v6079_v58  ;;  %v6119_v22 = vld [vmem:[#allocation11 + $0x2f0] sm:$0xff]  ;;  %v6116_v58 = vld [vmem:[#allocation11 + $0x2d8] sm:$0xff] }
 0x4cd   :  { %9687 = vmatprep.mubr.bf16.mxu1 %v17369_v15  ;;  %9485 = vmatprep.subr.bf16.mxu0 %v15242_v32  ;;  %v15257_v15 = vcombine.low %v6051_v43, %v6055_v63  ;;  %v15284_v32 = vcombine.high %v6076_v26, %v6080_v27  ;;  %v6095_v43 = vld [vmem:[#allocation11 + $0x230] sm:$0xff]  ;;  %v6092_v63 = vld [vmem:[#allocation11 + $0x218] sm:$0xff] }
 0x4ce   :  { %9657 = vmatprep.subr.bf16.mxu1 %v15244_v34  ;;  %v6084_v34 = vld [vmem:[#allocation11 + $0x1d8] sm:$0xff] }
 0x4cf   :  { %9486 = vmatpush1.bf16.msra.mxu0 %v15241_v38  ;;  %v15283_v38 = vcombine.low %v6076_v26, %v6080_v27  ;;  %v6120_v26 = vld [vmem:[#allocation11 + $0x2f8] sm:$0xff] }
 0x4d0   :  { %9658 = vmatpush1.bf16.msra.mxu1 %v15243_v42  ;;  %9487 = vmatprep.subr.bf16.mxu0 %v15250_v23  ;;  %v15290_v42 = vcombine.high %v6083_v33, %v6087_v10  ;;  %v15292_v23 = vcombine.high %v6084_v34, %v6088_v35  ;;  %v6127_v33 = vld [vmem:[#allocation11 + $0x330] sm:$0xff]  ;;  %v6124_v10 = vld [vmem:[#allocation11 + $0x318] sm:$0xff] }
 0x4d1   :  { %9659 = vmatprep.subr.bf16.mxu1 %v15252_v62  ;;  %v6091_v62 = vld [vmem:[#allocation11 + $0x210] sm:$0xff] }
 0x4d2   :  { %v15297_v46 = vcombine.low %v6091_v62, %v6095_v43 }
 0x4d3   :  { %9488 = vmatpush1.bf16.msra.mxu0 %v15249_v6  ;;  %v15291_v6 = vcombine.low %v6084_v34, %v6088_v35  ;;  %v6128_v34 = vld [vmem:[#allocation11 + $0x338] sm:$0xff] }
 0x4d4   :  { %9660 = vmatpush1.bf16.msra.mxu1 %v15251_v0  ;;  %9489 = vmatprep.subr.bf16.mxu0 %v15258_v2  ;;  %v15298_v0 = vcombine.high %v6091_v62, %v6095_v43  ;;  %v15300_v2 = vcombine.high %v6092_v63, %v6096_v5  ;;  %v6135_v62 = vld [vmem:[#allocation11 + $0x370] sm:$0xff]  ;;  %v6132_v43 = vld [vmem:[#allocation11 + $0x358] sm:$0xff] }
 0x4d5   :  { %9661 = vmatprep.subr.bf16.mxu1 %v15260_v1  ;;  %v6099_v1 = vld [vmem:[#allocation11 + $0x250] sm:$0xff] }
 0x4d6   :  { %v15305_v17 = vcombine.low %v6099_v1, %v6103_v7 }
 0x4d7   :  { %9490 = vmatpush1.bf16.msra.mxu0 %v15257_v15  ;;  %v15299_v15 = vcombine.low %v6092_v63, %v6096_v5  ;;  %v6136_v63 = vld [vmem:[#allocation11 + $0x378] sm:$0xff] }
 0x4d8   :  { %9662 = vmatpush1.bf16.msra.mxu1 %v15259_v12  ;;  %9491 = vmatprep.subr.bf16.mxu0 %v15266_v13  ;;  %v15306_v12 = vcombine.high %v6099_v1, %v6103_v7  ;;  %v15308_v13 = vcombine.high %v6100_v49, %v6104_v11  ;;  %v6143_v1 = vld [vmem:[#allocation11 + $0x3b0] sm:$0xff]  ;;  %v6140_v7 = vld [vmem:[#allocation11 + $0x398] sm:$0xff] }
 0x4d9   :  { %9663 = vmatprep.subr.bf16.mxu1 %v15268_v51  ;;  %v6107_v51 = vld [vmem:[#allocation11 + $0x290] sm:$0xff] }
 0x4da   :  { %v15313_v27 = vcombine.low %v6107_v51, %v6111_v16 }
 0x4db   :  { %9492 = vmatpush1.bf16.msra.mxu0 %v15265_v61  ;;  %v15307_v61 = vcombine.low %v6100_v49, %v6104_v11  ;;  %v6144_v49 = vld [vmem:[#allocation11 + $0x3b8] sm:$0xff] }
 0x4dc   :  { %9664 = vmatpush1.bf16.msra.mxu1 %v15267_v18  ;;  %9493 = vmatprep.subr.bf16.mxu0 %v15274_v54  ;;  %v15314_v18 = vcombine.high %v6107_v51, %v6111_v16  ;;  %v15316_v54 = vcombine.high %v6108_v60, %v6112_v4  ;;  %v6151_v51 = vld [vmem:[#allocation11 + $0x3f0] sm:$0xff]  ;;  %v6148_v16 = vld [vmem:[#allocation11 + $0x3d8] sm:$0xff] }
 0x4dd   :  { %9665 = vmatprep.subr.bf16.mxu1 %v15276_v21  ;;  %v6115_v21 = vld [vmem:[#allocation11 + $0x2d0] sm:$0xff] }
 0x4de   :  { %v15321_v35 = vcombine.low %v6115_v21, %v6119_v22 }
 0x4df   :  { %9494 = vmatpush1.bf16.msra.mxu0 %v15273_v28  ;;  %v15315_v28 = vcombine.low %v6108_v60, %v6112_v4  ;;  %v6152_v60 = vld [vmem:[#allocation11 + $0x3f8] sm:$0xff] }
 0x4e0   :  { %9666 = vmatpush1.bf16.msra.mxu1 %v15275_v30  ;;  %9495 = vmatprep.subr.bf16.mxu0 %v15282_v31  ;;  %v15322_v30 = vcombine.high %v6115_v21, %v6119_v22  ;;  %v15324_v31 = vcombine.high %v6116_v58, %v6120_v26  ;;  %v6159_v21 = vld [vmem:[#allocation11 + $0x430] sm:$0xff]  ;;  %v6156_v22 = vld [vmem:[#allocation11 + $0x418] sm:$0xff] }
 0x4e1   :  { %9667 = vmatprep.subr.bf16.mxu1 %v15284_v32  ;;  %v6123_v32 = vld [vmem:[#allocation11 + $0x310] sm:$0xff] }
 0x4e2   :  { %v15329_v5 = vcombine.low %v6123_v32, %v6127_v33 }
 0x4e3   :  { %9496 = vmatpush1.bf16.msra.mxu0 %v15281_v36  ;;  %v15323_v36 = vcombine.low %v6116_v58, %v6120_v26  ;;  %v6160_v58 = vld [vmem:[#allocation11 + $0x438] sm:$0xff] }
 0x4e4   :  { %9668 = vmatpush1.bf16.msra.mxu1 %v15283_v38  ;;  %9497 = vmatprep.subr.bf16.mxu0 %v15290_v42  ;;  %v15330_v38 = vcombine.high %v6123_v32, %v6127_v33  ;;  %v15332_v42 = vcombine.high %v6124_v10, %v6128_v34  ;;  %v6167_v32 = vld [vmem:[#allocation11 + $0x470] sm:$0xff] }
 0x4e5   :  { %9669 = vmatprep.subr.bf16.mxu1 %v15292_v23  ;;  %v6131_v23 = vld [vmem:[#allocation11 + $0x350] sm:$0xff] }
 0x4e6   :  { %v15337_v11 = vcombine.low %v6131_v23, %v6135_v62 }
 0x4e7   :  { %9498 = vmatpush1.bf16.msra.mxu0 %v15289_v8  ;;  %v15331_v8 = vcombine.low %v6124_v10, %v6128_v34  ;;  %v6164_v10 = vld [vmem:[#allocation11 + $0x458] sm:$0xff] }
 0x4e8   :  { %9670 = vmatpush1.bf16.msra.mxu1 %v15291_v6  ;;  %9499 = vmatprep.subr.bf16.mxu0 %v15298_v0  ;;  %v15338_v6 = vcombine.high %v6131_v23, %v6135_v62  ;;  %v15340_v0 = vcombine.high %v6132_v43, %v6136_v63  ;;  %v6168_v34 = vld [vmem:[#allocation11 + $0x478] sm:$0xff] }
 0x4e9   :  { %9671 = vmatprep.subr.bf16.mxu1 %v15300_v2  ;;  %v6139_v2 = vld [vmem:[#allocation11 + $0x390] sm:$0xff]  ;;  %v15372_v23 = vcombine.high %v6164_v10, %v6168_v34  ;;  %v6172_v62 = vld [vmem:[#allocation11 + $0x498] sm:$0xff] }
 0x4ea   :  { %v15345_v4 = vcombine.low %v6139_v2, %v6143_v1 }
 0x4eb   :  { %9500 = vmatpush1.bf16.msra.mxu0 %v15297_v46  ;;  %v15339_v46 = vcombine.low %v6132_v43, %v6136_v63  ;;  %v6176_v43 = vld [vmem:[#allocation11 + $0x4b8] sm:$0xff] }
 0x4ec   :  { %9672 = vmatpush1.bf16.msra.mxu1 %v15299_v15  ;;  %9501 = vmatprep.subr.bf16.mxu0 %v15306_v12  ;;  %v15346_v15 = vcombine.high %v6139_v2, %v6143_v1  ;;  %v15348_v12 = vcombine.high %v6140_v7, %v6144_v49  ;;  %v6183_v2 = vld [vmem:[#allocation11 + $0x4f0] sm:$0xff]  ;;  %v6180_v1 = vld [vmem:[#allocation11 + $0x4d8] sm:$0xff] }
 0x4ed   :  { %9673 = vmatprep.subr.bf16.mxu1 %v15308_v13  ;;  %v6147_v13 = vld [vmem:[#allocation11 + $0x3d0] sm:$0xff] }
 0x4ee   :  { %v15353_v26 = vcombine.low %v6147_v13, %v6151_v51 }
 0x4ef   :  { %9502 = vmatpush1.bf16.msra.mxu0 %v15305_v17  ;;  %v15347_v17 = vcombine.low %v6140_v7, %v6144_v49  ;;  %v6184_v7 = vld [vmem:[#allocation11 + $0x4f8] sm:$0xff] }
 0x4f0   :  { %9674 = vmatpush1.bf16.msra.mxu1 %v15307_v61  ;;  %9503 = vmatprep.subr.bf16.mxu0 %v15314_v18  ;;  %v15354_v61 = vcombine.high %v6147_v13, %v6151_v51  ;;  %v15356_v18 = vcombine.high %v6148_v16, %v6152_v60  ;;  %v6188_v13 = vld [vmem:[#allocation11 + $0x518] sm:$0xff] }
 0x4f1   :  { %9675 = vmatprep.subr.bf16.mxu1 %v15316_v54  ;;  %v6155_v54 = vld [vmem:[#allocation11 + $0x410] sm:$0xff]  ;;  %v6192_v51 = vld [vmem:[#allocation11 + $0x538] sm:$0xff] }
 0x4f2   :  { %v15361_v33 = vcombine.low %v6155_v54, %v6159_v21 }
 0x4f3   :  { %9504 = vmatpush1.bf16.msra.mxu0 %v15313_v27  ;;  %v15355_v27 = vcombine.low %v6148_v16, %v6152_v60  ;;  %v15387_v16 = vcombine.low %v6180_v1, %v6184_v7 }
 0x4f4   :  { %9676 = vmatpush1.bf16.msra.mxu1 %v15315_v28  ;;  %9505 = vmatprep.subr.bf16.mxu0 %v15322_v30  ;;  %v15362_v28 = vcombine.high %v6155_v54, %v6159_v21  ;;  %v15364_v30 = vcombine.high %v6156_v22, %v6160_v58  ;;  %v6200_v54 = vld [vmem:[#allocation11 + $0x578] sm:$0xff] }
 0x4f5   :  { %9677 = vmatprep.subr.bf16.mxu1 %v15324_v31  ;;  %v6163_v31 = vld [vmem:[#allocation11 + $0x450] sm:$0xff] }
 0x4f6   :  { %v15369_v63 = vcombine.low %v6163_v31, %v6167_v32 }
 0x4f7   :  { %9506 = vmatpush1.bf16.msra.mxu0 %v15321_v35  ;;  %v15363_v35 = vcombine.low %v6156_v22, %v6160_v58  ;;  %v15395_v22 = vcombine.low %v6188_v13, %v6192_v51 }
 0x4f8   :  { %9678 = vmatpush1.bf16.msra.mxu1 %v15323_v36  ;;  %9507 = vmatprep.subr.bf16.mxu0 %v15330_v38  ;;  %v15370_v36 = vcombine.high %v6163_v31, %v6167_v32  ;;  %v6171_v38 = vld [vmem:[#allocation11 + $0x490] sm:$0xff]  ;;  %v6208_v31 = vld [vmem:[#allocation11 + $0x5b8] sm:$0xff] }
 0x4f9   :  { %9679 = vmatprep.subr.bf16.mxu1 %v15332_v42  ;;  %v6175_v42 = vld [vmem:[#allocation11 + $0x4b0] sm:$0xff] }
 0x4fa   :  { %v15377_v49 = vcombine.low %v6171_v38, %v6175_v42 }
 0x4fb   :  { %9508 = vmatpush1.bf16.msra.mxu0 %v15329_v5  ;;  %v15371_v5 = vcombine.low %v6164_v10, %v6168_v34 }
 0x4fc   :  { %9680 = vmatpush1.bf16.msra.mxu1 %v15331_v8  ;;  %9509 = vmatprep.subr.bf16.mxu0 %v15338_v6  ;;  %v15378_v8 = vcombine.high %v6171_v38, %v6175_v42  ;;  %v15380_v6 = vcombine.high %v6172_v62, %v6176_v43  ;;  %v6212_v38 = vld [vmem:[#allocation11 + $0x5d8] sm:$0xff] }
 0x4fd   :  { %9681 = vmatprep.subr.bf16.mxu1 %v15340_v0  ;;  %v6179_v0 = vld [vmem:[#allocation11 + $0x4d0] sm:$0xff]  ;;  %v6216_v42 = vld [vmem:[#allocation11 + $0x5f8] sm:$0xff] }
 0x4ff   :  { %9510 = vmatpush1.bf16.msra.mxu0 %v15337_v11  ;;  %v15386_v11 = vcombine.high %v6179_v0, %v6183_v2 }
 0x500   :  { %9682 = vmatpush1.bf16.msra.mxu1 %v15339_v46  ;;  %9511 = vmatprep.subr.bf16.mxu0 %v15346_v15  ;;  %v15388_v46 = vcombine.high %v6180_v1, %v6184_v7  ;;  %v6187_v15 = vld [vmem:[#allocation11 + $0x510] sm:$0xff]  ;;  %v15419_v1 = vcombine.low %v6212_v38, %v6216_v42 }
 0x501   :  { %9683 = vmatprep.subr.bf16.mxu1 %v15348_v12  ;;  %v6191_v12 = vld [vmem:[#allocation11 + $0x530] sm:$0xff] }
 0x502   :  { %v15394_v60 = vcombine.high %v6187_v15, %v6191_v12  ;;  %v15393_v21 = vcombine.low %v6187_v15, %v6191_v12  ;;  %v6232_v15 = vld [vmem:[#allocation11 + $0x678] sm:$0xff] }
 0x503   :  { %9512 = vmatpush1.bf16.msra.mxu0 %v15345_v4  ;;  %v15396_v4 = vcombine.high %v6188_v13, %v6192_v51 }
 0x504   :  { %9684 = vmatpush1.bf16.msra.mxu1 %v15347_v17  ;;  %9513 = vmatprep.subr.bf16.mxu0 %v15354_v61  ;;  %v6195_v17 = vld [vmem:[#allocation11 + $0x550] sm:$0xff] }
 0x505   :  { %9685 = vmatprep.subr.bf16.mxu1 %v15356_v18  ;;  %v6199_v61 = vld [vmem:[#allocation11 + $0x570] sm:$0xff]  ;;  %v6196_v18 = vld [vmem:[#allocation11 + $0x558] sm:$0xff] }
 0x506   :  { %v15402_v58 = vcombine.high %v6195_v17, %v6199_v61  ;;  %v15401_v32 = vcombine.low %v6195_v17, %v6199_v61  ;;  %v6240_v17 = vld [vmem:[#allocation11 + $0x6b8] sm:$0xff] }
 0x507   :  { %9514 = vmatpush1.bf16.msra.mxu0 %v15353_v26  ;;  %v15404_v26 = vcombine.high %v6196_v18, %v6200_v54 }
 0x508   :  { %9686 = vmatpush1.bf16.msra.mxu1 %v15355_v27  ;;  %9526 = vmatprep.subr.bf16.mxu0 %v15362_v28  ;;  %v6203_v27 = vld [vmem:[#allocation11 + $0x590] sm:$0xff] }
 0x509   :  { %9698 = vmatprep.subr.bf16.mxu1 %v15364_v30  ;;  %v6207_v28 = vld [vmem:[#allocation11 + $0x5b0] sm:$0xff]  ;;  %v6204_v30 = vld [vmem:[#allocation11 + $0x598] sm:$0xff] }
 0x50a   :  { %9516 = vmatmul.mubr.bf16.vlgmr.msra.gmra.mrb[28].mxu0 %v17365_v9  ;;  %v15410_v10 = vcombine.high %v6203_v27, %v6207_v28  ;;  %v15412_v34 = vcombine.high %v6204_v30, %v6208_v31 }
 0x50b   :  { %9688 = vmatmul.mubr.bf16.vlgmr.msra.gmra.mrb[28].mxu1 %v17365_v9  ;;  %9527 = vmatpush1.bf16.msra.mxu0 %v15361_v33  ;;  %v15379_v9 = vcombine.low %v6172_v62, %v6176_v43  ;;  %v15403_v33 = vcombine.low %v6196_v18, %v6200_v54  ;;  %v15411_v62 = vcombine.low %v6204_v30, %v6208_v31 }
 0x50c   :  { %9558 = vmatprep.mubr.bf16.mxu0 %v17371_v19  ;;  %9699 = vmatpush1.bf16.msra.mxu1 %v15363_v35  ;;  %v6211_v35 = vld [vmem:[#allocation11 + $0x5d0] sm:$0xff] }
 0x50d   :  { %9730 = vmatprep.mubr.bf16.mxu1 %v17371_v19  ;;  %9528 = vmatprep.subr.bf16.mxu0 %v15370_v36  ;;  %v15385_v19 = vcombine.low %v6179_v0, %v6183_v2  ;;  %v6215_v36 = vld [vmem:[#allocation11 + $0x5f0] sm:$0xff]  ;;  %v6224_v0 = vld [vmem:[#allocation11 + $0x638] sm:$0xff] }
 0x50e   :  { %9700 = vmatprep.subr.bf16.mxu1 %v15372_v23  ;;  %v15409_v23 = vcombine.low %v6203_v27, %v6207_v28  ;;  %v15418_v43 = vcombine.high %v6211_v35, %v6215_v36  ;;  %v15417_v2 = vcombine.low %v6211_v35, %v6215_v36  ;;  %v6248_v27 = vld [vmem:[#allocation11 + $0x6f8] sm:$0xff] }
 0x50f   :  { %9529 = vmatpush1.bf16.msra.mxu0 %v15369_v63  ;;  %v15420_v63 = vcombine.high %v6212_v38, %v6216_v42  ;;  %v6256_v35 = vld [vmem:[#allocation11 + $0x738] sm:$0xff] }
 0x510   :  { %9701 = vmatpush1.bf16.msra.mxu1 %v15371_v5  ;;  %9530 = vmatprep.subr.bf16.mxu0 %v15378_v8  ;;  %v6219_v5 = vld [vmem:[#allocation11 + $0x610] sm:$0xff] }
 0x511   :  { %9702 = vmatprep.subr.bf16.mxu1 %v15380_v6  ;;  %v6223_v8 = vld [vmem:[#allocation11 + $0x630] sm:$0xff]  ;;  %v6220_v6 = vld [vmem:[#allocation11 + $0x618] sm:$0xff] }
 0x512   :  { %v15426_v7 = vcombine.high %v6219_v5, %v6223_v8  ;;  %v15425_v12 = vcombine.low %v6219_v5, %v6223_v8  ;;  %v15427_v13 = vcombine.low %v6220_v6, %v6224_v0  ;;  %v6264_v5 = vld [vmem:[#allocation11 + $0x778] sm:$0xff] }
 0x513   :  { %9531 = vmatpush1.bf16.msra.mxu0 %v15377_v49  ;;  %v15428_v49 = vcombine.high %v6220_v6, %v6224_v0 }
 0x514   :  { %9703 = vmatpush1.bf16.msra.mxu1 %v15379_v9  ;;  %9532 = vmatprep.subr.bf16.mxu0 %v15386_v11  ;;  %v6227_v9 = vld [vmem:[#allocation11 + $0x650] sm:$0xff] }
 0x515   :  { %9704 = vmatprep.subr.bf16.mxu1 %v15388_v46  ;;  %v6231_v11 = vld [vmem:[#allocation11 + $0x670] sm:$0xff]  ;;  %v6228_v46 = vld [vmem:[#allocation11 + $0x658] sm:$0xff] }
 0x516   :  { %v15434_v51 = vcombine.high %v6227_v9, %v6231_v11  ;;  %v15433_v61 = vcombine.low %v6227_v9, %v6231_v11  ;;  %v15435_v18 = vcombine.low %v6228_v46, %v6232_v15  ;;  %v6272_v9 = vld [vmem:[#allocation11 + $0x7b8] sm:$0xff] }
 0x517   :  { %9533 = vmatpush1.bf16.msra.mxu0 %v15385_v19  ;;  %v15436_v19 = vcombine.high %v6228_v46, %v6232_v15 }
 0x518   :  { %9705 = vmatpush1.bf16.msra.mxu1 %v15387_v16  ;;  %9534 = vmatprep.subr.bf16.mxu0 %v15394_v60  ;;  %v6235_v16 = vld [vmem:[#allocation11 + $0x690] sm:$0xff] }
 0x519   :  { %9706 = vmatprep.subr.bf16.mxu1 %v15396_v4  ;;  %v6239_v60 = vld [vmem:[#allocation11 + $0x6b0] sm:$0xff]  ;;  %v6236_v4 = vld [vmem:[#allocation11 + $0x698] sm:$0xff] }
 0x51a   :  { %v15442_v54 = vcombine.high %v6235_v16, %v6239_v60  ;;  %v15441_v28 = vcombine.low %v6235_v16, %v6239_v60  ;;  %v15443_v30 = vcombine.low %v6236_v4, %v6240_v17  ;;  %v6280_v16 = vld [vmem:[#allocation11 + $0x7f8] sm:$0xff] }
 0x51b   :  { %9535 = vmatpush1.bf16.msra.mxu0 %v15393_v21  ;;  %v15444_v21 = vcombine.high %v6236_v4, %v6240_v17 }
 0x51c   :  { %9707 = vmatpush1.bf16.msra.mxu1 %v15395_v22  ;;  %9536 = vmatprep.subr.bf16.mxu0 %v15402_v58  ;;  %v6243_v22 = vld [vmem:[#allocation11 + $0x6d0] sm:$0xff] }
 0x51d   :  { %9708 = vmatprep.subr.bf16.mxu1 %v15404_v26  ;;  %v6247_v58 = vld [vmem:[#allocation11 + $0x6f0] sm:$0xff]  ;;  %v6244_v26 = vld [vmem:[#allocation11 + $0x6d8] sm:$0xff] }
 0x51e   :  { %v15450_v31 = vcombine.high %v6243_v22, %v6247_v58  ;;  %v15449_v36 = vcombine.low %v6243_v22, %v6247_v58  ;;  %v15451_v38 = vcombine.low %v6244_v26, %v6248_v27  ;;  %v6288_v22 = vld [vmem:[#allocation11 + $0x838] sm:$0xff] }
 0x51f   :  { %9537 = vmatpush1.bf16.msra.mxu0 %v15401_v32  ;;  %v15452_v32 = vcombine.high %v6244_v26, %v6248_v27 }
 0x520   :  { %9709 = vmatpush1.bf16.msra.mxu1 %v15403_v33  ;;  %9538 = vmatprep.subr.bf16.mxu0 %v15410_v10  ;;  %v6251_v33 = vld [vmem:[#allocation11 + $0x710] sm:$0xff] }
 0x521   :  { %9710 = vmatprep.subr.bf16.mxu1 %v15412_v34  ;;  %v6255_v10 = vld [vmem:[#allocation11 + $0x730] sm:$0xff]  ;;  %v6252_v34 = vld [vmem:[#allocation11 + $0x718] sm:$0xff] }
 0x522   :  { %v15458_v42 = vcombine.high %v6251_v33, %v6255_v10  ;;  %v15457_v8 = vcombine.low %v6251_v33, %v6255_v10  ;;  %v15459_v6 = vcombine.low %v6252_v34, %v6256_v35  ;;  %v6292_v33 = vld [vmem:[#allocation11 + $0x858] sm:$0xff] }
 0x523   :  { %9539 = vmatpush1.bf16.msra.mxu0 %v15409_v23  ;;  %v15460_v23 = vcombine.high %v6252_v34, %v6256_v35  ;;  %v6296_v10 = vld [vmem:[#allocation11 + $0x878] sm:$0xff] }
 0x524   :  { %9711 = vmatpush1.bf16.msra.mxu1 %v15411_v62  ;;  %9540 = vmatprep.subr.bf16.mxu0 %v15418_v43  ;;  %v6259_v62 = vld [vmem:[#allocation11 + $0x750] sm:$0xff] }
 0x525   :  { %9712 = vmatprep.subr.bf16.mxu1 %v15420_v63  ;;  %v6263_v43 = vld [vmem:[#allocation11 + $0x770] sm:$0xff]  ;;  %v6260_v63 = vld [vmem:[#allocation11 + $0x758] sm:$0xff] }
 0x526   :  { %v15466_v0 = vcombine.high %v6259_v62, %v6263_v43  ;;  %v15465_v11 = vcombine.low %v6259_v62, %v6263_v43  ;;  %v15467_v46 = vcombine.low %v6260_v63, %v6264_v5  ;;  %v6304_v62 = vld [vmem:[#allocation11 + $0x8b8] sm:$0xff] }
 0x527   :  { %9541 = vmatpush1.bf16.msra.mxu0 %v15417_v2  ;;  %v15468_v2 = vcombine.high %v6260_v63, %v6264_v5  ;;  %v15499_v63 = vcombine.low %v6292_v33, %v6296_v10 }
 0x528   :  { %9713 = vmatpush1.bf16.msra.mxu1 %v15419_v1  ;;  %9542 = vmatprep.subr.bf16.mxu0 %v15426_v7  ;;  %v6267_v1 = vld [vmem:[#allocation11 + $0x790] sm:$0xff] }
 0x529   :  { %9714 = vmatprep.subr.bf16.mxu1 %v15428_v49  ;;  %v6271_v7 = vld [vmem:[#allocation11 + $0x7b0] sm:$0xff]  ;;  %v6268_v49 = vld [vmem:[#allocation11 + $0x798] sm:$0xff] }
 0x52a   :  { %v15474_v15 = vcombine.high %v6267_v1, %v6271_v7  ;;  %v15473_v60 = vcombine.low %v6267_v1, %v6271_v7  ;;  %v15475_v4 = vcombine.low %v6268_v49, %v6272_v9  ;;  %v6312_v1 = vld [vmem:[#allocation11 + $0x8f8] sm:$0xff] }
 0x52b   :  { %9543 = vmatpush1.bf16.msra.mxu0 %v15425_v12  ;;  %v15476_v12 = vcombine.high %v6268_v49, %v6272_v9 }
 0x52c   :  { %9715 = vmatpush1.bf16.msra.mxu1 %v15427_v13  ;;  %9544 = vmatprep.subr.bf16.mxu0 %v15434_v51  ;;  %v6275_v13 = vld [vmem:[#allocation11 + $0x7d0] sm:$0xff] }
 0x52d   :  { %9716 = vmatprep.subr.bf16.mxu1 %v15436_v19  ;;  %v6279_v51 = vld [vmem:[#allocation11 + $0x7f0] sm:$0xff]  ;;  %v6276_v19 = vld [vmem:[#allocation11 + $0x7d8] sm:$0xff] }
 0x52e   :  { %v15482_v17 = vcombine.high %v6275_v13, %v6279_v51  ;;  %v15481_v58 = vcombine.low %v6275_v13, %v6279_v51  ;;  %v15483_v26 = vcombine.low %v6276_v19, %v6280_v16 }
 0x52f   :  { %9545 = vmatpush1.bf16.msra.mxu0 %v15433_v61  ;;  %v15484_v61 = vcombine.high %v6276_v19, %v6280_v16  ;;  %v6323_v16 = vld [vmem:[#allocation11 + $0x950] sm:$0xff] }
 0x530   :  { %9717 = vmatpush1.bf16.msra.mxu1 %v15435_v18  ;;  %9546 = vmatprep.subr.bf16.mxu0 %v15442_v54  ;;  %v6283_v18 = vld [vmem:[#allocation11 + $0x810] sm:$0xff] }
 0x531   :  { %9718 = vmatprep.subr.bf16.mxu1 %v15444_v21  ;;  %v6287_v54 = vld [vmem:[#allocation11 + $0x830] sm:$0xff]  ;;  %v6284_v21 = vld [vmem:[#allocation11 + $0x818] sm:$0xff] }
 0x532   :  { %v15490_v27 = vcombine.high %v6283_v18, %v6287_v54  ;;  %v15491_v34 = vcombine.low %v6284_v21, %v6288_v22 }
 0x533   :  { %9547 = vmatpush1.bf16.msra.mxu0 %v15441_v28  ;;  %v15492_v28 = vcombine.high %v6284_v21, %v6288_v22  ;;  %v6331_v22 = vld [vmem:[#allocation11 + $0x990] sm:$0xff] }
 0x534   :  { %9719 = vmatpush1.bf16.msra.mxu1 %v15443_v30  ;;  %9548 = vmatprep.subr.bf16.mxu0 %v15450_v31  ;;  %v6291_v30 = vld [vmem:[#allocation11 + $0x850] sm:$0xff] }
 0x535   :  { %9720 = vmatprep.subr.bf16.mxu1 %v15452_v32  ;;  %v6295_v31 = vld [vmem:[#allocation11 + $0x870] sm:$0xff]  ;;  %v15489_v32 = vcombine.low %v6283_v18, %v6287_v54 }
 0x536   :  { %v15498_v35 = vcombine.high %v6291_v30, %v6295_v31  ;;  %v15497_v43 = vcombine.low %v6291_v30, %v6295_v31 }
 0x537   :  { %9549 = vmatpush1.bf16.msra.mxu0 %v15449_v36  ;;  %v6299_v36 = vld [vmem:[#allocation11 + $0x890] sm:$0xff] }
 0x538   :  { %9721 = vmatpush1.bf16.msra.mxu1 %v15451_v38  ;;  %9550 = vmatprep.subr.bf16.mxu0 %v15458_v42  ;;  %v6303_v38 = vld [vmem:[#allocation11 + $0x8b0] sm:$0xff]  ;;  %v15500_v42 = vcombine.high %v6292_v33, %v6296_v10 }
 0x539   :  { %9722 = vmatprep.subr.bf16.mxu1 %v15460_v23  ;;  %v6300_v23 = vld [vmem:[#allocation11 + $0x898] sm:$0xff]  ;;  %v15506_v5 = vcombine.high %v6299_v36, %v6303_v38  ;;  %v15505_v7 = vcombine.low %v6299_v36, %v6303_v38  ;;  %v6339_v33 = vld [vmem:[#allocation11 + $0x9d0] sm:$0xff] }
 0x53a   :  { %v6343_v10 = vld [vmem:[#allocation11 + $0x9f0] sm:$0xff] }
 0x53b   :  { %9551 = vmatpush1.bf16.msra.mxu0 %v15457_v8  ;;  %v15508_v8 = vcombine.high %v6300_v23, %v6304_v62 }
 0x53c   :  { %9723 = vmatpush1.bf16.msra.mxu1 %v15459_v6  ;;  %9552 = vmatprep.subr.bf16.mxu0 %v15466_v0  ;;  %v6307_v6 = vld [vmem:[#allocation11 + $0x8d0] sm:$0xff] }
 0x53d   :  { %9724 = vmatprep.subr.bf16.mxu1 %v15468_v2  ;;  %v6311_v0 = vld [vmem:[#allocation11 + $0x8f0] sm:$0xff]  ;;  %v6308_v2 = vld [vmem:[#allocation11 + $0x8d8] sm:$0xff] }
 0x53e   :  { %v15514_v49 = vcombine.high %v6307_v6, %v6311_v0  ;;  %v15516_v9 = vcombine.high %v6308_v2, %v6312_v1  ;;  %v15515_v13 = vcombine.low %v6308_v2, %v6312_v1  ;;  %v6355_v1 = vld [vmem:[#allocation11 + $0xa50] sm:$0xff] }
 0x53f   :  { %9553 = vmatpush1.bf16.msra.mxu0 %v15465_v11  ;;  %v6315_v11 = vld [vmem:[#allocation11 + $0x910] sm:$0xff] }
 0x540   :  { %9725 = vmatpush1.bf16.msra.mxu1 %v15467_v46  ;;  %9554 = vmatprep.subr.bf16.mxu0 %v15474_v15  ;;  %v6319_v46 = vld [vmem:[#allocation11 + $0x930] sm:$0xff]  ;;  %v6316_v15 = vld [vmem:[#allocation11 + $0x918] sm:$0xff] }
 0x541   :  { %9726 = vmatprep.subr.bf16.mxu1 %v15476_v12  ;;  %v6320_v12 = vld [vmem:[#allocation11 + $0x938] sm:$0xff]  ;;  %v15522_v51 = vcombine.high %v6315_v11, %v6319_v46 }
 0x542   :  { %v15524_v19 = vcombine.high %v6316_v15, %v6320_v12  ;;  %v15523_v18 = vcombine.low %v6316_v15, %v6320_v12  ;;  %v6363_v12 = vld [vmem:[#allocation11 + $0xa90] sm:$0xff] }
 0x543   :  { %9555 = vmatpush1.bf16.msra.mxu0 %v15473_v60  ;;  %v6327_v60 = vld [vmem:[#allocation11 + $0x970] sm:$0xff] }
 0x544   :  { %9727 = vmatpush1.bf16.msra.mxu1 %v15475_v4  ;;  %9556 = vmatprep.subr.bf16.mxu0 %v15482_v17  ;;  %v6324_v4 = vld [vmem:[#allocation11 + $0x958] sm:$0xff]  ;;  %v15530_v54 = vcombine.high %v6323_v16, %v6327_v60 }
 0x545   :  { %9728 = vmatprep.subr.bf16.mxu1 %v15484_v61  ;;  %v6328_v17 = vld [vmem:[#allocation11 + $0x978] sm:$0xff]  ;;  %v15521_v61 = vcombine.low %v6315_v11, %v6319_v46 }
 0x546   :  { %v15532_v21 = vcombine.high %v6324_v4, %v6328_v17  ;;  %v15531_v30 = vcombine.low %v6324_v4, %v6328_v17  ;;  %v6371_v17 = vld [vmem:[#allocation11 + $0xad0] sm:$0xff] }
 0x547   :  { %9557 = vmatpush1.bf16.msra.mxu0 %v15481_v58  ;;  %v6335_v58 = vld [vmem:[#allocation11 + $0x9b0] sm:$0xff] }
 0x548   :  { %9729 = vmatpush1.bf16.msra.mxu1 %v15483_v26  ;;  %9569 = vmatprep.subr.bf16.mxu0 %v15490_v27  ;;  %v6332_v26 = vld [vmem:[#allocation11 + $0x998] sm:$0xff]  ;;  %v15538_v31 = vcombine.high %v6331_v22, %v6335_v58  ;;  %v15537_v36 = vcombine.low %v6331_v22, %v6335_v58 }
 0x549   :  { %9741 = vmatprep.subr.bf16.mxu1 %v15492_v28  ;;  %v6336_v27 = vld [vmem:[#allocation11 + $0x9b8] sm:$0xff]  ;;  %v15529_v28 = vcombine.low %v6323_v16, %v6327_v60 }
 0x54a   :  { %9559 = vmatmul.mubr.bf16.vlgmr.msra.gmra.mrb[28].mxu0 %v17367_v14  ;;  %v15539_v38 = vcombine.low %v6332_v26, %v6336_v27 }
 0x54b   :  { %9731 = vmatmul.mubr.bf16.vlgmr.msra.gmra.mrb[28].mxu1 %v17367_v14  ;;  %9570 = vmatpush1.bf16.msra.mxu0 %v15489_v32  ;;  %v15507_v14 = vcombine.low %v6300_v23, %v6304_v62  ;;  %v15540_v32 = vcombine.high %v6332_v26, %v6336_v27  ;;  %v6347_v62 = vld [vmem:[#allocation11 + $0xa10] sm:$0xff] }
 0x54c   :  { %9601 = vmatprep.mubr.bf16.mxu0 %v17389_v53  ;;  %9742 = vmatpush1.bf16.msra.mxu1 %v15491_v34  ;;  %v6340_v34 = vld [vmem:[#allocation11 + $0x9d8] sm:$0xff]  ;;  %v6379_v27 = vld [vmem:[#allocation11 + $0xb10] sm:$0xff] }
 0x54d   :  { %9773 = vmatprep.mubr.bf16.mxu1 %v17389_v53  ;;  %9571 = vmatprep.subr.bf16.mxu0 %v15498_v35  ;;  %v15513_v53 = vcombine.low %v6307_v6, %v6311_v0  ;;  %v6344_v35 = vld [vmem:[#allocation11 + $0x9f8] sm:$0xff] }
 0x54e   :  { %9743 = vmatprep.subr.bf16.mxu1 %v15500_v42  ;;  %v15546_v42 = vcombine.high %v6339_v33, %v6343_v10  ;;  %v15548_v23 = vcombine.high %v6340_v34, %v6344_v35  ;;  %v15547_v6 = vcombine.low %v6340_v34, %v6344_v35  ;;  %v6387_v35 = vld [vmem:[#allocation11 + $0xb50] sm:$0xff] }
 0x54f   :  { %9572 = vmatpush1.bf16.msra.mxu0 %v15497_v43  ;;  %v6351_v43 = vld [vmem:[#allocation11 + $0xa30] sm:$0xff] }
 0x550   :  { %9744 = vmatpush1.bf16.msra.mxu1 %v15499_v63  ;;  %9573 = vmatprep.subr.bf16.mxu0 %v15506_v5  ;;  %v6348_v63 = vld [vmem:[#allocation11 + $0xa18] sm:$0xff]  ;;  %v15554_v0 = vcombine.high %v6347_v62, %v6351_v43 }
 0x551   :  { %9745 = vmatprep.subr.bf16.mxu1 %v15508_v8  ;;  %v6352_v5 = vld [vmem:[#allocation11 + $0xa38] sm:$0xff]  ;;  %v15545_v8 = vcombine.low %v6339_v33, %v6343_v10 }
 0x552   :  { %v15556_v2 = vcombine.high %v6348_v63, %v6352_v5  ;;  %v15555_v11 = vcombine.low %v6348_v63, %v6352_v5  ;;  %v6395_v5 = vld [vmem:[#allocation11 + $0xb90] sm:$0xff] }
 0x553   :  { %9574 = vmatpush1.bf16.msra.mxu0 %v15505_v7  ;;  %v6359_v7 = vld [vmem:[#allocation11 + $0xa70] sm:$0xff] }
 0x554   :  { %9746 = vmatpush1.bf16.msra.mxu1 %v15507_v14  ;;  %9575 = vmatprep.subr.bf16.mxu0 %v15514_v49  ;;  %v6356_v14 = vld [vmem:[#allocation11 + $0xa58] sm:$0xff]  ;;  %v15562_v46 = vcombine.high %v6355_v1, %v6359_v7 }
 0x555   :  { %9747 = vmatprep.subr.bf16.mxu1 %v15516_v9  ;;  %v6360_v49 = vld [vmem:[#allocation11 + $0xa78] sm:$0xff]  ;;  %v15553_v9 = vcombine.low %v6347_v62, %v6351_v43 }
 0x556   :  { %v15564_v15 = vcombine.high %v6356_v14, %v6360_v49  ;;  %v15563_v16 = vcombine.low %v6356_v14, %v6360_v49  ;;  %v6403_v49 = vld [vmem:[#allocation11 + $0xbd0] sm:$0xff] }
 0x557   :  { %9576 = vmatpush1.bf16.msra.mxu0 %v15513_v53  ;;  %v6367_v53 = vld [vmem:[#allocation11 + $0xab0] sm:$0xff] }
 0x558   :  { %9748 = vmatpush1.bf16.msra.mxu1 %v15515_v13  ;;  %9577 = vmatprep.subr.bf16.mxu0 %v15522_v51  ;;  %v6364_v13 = vld [vmem:[#allocation11 + $0xa98] sm:$0xff]  ;;  %v15570_v60 = vcombine.high %v6363_v12, %v6367_v53 }
 0x559   :  { %9749 = vmatprep.subr.bf16.mxu1 %v15524_v19  ;;  %v6368_v51 = vld [vmem:[#allocation11 + $0xab8] sm:$0xff]  ;;  %v15561_v19 = vcombine.low %v6355_v1, %v6359_v7 }
 0x55a   :  { %v15572_v4 = vcombine.high %v6364_v13, %v6368_v51  ;;  %v15571_v22 = vcombine.low %v6364_v13, %v6368_v51  ;;  %v6411_v51 = vld [vmem:[#allocation11 + $0xc10] sm:$0xff] }
 0x55b   :  { %9578 = vmatpush1.bf16.msra.mxu0 %v15521_v61  ;;  %v6375_v61 = vld [vmem:[#allocation11 + $0xaf0] sm:$0xff] }
 0x55c   :  { %9750 = vmatpush1.bf16.msra.mxu1 %v15523_v18  ;;  %9579 = vmatprep.subr.bf16.mxu0 %v15530_v54  ;;  %v6372_v18 = vld [vmem:[#allocation11 + $0xad8] sm:$0xff]  ;;  %v15578_v58 = vcombine.high %v6371_v17, %v6375_v61 }
 0x55d   :  { %9751 = vmatprep.subr.bf16.mxu1 %v15532_v21  ;;  %v6376_v54 = vld [vmem:[#allocation11 + $0xaf8] sm:$0xff]  ;;  %v15569_v21 = vcombine.low %v6363_v12, %v6367_v53 }
 0x55e   :  { %v15580_v26 = vcombine.high %v6372_v18, %v6376_v54  ;;  %v15579_v33 = vcombine.low %v6372_v18, %v6376_v54  ;;  %v6419_v54 = vld [vmem:[#allocation11 + $0xc50] sm:$0xff] }
 0x55f   :  { %9580 = vmatpush1.bf16.msra.mxu0 %v15529_v28  ;;  %v6383_v28 = vld [vmem:[#allocation11 + $0xb30] sm:$0xff] }
 0x560   :  { %9752 = vmatpush1.bf16.msra.mxu1 %v15531_v30  ;;  %9581 = vmatprep.subr.bf16.mxu0 %v15538_v31  ;;  %v6380_v30 = vld [vmem:[#allocation11 + $0xb18] sm:$0xff]  ;;  %v15586_v10 = vcombine.high %v6379_v27, %v6383_v28 }
 0x561   :  { %9753 = vmatprep.subr.bf16.mxu1 %v15540_v32  ;;  %v6384_v31 = vld [vmem:[#allocation11 + $0xb38] sm:$0xff]  ;;  %v15577_v32 = vcombine.low %v6371_v17, %v6375_v61 }
 0x562   :  { %v15588_v34 = vcombine.high %v6380_v30, %v6384_v31  ;;  %v15587_v62 = vcombine.low %v6380_v30, %v6384_v31  ;;  %v6427_v30 = vld [vmem:[#allocation11 + $0xc90] sm:$0xff] }
 0x563   :  { %9582 = vmatpush1.bf16.msra.mxu0 %v15537_v36  ;;  %v6391_v36 = vld [vmem:[#allocation11 + $0xb70] sm:$0xff] }
 0x564   :  { %9754 = vmatpush1.bf16.msra.mxu1 %v15539_v38  ;;  %9583 = vmatprep.subr.bf16.mxu0 %v15546_v42  ;;  %v6388_v38 = vld [vmem:[#allocation11 + $0xb58] sm:$0xff]  ;;  %v15594_v43 = vcombine.high %v6387_v35, %v6391_v36  ;;  %v6431_v31 = vld [vmem:[#allocation11 + $0xcb0] sm:$0xff] }
 0x565   :  { %9755 = vmatprep.subr.bf16.mxu1 %v15548_v23  ;;  %v6392_v42 = vld [vmem:[#allocation11 + $0xb78] sm:$0xff]  ;;  %v15585_v23 = vcombine.low %v6379_v27, %v6383_v28 }
 0x566   :  { %v15596_v63 = vcombine.high %v6388_v38, %v6392_v42  ;;  %v15595_v1 = vcombine.low %v6388_v38, %v6392_v42  ;;  %v6435_v42 = vld [vmem:[#allocation11 + $0xcd0] sm:$0xff] }
 0x567   :  { %9584 = vmatpush1.bf16.msra.mxu0 %v15545_v8  ;;  %v6399_v8 = vld [vmem:[#allocation11 + $0xbb0] sm:$0xff] }
 0x568   :  { %9756 = vmatpush1.bf16.msra.mxu1 %v15547_v6  ;;  %9585 = vmatprep.subr.bf16.mxu0 %v15554_v0  ;;  %v6396_v6 = vld [vmem:[#allocation11 + $0xb98] sm:$0xff]  ;;  %v15602_v7 = vcombine.high %v6395_v5, %v6399_v8 }
 0x569   :  { %9757 = vmatprep.subr.bf16.mxu1 %v15556_v2  ;;  %v6400_v0 = vld [vmem:[#allocation11 + $0xbb8] sm:$0xff]  ;;  %v15593_v2 = vcombine.low %v6387_v35, %v6391_v36  ;;  %v15634_v36 = vcombine.high %v6427_v30, %v6431_v31 }
 0x56a   :  { %v15604_v14 = vcombine.high %v6396_v6, %v6400_v0  ;;  %v15603_v12 = vcombine.low %v6396_v6, %v6400_v0  ;;  %v6443_v6 = vld [vmem:[#allocation11 + $0xd10] sm:$0xff] }
 0x56b   :  { %9586 = vmatpush1.bf16.msra.mxu0 %v15553_v9  ;;  %v6407_v9 = vld [vmem:[#allocation11 + $0xbf0] sm:$0xff] }
 0x56c   :  { %9758 = vmatpush1.bf16.msra.mxu1 %v15555_v11  ;;  %9587 = vmatprep.subr.bf16.mxu0 %v15562_v46  ;;  %v6404_v11 = vld [vmem:[#allocation11 + $0xbd8] sm:$0xff]  ;;  %v15610_v53 = vcombine.high %v6403_v49, %v6407_v9  ;;  %v6447_v0 = vld [vmem:[#allocation11 + $0xd30] sm:$0xff] }
 0x56d   :  { %9759 = vmatprep.subr.bf16.mxu1 %v15564_v15  ;;  %v6408_v46 = vld [vmem:[#allocation11 + $0xbf8] sm:$0xff]  ;;  %v15601_v15 = vcombine.low %v6395_v5, %v6399_v8 }
 0x56e   :  { %v15612_v13 = vcombine.high %v6404_v11, %v6408_v46  ;;  %v15611_v17 = vcombine.low %v6404_v11, %v6408_v46  ;;  %v6455_v11 = vld [vmem:[#allocation11 + $0xd70] sm:$0xff]  ;;  %v6452_v46 = vld [vmem:[#allocation11 + $0xd58] sm:$0xff] }
 0x56f   :  { %9588 = vmatpush1.bf16.msra.mxu0 %v15561_v19  ;;  %v6415_v19 = vld [vmem:[#allocation11 + $0xc30] sm:$0xff] }
 0x570   :  { %9760 = vmatpush1.bf16.msra.mxu1 %v15563_v16  ;;  %9589 = vmatprep.subr.bf16.mxu0 %v15570_v60  ;;  %v6412_v16 = vld [vmem:[#allocation11 + $0xc18] sm:$0xff]  ;;  %v15618_v61 = vcombine.high %v6411_v51, %v6415_v19 }
 0x571   :  { %9761 = vmatprep.subr.bf16.mxu1 %v15572_v4  ;;  %v6416_v60 = vld [vmem:[#allocation11 + $0xc38] sm:$0xff]  ;;  %v15609_v4 = vcombine.low %v6403_v49, %v6407_v9  ;;  %v6451_v9 = vld [vmem:[#allocation11 + $0xd50] sm:$0xff] }
 0x572   :  { %v15620_v18 = vcombine.high %v6412_v16, %v6416_v60  ;;  %v15619_v27 = vcombine.low %v6412_v16, %v6416_v60  ;;  %v6459_v16 = vld [vmem:[#allocation11 + $0xd90] sm:$0xff] }
 0x573   :  { %9590 = vmatpush1.bf16.msra.mxu0 %v15569_v21  ;;  %v6423_v21 = vld [vmem:[#allocation11 + $0xc70] sm:$0xff] }
 0x574   :  { %9762 = vmatpush1.bf16.msra.mxu1 %v15571_v22  ;;  %9591 = vmatprep.subr.bf16.mxu0 %v15578_v58  ;;  %v15617_v22 = vcombine.low %v6411_v51, %v6415_v19  ;;  %v6420_v58 = vld [vmem:[#allocation11 + $0xc58] sm:$0xff]  ;;  %v15626_v28 = vcombine.high %v6419_v54, %v6423_v21  ;;  %v15658_v51 = vcombine.high %v6451_v9, %v6455_v11  ;;  %v6463_v60 = vld [vmem:[#allocation11 + $0xdb0] sm:$0xff] }
 0x575   :  { %9763 = vmatprep.subr.bf16.mxu1 %v15580_v26  ;;  %v6424_v26 = vld [vmem:[#allocation11 + $0xc78] sm:$0xff] }
 0x576   :  { %v15627_v35 = vcombine.low %v6420_v58, %v6424_v26 }
 0x577   :  { %9592 = vmatpush1.bf16.msra.mxu0 %v15577_v32  ;;  %v15628_v32 = vcombine.high %v6420_v58, %v6424_v26  ;;  %v15666_v26 = vcombine.high %v6459_v16, %v6463_v60 }
 0x578   :  { %9764 = vmatpush1.bf16.msra.mxu1 %v15579_v33  ;;  %9593 = vmatprep.subr.bf16.mxu0 %v15586_v10  ;;  %v6428_v33 = vld [vmem:[#allocation11 + $0xc98] sm:$0xff] }
 0x579   :  { %9765 = vmatprep.subr.bf16.mxu1 %v15588_v34  ;;  %v6432_v10 = vld [vmem:[#allocation11 + $0xcb8] sm:$0xff]  ;;  %v15625_v34 = vcombine.low %v6419_v54, %v6423_v21  ;;  %v15657_v21 = vcombine.low %v6451_v9, %v6455_v11  ;;  %v6475_v9 = vld [vmem:[#allocation11 + $0xe10] sm:$0xff] }
 0x57a   :  { %v15636_v38 = vcombine.high %v6428_v33, %v6432_v10  ;;  %v6479_v11 = vld [vmem:[#allocation11 + $0xe30] sm:$0xff] }
 0x57b   :  { %9594 = vmatpush1.bf16.msra.mxu0 %v15585_v23  ;;  %v6439_v23 = vld [vmem:[#allocation11 + $0xcf0] sm:$0xff] }
 0x57c   :  { %9766 = vmatpush1.bf16.msra.mxu1 %v15587_v62  ;;  %9595 = vmatprep.subr.bf16.mxu0 %v15594_v43  ;;  %v6436_v62 = vld [vmem:[#allocation11 + $0xcd8] sm:$0xff]  ;;  %v15642_v5 = vcombine.high %v6435_v42, %v6439_v23 }
 0x57d   :  { %9767 = vmatprep.subr.bf16.mxu1 %v15596_v63  ;;  %v6440_v43 = vld [vmem:[#allocation11 + $0xcf8] sm:$0xff]  ;;  %v15633_v63 = vcombine.low %v6427_v30, %v6431_v31 }
 0x57e   :  { %v15644_v8 = vcombine.high %v6436_v62, %v6440_v43 }
 0x57f   :  { %9596 = vmatpush1.bf16.msra.mxu0 %v15593_v2  ;;  %v6444_v2 = vld [vmem:[#allocation11 + $0xd18] sm:$0xff] }
 0x580   :  { %9768 = vmatpush1.bf16.msra.mxu1 %v15595_v1  ;;  %9597 = vmatprep.subr.bf16.mxu0 %v15602_v7  ;;  %v6448_v1 = vld [vmem:[#allocation11 + $0xd38] sm:$0xff]  ;;  %v15643_v7 = vcombine.low %v6436_v62, %v6440_v43 }
 0x581   :  { %9769 = vmatprep.subr.bf16.mxu1 %v15604_v14  ;;  %v15650_v14 = vcombine.high %v6443_v6, %v6447_v0  ;;  %v15652_v49 = vcombine.high %v6444_v2, %v6448_v1 }
 0x583   :  { %9598 = vmatpush1.bf16.msra.mxu0 %v15601_v15  ;;  %v6456_v15 = vld [vmem:[#allocation11 + $0xd78] sm:$0xff] }
 0x584   :  { %9770 = vmatpush1.bf16.msra.mxu1 %v15603_v12  ;;  %9599 = vmatprep.subr.bf16.mxu0 %v15610_v53  ;;  %v15649_v12 = vcombine.low %v6443_v6, %v6447_v0  ;;  %v6537_v53 = vld [vmem:[#allocation13] sm:$0xff]  ;;  %v15660_v19 = vcombine.high %v6452_v46, %v6456_v15  ;;  %v15659_v58 = vcombine.low %v6452_v46, %v6456_v15 }
 0x585   :  { %9771 = vmatprep.subr.bf16.mxu1 %v15612_v13  ;;  %v15651_v13 = vcombine.low %v6444_v2, %v6448_v1  ;;  %v6546_v54 = vrot.slane %v6537_v53, %v17296_v57 }
 0x587   :  { %9600 = vmatpush1.bf16.msra.mxu0 %v15609_v4  ;;  %v6542_v4 = vrot.slane %v6537_v53, %v17288_v50 }
 0x588   :  { %9772 = vmatpush1.bf16.msra.mxu1 %v15611_v17  ;;  %9612 = vmatprep.subr.bf16.mxu0 %v15618_v61  ;;  %v6460_v17 = vld [vmem:[#allocation11 + $0xd98] sm:$0xff] }
 0x589   :  { %9784 = vmatprep.subr.bf16.mxu1 %v15620_v18  ;;  %v6464_v61 = vld [vmem:[#allocation11 + $0xdb8] sm:$0xff]  ;;  %v6550_v18 = vrot.slane %v6537_v53, %v17293_v55 }
 0x58a   :  { %9602 = vmatmul.mubr.bf16.vlgmr.msra.gmra.mrb[28].mxu0 %v17385_v39  ;;  %v15668_v31 = vcombine.high %v6460_v17, %v6464_v61  ;;  %v15667_v43 = vcombine.low %v6460_v17, %v6464_v61  ;;  %v15682_v17 = vcombine.high %v6475_v9, %v6479_v11 }
 0x58b   :  { %9774 = vmatmul.mubr.bf16.vlgmr.msra.gmra.mrb[28].mxu1 %v17385_v39  ;;  %9613 = vmatpush1.bf16.msra.mxu0 %v15617_v22  ;;  %v15635_v39 = vcombine.low %v6428_v33, %v6432_v10  ;;  %v6554_v22 = vrot.slane %v6537_v53, %v17299_v59  ;;  %v6472_v33 = vld [vmem:[#allocation11 + $0xdf8] sm:$0xff] }
 0x58c   :  { %9644 = vmatprep.mubr.bf16.mxu0 %v17391_v3  ;;  %9785 = vmatpush1.bf16.msra.mxu1 %v15619_v27  ;;  %v6467_v27 = vld [vmem:[#allocation11 + $0xdd0] sm:$0xff]  ;;  %v6476_v53 = vld [vmem:[#allocation11 + $0xe18] sm:$0xff] }
 0x58d   :  { %9816 = vmatprep.mubr.bf16.mxu1 %v17391_v3  ;;  %9614 = vmatprep.subr.bf16.mxu0 %v15626_v28  ;;  %v15641_v3 = vcombine.low %v6435_v42, %v6439_v23  ;;  %v6471_v28 = vld [vmem:[#allocation11 + $0xdf0] sm:$0xff] }
 0x58e   :  { %9786 = vmatprep.subr.bf16.mxu1 %v15628_v32  ;;  %v6468_v32 = vld [vmem:[#allocation11 + $0xdd8] sm:$0xff] }
 0x58f   :  { %9615 = vmatpush1.bf16.msra.mxu0 %v15625_v34  ;;  %v15676_v2 = vcombine.high %v6468_v32, %v6472_v33 }
 0x590   :  { %9787 = vmatpush1.bf16.msra.mxu1 %v15627_v35  ;;  %9616 = vmatprep.subr.bf16.mxu0 %v15634_v36  ;;  %v15665_v36 = vcombine.low %v6459_v16, %v6463_v60  ;;  %v15673_v16 = vcombine.low %v6467_v27, %v6471_v28 }
 0x591   :  { %9788 = vmatprep.subr.bf16.mxu1 %v15636_v38 }
 0x593   :  { %9617 = vmatpush1.bf16.msra.mxu0 %v15633_v63  ;;  %v15674_v63 = vcombine.high %v6467_v27, %v6471_v28 }
 0x594   :  { %9789 = vmatpush1.bf16.msra.mxu1 %v15635_v39  ;;  %9618 = vmatprep.subr.bf16.mxu0 %v15642_v5 }
 0x595   :  { %9790 = vmatprep.subr.bf16.mxu1 %v15644_v8 }
 0x597   :  { %9619 = vmatpush1.bf16.msra.mxu0 %v15641_v3 }
 0x598   :  { %9791 = vmatpush1.bf16.msra.mxu1 %v15643_v7  ;;  %9620 = vmatprep.subr.bf16.mxu0 %v15650_v14 }
 0x599   :  { %9792 = vmatprep.subr.bf16.mxu1 %v15652_v49 }
 0x59b   :  { %9621 = vmatpush1.bf16.msra.mxu0 %v15649_v12 }
 0x59c   :  { %9793 = vmatpush1.bf16.msra.mxu1 %v15651_v13  ;;  %9622 = vmatprep.subr.bf16.mxu0 %v15658_v51  ;;  %v6480_v13 = vld [vmem:[#allocation11 + $0xe38] sm:$0xff] }
 0x59d   :  { %v9302_v30 = vpop.f32.mrb[24].mxu0  ;;  %9794 = vmatprep.subr.bf16.mxu1 %v15660_v19  ;;  %v15684_v61 = vcombine.high %v6476_v53, %v6480_v13 }
 0x59e   :  { %v16422_v10 = vadd.f32 %v9302_v30, %v6542_v4  ;;  %v9474_v34 = vpop.f32.mrb[24].mxu1  ;;  %v9304_v35 = vpop.f32.mrb[25].mxu0  ;;  %v6491_v30 = vld [vmem:[#allocation11 + $0xe90] sm:$0xff] }
 0x59f   :  { %v16426_v38 = vadd.f32 %v9474_v34, %v6550_v18  ;;  %v16423_v42 = vadd.f32 %v9304_v35, %v6546_v54  ;;  %v9476_v23 = vpop.f32.mrb[25].mxu1  ;;  %v9306_v62 = vpop.f32.mrb[26].mxu0  ;;  %9623 = vmatpush1.bf16.msra.mxu0 %v15657_v21  ;;  %v6484_v21 = vld [vmem:[#allocation11 + $0xe58] sm:$0xff] }
 0x5a0   :  { %v9827_v39 = vmax.f32 %v16422_v10, 0.0  ;;  %v16427_v5 = vadd.f32 %v9476_v23, %v6554_v22  ;;  %v16424_v8 = vadd.f32 %v9306_v62, %v6542_v4  ;;  %v9478_v6 = vpop.f32.mrb[26].mxu1  ;;  %9795 = vmatpush1.bf16.msra.mxu1 %v15659_v58  ;;  %v9308_v0 = vpop.f32.mrb[27].mxu0  ;;  %9624 = vmatprep.subr.bf16.mxu0 %v15666_v26  ;;  %v15675_v4 = vcombine.low %v6468_v32, %v6472_v33  ;;  %v6492_v32 = vld [vmem:[#allocation11 + $0xe98] sm:$0xff] }
 0x5a1   :  { %v9829_v1 = vmax.f32 %v16426_v38, 0.0  ;;  %v9828_v3 = vmax.f32 %v16423_v42, 0.0  ;;  %v16428_v7 = vadd.f32 %v9478_v6, %v6550_v18  ;;  %v16425_v14 = vadd.f32 %v9308_v0, %v6546_v54  ;;  %v9480_v49 = vpop.f32.mrb[27].mxu1  ;;  %9796 = vmatprep.subr.bf16.mxu1 %v15668_v31  ;;  %v6483_v18 = vld [vmem:[#allocation11 + $0xe50] sm:$0xff]  ;;  %v6496_v33 = vld [vmem:[#allocation11 + $0xeb8] sm:$0xff] }
 0x5a2   :  { %9859 = vst [vmem:[#allocation21] sm:$0xff] %v9827_v39  ;;  %v9830_v46 = vmax.f32 %v16427_v5, 0.0  ;;  %v9835_v15 = vmax.f32 %v16424_v8, 0.0  ;;  %v16429_v12 = vadd.f32 %v9480_v49, %v6554_v22  ;;  %v6487_v54 = vld [vmem:[#allocation11 + $0xe70] sm:$0xff]  ;;  %v6488_v22 = vld [vmem:[#allocation11 + $0xe78] sm:$0xff]  ;;  %v15681_v58 = vcombine.low %v6475_v9, %v6479_v11 }
 0x5a3   :  { %9861 = vst [vmem:[#allocation21 + $0x10] sm:$0xff] %v9829_v1  ;;  %9860 = vst [vmem:[#allocation21 + $0x8] sm:$0xff] %v9828_v3  ;;  %v9837_v51 = vmax.f32 %v16428_v7, 0.0  ;;  %v9836_v19 = vmax.f32 %v16425_v14, 0.0  ;;  %9625 = vmatpush1.bf16.msra.mxu0 %v15665_v36  ;;  %v15683_v26 = vcombine.low %v6476_v53, %v6480_v13  ;;  %v15690_v27 = vcombine.high %v6483_v18, %v6487_v54  ;;  %v6495_v31 = vld [vmem:[#allocation11 + $0xeb0] sm:$0xff]  ;;  %v6500_v23 = vld [vmem:[#allocation11 + $0xed8] sm:$0xff] }
 0x5a4   :  { %9862 = vst [vmem:[#allocation21 + $0x18] sm:$0xff] %v9830_v46  ;;  %9867 = vst [vmem:[#allocation21 + $0x40] sm:$0xff] %v9835_v15  ;;  %v9838_v60 = vmax.f32 %v16429_v12, 0.0  ;;  %9797 = vmatpush1.bf16.msra.mxu1 %v15667_v43  ;;  %9626 = vmatprep.subr.bf16.mxu0 %v15674_v63  ;;  %v15692_v28 = vcombine.high %v6484_v21, %v6488_v22  ;;  %v15689_v10 = vcombine.low %v6483_v18, %v6487_v54  ;;  %v6499_v38 = vld [vmem:[#allocation11 + $0xed0] sm:$0xff]  ;;  %v6504_v62 = vld [vmem:[#allocation11 + $0xef8] sm:$0xff] }
 0x5a5   :  { %9869 = vst [vmem:[#allocation21 + $0x50] sm:$0xff] %v9837_v51  ;;  %9868 = vst [vmem:[#allocation21 + $0x48] sm:$0xff] %v9836_v19  ;;  %9798 = vmatprep.subr.bf16.mxu1 %v15676_v2  ;;  %v15691_v34 = vcombine.low %v6484_v21, %v6488_v22  ;;  %v15698_v35 = vcombine.high %v6491_v30, %v6495_v31  ;;  %v15700_v36 = vcombine.high %v6492_v32, %v6496_v33  ;;  %v6503_v42 = vld [vmem:[#allocation11 + $0xef0] sm:$0xff]  ;;  %v6508_v0 = vld [vmem:[#allocation11 + $0xf18] sm:$0xff] }
 0x5a6   :  { %9870 = vst [vmem:[#allocation21 + $0x58] sm:$0xff] %v9838_v60  ;;  %v15697_v43 = vcombine.low %v6491_v30, %v6495_v31  ;;  %v15699_v63 = vcombine.low %v6492_v32, %v6496_v33  ;;  %v15706_v39 = vcombine.high %v6499_v38, %v6503_v42  ;;  %v15708_v5 = vcombine.high %v6500_v23, %v6504_v62  ;;  %v6507_v8 = vld [vmem:[#allocation11 + $0xf10] sm:$0xff]  ;;  %v6512_v2 = vld [vmem:[#allocation11 + $0xf38] sm:$0xff]  ;;  %v9883_v31 = vld [vmem:[#allocation14] sm:$0xff] }
 0x5a7   :  { %9627 = vmatpush1.bf16.msra.mxu0 %v15673_v16  ;;  %v6511_v6 = vld [vmem:[#allocation11 + $0xf30] sm:$0xff]  ;;  %v15705_v1 = vcombine.low %v6499_v38, %v6503_v42  ;;  %v15707_v3 = vcombine.low %v6500_v23, %v6504_v62  ;;  %v15716_v14 = vcombine.high %v6508_v0, %v6512_v2  ;;  %v6516_v11 = vld [vmem:[#allocation11 + $0xf58] sm:$0xff]  ;;  %v15715_v12 = vcombine.low %v6508_v0, %v6512_v2  ;;  %v9887_v32 = vld [vmem:[#allocation14 + $0x20] sm:$0xff] }
 0x5a8   :  { %9799 = vmatpush1.bf16.msra.mxu1 %v15675_v4  ;;  %9628 = vmatprep.subr.bf16.mxu0 %v15682_v17  ;;  %v15714_v7 = vcombine.high %v6507_v8, %v6511_v6  ;;  %v6515_v49 = vld [vmem:[#allocation11 + $0xf50] sm:$0xff]  ;;  %v6520_v46 = vld [vmem:[#allocation11 + $0xf78] sm:$0xff]  ;;  %v15713_v15 = vcombine.low %v6507_v8, %v6511_v6  ;;  %v9891_v42 = vld [vmem:[#allocation14 + $0x40] sm:$0xff]  ;;  %v15741_v62 = vcombine.low %v9883_v31, %v9887_v32 }
 0x5a9   :  { %9800 = vmatprep.subr.bf16.mxu1 %v15684_v61  ;;  %v6519_v9 = vld [vmem:[#allocation11 + $0xf70] sm:$0xff]  ;;  %v15724_v13 = vcombine.high %v6516_v11, %v6520_v46  ;;  %v6524_v16 = vld [vmem:[#allocation11 + $0xf98] sm:$0xff]  ;;  %v15723_v17 = vcombine.low %v6516_v11, %v6520_v46  ;;  %v9895_v23 = vld [vmem:[#allocation14 + $0x60] sm:$0xff] }
 0x5aa   :  { %v15722_v53 = vcombine.high %v6515_v49, %v6519_v9  ;;  %v6523_v51 = vld [vmem:[#allocation11 + $0xf90] sm:$0xff]  ;;  %v6528_v60 = vld [vmem:[#allocation11 + $0xfb8] sm:$0xff]  ;;  %v15721_v4 = vcombine.low %v6515_v49, %v6519_v9  ;;  %v9899_v8 = vld [vmem:[#allocation14 + $0x80] sm:$0xff] }
 0x5ab   :  { %9629 = vmatpush1.bf16.msra.mxu0 %v15681_v58  ;;  %v6527_v19 = vld [vmem:[#allocation11 + $0xfb0] sm:$0xff]  ;;  %v15732_v18 = vcombine.high %v6524_v16, %v6528_v60  ;;  %v6532_v22 = vld [vmem:[#allocation11 + $0xfd8] sm:$0xff]  ;;  %v9903_v6 = vld [vmem:[#allocation14 + $0xa0] sm:$0xff] }
 0x5ac   :  { %9801 = vmatpush1.bf16.msra.mxu1 %v15683_v26  ;;  %9630 = vmatprep.subr.bf16.mxu0 %v15690_v27  ;;  %v15730_v61 = vcombine.high %v6523_v51, %v6527_v19  ;;  %v6531_v54 = vld [vmem:[#allocation11 + $0xfd0] sm:$0xff]  ;;  %v6536_v58 = vld [vmem:[#allocation11 + $0xff8] sm:$0xff]  ;;  %v15729_v26 = vcombine.low %v6523_v51, %v6527_v19  ;;  %v15731_v27 = vcombine.low %v6524_v16, %v6528_v60  ;;  %v9907_v9 = vld [vmem:[#allocation14 + $0xc0] sm:$0xff] }
 0x5ad   :  { %9802 = vmatprep.subr.bf16.mxu1 %v15692_v28  ;;  %v6535_v21 = vld [vmem:[#allocation11 + $0xff0] sm:$0xff]  ;;  %v15740_v30 = vcombine.high %v6532_v22, %v6536_v58  ;;  %v9911_v11 = vld [vmem:[#allocation14 + $0xe0] sm:$0xff] }
 0x5ae   :  { %v15738_v28 = vcombine.high %v6531_v54, %v6535_v21  ;;  %v9884_v33 = vld [vmem:[#allocation14 + $0x8] sm:$0xff]  ;;  %v9915_v51 = vld [vmem:[#allocation14 + $0x100] sm:$0xff] }
 0x5af   :  { %9631 = vmatpush1.bf16.msra.mxu0 %v15689_v10  ;;  %v9888_v10 = vld [vmem:[#allocation14 + $0x28] sm:$0xff]  ;;  %v9919_v19 = vld [vmem:[#allocation14 + $0x120] sm:$0xff] }
 0x5b0   :  { %9803 = vmatpush1.bf16.msra.mxu1 %v15691_v34  ;;  %9632 = vmatprep.subr.bf16.mxu0 %v15698_v35  ;;  %v15737_v34 = vcombine.low %v6531_v54, %v6535_v21  ;;  %v15739_v35 = vcombine.low %v6532_v22, %v6536_v58  ;;  %v15744_v38 = vcombine.high %v9884_v33, %v9888_v10  ;;  %v9900_v2 = vld [vmem:[#allocation14 + $0x88] sm:$0xff]  ;;  %v9923_v54 = vld [vmem:[#allocation14 + $0x140] sm:$0xff] }
 0x5b1   :  { %9804 = vmatprep.subr.bf16.mxu1 %v15700_v36  ;;  %v15742_v36 = vcombine.high %v9883_v31, %v9887_v32  ;;  %v9908_v46 = vld [vmem:[#allocation14 + $0xc8] sm:$0xff]  ;;  %v9927_v21 = vld [vmem:[#allocation14 + $0x160] sm:$0xff] }
 0x5b2   :  { %v9916_v16 = vld [vmem:[#allocation14 + $0x108] sm:$0xff]  ;;  %v9931_v31 = vld [vmem:[#allocation14 + $0x180] sm:$0xff] }
 0x5b3   :  { %9633 = vmatpush1.bf16.msra.mxu0 %v15697_v43  ;;  %v9892_v43 = vld [vmem:[#allocation14 + $0x48] sm:$0xff]  ;;  %v9935_v32 = vld [vmem:[#allocation14 + $0x1a0] sm:$0xff] }
 0x5b4   :  { %9805 = vmatpush1.bf16.msra.mxu1 %v15699_v63  ;;  %9634 = vmatprep.subr.bf16.mxu0 %v15706_v39  ;;  %v9896_v63 = vld [vmem:[#allocation14 + $0x68] sm:$0xff]  ;;  %v15743_v39 = vcombine.low %v9884_v33, %v9888_v10 }
 0x5b5   :  { %9806 = vmatprep.subr.bf16.mxu1 %v15708_v5  ;;  %v15750_v5 = vcombine.high %v9891_v42, %v9895_v23  ;;  %v15752_v0 = vcombine.high %v9892_v43, %v9896_v63  ;;  %v9920_v60 = vld [vmem:[#allocation14 + $0x128] sm:$0xff] }
 0x5b6   :  { %v9924_v22 = vld [vmem:[#allocation14 + $0x148] sm:$0xff] }
 0x5b7   :  { %9635 = vmatpush1.bf16.msra.mxu0 %v15705_v1  ;;  %v9904_v1 = vld [vmem:[#allocation14 + $0xa8] sm:$0xff] }
 0x5b8   :  { %9807 = vmatpush1.bf16.msra.mxu1 %v15707_v3  ;;  %9636 = vmatprep.subr.bf16.mxu0 %v15714_v7  ;;  %v15749_v3 = vcombine.low %v9891_v42, %v9895_v23  ;;  %v15751_v7 = vcombine.low %v9892_v43, %v9896_v63  ;;  %v15760_v49 = vcombine.high %v9900_v2, %v9904_v1  ;;  %v9928_v58 = vld [vmem:[#allocation14 + $0x168] sm:$0xff]  ;;  %v9939_v42 = vld [vmem:[#allocation14 + $0x1c0] sm:$0xff] }
 0x5b9   :  { %9808 = vmatprep.subr.bf16.mxu1 %v15716_v14  ;;  %v15758_v14 = vcombine.high %v9899_v8, %v9903_v6  ;;  %v9932_v33 = vld [vmem:[#allocation14 + $0x188] sm:$0xff]  ;;  %v9943_v23 = vld [vmem:[#allocation14 + $0x1e0] sm:$0xff]  ;;  %v15789_v63 = vcombine.low %v9931_v31, %v9935_v32 }
 0x5ba   :  { %v9936_v10 = vld [vmem:[#allocation14 + $0x1a8] sm:$0xff] }
 0x5bb   :  { %9637 = vmatpush1.bf16.msra.mxu0 %v15713_v15  ;;  %v9912_v15 = vld [vmem:[#allocation14 + $0xe8] sm:$0xff] }
 0x5bc   :  { %9809 = vmatpush1.bf16.msra.mxu1 %v15715_v12  ;;  %9638 = vmatprep.subr.bf16.mxu0 %v15722_v53  ;;  %v15757_v12 = vcombine.low %v9899_v8, %v9903_v6  ;;  %v15766_v53 = vcombine.high %v9907_v9, %v9911_v11  ;;  %v9944_v43 = vld [vmem:[#allocation14 + $0x1e8] sm:$0xff]  ;;  %v9947_v6 = vld [vmem:[#allocation14 + $0x200] sm:$0xff] }
 0x5bd   :  { %9810 = vmatprep.subr.bf16.mxu1 %v15724_v13  ;;  %v15768_v13 = vcombine.high %v9908_v46, %v9912_v15 }
 0x5bf   :  { %9639 = vmatpush1.bf16.msra.mxu0 %v15721_v4  ;;  %v15765_v4 = vcombine.low %v9907_v9, %v9911_v11  ;;  %v9955_v9 = vld [vmem:[#allocation14 + $0x240] sm:$0xff] }
 0x5c0   :  { %9811 = vmatpush1.bf16.msra.mxu1 %v15723_v17  ;;  %9640 = vmatprep.subr.bf16.mxu0 %v15730_v61  ;;  %v15767_v17 = vcombine.low %v9908_v46, %v9912_v15  ;;  %v15774_v61 = vcombine.high %v9915_v51, %v9919_v19  ;;  %v9959_v11 = vld [vmem:[#allocation14 + $0x260] sm:$0xff]  ;;  %v9956_v46 = vld [vmem:[#allocation14 + $0x248] sm:$0xff] }
 0x5c1   :  { %9812 = vmatprep.subr.bf16.mxu1 %v15732_v18  ;;  %v15776_v18 = vcombine.high %v9916_v16, %v9920_v60  ;;  %v9960_v15 = vld [vmem:[#allocation14 + $0x268] sm:$0xff] }
 0x5c3   :  { %9641 = vmatpush1.bf16.msra.mxu0 %v15729_v26  ;;  %v15773_v26 = vcombine.low %v9915_v51, %v9919_v19  ;;  %v9963_v51 = vld [vmem:[#allocation14 + $0x280] sm:$0xff] }
 0x5c4   :  { %9813 = vmatpush1.bf16.msra.mxu1 %v15731_v27  ;;  %9642 = vmatprep.subr.bf16.mxu0 %v15738_v28  ;;  %v15775_v27 = vcombine.low %v9916_v16, %v9920_v60  ;;  %v15782_v28 = vcombine.high %v9923_v54, %v9927_v21  ;;  %v9967_v19 = vld [vmem:[#allocation14 + $0x2a0] sm:$0xff]  ;;  %v9964_v16 = vld [vmem:[#allocation14 + $0x288] sm:$0xff] }
 0x5c5   :  { %9814 = vmatprep.subr.bf16.mxu1 %v15740_v30  ;;  %v15784_v30 = vcombine.high %v9924_v22, %v9928_v58  ;;  %v9968_v60 = vld [vmem:[#allocation14 + $0x2a8] sm:$0xff] }
 0x5c7   :  { %9643 = vmatpush1.bf16.msra.mxu0 %v15737_v34  ;;  %v15781_v34 = vcombine.low %v9923_v54, %v9927_v21  ;;  %v9971_v54 = vld [vmem:[#allocation14 + $0x2c0] sm:$0xff] }
 0x5c8   :  { %9815 = vmatpush1.bf16.msra.mxu1 %v15739_v35  ;;  %12997 = vmatprep.subr.bf16.mxu0 %v15742_v36  ;;  %v15783_v35 = vcombine.low %v9924_v22, %v9928_v58  ;;  %v15790_v36 = vcombine.high %v9931_v31, %v9935_v32  ;;  %v9975_v21 = vld [vmem:[#allocation14 + $0x2e0] sm:$0xff]  ;;  %v9972_v22 = vld [vmem:[#allocation14 + $0x2c8] sm:$0xff] }
 0x5c9   :  { %13169 = vmatprep.subr.bf16.mxu1 %v15744_v38  ;;  %v15792_v38 = vcombine.high %v9932_v33, %v9936_v10  ;;  %v9976_v58 = vld [vmem:[#allocation14 + $0x2e8] sm:$0xff]  ;;  %v9979_v31 = vld [vmem:[#allocation14 + $0x300] sm:$0xff] }
 0x5ca   :  { %9645 = vmatmul.mubr.bf16.vlgmr.msra.gmra.mrb[28].mxu0 %v17387_v52  ;;  %v9983_v32 = vld [vmem:[#allocation14 + $0x320] sm:$0xff] }
 0x5cb   :  { %9817 = vmatmul.mubr.bf16.vlgmr.msra.gmra.mrb[28].mxu1 %v17387_v52  ;;  %12998 = vmatpush1.bf16.msra.mxu0 %v15741_v62  ;;  %v15759_v52 = vcombine.low %v9900_v2, %v9904_v1  ;;  %v9940_v62 = vld [vmem:[#allocation14 + $0x1c8] sm:$0xff] }
 0x5cc   :  { %13029 = vmatprep.mubr.bf16.mxu0 %v17429_v25  ;;  %13170 = vmatpush1.bf16.msra.mxu1 %v15743_v39  ;;  %v15791_v39 = vcombine.low %v9932_v33, %v9936_v10  ;;  %v15800_v8 = vcombine.high %v9940_v62, %v9944_v43  ;;  %v9948_v2 = vld [vmem:[#allocation14 + $0x208] sm:$0xff] }
 0x5cd   :  { %13201 = vmatprep.mubr.bf16.mxu1 %v17429_v25  ;;  %12999 = vmatprep.subr.bf16.mxu0 %v15750_v5  ;;  %v15798_v5 = vcombine.high %v9939_v42, %v9943_v23  ;;  %v9952_v1 = vld [vmem:[#allocation14 + $0x228] sm:$0xff] }
 0x5ce   :  { %13171 = vmatprep.subr.bf16.mxu1 %v15752_v0  ;;  %v9951_v0 = vld [vmem:[#allocation14 + $0x220] sm:$0xff]  ;;  %v9980_v33 = vld [vmem:[#allocation14 + $0x308] sm:$0xff] }
 0x5cf   :  { %13000 = vmatpush1.bf16.msra.mxu0 %v15749_v3  ;;  %v15797_v3 = vcombine.low %v9939_v42, %v9943_v23  ;;  %v9984_v10 = vld [vmem:[#allocation14 + $0x328] sm:$0xff]  ;;  %v9987_v42 = vld [vmem:[#allocation14 + $0x340] sm:$0xff] }
 0x5d0   :  { %13172 = vmatpush1.bf16.msra.mxu1 %v15751_v7  ;;  %13001 = vmatprep.subr.bf16.mxu0 %v15758_v14  ;;  %v15799_v7 = vcombine.low %v9940_v62, %v9944_v43  ;;  %v15806_v14 = vcombine.high %v9947_v6, %v9951_v0  ;;  %v9991_v23 = vld [vmem:[#allocation14 + $0x360] sm:$0xff]  ;;  %v9988_v62 = vld [vmem:[#allocation14 + $0x348] sm:$0xff] }
 0x5d1   :  { %13173 = vmatprep.subr.bf16.mxu1 %v15760_v49  ;;  %v15808_v49 = vcombine.high %v9948_v2, %v9952_v1  ;;  %v9992_v43 = vld [vmem:[#allocation14 + $0x368] sm:$0xff] }
 0x5d3   :  { %13002 = vmatpush1.bf16.msra.mxu0 %v15757_v12  ;;  %v15805_v12 = vcombine.low %v9947_v6, %v9951_v0  ;;  %v9995_v6 = vld [vmem:[#allocation14 + $0x380] sm:$0xff] }
 0x5d4   :  { %13174 = vmatpush1.bf16.msra.mxu1 %v15759_v52  ;;  %13003 = vmatprep.subr.bf16.mxu0 %v15766_v53  ;;  %v15807_v52 = vcombine.low %v9948_v2, %v9952_v1  ;;  %v15814_v53 = vcombine.high %v9955_v9, %v9959_v11  ;;  %v9999_v0 = vld [vmem:[#allocation14 + $0x3a0] sm:$0xff]  ;;  %v9996_v2 = vld [vmem:[#allocation14 + $0x388] sm:$0xff] }
 0x5d5   :  { %13175 = vmatprep.subr.bf16.mxu1 %v15768_v13  ;;  %v15816_v13 = vcombine.high %v9956_v46, %v9960_v15  ;;  %v10000_v1 = vld [vmem:[#allocation14 + $0x3a8] sm:$0xff] }
 0x5d7   :  { %13004 = vmatpush1.bf16.msra.mxu0 %v15765_v4  ;;  %v15813_v4 = vcombine.low %v9955_v9, %v9959_v11  ;;  %v10003_v9 = vld [vmem:[#allocation14 + $0x3c0] sm:$0xff] }
 0x5d8   :  { %13176 = vmatpush1.bf16.msra.mxu1 %v15767_v17  ;;  %13005 = vmatprep.subr.bf16.mxu0 %v15774_v61  ;;  %v15815_v17 = vcombine.low %v9956_v46, %v9960_v15  ;;  %v15822_v61 = vcombine.high %v9963_v51, %v9967_v19  ;;  %v10007_v11 = vld [vmem:[#allocation14 + $0x3e0] sm:$0xff]  ;;  %v10004_v46 = vld [vmem:[#allocation14 + $0x3c8] sm:$0xff] }
 0x5d9   :  { %13177 = vmatprep.subr.bf16.mxu1 %v15776_v18  ;;  %v15824_v18 = vcombine.high %v9964_v16, %v9968_v60  ;;  %v10008_v15 = vld [vmem:[#allocation14 + $0x3e8] sm:$0xff] }
 0x5db   :  { %13006 = vmatpush1.bf16.msra.mxu0 %v15773_v26  ;;  %v15821_v26 = vcombine.low %v9963_v51, %v9967_v19  ;;  %v10011_v51 = vld [vmem:[#allocation14 + $0x400] sm:$0xff] }
 0x5dc   :  { %13178 = vmatpush1.bf16.msra.mxu1 %v15775_v27  ;;  %13007 = vmatprep.subr.bf16.mxu0 %v15782_v28  ;;  %v15823_v27 = vcombine.low %v9964_v16, %v9968_v60  ;;  %v15830_v28 = vcombine.high %v9971_v54, %v9975_v21  ;;  %v10015_v19 = vld [vmem:[#allocation14 + $0x420] sm:$0xff]  ;;  %v10012_v16 = vld [vmem:[#allocation14 + $0x408] sm:$0xff] }
 0x5dd   :  { %13179 = vmatprep.subr.bf16.mxu1 %v15784_v30  ;;  %v15832_v30 = vcombine.high %v9972_v22, %v9976_v58  ;;  %v10016_v60 = vld [vmem:[#allocation14 + $0x428] sm:$0xff] }
 0x5df   :  { %13008 = vmatpush1.bf16.msra.mxu0 %v15781_v34  ;;  %v15829_v34 = vcombine.low %v9971_v54, %v9975_v21  ;;  %v10019_v54 = vld [vmem:[#allocation14 + $0x440] sm:$0xff] }
 0x5e0   :  { %13180 = vmatpush1.bf16.msra.mxu1 %v15783_v35  ;;  %13009 = vmatprep.subr.bf16.mxu0 %v15790_v36  ;;  %v15831_v35 = vcombine.low %v9972_v22, %v9976_v58  ;;  %v15838_v36 = vcombine.high %v9979_v31, %v9983_v32  ;;  %v10023_v21 = vld [vmem:[#allocation14 + $0x460] sm:$0xff]  ;;  %v15869_v22 = vcombine.low %v10011_v51, %v10015_v19  ;;  %v10020_v58 = vld [vmem:[#allocation14 + $0x448] sm:$0xff] }
 0x5e1   :  { %13181 = vmatprep.subr.bf16.mxu1 %v15792_v38  ;;  %v15840_v38 = vcombine.high %v9980_v33, %v9984_v10 }
 0x5e3   :  { %13010 = vmatpush1.bf16.msra.mxu0 %v15789_v63  ;;  %v15837_v63 = vcombine.low %v9979_v31, %v9983_v32  ;;  %v10031_v31 = vld [vmem:[#allocation14 + $0x4a0] sm:$0xff] }
 0x5e4   :  { %13182 = vmatpush1.bf16.msra.mxu1 %v15791_v39  ;;  %13011 = vmatprep.subr.bf16.mxu0 %v15798_v5  ;;  %v15839_v39 = vcombine.low %v9980_v33, %v9984_v10  ;;  %v15846_v5 = vcombine.high %v9987_v42, %v9991_v23  ;;  %v10028_v33 = vld [vmem:[#allocation14 + $0x488] sm:$0xff] }
 0x5e5   :  { %13183 = vmatprep.subr.bf16.mxu1 %v15800_v8  ;;  %v15848_v8 = vcombine.high %v9988_v62, %v9992_v43  ;;  %v10032_v10 = vld [vmem:[#allocation14 + $0x4a8] sm:$0xff] }
 0x5e7   :  { %13012 = vmatpush1.bf16.msra.mxu0 %v15797_v3  ;;  %v15845_v3 = vcombine.low %v9987_v42, %v9991_v23  ;;  %v10035_v42 = vld [vmem:[#allocation14 + $0x4c0] sm:$0xff] }
 0x5e8   :  { %13184 = vmatpush1.bf16.msra.mxu1 %v15799_v7  ;;  %13013 = vmatprep.subr.bf16.mxu0 %v15806_v14  ;;  %v15847_v7 = vcombine.low %v9988_v62, %v9992_v43  ;;  %v15854_v14 = vcombine.high %v9995_v6, %v9999_v0  ;;  %v10039_v23 = vld [vmem:[#allocation14 + $0x4e0] sm:$0xff]  ;;  %v10036_v62 = vld [vmem:[#allocation14 + $0x4c8] sm:$0xff] }
 0x5e9   :  { %13185 = vmatprep.subr.bf16.mxu1 %v15808_v49  ;;  %v15856_v49 = vcombine.high %v9996_v2, %v10000_v1  ;;  %v10040_v43 = vld [vmem:[#allocation14 + $0x4e8] sm:$0xff] }
 0x5eb   :  { %13014 = vmatpush1.bf16.msra.mxu0 %v15805_v12  ;;  %v15853_v12 = vcombine.low %v9995_v6, %v9999_v0  ;;  %v10043_v6 = vld [vmem:[#allocation14 + $0x500] sm:$0xff] }
 0x5ec   :  { %13186 = vmatpush1.bf16.msra.mxu1 %v15807_v52  ;;  %13015 = vmatprep.subr.bf16.mxu0 %v15814_v53  ;;  %v15855_v52 = vcombine.low %v9996_v2, %v10000_v1  ;;  %v15862_v53 = vcombine.high %v10003_v9, %v10007_v11  ;;  %v10047_v0 = vld [vmem:[#allocation14 + $0x520] sm:$0xff]  ;;  %v10044_v2 = vld [vmem:[#allocation14 + $0x508] sm:$0xff] }
 0x5ed   :  { %13187 = vmatprep.subr.bf16.mxu1 %v15816_v13  ;;  %v15864_v13 = vcombine.high %v10004_v46, %v10008_v15  ;;  %v10048_v1 = vld [vmem:[#allocation14 + $0x528] sm:$0xff] }
 0x5ef   :  { %13016 = vmatpush1.bf16.msra.mxu0 %v15813_v4  ;;  %v15861_v4 = vcombine.low %v10003_v9, %v10007_v11  ;;  %v10051_v9 = vld [vmem:[#allocation14 + $0x540] sm:$0xff] }
 0x5f0   :  { %13188 = vmatpush1.bf16.msra.mxu1 %v15815_v17  ;;  %13017 = vmatprep.subr.bf16.mxu0 %v15822_v61  ;;  %v15863_v17 = vcombine.low %v10004_v46, %v10008_v15  ;;  %v15870_v61 = vcombine.high %v10011_v51, %v10015_v19  ;;  %v10055_v11 = vld [vmem:[#allocation14 + $0x560] sm:$0xff]  ;;  %v10052_v46 = vld [vmem:[#allocation14 + $0x548] sm:$0xff] }
 0x5f1   :  { %13189 = vmatprep.subr.bf16.mxu1 %v15824_v18  ;;  %v15872_v18 = vcombine.high %v10012_v16, %v10016_v60  ;;  %v10056_v15 = vld [vmem:[#allocation14 + $0x568] sm:$0xff]  ;;  %v10059_v51 = vld [vmem:[#allocation14 + $0x580] sm:$0xff] }
 0x5f2   :  { %v10063_v19 = vld [vmem:[#allocation14 + $0x5a0] sm:$0xff] }
 0x5f3   :  { %13018 = vmatpush1.bf16.msra.mxu0 %v15821_v26  ;;  %v10024_v26 = vld [vmem:[#allocation14 + $0x468] sm:$0xff] }
 0x5f4   :  { %13190 = vmatpush1.bf16.msra.mxu1 %v15823_v27  ;;  %13019 = vmatprep.subr.bf16.mxu0 %v15830_v28  ;;  %v15871_v27 = vcombine.low %v10012_v16, %v10016_v60  ;;  %v15878_v28 = vcombine.high %v10019_v54, %v10023_v21  ;;  %v15880_v32 = vcombine.high %v10020_v58, %v10024_v26  ;;  %v10060_v16 = vld [vmem:[#allocation14 + $0x588] sm:$0xff] }
 0x5f5   :  { %13191 = vmatprep.subr.bf16.mxu1 %v15832_v30  ;;  %v10027_v30 = vld [vmem:[#allocation14 + $0x480] sm:$0xff]  ;;  %v10064_v60 = vld [vmem:[#allocation14 + $0x5a8] sm:$0xff] }
 0x5f7   :  { %13020 = vmatpush1.bf16.msra.mxu0 %v15829_v34  ;;  %v15877_v34 = vcombine.low %v10019_v54, %v10023_v21  ;;  %v10067_v54 = vld [vmem:[#allocation14 + $0x5c0] sm:$0xff] }
 0x5f8   :  { %13192 = vmatpush1.bf16.msra.mxu1 %v15831_v35  ;;  %13021 = vmatprep.subr.bf16.mxu0 %v15838_v36  ;;  %v15879_v35 = vcombine.low %v10020_v58, %v10024_v26  ;;  %v15886_v36 = vcombine.high %v10027_v30, %v10031_v31  ;;  %v10071_v21 = vld [vmem:[#allocation14 + $0x5e0] sm:$0xff]  ;;  %v10072_v58 = vld [vmem:[#allocation14 + $0x5e8] sm:$0xff]  ;;  %v15917_v26 = vcombine.low %v10059_v51, %v10063_v19 }
 0x5f9   :  { %13193 = vmatprep.subr.bf16.mxu1 %v15840_v38  ;;  %v15888_v38 = vcombine.high %v10028_v33, %v10032_v10 }
 0x5fb   :  { %13022 = vmatpush1.bf16.msra.mxu0 %v15837_v63  ;;  %v15885_v63 = vcombine.low %v10027_v30, %v10031_v31  ;;  %v10075_v31 = vld [vmem:[#allocation14 + $0x600] sm:$0xff] }
 0x5fc   :  { %13194 = vmatpush1.bf16.msra.mxu1 %v15839_v39  ;;  %13023 = vmatprep.subr.bf16.mxu0 %v15846_v5  ;;  %v15887_v39 = vcombine.low %v10028_v33, %v10032_v10  ;;  %v15894_v5 = vcombine.high %v10035_v42, %v10039_v23  ;;  %v10076_v33 = vld [vmem:[#allocation14 + $0x608] sm:$0xff] }
 0x5fd   :  { %13195 = vmatprep.subr.bf16.mxu1 %v15848_v8  ;;  %v15896_v8 = vcombine.high %v10036_v62, %v10040_v43  ;;  %v10080_v10 = vld [vmem:[#allocation14 + $0x628] sm:$0xff] }
 0x5ff   :  { %13024 = vmatpush1.bf16.msra.mxu0 %v15845_v3  ;;  %v15893_v3 = vcombine.low %v10035_v42, %v10039_v23  ;;  %v10083_v42 = vld [vmem:[#allocation14 + $0x640] sm:$0xff] }
 0x600   :  { %13196 = vmatpush1.bf16.msra.mxu1 %v15847_v7  ;;  %13025 = vmatprep.subr.bf16.mxu0 %v15854_v14  ;;  %v15895_v7 = vcombine.low %v10036_v62, %v10040_v43  ;;  %v15902_v14 = vcombine.high %v10043_v6, %v10047_v0  ;;  %v10087_v23 = vld [vmem:[#allocation14 + $0x660] sm:$0xff]  ;;  %v10084_v62 = vld [vmem:[#allocation14 + $0x648] sm:$0xff] }
 0x601   :  { %13197 = vmatprep.subr.bf16.mxu1 %v15856_v49  ;;  %v15904_v49 = vcombine.high %v10044_v2, %v10048_v1  ;;  %v10088_v43 = vld [vmem:[#allocation14 + $0x668] sm:$0xff] }
 0x603   :  { %13026 = vmatpush1.bf16.msra.mxu0 %v15853_v12  ;;  %v15901_v12 = vcombine.low %v10043_v6, %v10047_v0  ;;  %v10091_v6 = vld [vmem:[#allocation14 + $0x680] sm:$0xff] }
 0x604   :  { %13198 = vmatpush1.bf16.msra.mxu1 %v15855_v52  ;;  %13027 = vmatprep.subr.bf16.mxu0 %v15862_v53  ;;  %v15903_v52 = vcombine.low %v10044_v2, %v10048_v1  ;;  %v15910_v53 = vcombine.high %v10051_v9, %v10055_v11  ;;  %v10095_v0 = vld [vmem:[#allocation14 + $0x6a0] sm:$0xff]  ;;  %v10092_v2 = vld [vmem:[#allocation14 + $0x688] sm:$0xff] }
 0x605   :  { %13199 = vmatprep.subr.bf16.mxu1 %v15864_v13  ;;  %v15912_v13 = vcombine.high %v10052_v46, %v10056_v15  ;;  %v10096_v1 = vld [vmem:[#allocation14 + $0x6a8] sm:$0xff] }
 0x607   :  { %13028 = vmatpush1.bf16.msra.mxu0 %v15861_v4  ;;  %v15909_v4 = vcombine.low %v10051_v9, %v10055_v11  ;;  %v10099_v9 = vld [vmem:[#allocation14 + $0x6c0] sm:$0xff] }
 0x608   :  { %13200 = vmatpush1.bf16.msra.mxu1 %v15863_v17  ;;  %13040 = vmatprep.subr.bf16.mxu0 %v15870_v61  ;;  %v15911_v17 = vcombine.low %v10052_v46, %v10056_v15  ;;  %v15918_v61 = vcombine.high %v10059_v51, %v10063_v19  ;;  %v10103_v11 = vld [vmem:[#allocation14 + $0x6e0] sm:$0xff]  ;;  %v10100_v46 = vld [vmem:[#allocation14 + $0x6c8] sm:$0xff] }
 0x609   :  { %13212 = vmatprep.subr.bf16.mxu1 %v15872_v18  ;;  %v15920_v18 = vcombine.high %v10060_v16, %v10064_v60  ;;  %v10104_v15 = vld [vmem:[#allocation14 + $0x6e8] sm:$0xff]  ;;  %v10107_v51 = vld [vmem:[#allocation14 + $0x700] sm:$0xff] }
 0x60a   :  { %13030 = vmatmul.mubr.bf16.vlgmr.msra.gmra.mrb[32].mxu0 %v17424_v20  ;;  %v10111_v19 = vld [vmem:[#allocation14 + $0x720] sm:$0xff] }
 0x60b   :  { %13202 = vmatmul.mubr.bf16.vlgmr.msra.gmra.mrb[32].mxu1 %v17424_v20  ;;  %13041 = vmatpush1.bf16.msra.mxu0 %v15869_v22  ;;  %v10068_v22 = vld [vmem:[#allocation14 + $0x5c8] sm:$0xff] }
 0x60c   :  { %13072 = vmatprep.mubr.bf16.mxu0 %v17431_v29  ;;  %13213 = vmatpush1.bf16.msra.mxu1 %v15871_v27  ;;  %v15919_v27 = vcombine.low %v10060_v16, %v10064_v60  ;;  %v15928_v30 = vcombine.high %v10068_v22, %v10072_v58  ;;  %v10108_v16 = vld [vmem:[#allocation14 + $0x708] sm:$0xff] }
 0x60d   :  { %13244 = vmatprep.mubr.bf16.mxu1 %v17431_v29  ;;  %13042 = vmatprep.subr.bf16.mxu0 %v15878_v28  ;;  %v15926_v28 = vcombine.high %v10067_v54, %v10071_v21  ;;  %v10112_v60 = vld [vmem:[#allocation14 + $0x728] sm:$0xff] }
 0x60e   :  { %13214 = vmatprep.subr.bf16.mxu1 %v15880_v32  ;;  %v10079_v32 = vld [vmem:[#allocation14 + $0x620] sm:$0xff] }
 0x60f   :  { %13043 = vmatpush1.bf16.msra.mxu0 %v15877_v34  ;;  %v15925_v34 = vcombine.low %v10067_v54, %v10071_v21  ;;  %v10115_v54 = vld [vmem:[#allocation14 + $0x740] sm:$0xff] }
 0x610   :  { %13215 = vmatpush1.bf16.msra.mxu1 %v15879_v35  ;;  %13044 = vmatprep.subr.bf16.mxu0 %v15886_v36  ;;  %v15927_v35 = vcombine.low %v10068_v22, %v10072_v58  ;;  %v15934_v36 = vcombine.high %v10075_v31, %v10079_v32  ;;  %v10119_v21 = vld [vmem:[#allocation14 + $0x760] sm:$0xff]  ;;  %v10116_v22 = vld [vmem:[#allocation14 + $0x748] sm:$0xff] }
 0x611   :  { %13216 = vmatprep.subr.bf16.mxu1 %v15888_v38  ;;  %v15936_v38 = vcombine.high %v10076_v33, %v10080_v10  ;;  %v10120_v58 = vld [vmem:[#allocation14 + $0x768] sm:$0xff] }
 0x613   :  { %13045 = vmatpush1.bf16.msra.mxu0 %v15885_v63  ;;  %v15933_v63 = vcombine.low %v10075_v31, %v10079_v32  ;;  %v10123_v31 = vld [vmem:[#allocation14 + $0x780] sm:$0xff] }
 0x614   :  { %13217 = vmatpush1.bf16.msra.mxu1 %v15887_v39  ;;  %13046 = vmatprep.subr.bf16.mxu0 %v15894_v5  ;;  %v15935_v39 = vcombine.low %v10076_v33, %v10080_v10  ;;  %v15942_v5 = vcombine.high %v10083_v42, %v10087_v23  ;;  %v10127_v32 = vld [vmem:[#allocation14 + $0x7a0] sm:$0xff]  ;;  %v10124_v33 = vld [vmem:[#allocation14 + $0x788] sm:$0xff] }
 0x615   :  { %13218 = vmatprep.subr.bf16.mxu1 %v15896_v8  ;;  %v15944_v8 = vcombine.high %v10084_v62, %v10088_v43  ;;  %v10128_v10 = vld [vmem:[#allocation14 + $0x7a8] sm:$0xff] }
 0x617   :  { %13047 = vmatpush1.bf16.msra.mxu0 %v15893_v3  ;;  %v15941_v3 = vcombine.low %v10083_v42, %v10087_v23  ;;  %v10131_v42 = vld [vmem:[#allocation14 + $0x7c0] sm:$0xff] }
 0x618   :  { %13219 = vmatpush1.bf16.msra.mxu1 %v15895_v7  ;;  %13048 = vmatprep.subr.bf16.mxu0 %v15902_v14  ;;  %v15943_v7 = vcombine.low %v10084_v62, %v10088_v43  ;;  %v15950_v14 = vcombine.high %v10091_v6, %v10095_v0  ;;  %v10135_v23 = vld [vmem:[#allocation14 + $0x7e0] sm:$0xff]  ;;  %v10132_v62 = vld [vmem:[#allocation14 + $0x7c8] sm:$0xff] }
 0x619   :  { %13220 = vmatprep.subr.bf16.mxu1 %v15904_v49  ;;  %v15952_v49 = vcombine.high %v10092_v2, %v10096_v1  ;;  %v10136_v43 = vld [vmem:[#allocation14 + $0x7e8] sm:$0xff] }
 0x61b   :  { %13049 = vmatpush1.bf16.msra.mxu0 %v15901_v12  ;;  %v15949_v12 = vcombine.low %v10091_v6, %v10095_v0  ;;  %v10139_v6 = vld [vmem:[#allocation14 + $0x800] sm:$0xff] }
 0x61c   :  { %13221 = vmatpush1.bf16.msra.mxu1 %v15903_v52  ;;  %13050 = vmatprep.subr.bf16.mxu0 %v15910_v53  ;;  %v15951_v52 = vcombine.low %v10092_v2, %v10096_v1  ;;  %v15958_v53 = vcombine.high %v10099_v9, %v10103_v11  ;;  %v10143_v0 = vld [vmem:[#allocation14 + $0x820] sm:$0xff]  ;;  %v10140_v2 = vld [vmem:[#allocation14 + $0x808] sm:$0xff] }
 0x61d   :  { %13222 = vmatprep.subr.bf16.mxu1 %v15912_v13  ;;  %v15960_v13 = vcombine.high %v10100_v46, %v10104_v15  ;;  %v10144_v1 = vld [vmem:[#allocation14 + $0x828] sm:$0xff] }
 0x61f   :  { %13051 = vmatpush1.bf16.msra.mxu0 %v15909_v4  ;;  %v15957_v4 = vcombine.low %v10099_v9, %v10103_v11  ;;  %v10147_v9 = vld [vmem:[#allocation14 + $0x840] sm:$0xff] }
 0x620   :  { %13223 = vmatpush1.bf16.msra.mxu1 %v15911_v17  ;;  %13052 = vmatprep.subr.bf16.mxu0 %v15918_v61  ;;  %v15959_v17 = vcombine.low %v10100_v46, %v10104_v15  ;;  %v15966_v61 = vcombine.high %v10107_v51, %v10111_v19  ;;  %v10151_v11 = vld [vmem:[#allocation14 + $0x860] sm:$0xff]  ;;  %v15997_v46 = vcombine.low %v10139_v6, %v10143_v0  ;;  %v10148_v15 = vld [vmem:[#allocation14 + $0x848] sm:$0xff] }
 0x621   :  { %13224 = vmatprep.subr.bf16.mxu1 %v15920_v18  ;;  %v15968_v18 = vcombine.high %v10108_v16, %v10112_v60 }
 0x623   :  { %13053 = vmatpush1.bf16.msra.mxu0 %v15917_v26  ;;  %v15965_v26 = vcombine.low %v10107_v51, %v10111_v19  ;;  %v10159_v51 = vld [vmem:[#allocation14 + $0x8a0] sm:$0xff] }
 0x624   :  { %13225 = vmatpush1.bf16.msra.mxu1 %v15919_v27  ;;  %13054 = vmatprep.subr.bf16.mxu0 %v15926_v28  ;;  %v15967_v27 = vcombine.low %v10108_v16, %v10112_v60  ;;  %v15974_v28 = vcombine.high %v10115_v54, %v10119_v21  ;;  %v10156_v16 = vld [vmem:[#allocation14 + $0x888] sm:$0xff] }
 0x625   :  { %13226 = vmatprep.subr.bf16.mxu1 %v15928_v30  ;;  %v15976_v30 = vcombine.high %v10116_v22, %v10120_v58  ;;  %v10160_v60 = vld [vmem:[#allocation14 + $0x8a8] sm:$0xff] }
 0x627   :  { %13055 = vmatpush1.bf16.msra.mxu0 %v15925_v34  ;;  %v15973_v34 = vcombine.low %v10115_v54, %v10119_v21  ;;  %v10163_v54 = vld [vmem:[#allocation14 + $0x8c0] sm:$0xff] }
 0x628   :  { %13227 = vmatpush1.bf16.msra.mxu1 %v15927_v35  ;;  %13056 = vmatprep.subr.bf16.mxu0 %v15934_v36  ;;  %v15975_v35 = vcombine.low %v10116_v22, %v10120_v58  ;;  %v15982_v36 = vcombine.high %v10123_v31, %v10127_v32  ;;  %v10167_v21 = vld [vmem:[#allocation14 + $0x8e0] sm:$0xff]  ;;  %v10164_v22 = vld [vmem:[#allocation14 + $0x8c8] sm:$0xff] }
 0x629   :  { %13228 = vmatprep.subr.bf16.mxu1 %v15936_v38  ;;  %v15984_v38 = vcombine.high %v10124_v33, %v10128_v10  ;;  %v10168_v58 = vld [vmem:[#allocation14 + $0x8e8] sm:$0xff] }
 0x62b   :  { %13057 = vmatpush1.bf16.msra.mxu0 %v15933_v63  ;;  %v15981_v63 = vcombine.low %v10123_v31, %v10127_v32  ;;  %v10171_v31 = vld [vmem:[#allocation14 + $0x900] sm:$0xff] }
 0x62c   :  { %13229 = vmatpush1.bf16.msra.mxu1 %v15935_v39  ;;  %13058 = vmatprep.subr.bf16.mxu0 %v15942_v5  ;;  %v15983_v39 = vcombine.low %v10124_v33, %v10128_v10  ;;  %v15990_v5 = vcombine.high %v10131_v42, %v10135_v23  ;;  %v10175_v32 = vld [vmem:[#allocation14 + $0x920] sm:$0xff]  ;;  %v10172_v33 = vld [vmem:[#allocation14 + $0x908] sm:$0xff] }
 0x62d   :  { %13230 = vmatprep.subr.bf16.mxu1 %v15944_v8  ;;  %v15992_v8 = vcombine.high %v10132_v62, %v10136_v43  ;;  %v10176_v10 = vld [vmem:[#allocation14 + $0x928] sm:$0xff] }
 0x62f   :  { %13059 = vmatpush1.bf16.msra.mxu0 %v15941_v3  ;;  %v15989_v3 = vcombine.low %v10131_v42, %v10135_v23  ;;  %v10179_v42 = vld [vmem:[#allocation14 + $0x940] sm:$0xff] }
 0x630   :  { %13231 = vmatpush1.bf16.msra.mxu1 %v15943_v7  ;;  %13060 = vmatprep.subr.bf16.mxu0 %v15950_v14  ;;  %v15991_v7 = vcombine.low %v10132_v62, %v10136_v43  ;;  %v15998_v14 = vcombine.high %v10139_v6, %v10143_v0  ;;  %v10183_v23 = vld [vmem:[#allocation14 + $0x960] sm:$0xff]  ;;  %v10180_v62 = vld [vmem:[#allocation14 + $0x948] sm:$0xff] }
 0x631   :  { %13232 = vmatprep.subr.bf16.mxu1 %v15952_v49  ;;  %v16000_v49 = vcombine.high %v10140_v2, %v10144_v1  ;;  %v10184_v43 = vld [vmem:[#allocation14 + $0x968] sm:$0xff]  ;;  %v10187_v6 = vld [vmem:[#allocation14 + $0x980] sm:$0xff] }
 0x632   :  { %v10191_v0 = vld [vmem:[#allocation14 + $0x9a0] sm:$0xff] }
 0x633   :  { %13061 = vmatpush1.bf16.msra.mxu0 %v15949_v12  ;;  %v10152_v12 = vld [vmem:[#allocation14 + $0x868] sm:$0xff] }
 0x634   :  { %13233 = vmatpush1.bf16.msra.mxu1 %v15951_v52  ;;  %13062 = vmatprep.subr.bf16.mxu0 %v15958_v53  ;;  %v15999_v52 = vcombine.low %v10140_v2, %v10144_v1  ;;  %v16006_v53 = vcombine.high %v10147_v9, %v10151_v11  ;;  %v16008_v19 = vcombine.high %v10148_v15, %v10152_v12  ;;  %v10188_v2 = vld [vmem:[#allocation14 + $0x988] sm:$0xff] }
 0x635   :  { %13234 = vmatprep.subr.bf16.mxu1 %v15960_v13  ;;  %v10155_v13 = vld [vmem:[#allocation14 + $0x880] sm:$0xff]  ;;  %v10192_v1 = vld [vmem:[#allocation14 + $0x9a8] sm:$0xff] }
 0x637   :  { %13063 = vmatpush1.bf16.msra.mxu0 %v15957_v4  ;;  %v16005_v4 = vcombine.low %v10147_v9, %v10151_v11  ;;  %v10195_v9 = vld [vmem:[#allocation14 + $0x9c0] sm:$0xff] }
 0x638   :  { %13235 = vmatpush1.bf16.msra.mxu1 %v15959_v17  ;;  %13064 = vmatprep.subr.bf16.mxu0 %v15966_v61  ;;  %v16007_v17 = vcombine.low %v10148_v15, %v10152_v12  ;;  %v16014_v61 = vcombine.high %v10155_v13, %v10159_v51  ;;  %v10199_v11 = vld [vmem:[#allocation14 + $0x9e0] sm:$0xff]  ;;  %v10200_v15 = vld [vmem:[#allocation14 + $0x9e8] sm:$0xff]  ;;  %v16045_v12 = vcombine.low %v10187_v6, %v10191_v0 }
 0x639   :  { %13236 = vmatprep.subr.bf16.mxu1 %v15968_v18  ;;  %v16016_v18 = vcombine.high %v10156_v16, %v10160_v60 }
 0x63b   :  { %13065 = vmatpush1.bf16.msra.mxu0 %v15965_v26  ;;  %v16013_v26 = vcombine.low %v10155_v13, %v10159_v51  ;;  %v10203_v51 = vld [vmem:[#allocation14 + $0xa00] sm:$0xff] }
 0x63c   :  { %13237 = vmatpush1.bf16.msra.mxu1 %v15967_v27  ;;  %13066 = vmatprep.subr.bf16.mxu0 %v15974_v28  ;;  %v16015_v27 = vcombine.low %v10156_v16, %v10160_v60  ;;  %v16022_v28 = vcombine.high %v10163_v54, %v10167_v21  ;;  %v10204_v16 = vld [vmem:[#allocation14 + $0xa08] sm:$0xff] }
 0x63d   :  { %13238 = vmatprep.subr.bf16.mxu1 %v15976_v30  ;;  %v16024_v30 = vcombine.high %v10164_v22, %v10168_v58  ;;  %v10208_v60 = vld [vmem:[#allocation14 + $0xa28] sm:$0xff] }
 0x63f   :  { %13067 = vmatpush1.bf16.msra.mxu0 %v15973_v34  ;;  %v16021_v34 = vcombine.low %v10163_v54, %v10167_v21  ;;  %v10211_v54 = vld [vmem:[#allocation14 + $0xa40] sm:$0xff] }
 0x640   :  { %13239 = vmatpush1.bf16.msra.mxu1 %v15975_v35  ;;  %13068 = vmatprep.subr.bf16.mxu0 %v15982_v36  ;;  %v16023_v35 = vcombine.low %v10164_v22, %v10168_v58  ;;  %v16030_v36 = vcombine.high %v10171_v31, %v10175_v32  ;;  %v10215_v21 = vld [vmem:[#allocation14 + $0xa60] sm:$0xff]  ;;  %v10212_v22 = vld [vmem:[#allocation14 + $0xa48] sm:$0xff] }
 0x641   :  { %13240 = vmatprep.subr.bf16.mxu1 %v15984_v38  ;;  %v16032_v38 = vcombine.high %v10172_v33, %v10176_v10  ;;  %v10216_v58 = vld [vmem:[#allocation14 + $0xa68] sm:$0xff] }
 0x643   :  { %13069 = vmatpush1.bf16.msra.mxu0 %v15981_v63  ;;  %v16029_v63 = vcombine.low %v10171_v31, %v10175_v32  ;;  %v10219_v31 = vld [vmem:[#allocation14 + $0xa80] sm:$0xff] }
 0x644   :  { %13241 = vmatpush1.bf16.msra.mxu1 %v15983_v39  ;;  %13070 = vmatprep.subr.bf16.mxu0 %v15990_v5  ;;  %v16031_v39 = vcombine.low %v10172_v33, %v10176_v10  ;;  %v16038_v5 = vcombine.high %v10179_v42, %v10183_v23  ;;  %v10223_v32 = vld [vmem:[#allocation14 + $0xaa0] sm:$0xff]  ;;  %v10220_v33 = vld [vmem:[#allocation14 + $0xa88] sm:$0xff] }
 0x645   :  { %13242 = vmatprep.subr.bf16.mxu1 %v15992_v8  ;;  %v16040_v8 = vcombine.high %v10180_v62, %v10184_v43  ;;  %v10224_v10 = vld [vmem:[#allocation14 + $0xaa8] sm:$0xff] }
 0x647   :  { %13071 = vmatpush1.bf16.msra.mxu0 %v15989_v3  ;;  %v16037_v3 = vcombine.low %v10179_v42, %v10183_v23  ;;  %v10227_v42 = vld [vmem:[#allocation14 + $0xac0] sm:$0xff] }
 0x648   :  { %13243 = vmatpush1.bf16.msra.mxu1 %v15991_v7  ;;  %13083 = vmatprep.subr.bf16.mxu0 %v15998_v14  ;;  %v16039_v7 = vcombine.low %v10180_v62, %v10184_v43  ;;  %v16046_v14 = vcombine.high %v10187_v6, %v10191_v0  ;;  %v10231_v23 = vld [vmem:[#allocation14 + $0xae0] sm:$0xff]  ;;  %v10228_v62 = vld [vmem:[#allocation14 + $0xac8] sm:$0xff] }
 0x649   :  { %13255 = vmatprep.subr.bf16.mxu1 %v16000_v49  ;;  %v16048_v49 = vcombine.high %v10188_v2, %v10192_v1  ;;  %v10232_v43 = vld [vmem:[#allocation14 + $0xae8] sm:$0xff]  ;;  %v10235_v6 = vld [vmem:[#allocation14 + $0xb00] sm:$0xff] }
 0x64a   :  { %13073 = vmatmul.mubr.bf16.vlgmr.msra.gmra.mrb[32].mxu0 %v17427_v24  ;;  %v10239_v0 = vld [vmem:[#allocation14 + $0xb20] sm:$0xff] }
 0x64b   :  { %13245 = vmatmul.mubr.bf16.vlgmr.msra.gmra.mrb[32].mxu1 %v17427_v24  ;;  %13084 = vmatpush1.bf16.msra.mxu0 %v15997_v46  ;;  %v10196_v46 = vld [vmem:[#allocation14 + $0x9c8] sm:$0xff] }
 0x64c   :  { %13115 = vmatprep.mubr.bf16.mxu0 %v17469_v47  ;;  %13256 = vmatpush1.bf16.msra.mxu1 %v15999_v52  ;;  %v16047_v52 = vcombine.low %v10188_v2, %v10192_v1  ;;  %v16056_v13 = vcombine.high %v10196_v46, %v10200_v15  ;;  %v10236_v2 = vld [vmem:[#allocation14 + $0xb08] sm:$0xff] }
 0x64d   :  { %13287 = vmatprep.mubr.bf16.mxu1 %v17469_v47  ;;  %13085 = vmatprep.subr.bf16.mxu0 %v16006_v53  ;;  %v16054_v53 = vcombine.high %v10195_v9, %v10199_v11  ;;  %v10240_v1 = vld [vmem:[#allocation14 + $0xb28] sm:$0xff] }
 0x64e   :  { %13257 = vmatprep.subr.bf16.mxu1 %v16008_v19  ;;  %v10207_v19 = vld [vmem:[#allocation14 + $0xa20] sm:$0xff] }
 0x64f   :  { %13086 = vmatpush1.bf16.msra.mxu0 %v16005_v4  ;;  %v16053_v4 = vcombine.low %v10195_v9, %v10199_v11  ;;  %v10243_v9 = vld [vmem:[#allocation14 + $0xb40] sm:$0xff] }
 0x650   :  { %13258 = vmatpush1.bf16.msra.mxu1 %v16007_v17  ;;  %13087 = vmatprep.subr.bf16.mxu0 %v16014_v61  ;;  %v16055_v17 = vcombine.low %v10196_v46, %v10200_v15  ;;  %v16062_v61 = vcombine.high %v10203_v51, %v10207_v19  ;;  %v10247_v11 = vld [vmem:[#allocation14 + $0xb60] sm:$0xff]  ;;  %v10244_v46 = vld [vmem:[#allocation14 + $0xb48] sm:$0xff] }
 0x651   :  { %13259 = vmatprep.subr.bf16.mxu1 %v16016_v18  ;;  %v16064_v18 = vcombine.high %v10204_v16, %v10208_v60  ;;  %v10248_v15 = vld [vmem:[#allocation14 + $0xb68] sm:$0xff] }
 0x653   :  { %13088 = vmatpush1.bf16.msra.mxu0 %v16013_v26  ;;  %v16061_v26 = vcombine.low %v10203_v51, %v10207_v19  ;;  %v10251_v51 = vld [vmem:[#allocation14 + $0xb80] sm:$0xff] }
 0x654   :  { %13260 = vmatpush1.bf16.msra.mxu1 %v16015_v27  ;;  %13089 = vmatprep.subr.bf16.mxu0 %v16022_v28  ;;  %v16063_v27 = vcombine.low %v10204_v16, %v10208_v60  ;;  %v16070_v28 = vcombine.high %v10211_v54, %v10215_v21  ;;  %v10255_v19 = vld [vmem:[#allocation14 + $0xba0] sm:$0xff]  ;;  %v10252_v16 = vld [vmem:[#allocation14 + $0xb88] sm:$0xff] }
 0x655   :  { %13261 = vmatprep.subr.bf16.mxu1 %v16024_v30  ;;  %v16072_v30 = vcombine.high %v10212_v22, %v10216_v58  ;;  %v10256_v60 = vld [vmem:[#allocation14 + $0xba8] sm:$0xff] }
 0x657   :  { %13090 = vmatpush1.bf16.msra.mxu0 %v16021_v34  ;;  %v16069_v34 = vcombine.low %v10211_v54, %v10215_v21  ;;  %v10259_v54 = vld [vmem:[#allocation14 + $0xbc0] sm:$0xff] }
 0x658   :  { %13262 = vmatpush1.bf16.msra.mxu1 %v16023_v35  ;;  %13091 = vmatprep.subr.bf16.mxu0 %v16030_v36  ;;  %v16071_v35 = vcombine.low %v10212_v22, %v10216_v58  ;;  %v16078_v36 = vcombine.high %v10219_v31, %v10223_v32  ;;  %v10263_v21 = vld [vmem:[#allocation14 + $0xbe0] sm:$0xff]  ;;  %v10260_v22 = vld [vmem:[#allocation14 + $0xbc8] sm:$0xff] }
 0x659   :  { %13263 = vmatprep.subr.bf16.mxu1 %v16032_v38  ;;  %v16080_v38 = vcombine.high %v10220_v33, %v10224_v10  ;;  %v10264_v58 = vld [vmem:[#allocation14 + $0xbe8] sm:$0xff] }
 0x65b   :  { %13092 = vmatpush1.bf16.msra.mxu0 %v16029_v63  ;;  %v16077_v63 = vcombine.low %v10219_v31, %v10223_v32  ;;  %v10267_v31 = vld [vmem:[#allocation14 + $0xc00] sm:$0xff] }
 0x65c   :  { %13264 = vmatpush1.bf16.msra.mxu1 %v16031_v39  ;;  %13093 = vmatprep.subr.bf16.mxu0 %v16038_v5  ;;  %v16079_v39 = vcombine.low %v10220_v33, %v10224_v10  ;;  %v16086_v5 = vcombine.high %v10227_v42, %v10231_v23  ;;  %v10271_v32 = vld [vmem:[#allocation14 + $0xc20] sm:$0xff]  ;;  %v10268_v33 = vld [vmem:[#allocation14 + $0xc08] sm:$0xff] }
 0x65d   :  { %13265 = vmatprep.subr.bf16.mxu1 %v16040_v8  ;;  %v16088_v8 = vcombine.high %v10228_v62, %v10232_v43  ;;  %v10272_v10 = vld [vmem:[#allocation14 + $0xc28] sm:$0xff] }
 0x65f   :  { %13094 = vmatpush1.bf16.msra.mxu0 %v16037_v3  ;;  %v16085_v3 = vcombine.low %v10227_v42, %v10231_v23  ;;  %v10275_v42 = vld [vmem:[#allocation14 + $0xc40] sm:$0xff] }
 0x660   :  { %13266 = vmatpush1.bf16.msra.mxu1 %v16039_v7  ;;  %13095 = vmatprep.subr.bf16.mxu0 %v16046_v14  ;;  %v16087_v7 = vcombine.low %v10228_v62, %v10232_v43  ;;  %v16094_v14 = vcombine.high %v10235_v6, %v10239_v0  ;;  %v10279_v23 = vld [vmem:[#allocation14 + $0xc60] sm:$0xff]  ;;  %v16125_v62 = vcombine.low %v10267_v31, %v10271_v32  ;;  %v10276_v43 = vld [vmem:[#allocation14 + $0xc48] sm:$0xff] }
 0x661   :  { %13267 = vmatprep.subr.bf16.mxu1 %v16048_v49  ;;  %v16096_v49 = vcombine.high %v10236_v2, %v10240_v1 }
 0x663   :  { %13096 = vmatpush1.bf16.msra.mxu0 %v16045_v12  ;;  %v16093_v12 = vcombine.low %v10235_v6, %v10239_v0  ;;  %v10287_v6 = vld [vmem:[#allocation14 + $0xca0] sm:$0xff] }
 0x664   :  { %13268 = vmatpush1.bf16.msra.mxu1 %v16047_v52  ;;  %13097 = vmatprep.subr.bf16.mxu0 %v16054_v53  ;;  %v16095_v52 = vcombine.low %v10236_v2, %v10240_v1  ;;  %v16102_v53 = vcombine.high %v10243_v9, %v10247_v11  ;;  %v10284_v2 = vld [vmem:[#allocation14 + $0xc88] sm:$0xff] }
 0x665   :  { %13269 = vmatprep.subr.bf16.mxu1 %v16056_v13  ;;  %v16104_v13 = vcombine.high %v10244_v46, %v10248_v15  ;;  %v10288_v1 = vld [vmem:[#allocation14 + $0xca8] sm:$0xff] }
 0x667   :  { %13098 = vmatpush1.bf16.msra.mxu0 %v16053_v4  ;;  %v16101_v4 = vcombine.low %v10243_v9, %v10247_v11  ;;  %v10291_v9 = vld [vmem:[#allocation14 + $0xcc0] sm:$0xff] }
 0x668   :  { %13270 = vmatpush1.bf16.msra.mxu1 %v16055_v17  ;;  %13099 = vmatprep.subr.bf16.mxu0 %v16062_v61  ;;  %v16103_v17 = vcombine.low %v10244_v46, %v10248_v15  ;;  %v16110_v61 = vcombine.high %v10251_v51, %v10255_v19  ;;  %v10295_v11 = vld [vmem:[#allocation14 + $0xce0] sm:$0xff]  ;;  %v10292_v46 = vld [vmem:[#allocation14 + $0xcc8] sm:$0xff] }
 0x669   :  { %13271 = vmatprep.subr.bf16.mxu1 %v16064_v18  ;;  %v16112_v18 = vcombine.high %v10252_v16, %v10256_v60  ;;  %v10296_v15 = vld [vmem:[#allocation14 + $0xce8] sm:$0xff] }
 0x66b   :  { %13100 = vmatpush1.bf16.msra.mxu0 %v16061_v26  ;;  %v16109_v26 = vcombine.low %v10251_v51, %v10255_v19  ;;  %v10299_v51 = vld [vmem:[#allocation14 + $0xd00] sm:$0xff] }
 0x66c   :  { %13272 = vmatpush1.bf16.msra.mxu1 %v16063_v27  ;;  %13101 = vmatprep.subr.bf16.mxu0 %v16070_v28  ;;  %v16111_v27 = vcombine.low %v10252_v16, %v10256_v60  ;;  %v16118_v28 = vcombine.high %v10259_v54, %v10263_v21  ;;  %v10303_v19 = vld [vmem:[#allocation14 + $0xd20] sm:$0xff]  ;;  %v10300_v16 = vld [vmem:[#allocation14 + $0xd08] sm:$0xff] }
 0x66d   :  { %13273 = vmatprep.subr.bf16.mxu1 %v16072_v30  ;;  %v16120_v30 = vcombine.high %v10260_v22, %v10264_v58  ;;  %v10304_v60 = vld [vmem:[#allocation14 + $0xd28] sm:$0xff] }
 0x66f   :  { %13102 = vmatpush1.bf16.msra.mxu0 %v16069_v34  ;;  %v16117_v34 = vcombine.low %v10259_v54, %v10263_v21  ;;  %v10307_v54 = vld [vmem:[#allocation14 + $0xd40] sm:$0xff] }
 0x670   :  { %13274 = vmatpush1.bf16.msra.mxu1 %v16071_v35  ;;  %13103 = vmatprep.subr.bf16.mxu0 %v16078_v36  ;;  %v16119_v35 = vcombine.low %v10260_v22, %v10264_v58  ;;  %v16126_v36 = vcombine.high %v10267_v31, %v10271_v32  ;;  %v10311_v21 = vld [vmem:[#allocation14 + $0xd60] sm:$0xff]  ;;  %v10308_v22 = vld [vmem:[#allocation14 + $0xd48] sm:$0xff] }
 0x671   :  { %13275 = vmatprep.subr.bf16.mxu1 %v16080_v38  ;;  %v16128_v38 = vcombine.high %v10268_v33, %v10272_v10  ;;  %v10312_v58 = vld [vmem:[#allocation14 + $0xd68] sm:$0xff]  ;;  %v10315_v31 = vld [vmem:[#allocation14 + $0xd80] sm:$0xff] }
 0x672   :  { %v10319_v32 = vld [vmem:[#allocation14 + $0xda0] sm:$0xff] }
 0x673   :  { %13104 = vmatpush1.bf16.msra.mxu0 %v16077_v63  ;;  %v10280_v63 = vld [vmem:[#allocation14 + $0xc68] sm:$0xff] }
 0x674   :  { %13276 = vmatpush1.bf16.msra.mxu1 %v16079_v39  ;;  %13105 = vmatprep.subr.bf16.mxu0 %v16086_v5  ;;  %v16127_v39 = vcombine.low %v10268_v33, %v10272_v10  ;;  %v16134_v5 = vcombine.high %v10275_v42, %v10279_v23  ;;  %v16136_v0 = vcombine.high %v10276_v43, %v10280_v63  ;;  %v16693_v33 = vld [vmem:[#allocation13] sm:$0xff] }
 0x675   :  { %13277 = vmatprep.subr.bf16.mxu1 %v16088_v8  ;;  %v10283_v8 = vld [vmem:[#allocation14 + $0xc80] sm:$0xff]  ;;  %v6558_v10 = vrot.slane %v16693_v33, %v17324_v40 }
 0x677   :  { %13106 = vmatpush1.bf16.msra.mxu0 %v16085_v3  ;;  %v16133_v3 = vcombine.low %v10275_v42, %v10279_v23  ;;  %v16165_v42 = vcombine.low %v10307_v54, %v10311_v21  ;;  %v6570_v23 = vrot.slane %v16693_v33, %v17333_v48 }
 0x678   :  { %13278 = vmatpush1.bf16.msra.mxu1 %v16087_v7  ;;  %13107 = vmatprep.subr.bf16.mxu0 %v16094_v14  ;;  %v16135_v7 = vcombine.low %v10276_v43, %v10280_v63  ;;  %v16142_v14 = vcombine.high %v10283_v8, %v10287_v6  ;;  %v16174_v43 = vcombine.high %v10315_v31, %v10319_v32  ;;  %v10323_v63 = vld [vmem:[#allocation14 + $0xdc0] sm:$0xff] }
 0x679   :  { %13279 = vmatprep.subr.bf16.mxu1 %v16096_v49  ;;  %v16144_v49 = vcombine.high %v10284_v2, %v10288_v1 }
 0x67b   :  { %13108 = vmatpush1.bf16.msra.mxu0 %v16093_v12  ;;  %v16141_v12 = vcombine.low %v10283_v8, %v10287_v6  ;;  %v10324_v6 = vld [vmem:[#allocation14 + $0xdc8] sm:$0xff] }
 0x67c   :  { %13280 = vmatpush1.bf16.msra.mxu1 %v16095_v52  ;;  %13109 = vmatprep.subr.bf16.mxu0 %v16102_v53  ;;  %v16143_v52 = vcombine.low %v10284_v2, %v10288_v1  ;;  %v16150_v53 = vcombine.high %v10291_v9, %v10295_v11 }
 0x67d   :  { %13281 = vmatprep.subr.bf16.mxu1 %v16104_v13  ;;  %v16152_v13 = vcombine.high %v10292_v46, %v10296_v15 }
 0x67f   :  { %13110 = vmatpush1.bf16.msra.mxu0 %v16101_v4  ;;  %v16149_v4 = vcombine.low %v10291_v9, %v10295_v11 }
 0x680   :  { %13282 = vmatpush1.bf16.msra.mxu1 %v16103_v17  ;;  %13111 = vmatprep.subr.bf16.mxu0 %v16110_v61  ;;  %v16151_v17 = vcombine.low %v10292_v46, %v10296_v15  ;;  %v16158_v61 = vcombine.high %v10299_v51, %v10303_v19 }
 0x681   :  { %13283 = vmatprep.subr.bf16.mxu1 %v16112_v18  ;;  %v16160_v18 = vcombine.high %v10300_v16, %v10304_v60 }
 0x683   :  { %13112 = vmatpush1.bf16.msra.mxu0 %v16109_v26  ;;  %v16157_v26 = vcombine.low %v10299_v51, %v10303_v19 }
 0x684   :  { %13284 = vmatpush1.bf16.msra.mxu1 %v16111_v27  ;;  %13113 = vmatprep.subr.bf16.mxu0 %v16118_v28  ;;  %v16159_v27 = vcombine.low %v10300_v16, %v10304_v60  ;;  %v16166_v28 = vcombine.high %v10307_v54, %v10311_v21  ;;  %v10335_v54 = vld [vmem:[#allocation14 + $0xe20] sm:$0xff] }
 0x685   :  { %13285 = vmatprep.subr.bf16.mxu1 %v16120_v30  ;;  %v16168_v30 = vcombine.high %v10308_v22, %v10312_v58 }
 0x687   :  { %13114 = vmatpush1.bf16.msra.mxu0 %v16117_v34  ;;  %v10316_v34 = vld [vmem:[#allocation14 + $0xd88] sm:$0xff] }
 0x688   :  { %13286 = vmatpush1.bf16.msra.mxu1 %v16119_v35  ;;  %13126 = vmatprep.subr.bf16.mxu0 %v16126_v36  ;;  %v10320_v35 = vld [vmem:[#allocation14 + $0xda8] sm:$0xff]  ;;  %v6566_v36 = vrot.slane %v16693_v33, %v17327_v44 }
 0x689   :  { %13298 = vmatprep.subr.bf16.mxu1 %v16128_v38  ;;  %v6562_v38 = vrot.slane %v16693_v33, %v17330_v45  ;;  %v16176_v8 = vcombine.high %v10316_v34, %v10320_v35  ;;  %v16175_v46 = vcombine.low %v10316_v34, %v10320_v35  ;;  %v10339_v35 = vld [vmem:[#allocation14 + $0xe40] sm:$0xff] }
 0x68a   :  { %13116 = vmatmul.mubr.bf16.vlgmr.msra.gmra.mrb[32].mxu0 %v17464_v37 }
 0x68b   :  { %13288 = vmatmul.mubr.bf16.vlgmr.msra.gmra.mrb[32].mxu1 %v17464_v37  ;;  %13127 = vmatpush1.bf16.msra.mxu0 %v16125_v62  ;;  %v16167_v62 = vcombine.low %v10308_v22, %v10312_v58 }
 0x68c   :  { %13158 = vmatprep.mubr.bf16.mxu0 %v17471_v56  ;;  %13299 = vmatpush1.bf16.msra.mxu1 %v16127_v39  ;;  %v10327_v39 = vld [vmem:[#allocation14 + $0xde0] sm:$0xff] }
 0x68d   :  { %13330 = vmatprep.mubr.bf16.mxu1 %v17471_v56  ;;  %13128 = vmatprep.subr.bf16.mxu0 %v16134_v5  ;;  %v16182_v15 = vcombine.high %v10323_v63, %v10327_v39 }
 0x68e   :  { %13300 = vmatprep.subr.bf16.mxu1 %v16136_v0  ;;  %v10328_v0 = vld [vmem:[#allocation14 + $0xde8] sm:$0xff] }
 0x68f   :  { %13129 = vmatpush1.bf16.msra.mxu0 %v16133_v3  ;;  %v16184_v19 = vcombine.high %v10324_v6, %v10328_v0  ;;  %v16183_v33 = vcombine.low %v10324_v6, %v10328_v0  ;;  %v10352_v6 = vld [vmem:[#allocation14 + $0xea8] sm:$0xff] }
 0x690   :  { %13301 = vmatpush1.bf16.msra.mxu1 %v16135_v7  ;;  %13130 = vmatprep.subr.bf16.mxu0 %v16142_v14  ;;  %v16173_v7 = vcombine.low %v10315_v31, %v10319_v32  ;;  %v16181_v31 = vcombine.low %v10323_v63, %v10327_v39  ;;  %v10347_v39 = vld [vmem:[#allocation14 + $0xe80] sm:$0xff] }
 0x691   :  { %13302 = vmatprep.subr.bf16.mxu1 %v16144_v49 }
 0x693   :  { %13131 = vmatpush1.bf16.msra.mxu0 %v16141_v12 }
 0x694   :  { %13303 = vmatpush1.bf16.msra.mxu1 %v16143_v52  ;;  %13132 = vmatprep.subr.bf16.mxu0 %v16150_v53 }
 0x695   :  { %13304 = vmatprep.subr.bf16.mxu1 %v16152_v13 }
 0x697   :  { %13133 = vmatpush1.bf16.msra.mxu0 %v16149_v4 }
 0x698   :  { %13305 = vmatpush1.bf16.msra.mxu1 %v16151_v17  ;;  %13134 = vmatprep.subr.bf16.mxu0 %v16158_v61 }
 0x699   :  { %13306 = vmatprep.subr.bf16.mxu1 %v16160_v18  ;;  %v10331_v18 = vld [vmem:[#allocation14 + $0xe00] sm:$0xff] }
 0x69b   :  { %13135 = vmatpush1.bf16.msra.mxu0 %v16157_v26  ;;  %v10332_v26 = vld [vmem:[#allocation14 + $0xe08] sm:$0xff] }
 0x69c   :  { %13307 = vmatpush1.bf16.msra.mxu1 %v16159_v27  ;;  %13136 = vmatprep.subr.bf16.mxu0 %v16166_v28  ;;  %v10336_v27 = vld [vmem:[#allocation14 + $0xe28] sm:$0xff] }
 0x69d   :  { %v9646_v5 = vpop.f32.mrb[28].mxu0  ;;  %13308 = vmatprep.subr.bf16.mxu1 %v16168_v30  ;;  %v16192_v34 = vcombine.high %v10332_v26, %v10336_v27 }
 0x69e   :  { %v16430_v2 = vadd.f32 %v9646_v5, %v6558_v10  ;;  %v9818_v1 = vpop.f32.mrb[28].mxu1  ;;  %v9648_v3 = vpop.f32.mrb[29].mxu0  ;;  %v10351_v5 = vld [vmem:[#allocation14 + $0xea0] sm:$0xff] }
 0x69f   :  { %v16434_v14 = vadd.f32 %v9818_v1, %v6566_v36  ;;  %v16431_v49 = vadd.f32 %v9648_v3, %v6562_v38  ;;  %v9820_v9 = vpop.f32.mrb[29].mxu1  ;;  %v9650_v11 = vpop.f32.mrb[30].mxu0  ;;  %13137 = vmatpush1.bf16.msra.mxu0 %v16165_v42  ;;  %v10344_v42 = vld [vmem:[#allocation14 + $0xe68] sm:$0xff]  ;;  %v16206_v1 = vcombine.high %v10347_v39, %v10351_v5 }
 0x6a0   :  { %v9831_v12 = vmax.f32 %v16430_v2, 0.0  ;;  %v16435_v52 = vadd.f32 %v9820_v9, %v6570_v23  ;;  %v16432_v53 = vadd.f32 %v9650_v11, %v6558_v10  ;;  %v9822_v13 = vpop.f32.mrb[30].mxu1  ;;  %13309 = vmatpush1.bf16.msra.mxu1 %v16167_v62  ;;  %v9652_v51 = vpop.f32.mrb[31].mxu0  ;;  %13138 = vmatprep.subr.bf16.mxu0 %v16174_v43  ;;  %v16190_v10 = vcombine.high %v10331_v18, %v10335_v54  ;;  %v10360_v9 = vld [vmem:[#allocation14 + $0xee8] sm:$0xff] }
 0x6a1   :  { %v9833_v16 = vmax.f32 %v16434_v14, 0.0  ;;  %v9832_v60 = vmax.f32 %v16431_v49, 0.0  ;;  %v16436_v4 = vadd.f32 %v9822_v13, %v6566_v36  ;;  %v16433_v17 = vadd.f32 %v9652_v51, %v6562_v38  ;;  %v9824_v61 = vpop.f32.mrb[31].mxu1  ;;  %13310 = vmatprep.subr.bf16.mxu1 %v16176_v8  ;;  %v10343_v36 = vld [vmem:[#allocation14 + $0xe60] sm:$0xff]  ;;  %v10340_v38 = vld [vmem:[#allocation14 + $0xe48] sm:$0xff] }
 0x6a2   :  { %9863 = vst [vmem:[#allocation21 + $0x20] sm:$0xff] %v9831_v12  ;;  %v9834_v21 = vmax.f32 %v16435_v52, 0.0  ;;  %v9839_v22 = vmax.f32 %v16432_v53, 0.0  ;;  %v16437_v58 = vadd.f32 %v9824_v61, %v6570_v23  ;;  %v16189_v23 = vcombine.low %v10331_v18, %v10335_v54  ;;  %v10348_v8 = vld [vmem:[#allocation14 + $0xe88] sm:$0xff]  ;;  %v10359_v14 = vld [vmem:[#allocation14 + $0xee0] sm:$0xff] }
 0x6a3   :  { %9865 = vst [vmem:[#allocation21 + $0x30] sm:$0xff] %v9833_v16  ;;  %9864 = vst [vmem:[#allocation21 + $0x28] sm:$0xff] %v9832_v60  ;;  %v9841_v28 = vmax.f32 %v16436_v4, 0.0  ;;  %v9840_v30 = vmax.f32 %v16433_v17, 0.0  ;;  %13139 = vmatpush1.bf16.msra.mxu0 %v16173_v7  ;;  %v16191_v62 = vcombine.low %v10332_v26, %v10336_v27  ;;  %v16198_v43 = vcombine.high %v10339_v35, %v10343_v36  ;;  %v10355_v7 = vld [vmem:[#allocation14 + $0xec0] sm:$0xff]  ;;  %v10356_v49 = vld [vmem:[#allocation14 + $0xec8] sm:$0xff] }
 0x6a4   :  { %9866 = vst [vmem:[#allocation21 + $0x38] sm:$0xff] %v9834_v21  ;;  %9871 = vst [vmem:[#allocation21 + $0x60] sm:$0xff] %v9839_v22  ;;  %v9842_v32 = vmax.f32 %v16437_v58, 0.0  ;;  %13311 = vmatpush1.bf16.msra.mxu1 %v16175_v46  ;;  %13140 = vmatprep.subr.bf16.mxu0 %v16182_v15  ;;  %v16200_v63 = vcombine.high %v10340_v38, %v10344_v42  ;;  %v16197_v0 = vcombine.low %v10339_v35, %v10343_v36  ;;  %v10363_v52 = vld [vmem:[#allocation14 + $0xf00] sm:$0xff]  ;;  %v10364_v13 = vld [vmem:[#allocation14 + $0xf08] sm:$0xff] }
 0x6a5   :  { %9873 = vst [vmem:[#allocation21 + $0x70] sm:$0xff] %v9841_v28  ;;  %9872 = vst [vmem:[#allocation21 + $0x68] sm:$0xff] %v9840_v30  ;;  %13312 = vmatprep.subr.bf16.mxu1 %v16184_v19  ;;  %v16199_v2 = vcombine.low %v10340_v38, %v10344_v42  ;;  %v16208_v3 = vcombine.high %v10348_v8, %v10352_v6  ;;  %v16205_v11 = vcombine.low %v10347_v39, %v10351_v5  ;;  %v10367_v53 = vld [vmem:[#allocation14 + $0xf20] sm:$0xff]  ;;  %v10368_v51 = vld [vmem:[#allocation14 + $0xf28] sm:$0xff] }
 0x6a6   :  { %9874 = vst [vmem:[#allocation21 + $0x78] sm:$0xff] %v9842_v32  ;;  %v16207_v46 = vcombine.low %v10348_v8, %v10352_v6  ;;  %v16214_v15 = vcombine.high %v10355_v7, %v10359_v14  ;;  %v16216_v12 = vcombine.high %v10356_v49, %v10360_v9  ;;  %v16213_v19 = vcombine.low %v10355_v7, %v10359_v14  ;;  %v10371_v17 = vld [vmem:[#allocation14 + $0xf40] sm:$0xff]  ;;  %v10372_v18 = vld [vmem:[#allocation14 + $0xf48] sm:$0xff]  ;;  %v9885_v39 = vld [vmem:[#allocation14 + $0x10] sm:$0xff] }
 0x6a7   :  { %13141 = vmatpush1.bf16.msra.mxu0 %v16181_v31  ;;  %v16215_v16 = vcombine.low %v10356_v49, %v10360_v9  ;;  %v16222_v60 = vcombine.high %v10363_v52, %v10367_v53  ;;  %v16224_v4 = vcombine.high %v10364_v13, %v10368_v51  ;;  %v10375_v61 = vld [vmem:[#allocation14 + $0xf60] sm:$0xff]  ;;  %v10376_v54 = vld [vmem:[#allocation14 + $0xf68] sm:$0xff]  ;;  %v16221_v21 = vcombine.low %v10363_v52, %v10367_v53  ;;  %v9889_v5 = vld [vmem:[#allocation14 + $0x30] sm:$0xff] }
 0x6a8   :  { %13313 = vmatpush1.bf16.msra.mxu1 %v16183_v33  ;;  %13142 = vmatprep.subr.bf16.mxu0 %v16190_v10  ;;  %v16223_v22 = vcombine.low %v10364_v13, %v10368_v51  ;;  %v16230_v58 = vcombine.high %v10371_v17, %v10375_v61  ;;  %v16232_v26 = vcombine.high %v10372_v18, %v10376_v54  ;;  %v10379_v27 = vld [vmem:[#allocation14 + $0xf80] sm:$0xff]  ;;  %v10380_v30 = vld [vmem:[#allocation14 + $0xf88] sm:$0xff]  ;;  %v9886_v8 = vld [vmem:[#allocation14 + $0x18] sm:$0xff] }
 0x6a9   :  { %13314 = vmatprep.subr.bf16.mxu1 %v16192_v34  ;;  %v10383_v28 = vld [vmem:[#allocation14 + $0xfa0] sm:$0xff]  ;;  %v10384_v31 = vld [vmem:[#allocation14 + $0xfa8] sm:$0xff]  ;;  %v16229_v32 = vcombine.low %v10371_v17, %v10375_v61  ;;  %v16231_v33 = vcombine.low %v10372_v18, %v10376_v54  ;;  %v9890_v6 = vld [vmem:[#allocation14 + $0x38] sm:$0xff]  ;;  %v15745_v49 = vcombine.low %v9885_v39, %v9889_v5 }
 0x6aa   :  { %v16238_v10 = vcombine.high %v10379_v27, %v10383_v28  ;;  %v16240_v34 = vcombine.high %v10380_v30, %v10384_v31  ;;  %v10387_v35 = vld [vmem:[#allocation14 + $0xfc0] sm:$0xff]  ;;  %v10388_v38 = vld [vmem:[#allocation14 + $0xfc8] sm:$0xff]  ;;  %v9893_v7 = vld [vmem:[#allocation14 + $0x50] sm:$0xff] }
 0x6ab   :  { %13143 = vmatpush1.bf16.msra.mxu0 %v16189_v23  ;;  %v10391_v36 = vld [vmem:[#allocation14 + $0xfe0] sm:$0xff]  ;;  %v10392_v42 = vld [vmem:[#allocation14 + $0xfe8] sm:$0xff]  ;;  %v16237_v23 = vcombine.low %v10379_v27, %v10383_v28  ;;  %v9897_v14 = vld [vmem:[#allocation14 + $0x70] sm:$0xff] }
 0x6ac   :  { %13315 = vmatpush1.bf16.msra.mxu1 %v16191_v62  ;;  %13144 = vmatprep.subr.bf16.mxu0 %v16198_v43  ;;  %v16239_v62 = vcombine.low %v10380_v30, %v10384_v31  ;;  %v16246_v43 = vcombine.high %v10387_v35, %v10391_v36  ;;  %v9894_v9 = vld [vmem:[#allocation14 + $0x58] sm:$0xff]  ;;  %v9905_v52 = vld [vmem:[#allocation14 + $0xb0] sm:$0xff] }
 0x6ad   :  { %13316 = vmatprep.subr.bf16.mxu1 %v16200_v63  ;;  %v16248_v63 = vcombine.high %v10388_v38, %v10392_v42  ;;  %v9902_v13 = vld [vmem:[#allocation14 + $0x98] sm:$0xff]  ;;  %v9909_v17 = vld [vmem:[#allocation14 + $0xd0] sm:$0xff] }
 0x6ae   :  { %v9906_v51 = vld [vmem:[#allocation14 + $0xb8] sm:$0xff]  ;;  %v9913_v61 = vld [vmem:[#allocation14 + $0xf0] sm:$0xff] }
 0x6af   :  { %13145 = vmatpush1.bf16.msra.mxu0 %v16197_v0  ;;  %v16245_v0 = vcombine.low %v10387_v35, %v10391_v36  ;;  %v9910_v18 = vld [vmem:[#allocation14 + $0xd8] sm:$0xff]  ;;  %v9917_v27 = vld [vmem:[#allocation14 + $0x110] sm:$0xff] }
 0x6b0   :  { %13317 = vmatpush1.bf16.msra.mxu1 %v16199_v2  ;;  %13146 = vmatprep.subr.bf16.mxu0 %v16206_v1  ;;  %v16247_v2 = vcombine.low %v10388_v38, %v10392_v42  ;;  %v15746_v1 = vcombine.high %v9885_v39, %v9889_v5  ;;  %v9914_v54 = vld [vmem:[#allocation14 + $0xf8] sm:$0xff]  ;;  %v9921_v28 = vld [vmem:[#allocation14 + $0x130] sm:$0xff] }
 0x6b1   :  { %13318 = vmatprep.subr.bf16.mxu1 %v16208_v3  ;;  %v15748_v3 = vcombine.high %v9886_v8, %v9890_v6  ;;  %v9918_v30 = vld [vmem:[#allocation14 + $0x118] sm:$0xff]  ;;  %v9929_v35 = vld [vmem:[#allocation14 + $0x170] sm:$0xff]  ;;  %v15777_v42 = vcombine.low %v9917_v27, %v9921_v28 }
 0x6b2   :  { %v9922_v31 = vld [vmem:[#allocation14 + $0x138] sm:$0xff]  ;;  %v9937_v39 = vld [vmem:[#allocation14 + $0x1b0] sm:$0xff] }
 0x6b3   :  { %13147 = vmatpush1.bf16.msra.mxu0 %v16205_v11  ;;  %v9898_v11 = vld [vmem:[#allocation14 + $0x78] sm:$0xff] }
 0x6b4   :  { %13319 = vmatpush1.bf16.msra.mxu1 %v16207_v46  ;;  %13148 = vmatprep.subr.bf16.mxu0 %v16214_v15  ;;  %v15747_v46 = vcombine.low %v9886_v8, %v9890_v6  ;;  %v15754_v15 = vcombine.high %v9893_v7, %v9897_v14  ;;  %v15756_v53 = vcombine.high %v9894_v9, %v9898_v11  ;;  %v9926_v36 = vld [vmem:[#allocation14 + $0x158] sm:$0xff] }
 0x6b5   :  { %13320 = vmatprep.subr.bf16.mxu1 %v16216_v12  ;;  %v9901_v12 = vld [vmem:[#allocation14 + $0x90] sm:$0xff]  ;;  %v9930_v38 = vld [vmem:[#allocation14 + $0x178] sm:$0xff] }
 0x6b6   :  { %v9934_v5 = vld [vmem:[#allocation14 + $0x198] sm:$0xff] }
 0x6b7   :  { %13149 = vmatpush1.bf16.msra.mxu0 %v16213_v19  ;;  %v15753_v19 = vcombine.low %v9893_v7, %v9897_v14  ;;  %v9938_v8 = vld [vmem:[#allocation14 + $0x1b8] sm:$0xff]  ;;  %v9945_v7 = vld [vmem:[#allocation14 + $0x1f0] sm:$0xff] }
 0x6b8   :  { %13321 = vmatpush1.bf16.msra.mxu1 %v16215_v16  ;;  %13150 = vmatprep.subr.bf16.mxu0 %v16222_v60  ;;  %v15755_v16 = vcombine.low %v9894_v9, %v9898_v11  ;;  %v15762_v60 = vcombine.high %v9901_v12, %v9905_v52  ;;  %v9942_v14 = vld [vmem:[#allocation14 + $0x1d8] sm:$0xff]  ;;  %v15795_v11 = vcombine.low %v9934_v5, %v9938_v8 }
 0x6b9   :  { %13322 = vmatprep.subr.bf16.mxu1 %v16224_v4  ;;  %v15764_v4 = vcombine.high %v9902_v13, %v9906_v51 }
 0x6bb   :  { %13151 = vmatpush1.bf16.msra.mxu0 %v16221_v21  ;;  %v15761_v21 = vcombine.low %v9901_v12, %v9905_v52  ;;  %v9949_v12 = vld [vmem:[#allocation14 + $0x210] sm:$0xff] }
 0x6bc   :  { %13323 = vmatpush1.bf16.msra.mxu1 %v16223_v22  ;;  %13152 = vmatprep.subr.bf16.mxu0 %v16230_v58  ;;  %v15763_v22 = vcombine.low %v9902_v13, %v9906_v51  ;;  %v15770_v58 = vcombine.high %v9909_v17, %v9913_v61  ;;  %v9953_v52 = vld [vmem:[#allocation14 + $0x230] sm:$0xff]  ;;  %v9954_v13 = vld [vmem:[#allocation14 + $0x238] sm:$0xff] }
 0x6bd   :  { %13324 = vmatprep.subr.bf16.mxu1 %v16232_v26  ;;  %v15772_v26 = vcombine.high %v9910_v18, %v9914_v54 }
 0x6bf   :  { %13153 = vmatpush1.bf16.msra.mxu0 %v16229_v32  ;;  %v15771_v32 = vcombine.low %v9910_v18, %v9914_v54  ;;  %v9962_v18 = vld [vmem:[#allocation14 + $0x278] sm:$0xff]  ;;  %v15809_v54 = vcombine.low %v9949_v12, %v9953_v52 }
 0x6c0   :  { %13325 = vmatpush1.bf16.msra.mxu1 %v16231_v33  ;;  %13154 = vmatprep.subr.bf16.mxu0 %v16238_v10  ;;  %v15778_v33 = vcombine.high %v9917_v27, %v9921_v28  ;;  %v15780_v10 = vcombine.high %v9918_v30, %v9922_v31  ;;  %v9969_v27 = vld [vmem:[#allocation14 + $0x2b0] sm:$0xff]  ;;  %v9966_v28 = vld [vmem:[#allocation14 + $0x298] sm:$0xff] }
 0x6c1   :  { %13326 = vmatprep.subr.bf16.mxu1 %v16240_v34  ;;  %v9925_v34 = vld [vmem:[#allocation14 + $0x150] sm:$0xff] }
 0x6c2   :  { %v15785_v6 = vcombine.low %v9925_v34, %v9929_v35 }
 0x6c3   :  { %13155 = vmatpush1.bf16.msra.mxu0 %v16237_v23  ;;  %v15779_v23 = vcombine.low %v9918_v30, %v9922_v31  ;;  %v9970_v30 = vld [vmem:[#allocation14 + $0x2b8] sm:$0xff] }
 0x6c4   :  { %13327 = vmatpush1.bf16.msra.mxu1 %v16239_v62  ;;  %13156 = vmatprep.subr.bf16.mxu0 %v16246_v43  ;;  %v15786_v62 = vcombine.high %v9925_v34, %v9929_v35  ;;  %v15788_v43 = vcombine.high %v9926_v36, %v9930_v38  ;;  %v9977_v34 = vld [vmem:[#allocation14 + $0x2f0] sm:$0xff]  ;;  %v9974_v35 = vld [vmem:[#allocation14 + $0x2d8] sm:$0xff] }
 0x6c5   :  { %13328 = vmatprep.subr.bf16.mxu1 %v16248_v63  ;;  %v9933_v63 = vld [vmem:[#allocation14 + $0x190] sm:$0xff] }
 0x6c6   :  { %v15793_v9 = vcombine.low %v9933_v63, %v9937_v39 }
 0x6c7   :  { %13157 = vmatpush1.bf16.msra.mxu0 %v16245_v0  ;;  %v15787_v0 = vcombine.low %v9926_v36, %v9930_v38  ;;  %v9978_v36 = vld [vmem:[#allocation14 + $0x2f8] sm:$0xff] }
 0x6c8   :  { %13329 = vmatpush1.bf16.msra.mxu1 %v16247_v2  ;;  %13341 = vmatprep.subr.bf16.mxu0 %v15746_v1  ;;  %v15794_v2 = vcombine.high %v9933_v63, %v9937_v39  ;;  %v15796_v1 = vcombine.high %v9934_v5, %v9938_v8  ;;  %v9985_v63 = vld [vmem:[#allocation14 + $0x330] sm:$0xff]  ;;  %v9982_v39 = vld [vmem:[#allocation14 + $0x318] sm:$0xff] }
 0x6c9   :  { %13513 = vmatprep.subr.bf16.mxu1 %v15748_v3  ;;  %v9941_v3 = vld [vmem:[#allocation14 + $0x1d0] sm:$0xff]  ;;  %v9986_v5 = vld [vmem:[#allocation14 + $0x338] sm:$0xff] }
 0x6ca   :  { %13159 = vmatmul.mubr.bf16.vlgmr.msra.gmra.mrb[32].mxu0 %v17467_v41  ;;  %v15801_v51 = vcombine.low %v9941_v3, %v9945_v7 }
 0x6cb   :  { %13331 = vmatmul.mubr.bf16.vlgmr.msra.gmra.mrb[32].mxu1 %v17467_v41  ;;  %13342 = vmatpush1.bf16.msra.mxu0 %v15745_v49  ;;  %v9946_v49 = vld [vmem:[#allocation14 + $0x1f8] sm:$0xff] }
 0x6cc   :  { %13373 = vmatprep.mubr.bf16.mxu0 %v17429_v25  ;;  %13514 = vmatpush1.bf16.msra.mxu1 %v15747_v46  ;;  %v15802_v46 = vcombine.high %v9941_v3, %v9945_v7  ;;  %v9993_v3 = vld [vmem:[#allocation14 + $0x370] sm:$0xff]  ;;  %v9990_v7 = vld [vmem:[#allocation14 + $0x358] sm:$0xff] }
 0x6cd   :  { %13545 = vmatprep.mubr.bf16.mxu1 %v17429_v25  ;;  %13343 = vmatprep.subr.bf16.mxu0 %v15754_v15  ;;  %v15769_v25 = vcombine.low %v9909_v17, %v9913_v61  ;;  %v15804_v15 = vcombine.high %v9942_v14, %v9946_v49  ;;  %v9961_v17 = vld [vmem:[#allocation14 + $0x270] sm:$0xff]  ;;  %v9958_v61 = vld [vmem:[#allocation14 + $0x258] sm:$0xff] }
 0x6ce   :  { %13515 = vmatprep.subr.bf16.mxu1 %v15756_v53  ;;  %v9950_v53 = vld [vmem:[#allocation14 + $0x218] sm:$0xff] }
 0x6cf   :  { %13344 = vmatpush1.bf16.msra.mxu0 %v15753_v19  ;;  %v15803_v19 = vcombine.low %v9942_v14, %v9946_v49  ;;  %v9994_v14 = vld [vmem:[#allocation14 + $0x378] sm:$0xff] }
 0x6d0   :  { %13516 = vmatpush1.bf16.msra.mxu1 %v15755_v16  ;;  %13345 = vmatprep.subr.bf16.mxu0 %v15762_v60  ;;  %v15810_v16 = vcombine.high %v9949_v12, %v9953_v52  ;;  %v15812_v60 = vcombine.high %v9950_v53, %v9954_v13  ;;  %v10001_v12 = vld [vmem:[#allocation14 + $0x3b0] sm:$0xff]  ;;  %v9998_v52 = vld [vmem:[#allocation14 + $0x398] sm:$0xff] }
 0x6d1   :  { %13517 = vmatprep.subr.bf16.mxu1 %v15764_v4  ;;  %v9957_v4 = vld [vmem:[#allocation14 + $0x250] sm:$0xff] }
 0x6d2   :  { %v15817_v31 = vcombine.low %v9957_v4, %v9961_v17 }
 0x6d3   :  { %13346 = vmatpush1.bf16.msra.mxu0 %v15761_v21  ;;  %v15811_v21 = vcombine.low %v9950_v53, %v9954_v13  ;;  %v10002_v53 = vld [vmem:[#allocation14 + $0x3b8] sm:$0xff] }
 0x6d4   :  { %13518 = vmatpush1.bf16.msra.mxu1 %v15763_v22  ;;  %13347 = vmatprep.subr.bf16.mxu0 %v15770_v58  ;;  %v15818_v22 = vcombine.high %v9957_v4, %v9961_v17  ;;  %v15820_v58 = vcombine.high %v9958_v61, %v9962_v18  ;;  %v10009_v4 = vld [vmem:[#allocation14 + $0x3f0] sm:$0xff]  ;;  %v10006_v17 = vld [vmem:[#allocation14 + $0x3d8] sm:$0xff] }
 0x6d5   :  { %13519 = vmatprep.subr.bf16.mxu1 %v15772_v26  ;;  %v9965_v26 = vld [vmem:[#allocation14 + $0x290] sm:$0xff] }
 0x6d6   :  { %v15825_v38 = vcombine.low %v9965_v26, %v9969_v27 }
 0x6d7   :  { %13348 = vmatpush1.bf16.msra.mxu0 %v15769_v25  ;;  %v15819_v25 = vcombine.low %v9958_v61, %v9962_v18  ;;  %v10010_v61 = vld [vmem:[#allocation14 + $0x3f8] sm:$0xff] }
 0x6d8   :  { %13520 = vmatpush1.bf16.msra.mxu1 %v15771_v32  ;;  %13349 = vmatprep.subr.bf16.mxu0 %v15778_v33  ;;  %v15826_v32 = vcombine.high %v9965_v26, %v9969_v27  ;;  %v15828_v33 = vcombine.high %v9966_v28, %v9970_v30  ;;  %v10017_v26 = vld [vmem:[#allocation14 + $0x430] sm:$0xff]  ;;  %v10014_v27 = vld [vmem:[#allocation14 + $0x418] sm:$0xff] }
 0x6d9   :  { %13521 = vmatprep.subr.bf16.mxu1 %v15780_v10  ;;  %v9973_v10 = vld [vmem:[#allocation14 + $0x2d0] sm:$0xff] }
 0x6da   :  { %v15833_v8 = vcombine.low %v9973_v10, %v9977_v34 }
 0x6db   :  { %13350 = vmatpush1.bf16.msra.mxu0 %v15777_v42  ;;  %v15827_v42 = vcombine.low %v9966_v28, %v9970_v30  ;;  %v10018_v28 = vld [vmem:[#allocation14 + $0x438] sm:$0xff] }
 0x6dc   :  { %13522 = vmatpush1.bf16.msra.mxu1 %v15779_v23  ;;  %13351 = vmatprep.subr.bf16.mxu0 %v15786_v62  ;;  %v15834_v23 = vcombine.high %v9973_v10, %v9977_v34  ;;  %v15836_v62 = vcombine.high %v9974_v35, %v9978_v36  ;;  %v10025_v10 = vld [vmem:[#allocation14 + $0x470] sm:$0xff] }
 0x6dd   :  { %13523 = vmatprep.subr.bf16.mxu1 %v15788_v43  ;;  %v9981_v43 = vld [vmem:[#allocation14 + $0x310] sm:$0xff] }
 0x6de   :  { %v15841_v49 = vcombine.low %v9981_v43, %v9985_v63 }
 0x6df   :  { %13352 = vmatpush1.bf16.msra.mxu0 %v15785_v6  ;;  %v15835_v6 = vcombine.low %v9974_v35, %v9978_v36  ;;  %v10022_v35 = vld [vmem:[#allocation14 + $0x458] sm:$0xff] }
 0x6e0   :  { %13524 = vmatpush1.bf16.msra.mxu1 %v15787_v0  ;;  %13353 = vmatprep.subr.bf16.mxu0 %v15794_v2  ;;  %v15842_v0 = vcombine.high %v9981_v43, %v9985_v63  ;;  %v15844_v2 = vcombine.high %v9982_v39, %v9986_v5  ;;  %v10026_v36 = vld [vmem:[#allocation14 + $0x478] sm:$0xff] }
 0x6e1   :  { %13525 = vmatprep.subr.bf16.mxu1 %v15796_v1  ;;  %v9989_v1 = vld [vmem:[#allocation14 + $0x350] sm:$0xff]  ;;  %v15884_v43 = vcombine.high %v10022_v35, %v10026_v36  ;;  %v10030_v63 = vld [vmem:[#allocation14 + $0x498] sm:$0xff] }
 0x6e2   :  { %v15849_v13 = vcombine.low %v9989_v1, %v9993_v3 }
 0x6e3   :  { %13354 = vmatpush1.bf16.msra.mxu0 %v15793_v9  ;;  %v15843_v9 = vcombine.low %v9982_v39, %v9986_v5  ;;  %v10034_v39 = vld [vmem:[#allocation14 + $0x4b8] sm:$0xff] }
 0x6e4   :  { %13526 = vmatpush1.bf16.msra.mxu1 %v15795_v11  ;;  %13355 = vmatprep.subr.bf16.mxu0 %v15802_v46  ;;  %v15850_v11 = vcombine.high %v9989_v1, %v9993_v3  ;;  %v15852_v46 = vcombine.high %v9990_v7, %v9994_v14  ;;  %v10041_v1 = vld [vmem:[#allocation14 + $0x4f0] sm:$0xff]  ;;  %v10038_v3 = vld [vmem:[#allocation14 + $0x4d8] sm:$0xff] }
 0x6e5   :  { %13527 = vmatprep.subr.bf16.mxu1 %v15804_v15  ;;  %v9997_v15 = vld [vmem:[#allocation14 + $0x390] sm:$0xff] }
 0x6e6   :  { %v15857_v18 = vcombine.low %v9997_v15, %v10001_v12 }
 0x6e7   :  { %13356 = vmatpush1.bf16.msra.mxu0 %v15801_v51  ;;  %v15851_v51 = vcombine.low %v9990_v7, %v9994_v14  ;;  %v10042_v7 = vld [vmem:[#allocation14 + $0x4f8] sm:$0xff] }
 0x6e8   :  { %13528 = vmatpush1.bf16.msra.mxu1 %v15803_v19  ;;  %13357 = vmatprep.subr.bf16.mxu0 %v15810_v16  ;;  %v15858_v19 = vcombine.high %v9997_v15, %v10001_v12  ;;  %v15860_v16 = vcombine.high %v9998_v52, %v10002_v53  ;;  %v10046_v15 = vld [vmem:[#allocation14 + $0x518] sm:$0xff] }
 0x6e9   :  { %13529 = vmatprep.subr.bf16.mxu1 %v15812_v60  ;;  %v10005_v60 = vld [vmem:[#allocation14 + $0x3d0] sm:$0xff]  ;;  %v10050_v12 = vld [vmem:[#allocation14 + $0x538] sm:$0xff] }
 0x6ea   :  { %v15865_v30 = vcombine.low %v10005_v60, %v10009_v4 }
 0x6eb   :  { %13358 = vmatpush1.bf16.msra.mxu0 %v15809_v54  ;;  %v15859_v54 = vcombine.low %v9998_v52, %v10002_v53  ;;  %v15899_v52 = vcombine.low %v10038_v3, %v10042_v7 }
 0x6ec   :  { %13530 = vmatpush1.bf16.msra.mxu1 %v15811_v21  ;;  %13359 = vmatprep.subr.bf16.mxu0 %v15818_v22  ;;  %v15866_v21 = vcombine.high %v10005_v60, %v10009_v4  ;;  %v15868_v22 = vcombine.high %v10006_v17, %v10010_v61  ;;  %v10058_v60 = vld [vmem:[#allocation14 + $0x578] sm:$0xff] }
 0x6ed   :  { %13531 = vmatprep.subr.bf16.mxu1 %v15820_v58  ;;  %v10013_v58 = vld [vmem:[#allocation14 + $0x410] sm:$0xff] }
 0x6ee   :  { %v15873_v34 = vcombine.low %v10013_v58, %v10017_v26 }
 0x6ef   :  { %13360 = vmatpush1.bf16.msra.mxu0 %v15817_v31  ;;  %v15867_v31 = vcombine.low %v10006_v17, %v10010_v61  ;;  %v15907_v17 = vcombine.low %v10046_v15, %v10050_v12 }
 0x6f0   :  { %13532 = vmatpush1.bf16.msra.mxu1 %v15819_v25  ;;  %13361 = vmatprep.subr.bf16.mxu0 %v15826_v32  ;;  %v15874_v25 = vcombine.high %v10013_v58, %v10017_v26  ;;  %v15876_v32 = vcombine.high %v10014_v27, %v10018_v28  ;;  %v10066_v58 = vld [vmem:[#allocation14 + $0x5b8] sm:$0xff] }
 0x6f1   :  { %13533 = vmatprep.subr.bf16.mxu1 %v15828_v33  ;;  %v10021_v33 = vld [vmem:[#allocation14 + $0x450] sm:$0xff] }
 0x6f2   :  { %v15881_v5 = vcombine.low %v10021_v33, %v10025_v10 }
 0x6f3   :  { %13362 = vmatpush1.bf16.msra.mxu0 %v15825_v38  ;;  %v15875_v38 = vcombine.low %v10014_v27, %v10018_v28 }
 0x6f4   :  { %13534 = vmatpush1.bf16.msra.mxu1 %v15827_v42  ;;  %13363 = vmatprep.subr.bf16.mxu0 %v15834_v23  ;;  %v15882_v42 = vcombine.high %v10021_v33, %v10025_v10  ;;  %v10029_v23 = vld [vmem:[#allocation14 + $0x490] sm:$0xff]  ;;  %v10074_v33 = vld [vmem:[#allocation14 + $0x5f8] sm:$0xff] }
 0x6f5   :  { %13535 = vmatprep.subr.bf16.mxu1 %v15836_v62  ;;  %v10033_v62 = vld [vmem:[#allocation14 + $0x4b0] sm:$0xff] }
 0x6f6   :  { %v15889_v14 = vcombine.low %v10029_v23, %v10033_v62 }
 0x6f7   :  { %13364 = vmatpush1.bf16.msra.mxu0 %v15833_v8  ;;  %v15883_v8 = vcombine.low %v10022_v35, %v10026_v36 }
 0x6f8   :  { %13536 = vmatpush1.bf16.msra.mxu1 %v15835_v6  ;;  %13365 = vmatprep.subr.bf16.mxu0 %v15842_v0  ;;  %v15890_v6 = vcombine.high %v10029_v23, %v10033_v62  ;;  %v15892_v0 = vcombine.high %v10030_v63, %v10034_v39  ;;  %v10078_v23 = vld [vmem:[#allocation14 + $0x618] sm:$0xff] }
 0x6f9   :  { %13537 = vmatprep.subr.bf16.mxu1 %v15844_v2  ;;  %v10037_v2 = vld [vmem:[#allocation14 + $0x4d0] sm:$0xff]  ;;  %v10082_v62 = vld [vmem:[#allocation14 + $0x638] sm:$0xff] }
 0x6fb   :  { %13366 = vmatpush1.bf16.msra.mxu0 %v15841_v49  ;;  %v15898_v49 = vcombine.high %v10037_v2, %v10041_v1 }
 0x6fc   :  { %13538 = vmatpush1.bf16.msra.mxu1 %v15843_v9  ;;  %13367 = vmatprep.subr.bf16.mxu0 %v15850_v11  ;;  %v15900_v9 = vcombine.high %v10038_v3, %v10042_v7  ;;  %v10045_v11 = vld [vmem:[#allocation14 + $0x510] sm:$0xff]  ;;  %v15939_v3 = vcombine.low %v10078_v23, %v10082_v62 }
 0x6fd   :  { %13539 = vmatprep.subr.bf16.mxu1 %v15852_v46  ;;  %v10049_v46 = vld [vmem:[#allocation14 + $0x530] sm:$0xff] }
 0x6fe   :  { %v15906_v53 = vcombine.high %v10045_v11, %v10049_v46  ;;  %v15905_v4 = vcombine.low %v10045_v11, %v10049_v46  ;;  %v10098_v11 = vld [vmem:[#allocation14 + $0x6b8] sm:$0xff] }
 0x6ff   :  { %13368 = vmatpush1.bf16.msra.mxu0 %v15849_v13  ;;  %v15908_v13 = vcombine.high %v10046_v15, %v10050_v12 }
 0x700   :  { %13540 = vmatpush1.bf16.msra.mxu1 %v15851_v51  ;;  %13369 = vmatprep.subr.bf16.mxu0 %v15858_v19  ;;  %v10053_v51 = vld [vmem:[#allocation14 + $0x550] sm:$0xff] }
 0x701   :  { %13541 = vmatprep.subr.bf16.mxu1 %v15860_v16  ;;  %v10057_v19 = vld [vmem:[#allocation14 + $0x570] sm:$0xff]  ;;  %v10054_v16 = vld [vmem:[#allocation14 + $0x558] sm:$0xff] }
 0x702   :  { %v15914_v61 = vcombine.high %v10053_v51, %v10057_v19  ;;  %v15913_v26 = vcombine.low %v10053_v51, %v10057_v19  ;;  %v15915_v27 = vcombine.low %v10054_v16, %v10058_v60  ;;  %v10106_v51 = vld [vmem:[#allocation14 + $0x6f8] sm:$0xff] }
 0x703   :  { %13370 = vmatpush1.bf16.msra.mxu0 %v15857_v18  ;;  %v15916_v18 = vcombine.high %v10054_v16, %v10058_v60 }
 0x704   :  { %13542 = vmatpush1.bf16.msra.mxu1 %v15859_v54  ;;  %13371 = vmatprep.subr.bf16.mxu0 %v15866_v21  ;;  %v10061_v54 = vld [vmem:[#allocation14 + $0x590] sm:$0xff] }
 0x705   :  { %13543 = vmatprep.subr.bf16.mxu1 %v15868_v22  ;;  %v10065_v21 = vld [vmem:[#allocation14 + $0x5b0] sm:$0xff]  ;;  %v10062_v22 = vld [vmem:[#allocation14 + $0x598] sm:$0xff] }
 0x706   :  { %v15922_v28 = vcombine.high %v10061_v54, %v10065_v21  ;;  %v15921_v10 = vcombine.low %v10061_v54, %v10065_v21  ;;  %v10114_v54 = vld [vmem:[#allocation14 + $0x738] sm:$0xff] }
 0x707   :  { %13372 = vmatpush1.bf16.msra.mxu0 %v15865_v30  ;;  %v15924_v30 = vcombine.high %v10062_v22, %v10066_v58 }
 0x708   :  { %13544 = vmatpush1.bf16.msra.mxu1 %v15867_v31  ;;  %13384 = vmatprep.subr.bf16.mxu0 %v15874_v25  ;;  %v10069_v31 = vld [vmem:[#allocation14 + $0x5d0] sm:$0xff] }
 0x709   :  { %13556 = vmatprep.subr.bf16.mxu1 %v15876_v32  ;;  %v10073_v25 = vld [vmem:[#allocation14 + $0x5f0] sm:$0xff]  ;;  %v10070_v32 = vld [vmem:[#allocation14 + $0x5d8] sm:$0xff] }
 0x70a   :  { %13374 = vmatmul.mubr.bf16.vlgmr.msra.gmra.mrb[36].mxu0 %v17424_v20  ;;  %v15930_v35 = vcombine.high %v10069_v31, %v10073_v25  ;;  %v15932_v36 = vcombine.high %v10070_v32, %v10074_v33 }
 0x70b   :  { %13546 = vmatmul.mubr.bf16.vlgmr.msra.gmra.mrb[36].mxu1 %v17424_v20  ;;  %13385 = vmatpush1.bf16.msra.mxu0 %v15873_v34  ;;  %v15891_v20 = vcombine.low %v10030_v63, %v10034_v39  ;;  %v15923_v34 = vcombine.low %v10062_v22, %v10066_v58  ;;  %v15931_v63 = vcombine.low %v10070_v32, %v10074_v33 }
 0x70c   :  { %13416 = vmatprep.mubr.bf16.mxu0 %v17431_v29  ;;  %13557 = vmatpush1.bf16.msra.mxu1 %v15875_v38  ;;  %v10077_v38 = vld [vmem:[#allocation14 + $0x610] sm:$0xff] }
 0x70d   :  { %13588 = vmatprep.mubr.bf16.mxu1 %v17431_v29  ;;  %13386 = vmatprep.subr.bf16.mxu0 %v15882_v42  ;;  %v15897_v29 = vcombine.low %v10037_v2, %v10041_v1  ;;  %v10081_v42 = vld [vmem:[#allocation14 + $0x630] sm:$0xff]  ;;  %v10090_v2 = vld [vmem:[#allocation14 + $0x678] sm:$0xff] }
 0x70e   :  { %13558 = vmatprep.subr.bf16.mxu1 %v15884_v43  ;;  %v15929_v43 = vcombine.low %v10069_v31, %v10073_v25  ;;  %v15938_v39 = vcombine.high %v10077_v38, %v10081_v42  ;;  %v15937_v1 = vcombine.low %v10077_v38, %v10081_v42  ;;  %v10122_v31 = vld [vmem:[#allocation14 + $0x778] sm:$0xff] }
 0x70f   :  { %13387 = vmatpush1.bf16.msra.mxu0 %v15881_v5  ;;  %v15940_v5 = vcombine.high %v10078_v23, %v10082_v62  ;;  %v10130_v38 = vld [vmem:[#allocation14 + $0x7b8] sm:$0xff] }
 0x710   :  { %13559 = vmatpush1.bf16.msra.mxu1 %v15883_v8  ;;  %13388 = vmatprep.subr.bf16.mxu0 %v15890_v6  ;;  %v10085_v8 = vld [vmem:[#allocation14 + $0x650] sm:$0xff] }
 0x711   :  { %13560 = vmatprep.subr.bf16.mxu1 %v15892_v0  ;;  %v10089_v6 = vld [vmem:[#allocation14 + $0x670] sm:$0xff]  ;;  %v10086_v0 = vld [vmem:[#allocation14 + $0x658] sm:$0xff] }
 0x712   :  { %v15946_v7 = vcombine.high %v10085_v8, %v10089_v6  ;;  %v15945_v46 = vcombine.low %v10085_v8, %v10089_v6  ;;  %v15947_v15 = vcombine.low %v10086_v0, %v10090_v2  ;;  %v10138_v8 = vld [vmem:[#allocation14 + $0x7f8] sm:$0xff] }
 0x713   :  { %13389 = vmatpush1.bf16.msra.mxu0 %v15889_v14  ;;  %v15948_v14 = vcombine.high %v10086_v0, %v10090_v2 }
 0x714   :  { %13561 = vmatpush1.bf16.msra.mxu1 %v15891_v20  ;;  %13390 = vmatprep.subr.bf16.mxu0 %v15898_v49  ;;  %v10093_v20 = vld [vmem:[#allocation14 + $0x690] sm:$0xff] }
 0x715   :  { %13562 = vmatprep.subr.bf16.mxu1 %v15900_v9  ;;  %v10097_v49 = vld [vmem:[#allocation14 + $0x6b0] sm:$0xff]  ;;  %v10094_v9 = vld [vmem:[#allocation14 + $0x698] sm:$0xff] }
 0x716   :  { %v15954_v12 = vcombine.high %v10093_v20, %v10097_v49  ;;  %v15953_v19 = vcombine.low %v10093_v20, %v10097_v49  ;;  %v15955_v16 = vcombine.low %v10094_v9, %v10098_v11  ;;  %v10146_v20 = vld [vmem:[#allocation14 + $0x838] sm:$0xff] }
 0x717   :  { %13391 = vmatpush1.bf16.msra.mxu0 %v15897_v29  ;;  %v15956_v29 = vcombine.high %v10094_v9, %v10098_v11 }
 0x718   :  { %13563 = vmatpush1.bf16.msra.mxu1 %v15899_v52  ;;  %13392 = vmatprep.subr.bf16.mxu0 %v15906_v53  ;;  %v10101_v52 = vld [vmem:[#allocation14 + $0x6d0] sm:$0xff] }
 0x719   :  { %13564 = vmatprep.subr.bf16.mxu1 %v15908_v13  ;;  %v10105_v53 = vld [vmem:[#allocation14 + $0x6f0] sm:$0xff]  ;;  %v10102_v13 = vld [vmem:[#allocation14 + $0x6d8] sm:$0xff] }
 0x71a   :  { %v15962_v60 = vcombine.high %v10101_v52, %v10105_v53  ;;  %v15961_v21 = vcombine.low %v10101_v52, %v10105_v53  ;;  %v15963_v22 = vcombine.low %v10102_v13, %v10106_v51  ;;  %v10150_v52 = vld [vmem:[#allocation14 + $0x858] sm:$0xff] }
 0x71b   :  { %13393 = vmatpush1.bf16.msra.mxu0 %v15905_v4  ;;  %v15964_v4 = vcombine.high %v10102_v13, %v10106_v51  ;;  %v10154_v53 = vld [vmem:[#allocation14 + $0x878] sm:$0xff] }
 0x71c   :  { %13565 = vmatpush1.bf16.msra.mxu1 %v15907_v17  ;;  %13394 = vmatprep.subr.bf16.mxu0 %v15914_v61  ;;  %v10109_v17 = vld [vmem:[#allocation14 + $0x710] sm:$0xff] }
 0x71d   :  { %13566 = vmatprep.subr.bf16.mxu1 %v15916_v18  ;;  %v10113_v61 = vld [vmem:[#allocation14 + $0x730] sm:$0xff]  ;;  %v10110_v18 = vld [vmem:[#allocation14 + $0x718] sm:$0xff] }
 0x71e   :  { %v15970_v58 = vcombine.high %v10109_v17, %v10113_v61  ;;  %v15969_v25 = vcombine.low %v10109_v17, %v10113_v61  ;;  %v15971_v32 = vcombine.low %v10110_v18, %v10114_v54  ;;  %v10162_v17 = vld [vmem:[#allocation14 + $0x8b8] sm:$0xff] }
 0x71f   :  { %13395 = vmatpush1.bf16.msra.mxu0 %v15913_v26  ;;  %v15972_v26 = vcombine.high %v10110_v18, %v10114_v54  ;;  %v16011_v18 = vcombine.low %v10150_v52, %v10154_v53 }
 0x720   :  { %13567 = vmatpush1.bf16.msra.mxu1 %v15915_v27  ;;  %13396 = vmatprep.subr.bf16.mxu0 %v15922_v28  ;;  %v10117_v27 = vld [vmem:[#allocation14 + $0x750] sm:$0xff] }
 0x721   :  { %13568 = vmatprep.subr.bf16.mxu1 %v15924_v30  ;;  %v10121_v28 = vld [vmem:[#allocation14 + $0x770] sm:$0xff]  ;;  %v10118_v30 = vld [vmem:[#allocation14 + $0x758] sm:$0xff] }
 0x722   :  { %v15978_v33 = vcombine.high %v10117_v27, %v10121_v28  ;;  %v15977_v42 = vcombine.low %v10117_v27, %v10121_v28  ;;  %v15979_v23 = vcombine.low %v10118_v30, %v10122_v31  ;;  %v10170_v27 = vld [vmem:[#allocation14 + $0x8f8] sm:$0xff] }
 0x723   :  { %13397 = vmatpush1.bf16.msra.mxu0 %v15921_v10  ;;  %v15980_v10 = vcombine.high %v10118_v30, %v10122_v31 }
 0x724   :  { %13569 = vmatpush1.bf16.msra.mxu1 %v15923_v34  ;;  %13398 = vmatprep.subr.bf16.mxu0 %v15930_v35  ;;  %v10125_v34 = vld [vmem:[#allocation14 + $0x790] sm:$0xff] }
 0x725   :  { %13570 = vmatprep.subr.bf16.mxu1 %v15932_v36  ;;  %v10129_v35 = vld [vmem:[#allocation14 + $0x7b0] sm:$0xff]  ;;  %v10126_v36 = vld [vmem:[#allocation14 + $0x798] sm:$0xff] }
 0x726   :  { %v15986_v62 = vcombine.high %v10125_v34, %v10129_v35  ;;  %v15985_v6 = vcombine.low %v10125_v34, %v10129_v35  ;;  %v15987_v0 = vcombine.low %v10126_v36, %v10130_v38 }
 0x727   :  { %13399 = vmatpush1.bf16.msra.mxu0 %v15929_v43  ;;  %v15988_v43 = vcombine.high %v10126_v36, %v10130_v38  ;;  %v10181_v38 = vld [vmem:[#allocation14 + $0x950] sm:$0xff] }
 0x728   :  { %13571 = vmatpush1.bf16.msra.mxu1 %v15931_v63  ;;  %13400 = vmatprep.subr.bf16.mxu0 %v15938_v39  ;;  %v10133_v63 = vld [vmem:[#allocation14 + $0x7d0] sm:$0xff] }
 0x729   :  { %13572 = vmatprep.subr.bf16.mxu1 %v15940_v5  ;;  %v10137_v39 = vld [vmem:[#allocation14 + $0x7f0] sm:$0xff]  ;;  %v10134_v5 = vld [vmem:[#allocation14 + $0x7d8] sm:$0xff] }
 0x72a   :  { %v15994_v2 = vcombine.high %v10133_v63, %v10137_v39  ;;  %v15993_v49 = vcombine.low %v10133_v63, %v10137_v39  ;;  %v15995_v9 = vcombine.low %v10134_v5, %v10138_v8 }
 0x72b   :  { %13401 = vmatpush1.bf16.msra.mxu0 %v15937_v1  ;;  %v15996_v1 = vcombine.high %v10134_v5, %v10138_v8  ;;  %v10189_v8 = vld [vmem:[#allocation14 + $0x990] sm:$0xff] }
 0x72c   :  { %13573 = vmatpush1.bf16.msra.mxu1 %v15939_v3  ;;  %13402 = vmatprep.subr.bf16.mxu0 %v15946_v7  ;;  %v10141_v3 = vld [vmem:[#allocation14 + $0x810] sm:$0xff] }
 0x72d   :  { %13574 = vmatprep.subr.bf16.mxu1 %v15948_v14  ;;  %v10145_v7 = vld [vmem:[#allocation14 + $0x830] sm:$0xff]  ;;  %v10142_v14 = vld [vmem:[#allocation14 + $0x818] sm:$0xff] }
 0x72e   :  { %v16002_v11 = vcombine.high %v10141_v3, %v10145_v7  ;;  %v16003_v13 = vcombine.low %v10142_v14, %v10146_v20 }
 0x72f   :  { %13403 = vmatpush1.bf16.msra.mxu0 %v15945_v46  ;;  %v16004_v46 = vcombine.high %v10142_v14, %v10146_v20  ;;  %v10197_v20 = vld [vmem:[#allocation14 + $0x9d0] sm:$0xff] }
 0x730   :  { %13575 = vmatpush1.bf16.msra.mxu1 %v15947_v15  ;;  %13404 = vmatprep.subr.bf16.mxu0 %v15954_v12  ;;  %v10149_v15 = vld [vmem:[#allocation14 + $0x850] sm:$0xff] }
 0x731   :  { %13576 = vmatprep.subr.bf16.mxu1 %v15956_v29  ;;  %v10153_v12 = vld [vmem:[#allocation14 + $0x870] sm:$0xff]  ;;  %v16001_v29 = vcombine.low %v10141_v3, %v10145_v7 }
 0x732   :  { %v16010_v51 = vcombine.high %v10149_v15, %v10153_v12  ;;  %v16009_v61 = vcombine.low %v10149_v15, %v10153_v12 }
 0x733   :  { %13405 = vmatpush1.bf16.msra.mxu0 %v15953_v19  ;;  %v10157_v19 = vld [vmem:[#allocation14 + $0x890] sm:$0xff] }
 0x734   :  { %13577 = vmatpush1.bf16.msra.mxu1 %v15955_v16  ;;  %13406 = vmatprep.subr.bf16.mxu0 %v15962_v60  ;;  %v10161_v16 = vld [vmem:[#allocation14 + $0x8b0] sm:$0xff]  ;;  %v16012_v60 = vcombine.high %v10150_v52, %v10154_v53 }
 0x735   :  { %13578 = vmatprep.subr.bf16.mxu1 %v15964_v4  ;;  %v10158_v4 = vld [vmem:[#allocation14 + $0x898] sm:$0xff]  ;;  %v16018_v54 = vcombine.high %v10157_v19, %v10161_v16  ;;  %v16017_v28 = vcombine.low %v10157_v19, %v10161_v16  ;;  %v10205_v52 = vld [vmem:[#allocation14 + $0xa10] sm:$0xff] }
 0x736   :  { %v10209_v53 = vld [vmem:[#allocation14 + $0xa30] sm:$0xff] }
 0x737   :  { %13407 = vmatpush1.bf16.msra.mxu0 %v15961_v21  ;;  %v16020_v21 = vcombine.high %v10158_v4, %v10162_v17 }
 0x738   :  { %13579 = vmatpush1.bf16.msra.mxu1 %v15963_v22  ;;  %13408 = vmatprep.subr.bf16.mxu0 %v15970_v58  ;;  %v10165_v22 = vld [vmem:[#allocation14 + $0x8d0] sm:$0xff] }
 0x739   :  { %13580 = vmatprep.subr.bf16.mxu1 %v15972_v26  ;;  %v10169_v58 = vld [vmem:[#allocation14 + $0x8f0] sm:$0xff]  ;;  %v10166_v26 = vld [vmem:[#allocation14 + $0x8d8] sm:$0xff] }
 0x73a   :  { %v16026_v30 = vcombine.high %v10165_v22, %v10169_v58  ;;  %v16028_v31 = vcombine.high %v10166_v26, %v10170_v27  ;;  %v16027_v34 = vcombine.low %v10166_v26, %v10170_v27  ;;  %v10221_v27 = vld [vmem:[#allocation14 + $0xa90] sm:$0xff] }
 0x73b   :  { %13409 = vmatpush1.bf16.msra.mxu0 %v15969_v25  ;;  %v10173_v25 = vld [vmem:[#allocation14 + $0x910] sm:$0xff] }
 0x73c   :  { %13581 = vmatpush1.bf16.msra.mxu1 %v15971_v32  ;;  %13410 = vmatprep.subr.bf16.mxu0 %v15978_v33  ;;  %v10177_v32 = vld [vmem:[#allocation14 + $0x930] sm:$0xff]  ;;  %v10174_v33 = vld [vmem:[#allocation14 + $0x918] sm:$0xff] }
 0x73d   :  { %13582 = vmatprep.subr.bf16.mxu1 %v15980_v10  ;;  %v10178_v10 = vld [vmem:[#allocation14 + $0x938] sm:$0xff]  ;;  %v16034_v35 = vcombine.high %v10173_v25, %v10177_v32 }
 0x73e   :  { %v16036_v36 = vcombine.high %v10174_v33, %v10178_v10  ;;  %v16035_v63 = vcombine.low %v10174_v33, %v10178_v10  ;;  %v10229_v10 = vld [vmem:[#allocation14 + $0xad0] sm:$0xff] }
 0x73f   :  { %13411 = vmatpush1.bf16.msra.mxu0 %v15977_v42  ;;  %v10185_v42 = vld [vmem:[#allocation14 + $0x970] sm:$0xff] }
 0x740   :  { %13583 = vmatpush1.bf16.msra.mxu1 %v15979_v23  ;;  %13412 = vmatprep.subr.bf16.mxu0 %v15986_v62  ;;  %v10182_v23 = vld [vmem:[#allocation14 + $0x958] sm:$0xff]  ;;  %v16042_v39 = vcombine.high %v10181_v38, %v10185_v42 }
 0x741   :  { %13584 = vmatprep.subr.bf16.mxu1 %v15988_v43  ;;  %v10186_v62 = vld [vmem:[#allocation14 + $0x978] sm:$0xff]  ;;  %v16033_v43 = vcombine.low %v10173_v25, %v10177_v32 }
 0x742   :  { %v16044_v5 = vcombine.high %v10182_v23, %v10186_v62  ;;  %v16043_v3 = vcombine.low %v10182_v23, %v10186_v62  ;;  %v10237_v62 = vld [vmem:[#allocation14 + $0xb10] sm:$0xff] }
 0x743   :  { %13413 = vmatpush1.bf16.msra.mxu0 %v15985_v6  ;;  %v10193_v6 = vld [vmem:[#allocation14 + $0x9b0] sm:$0xff] }
 0x744   :  { %13585 = vmatpush1.bf16.msra.mxu1 %v15987_v0  ;;  %13414 = vmatprep.subr.bf16.mxu0 %v15994_v2  ;;  %v10190_v0 = vld [vmem:[#allocation14 + $0x998] sm:$0xff]  ;;  %v16050_v7 = vcombine.high %v10189_v8, %v10193_v6 }
 0x745   :  { %13586 = vmatprep.subr.bf16.mxu1 %v15996_v1  ;;  %v10194_v2 = vld [vmem:[#allocation14 + $0x9b8] sm:$0xff]  ;;  %v16041_v1 = vcombine.low %v10181_v38, %v10185_v42 }
 0x746   :  { %v16052_v14 = vcombine.high %v10190_v0, %v10194_v2  ;;  %v16051_v15 = vcombine.low %v10190_v0, %v10194_v2  ;;  %v10245_v2 = vld [vmem:[#allocation14 + $0xb50] sm:$0xff] }
 0x747   :  { %13415 = vmatpush1.bf16.msra.mxu0 %v15993_v49  ;;  %v10201_v49 = vld [vmem:[#allocation14 + $0x9f0] sm:$0xff] }
 0x748   :  { %13587 = vmatpush1.bf16.msra.mxu1 %v15995_v9  ;;  %13427 = vmatprep.subr.bf16.mxu0 %v16002_v11  ;;  %v10198_v9 = vld [vmem:[#allocation14 + $0x9d8] sm:$0xff]  ;;  %v16058_v12 = vcombine.high %v10197_v20, %v10201_v49  ;;  %v16057_v19 = vcombine.low %v10197_v20, %v10201_v49 }
 0x749   :  { %13599 = vmatprep.subr.bf16.mxu1 %v16004_v46  ;;  %v10202_v11 = vld [vmem:[#allocation14 + $0x9f8] sm:$0xff]  ;;  %v16049_v46 = vcombine.low %v10189_v8, %v10193_v6 }
 0x74a   :  { %13417 = vmatmul.mubr.bf16.vlgmr.msra.gmra.mrb[36].mxu0 %v17427_v24  ;;  %v16059_v16 = vcombine.low %v10198_v9, %v10202_v11 }
 0x74b   :  { %13589 = vmatmul.mubr.bf16.vlgmr.msra.gmra.mrb[36].mxu1 %v17427_v24  ;;  %13428 = vmatpush1.bf16.msra.mxu0 %v16001_v29  ;;  %v16019_v24 = vcombine.low %v10158_v4, %v10162_v17  ;;  %v16060_v29 = vcombine.high %v10198_v9, %v10202_v11  ;;  %v10213_v17 = vld [vmem:[#allocation14 + $0xa50] sm:$0xff] }
 0x74c   :  { %13459 = vmatprep.mubr.bf16.mxu0 %v17469_v47  ;;  %13600 = vmatpush1.bf16.msra.mxu1 %v16003_v13  ;;  %v10206_v13 = vld [vmem:[#allocation14 + $0xa18] sm:$0xff]  ;;  %v10253_v11 = vld [vmem:[#allocation14 + $0xb90] sm:$0xff] }
 0x74d   :  { %13631 = vmatprep.mubr.bf16.mxu1 %v17469_v47  ;;  %13429 = vmatprep.subr.bf16.mxu0 %v16010_v51  ;;  %v16025_v47 = vcombine.low %v10165_v22, %v10169_v58  ;;  %v10210_v51 = vld [vmem:[#allocation14 + $0xa38] sm:$0xff] }
 0x74e   :  { %13601 = vmatprep.subr.bf16.mxu1 %v16012_v60  ;;  %v16066_v60 = vcombine.high %v10205_v52, %v10209_v53  ;;  %v16068_v4 = vcombine.high %v10206_v13, %v10210_v51  ;;  %v16067_v22 = vcombine.low %v10206_v13, %v10210_v51  ;;  %v10261_v51 = vld [vmem:[#allocation14 + $0xbd0] sm:$0xff] }
 0x74f   :  { %13430 = vmatpush1.bf16.msra.mxu0 %v16009_v61  ;;  %v10217_v61 = vld [vmem:[#allocation14 + $0xa70] sm:$0xff] }
 0x750   :  { %13602 = vmatpush1.bf16.msra.mxu1 %v16011_v18  ;;  %13431 = vmatprep.subr.bf16.mxu0 %v16018_v54  ;;  %v10214_v18 = vld [vmem:[#allocation14 + $0xa58] sm:$0xff]  ;;  %v16074_v58 = vcombine.high %v10213_v17, %v10217_v61 }
 0x751   :  { %13603 = vmatprep.subr.bf16.mxu1 %v16020_v21  ;;  %v10218_v54 = vld [vmem:[#allocation14 + $0xa78] sm:$0xff]  ;;  %v16065_v21 = vcombine.low %v10205_v52, %v10209_v53 }
 0x752   :  { %v16076_v26 = vcombine.high %v10214_v18, %v10218_v54  ;;  %v16075_v25 = vcombine.low %v10214_v18, %v10218_v54  ;;  %v10269_v54 = vld [vmem:[#allocation14 + $0xc10] sm:$0xff] }
 0x753   :  { %13432 = vmatpush1.bf16.msra.mxu0 %v16017_v28  ;;  %v10225_v28 = vld [vmem:[#allocation14 + $0xab0] sm:$0xff] }
 0x754   :  { %13604 = vmatpush1.bf16.msra.mxu1 %v16019_v24  ;;  %13433 = vmatprep.subr.bf16.mxu0 %v16026_v30  ;;  %v10222_v24 = vld [vmem:[#allocation14 + $0xa98] sm:$0xff]  ;;  %v16082_v32 = vcombine.high %v10221_v27, %v10225_v28 }
 0x755   :  { %13605 = vmatprep.subr.bf16.mxu1 %v16028_v31  ;;  %v10226_v30 = vld [vmem:[#allocation14 + $0xab8] sm:$0xff]  ;;  %v16073_v31 = vcombine.low %v10213_v17, %v10217_v61 }
 0x756   :  { %v16084_v33 = vcombine.high %v10222_v24, %v10226_v30  ;;  %v16083_v38 = vcombine.low %v10222_v24, %v10226_v30  ;;  %v10277_v30 = vld [vmem:[#allocation14 + $0xc50] sm:$0xff] }
 0x757   :  { %13434 = vmatpush1.bf16.msra.mxu0 %v16025_v47  ;;  %v10233_v47 = vld [vmem:[#allocation14 + $0xaf0] sm:$0xff] }
 0x758   :  { %13606 = vmatpush1.bf16.msra.mxu1 %v16027_v34  ;;  %13435 = vmatprep.subr.bf16.mxu0 %v16034_v35  ;;  %v10230_v34 = vld [vmem:[#allocation14 + $0xad8] sm:$0xff]  ;;  %v16090_v42 = vcombine.high %v10229_v10, %v10233_v47 }
 0x759   :  { %13607 = vmatprep.subr.bf16.mxu1 %v16036_v36  ;;  %v10234_v35 = vld [vmem:[#allocation14 + $0xaf8] sm:$0xff]  ;;  %v16081_v36 = vcombine.low %v10221_v27, %v10225_v28 }
 0x75a   :  { %v16092_v23 = vcombine.high %v10230_v34, %v10234_v35  ;;  %v16091_v8 = vcombine.low %v10230_v34, %v10234_v35  ;;  %v10285_v34 = vld [vmem:[#allocation14 + $0xc90] sm:$0xff] }
 0x75b   :  { %13436 = vmatpush1.bf16.msra.mxu0 %v16033_v43  ;;  %v10241_v43 = vld [vmem:[#allocation14 + $0xb30] sm:$0xff] }
 0x75c   :  { %13608 = vmatpush1.bf16.msra.mxu1 %v16035_v63  ;;  %13437 = vmatprep.subr.bf16.mxu0 %v16042_v39  ;;  %v10238_v63 = vld [vmem:[#allocation14 + $0xb18] sm:$0xff]  ;;  %v16098_v6 = vcombine.high %v10237_v62, %v10241_v43  ;;  %v10289_v35 = vld [vmem:[#allocation14 + $0xcb0] sm:$0xff] }
 0x75d   :  { %13609 = vmatprep.subr.bf16.mxu1 %v16044_v5  ;;  %v10242_v39 = vld [vmem:[#allocation14 + $0xb38] sm:$0xff]  ;;  %v16089_v5 = vcombine.low %v10229_v10, %v10233_v47 }
 0x75e   :  { %v16100_v0 = vcombine.high %v10238_v63, %v10242_v39  ;;  %v16099_v20 = vcombine.low %v10238_v63, %v10242_v39  ;;  %v10293_v39 = vld [vmem:[#allocation14 + $0xcd0] sm:$0xff] }
 0x75f   :  { %13438 = vmatpush1.bf16.msra.mxu0 %v16041_v1  ;;  %v10249_v1 = vld [vmem:[#allocation14 + $0xb70] sm:$0xff] }
 0x760   :  { %13610 = vmatpush1.bf16.msra.mxu1 %v16043_v3  ;;  %13439 = vmatprep.subr.bf16.mxu0 %v16050_v7  ;;  %v10246_v3 = vld [vmem:[#allocation14 + $0xb58] sm:$0xff]  ;;  %v16106_v49 = vcombine.high %v10245_v2, %v10249_v1 }
 0x761   :  { %13611 = vmatprep.subr.bf16.mxu1 %v16052_v14  ;;  %v10250_v7 = vld [vmem:[#allocation14 + $0xb78] sm:$0xff]  ;;  %v16097_v14 = vcombine.low %v10237_v62, %v10241_v43  ;;  %v16146_v43 = vcombine.high %v10285_v34, %v10289_v35 }
 0x762   :  { %v16108_v9 = vcombine.high %v10246_v3, %v10250_v7  ;;  %v16107_v52 = vcombine.low %v10246_v3, %v10250_v7  ;;  %v10301_v3 = vld [vmem:[#allocation14 + $0xd10] sm:$0xff] }
 0x763   :  { %13440 = vmatpush1.bf16.msra.mxu0 %v16049_v46  ;;  %v10257_v46 = vld [vmem:[#allocation14 + $0xbb0] sm:$0xff] }
 0x764   :  { %13612 = vmatpush1.bf16.msra.mxu1 %v16051_v15  ;;  %13441 = vmatprep.subr.bf16.mxu0 %v16058_v12  ;;  %v10254_v15 = vld [vmem:[#allocation14 + $0xb98] sm:$0xff]  ;;  %v16114_v53 = vcombine.high %v10253_v11, %v10257_v46  ;;  %v10305_v7 = vld [vmem:[#allocation14 + $0xd30] sm:$0xff] }
 0x765   :  { %13613 = vmatprep.subr.bf16.mxu1 %v16060_v29  ;;  %v10258_v12 = vld [vmem:[#allocation14 + $0xbb8] sm:$0xff]  ;;  %v16105_v29 = vcombine.low %v10245_v2, %v10249_v1 }
 0x766   :  { %v16116_v13 = vcombine.high %v10254_v15, %v10258_v12  ;;  %v16115_v17 = vcombine.low %v10254_v15, %v10258_v12  ;;  %v10313_v15 = vld [vmem:[#allocation14 + $0xd70] sm:$0xff]  ;;  %v10310_v12 = vld [vmem:[#allocation14 + $0xd58] sm:$0xff] }
 0x767   :  { %13442 = vmatpush1.bf16.msra.mxu0 %v16057_v19  ;;  %v10265_v19 = vld [vmem:[#allocation14 + $0xbf0] sm:$0xff] }
 0x768   :  { %13614 = vmatpush1.bf16.msra.mxu1 %v16059_v16  ;;  %13443 = vmatprep.subr.bf16.mxu0 %v16066_v60  ;;  %v10262_v16 = vld [vmem:[#allocation14 + $0xbd8] sm:$0xff]  ;;  %v16122_v61 = vcombine.high %v10261_v51, %v10265_v19 }
 0x769   :  { %13615 = vmatprep.subr.bf16.mxu1 %v16068_v4  ;;  %v10266_v60 = vld [vmem:[#allocation14 + $0xbf8] sm:$0xff]  ;;  %v16113_v4 = vcombine.low %v10253_v11, %v10257_v46  ;;  %v10309_v46 = vld [vmem:[#allocation14 + $0xd50] sm:$0xff] }
 0x76a   :  { %v16124_v18 = vcombine.high %v10262_v16, %v10266_v60  ;;  %v16123_v27 = vcombine.low %v10262_v16, %v10266_v60  ;;  %v10317_v16 = vld [vmem:[#allocation14 + $0xd90] sm:$0xff] }
 0x76b   :  { %13444 = vmatpush1.bf16.msra.mxu0 %v16065_v21  ;;  %v10273_v21 = vld [vmem:[#allocation14 + $0xc30] sm:$0xff] }
 0x76c   :  { %13616 = vmatpush1.bf16.msra.mxu1 %v16067_v22  ;;  %13445 = vmatprep.subr.bf16.mxu0 %v16074_v58  ;;  %v10270_v22 = vld [vmem:[#allocation14 + $0xc18] sm:$0xff]  ;;  %v16130_v28 = vcombine.high %v10269_v54, %v10273_v21  ;;  %v10321_v60 = vld [vmem:[#allocation14 + $0xdb0] sm:$0xff] }
 0x76d   :  { %13617 = vmatprep.subr.bf16.mxu1 %v16076_v26  ;;  %v10274_v58 = vld [vmem:[#allocation14 + $0xc38] sm:$0xff]  ;;  %v16121_v26 = vcombine.low %v10261_v51, %v10265_v19  ;;  %v16170_v51 = vcombine.high %v10309_v46, %v10313_v15 }
 0x76e   :  { %v16132_v24 = vcombine.high %v10270_v22, %v10274_v58  ;;  %v16131_v10 = vcombine.low %v10270_v22, %v10274_v58 }
 0x76f   :  { %13446 = vmatpush1.bf16.msra.mxu0 %v16073_v31  ;;  %v10281_v31 = vld [vmem:[#allocation14 + $0xc70] sm:$0xff] }
 0x770   :  { %13618 = vmatpush1.bf16.msra.mxu1 %v16075_v25  ;;  %13447 = vmatprep.subr.bf16.mxu0 %v16082_v32  ;;  %v16129_v25 = vcombine.low %v10269_v54, %v10273_v21  ;;  %v10278_v32 = vld [vmem:[#allocation14 + $0xc58] sm:$0xff]  ;;  %v16138_v47 = vcombine.high %v10277_v30, %v10281_v31  ;;  %v16169_v21 = vcombine.low %v10309_v46, %v10313_v15 }
 0x771   :  { %13619 = vmatprep.subr.bf16.mxu1 %v16084_v33  ;;  %v10282_v33 = vld [vmem:[#allocation14 + $0xc78] sm:$0xff] }
 0x772   :  { %v16139_v62 = vcombine.low %v10278_v32, %v10282_v33 }
 0x773   :  { %13448 = vmatpush1.bf16.msra.mxu0 %v16081_v36  ;;  %v16140_v36 = vcombine.high %v10278_v32, %v10282_v33  ;;  %v10330_v32 = vld [vmem:[#allocation14 + $0xdf8] sm:$0xff] }
 0x774   :  { %13620 = vmatpush1.bf16.msra.mxu1 %v16083_v38  ;;  %13449 = vmatprep.subr.bf16.mxu0 %v16090_v42  ;;  %v10286_v38 = vld [vmem:[#allocation14 + $0xc98] sm:$0xff] }
 0x775   :  { %13621 = vmatprep.subr.bf16.mxu1 %v16092_v23  ;;  %v10290_v42 = vld [vmem:[#allocation14 + $0xcb8] sm:$0xff]  ;;  %v16137_v23 = vcombine.low %v10277_v30, %v10281_v31 }
 0x776   :  { %v16148_v63 = vcombine.high %v10286_v38, %v10290_v42 }
 0x777   :  { %13450 = vmatpush1.bf16.msra.mxu0 %v16089_v5  ;;  %v10297_v5 = vld [vmem:[#allocation14 + $0xcf0] sm:$0xff] }
 0x778   :  { %13622 = vmatpush1.bf16.msra.mxu1 %v16091_v8  ;;  %13451 = vmatprep.subr.bf16.mxu0 %v16098_v6  ;;  %v10294_v8 = vld [vmem:[#allocation14 + $0xcd8] sm:$0xff]  ;;  %v16154_v2 = vcombine.high %v10293_v39, %v10297_v5 }
 0x779   :  { %13623 = vmatprep.subr.bf16.mxu1 %v16100_v0  ;;  %v10298_v6 = vld [vmem:[#allocation14 + $0xcf8] sm:$0xff]  ;;  %v16145_v0 = vcombine.low %v10285_v34, %v10289_v35  ;;  %v16177_v34 = vcombine.low %v10317_v16, %v10321_v60 }
 0x77a   :  { %v16156_v1 = vcombine.high %v10294_v8, %v10298_v6 }
 0x77b   :  { %13452 = vmatpush1.bf16.msra.mxu0 %v16097_v14  ;;  %v10302_v14 = vld [vmem:[#allocation14 + $0xd18] sm:$0xff] }
 0x77c   :  { %13624 = vmatpush1.bf16.msra.mxu1 %v16099_v20  ;;  %13453 = vmatprep.subr.bf16.mxu0 %v16106_v49  ;;  %v10306_v20 = vld [vmem:[#allocation14 + $0xd38] sm:$0xff]  ;;  %v16155_v49 = vcombine.low %v10294_v8, %v10298_v6  ;;  %v10333_v8 = vld [vmem:[#allocation14 + $0xe10] sm:$0xff] }
 0x77d   :  { %13625 = vmatprep.subr.bf16.mxu1 %v16108_v9  ;;  %v16162_v9 = vcombine.high %v10301_v3, %v10305_v7  ;;  %v16164_v11 = vcombine.high %v10302_v14, %v10306_v20  ;;  %v10337_v6 = vld [vmem:[#allocation14 + $0xe30] sm:$0xff] }
 0x77e   :  { %v16194_v15 = vcombine.high %v10333_v8, %v10337_v6 }
 0x77f   :  { %13454 = vmatpush1.bf16.msra.mxu0 %v16105_v29  ;;  %v10314_v29 = vld [vmem:[#allocation14 + $0xd78] sm:$0xff] }
 0x780   :  { %13626 = vmatpush1.bf16.msra.mxu1 %v16107_v52  ;;  %13455 = vmatprep.subr.bf16.mxu0 %v16114_v53  ;;  %v16161_v52 = vcombine.low %v10301_v3, %v10305_v7  ;;  %v17529_v53 = vld [vmem:[#allocation16] sm:$0xff]  ;;  %v16172_v19 = vcombine.high %v10310_v12, %v10314_v29  ;;  %v16171_v58 = vcombine.low %v10310_v12, %v10314_v29  ;;  %v10334_v3 = vld [vmem:[#allocation14 + $0xe18] sm:$0xff] }
 0x781   :  { %13627 = vmatprep.subr.bf16.mxu1 %v16116_v13  ;;  %v16163_v13 = vcombine.low %v10302_v14, %v10306_v20  ;;  %v10404_v54 = vrot.slane %v17529_v53, %v17296_v57  ;;  %v10412_v22 = vrot.slane %v17529_v53, %v17299_v59  ;;  %v10338_v7 = vld [vmem:[#allocation14 + $0xe38] sm:$0xff] }
 0x783   :  { %13456 = vmatpush1.bf16.msra.mxu0 %v16113_v4  ;;  %v10400_v4 = vrot.slane %v17529_v53, %v17288_v50 }
 0x784   :  { %13628 = vmatpush1.bf16.msra.mxu1 %v16115_v17  ;;  %13457 = vmatprep.subr.bf16.mxu0 %v16122_v61  ;;  %v10318_v17 = vld [vmem:[#allocation14 + $0xd98] sm:$0xff] }
 0x785   :  { %13629 = vmatprep.subr.bf16.mxu1 %v16124_v18  ;;  %v10322_v61 = vld [vmem:[#allocation14 + $0xdb8] sm:$0xff]  ;;  %v10408_v18 = vrot.slane %v17529_v53, %v17293_v55 }
 0x786   :  { %v16180_v50 = vcombine.high %v10318_v17, %v10322_v61  ;;  %v10326_v55 = vld [vmem:[#allocation14 + $0xdd8] sm:$0xff]  ;;  %v16179_v59 = vcombine.low %v10318_v17, %v10322_v61  ;;  %v16195_v17 = vcombine.low %v10334_v3, %v10338_v7 }
 0x787   :  { %13458 = vmatpush1.bf16.msra.mxu0 %v16121_v26  ;;  %v16178_v26 = vcombine.high %v10317_v16, %v10321_v60  ;;  %v10342_v16 = vld [vmem:[#allocation14 + $0xe58] sm:$0xff] }
 0x788   :  { %13630 = vmatpush1.bf16.msra.mxu1 %v16123_v27  ;;  %13470 = vmatprep.subr.bf16.mxu0 %v16130_v28  ;;  %v10325_v28 = vld [vmem:[#allocation14 + $0xdd0] sm:$0xff]  ;;  %v10346_v60 = vld [vmem:[#allocation14 + $0xe78] sm:$0xff] }
 0x789   :  { %13642 = vmatprep.subr.bf16.mxu1 %v16132_v24  ;;  %v10329_v24 = vld [vmem:[#allocation14 + $0xdf0] sm:$0xff] }
 0x78a   :  { %13460 = vmatmul.mubr.bf16.vlgmr.msra.gmra.mrb[36].mxu0 %v17464_v37 }
 0x78b   :  { %13632 = vmatmul.mubr.bf16.vlgmr.msra.gmra.mrb[36].mxu1 %v17464_v37  ;;  %13471 = vmatpush1.bf16.msra.mxu0 %v16129_v25  ;;  %v16147_v37 = vcombine.low %v10286_v38, %v10290_v42 }
 0x78c   :  { %13502 = vmatprep.mubr.bf16.mxu0 %v17471_v56  ;;  %13643 = vmatpush1.bf16.msra.mxu1 %v16131_v10 }
 0x78d   :  { %13674 = vmatprep.mubr.bf16.mxu1 %v17471_v56  ;;  %13472 = vmatprep.subr.bf16.mxu0 %v16138_v47  ;;  %v16153_v56 = vcombine.low %v10293_v39, %v10297_v5  ;;  %v16185_v39 = vcombine.low %v10325_v28, %v10329_v24  ;;  %v16188_v5 = vcombine.high %v10326_v55, %v10330_v32 }
 0x78e   :  { %13644 = vmatprep.subr.bf16.mxu1 %v16140_v36 }
 0x78f   :  { %13473 = vmatpush1.bf16.msra.mxu0 %v16137_v23  ;;  %v16186_v23 = vcombine.high %v10325_v28, %v10329_v24  ;;  %v10357_v24 = vld [vmem:[#allocation14 + $0xed0] sm:$0xff] }
 0x790   :  { %13645 = vmatpush1.bf16.msra.mxu1 %v16139_v62  ;;  %13474 = vmatprep.subr.bf16.mxu0 %v16146_v43 }
 0x791   :  { %13646 = vmatprep.subr.bf16.mxu1 %v16148_v63 }
 0x793   :  { %13475 = vmatpush1.bf16.msra.mxu0 %v16145_v0 }
 0x794   :  { %13647 = vmatpush1.bf16.msra.mxu1 %v16147_v37  ;;  %13476 = vmatprep.subr.bf16.mxu0 %v16154_v2 }
 0x795   :  { %13648 = vmatprep.subr.bf16.mxu1 %v16156_v1  ;;  %v16187_v1 = vcombine.low %v10326_v55, %v10330_v32 }
 0x797   :  { %13477 = vmatpush1.bf16.msra.mxu0 %v16153_v56 }
 0x798   :  { %13649 = vmatpush1.bf16.msra.mxu1 %v16155_v49  ;;  %13478 = vmatprep.subr.bf16.mxu0 %v16162_v9 }
 0x799   :  { %13650 = vmatprep.subr.bf16.mxu1 %v16164_v11 }
 0x79b   :  { %13479 = vmatpush1.bf16.msra.mxu0 %v16161_v52  ;;  %v16196_v52 = vcombine.high %v10334_v3, %v10338_v7 }
 0x79c   :  { %13651 = vmatpush1.bf16.msra.mxu1 %v16163_v13  ;;  %13480 = vmatprep.subr.bf16.mxu0 %v16170_v51  ;;  %v10341_v13 = vld [vmem:[#allocation14 + $0xe50] sm:$0xff] }
 0x79d   :  { %v13160_v27 = vpop.f32.mrb[32].mxu0  ;;  %13652 = vmatprep.subr.bf16.mxu1 %v16172_v19  ;;  %v10345_v51 = vld [vmem:[#allocation14 + $0xe70] sm:$0xff] }
 0x79e   :  { %v16438_v30 = vadd.f32 %v13160_v27, %v10400_v4  ;;  %v13332_v31 = vpop.f32.mrb[32].mxu1  ;;  %v13162_v25 = vpop.f32.mrb[33].mxu0  ;;  %v16202_v61 = vcombine.high %v10341_v13, %v10345_v51  ;;  %v16203_v27 = vcombine.low %v10342_v16, %v10346_v60 }
 0x79f   :  { %v16442_v33 = vadd.f32 %v13332_v31, %v10408_v18  ;;  %v16439_v57 = vadd.f32 %v13162_v25, %v10404_v54  ;;  %v13334_v10 = vpop.f32.mrb[33].mxu1  ;;  %v13164_v47 = vpop.f32.mrb[34].mxu0  ;;  %13481 = vmatpush1.bf16.msra.mxu0 %v16169_v21  ;;  %v10353_v21 = vld [vmem:[#allocation14 + $0xeb0] sm:$0xff]  ;;  %v10358_v31 = vld [vmem:[#allocation14 + $0xed8] sm:$0xff] }
 0x7a0   :  { %v16443_v35 = vadd.f32 %v13334_v10, %v10412_v22  ;;  %v16440_v36 = vadd.f32 %v13164_v47, %v10400_v4  ;;  %v13336_v38 = vpop.f32.mrb[34].mxu1  ;;  %13653 = vmatpush1.bf16.msra.mxu1 %v16171_v58  ;;  %v13166_v42 = vpop.f32.mrb[35].mxu0  ;;  %13482 = vmatprep.subr.bf16.mxu0 %v16178_v26  ;;  %v13685_v0 = vmax.f32 %v16438_v30, 0.0  ;;  %v16193_v4 = vcombine.low %v10333_v8, %v10337_v6  ;;  %v10354_v58 = vld [vmem:[#allocation14 + $0xeb8] sm:$0xff]  ;;  %v10361_v30 = vld [vmem:[#allocation14 + $0xef0] sm:$0xff] }
 0x7a1   :  { %v16444_v62 = vadd.f32 %v13336_v38, %v10408_v18  ;;  %v16441_v43 = vadd.f32 %v13166_v42, %v10404_v54  ;;  %v13338_v63 = vpop.f32.mrb[35].mxu1  ;;  %13654 = vmatprep.subr.bf16.mxu1 %v16180_v50  ;;  %v13687_v14 = vmax.f32 %v16442_v33, 0.0  ;;  %v13686_v20 = vmax.f32 %v16439_v57, 0.0  ;;  %v10349_v54 = vld [vmem:[#allocation14 + $0xe90] sm:$0xff]  ;;  %v10362_v25 = vld [vmem:[#allocation14 + $0xef8] sm:$0xff] }
 0x7a2   :  { %v13693_v37 = vmax.f32 %v16440_v36, 0.0  ;;  %v16445_v2 = vadd.f32 %v13338_v63, %v10412_v22  ;;  %v13688_v9 = vmax.f32 %v16443_v35, 0.0  ;;  %v16204_v18 = vcombine.high %v10342_v16, %v10346_v60  ;;  %v10350_v22 = vld [vmem:[#allocation14 + $0xe98] sm:$0xff]  ;;  %v10365_v10 = vld [vmem:[#allocation14 + $0xf10] sm:$0xff] }
 0x7a3   :  { %v13695_v56 = vmax.f32 %v16444_v62, 0.0  ;;  %v13694_v49 = vmax.f32 %v16441_v43, 0.0  ;;  %13483 = vmatpush1.bf16.msra.mxu0 %v16177_v34  ;;  %v16201_v26 = vcombine.low %v10341_v13, %v10345_v51  ;;  %v16210_v50 = vcombine.high %v10349_v54, %v10353_v21  ;;  %v10369_v47 = vld [vmem:[#allocation14 + $0xf30] sm:$0xff]  ;;  %v10366_v34 = vld [vmem:[#allocation14 + $0xf18] sm:$0xff] }
 0x7a4   :  { %v17539_v11 = vpack.c.bf16 %v13693_v37, %v13685_v0  ;;  %v13696_v46 = vmax.f32 %v16445_v2, 0.0  ;;  %13655 = vmatpush1.bf16.msra.mxu1 %v16179_v59  ;;  %13484 = vmatprep.subr.bf16.mxu0 %v16186_v23  ;;  %v16212_v28 = vcombine.high %v10350_v22, %v10354_v58  ;;  %v16209_v55 = vcombine.low %v10349_v54, %v10353_v21  ;;  %v10370_v59 = vld [vmem:[#allocation14 + $0xf38] sm:$0xff]  ;;  %v10373_v23 = vld [vmem:[#allocation14 + $0xf50] sm:$0xff] }
 0x7a5   :  { %v17541_v12 = vpack.c.bf16 %v13695_v56, %v13687_v14  ;;  %v17543_v29 = vpack.c.bf16 %v13694_v49, %v13686_v20  ;;  %13656 = vmatprep.subr.bf16.mxu1 %v16188_v5  ;;  %v16211_v32 = vcombine.low %v10350_v22, %v10354_v58  ;;  %v16218_v33 = vcombine.high %v10357_v24, %v10361_v30  ;;  %v10377_v62 = vld [vmem:[#allocation14 + $0xf70] sm:$0xff]  ;;  %v10374_v43 = vld [vmem:[#allocation14 + $0xf58] sm:$0xff] }
 0x7a6   :  { %v17545_v19 = vpack.c.bf16 %v13696_v46, %v13688_v9  ;;  %v16220_v57 = vcombine.high %v10358_v31, %v10362_v25  ;;  %v16217_v35 = vcombine.low %v10357_v24, %v10361_v30  ;;  %v16219_v36 = vcombine.low %v10358_v31, %v10362_v25  ;;  %v10378_v63 = vld [vmem:[#allocation14 + $0xf78] sm:$0xff]  ;;  %v10381_v0 = vld [vmem:[#allocation14 + $0xf90] sm:$0xff]  ;;  %v16634_v24 = vld [vmem:[#allocation17 + $0x58] sm:$0xff]  }
 0x7a7   :  { %13485 = vmatpush1.bf16.msra.mxu0 %v16185_v39  ;;  %v16226_v38 = vcombine.high %v10365_v10, %v10369_v47  ;;  %v16228_v42 = vcombine.high %v10366_v34, %v10370_v59  ;;  %v16225_v39 = vcombine.low %v10365_v10, %v10369_v47  ;;  %v16227_v5 = vcombine.low %v10366_v34, %v10370_v59  ;;  %v10385_v37 = vld [vmem:[#allocation14 + $0xfb0] sm:$0xff]  ;;  %v10382_v2 = vld [vmem:[#allocation14 + $0xf98] sm:$0xff]  ;;  %v16636_v30 = vld [vmem:[#allocation17 + $0x18] sm:$0xff]  }
 0x7a8   :  { %13657 = vmatpush1.bf16.msra.mxu1 %v16187_v1  ;;  %13486 = vmatprep.subr.bf16.mxu0 %v16194_v15  ;;  %v16234_v8 = vcombine.high %v10373_v23, %v10377_v62  ;;  %v16236_v6 = vcombine.high %v10374_v43, %v10378_v63  ;;  %v10386_v1 = vld [vmem:[#allocation14 + $0xfb8] sm:$0xff]  ;;  %v16233_v3 = vcombine.low %v10373_v23, %v10377_v62  ;;  %v10389_v56 = vld [vmem:[#allocation14 + $0xfd0] sm:$0xff]  ;;  %v16638_v31 = vld [vmem:[#allocation17 + $0x60] sm:$0xff]  }
 0x7a9   :  { %13658 = vmatprep.subr.bf16.mxu1 %v16196_v52  ;;  %v16235_v7 = vcombine.low %v10374_v43, %v10378_v63  ;;  %v16242_v14 = vcombine.high %v10381_v0, %v10385_v37  ;;  %v16244_v20 = vcombine.high %v10382_v2, %v10386_v1  ;;  %v10393_v49 = vld [vmem:[#allocation14 + $0xff0] sm:$0xff]  ;;  %v10390_v9 = vld [vmem:[#allocation14 + $0xfd8] sm:$0xff]  ;;  %v16241_v15 = vcombine.low %v10381_v0, %v10385_v37  ;;  %v16639_v25 = vld [vmem:[#allocation17 + $0xe0] sm:$0xff]  }
 0x7aa   :  { %v10394_v46 = vld [vmem:[#allocation14 + $0xff8] sm:$0xff]  ;;  %v16243_v52 = vcombine.low %v10382_v2, %v10386_v1  ;;  %v16250_v13 = vcombine.high %v10389_v56, %v10393_v49  ;;  %v16249_v16 = vcombine.low %v10389_v56, %v10393_v49  ;;  %v16626_v54 = vld [vmem:[#allocation17 + $0x48] sm:$0xff]   ;;  %v16653_v23 = vld [vmem:[#allocation17 + $0xb8] sm:$0xff]  }
 0x7ab   :  { %13487 = vmatpush1.bf16.msra.mxu0 %v16193_v4  ;;  %v16252_v51 = vcombine.high %v10390_v9, %v10394_v46  ;;  %v16251_v60 = vcombine.low %v10390_v9, %v10394_v46  ;;  %v16622_v4 = vld [vmem:[#allocation17 + $0x40] sm:$0xff]   ;;  %v16627_v21 = vld [vmem:[#allocation17 + $0xc8] sm:$0xff]   ;;  %v16646_v47 = vld [vmem:[#allocation17 + $0x70] sm:$0xff]  }
 0x7ac   :  { %13659 = vmatpush1.bf16.msra.mxu1 %v16195_v17  ;;  %13488 = vmatprep.subr.bf16.mxu0 %v16202_v61  ;;  %v16623_v17 = vld [vmem:[#allocation17 + $0xc0] sm:$0xff]   ;;  %v16628_v22 = vld [vmem:[#allocation17 + $0x8] sm:$0xff]   ;;  %v16647_v34 = vld [vmem:[#allocation17 + $0xf0] sm:$0xff]  }
 0x7ad   :  { %13660 = vmatprep.subr.bf16.mxu1 %v16204_v18  ;;  %v16624_v61 = vld [vmem:[#allocation17] sm:$0xff]   ;;  %v16629_v58 = vld [vmem:[#allocation17 + $0x88] sm:$0xff]   ;;  %v16648_v59 = vld [vmem:[#allocation17 + $0x30] sm:$0xff]  }
 0x7ae   :  { %v16625_v18 = vld [vmem:[#allocation17 + $0x80] sm:$0xff]   ;;  %v16645_v10 = vld [vmem:[#allocation17 + $0xa8] sm:$0xff]   ;;  %v16662_v37 = vld [vmem:[#allocation17 + $0x150] sm:$0xff]  }
 0x7af   :  { %13489 = vmatpush1.bf16.msra.mxu0 %v16201_v26  ;;  %v16630_v26 = vld [vmem:[#allocation17 + $0x50] sm:$0xff]   ;;  %v16654_v62 = vld [vmem:[#allocation17 + $0x140] sm:$0xff]   ;;  %v16661_v0 = vld [vmem:[#allocation17 + $0x188] sm:$0xff]  }
 0x7b0   :  { %13661 = vmatpush1.bf16.msra.mxu1 %v16203_v27  ;;  %13490 = vmatprep.subr.bf16.mxu0 %v16210_v50  ;;  %v16631_v27 = vld [vmem:[#allocation17 + $0xd0] sm:$0xff]   ;;  %v16655_v43 = vld [vmem:[#allocation17 + $0x1c0] sm:$0xff]   ;;  %v16674_v46 = vld [vmem:[#allocation17 + $0x168] sm:$0xff]  }
 0x7b1   :  { %13662 = vmatprep.subr.bf16.mxu1 %v16212_v28  ;;  %v16632_v50 = vld [vmem:[#allocation17 + $0x10] sm:$0xff]   ;;  %v16656_v63 = vld [vmem:[#allocation17 + $0x100] sm:$0xff]  }
 0x7b2   :  { %v16633_v28 = vld [vmem:[#allocation17 + $0x90] sm:$0xff]   ;;  %v16671_v56 = vld [vmem:[#allocation17 + $0x1e0] sm:$0xff]  }
 0x7b3   :  { %13491 = vmatpush1.bf16.msra.mxu0 %v16209_v55  ;;  %v16641_v55 = vld [vmem:[#allocation17 + $0xa0] sm:$0xff]   ;;  %v16663_v2 = vld [vmem:[#allocation17 + $0x1d0] sm:$0xff]  }
 0x7b4   :  { %13663 = vmatpush1.bf16.msra.mxu1 %v16211_v32  ;;  %13492 = vmatprep.subr.bf16.mxu0 %v16218_v33  ;;  %v16642_v32 = vld [vmem:[#allocation17 + $0x68] sm:$0xff]   ;;  %v16664_v1 = vld [vmem:[#allocation17 + $0x110] sm:$0xff]   ;;  %v16672_v49 = vld [vmem:[#allocation17 + $0x120] sm:$0xff]  }
 0x7b5   :  { %13664 = vmatprep.subr.bf16.mxu1 %v16220_v57  ;;  %v16643_v33 = vld [vmem:[#allocation17 + $0xe8] sm:$0xff]   ;;  %v16673_v9 = vld [vmem:[#allocation17 + $0x1a0] sm:$0xff]  }
 0x7b6   :  { %v16644_v57 = vld [vmem:[#allocation17 + $0x28] sm:$0xff]  }
 0x7b7   :  { %13493 = vmatpush1.bf16.msra.mxu0 %v16217_v35  ;;  %v16649_v35 = vld [vmem:[#allocation17 + $0xb0] sm:$0xff]  }
 0x7b8   :  { %13665 = vmatpush1.bf16.msra.mxu1 %v16219_v36  ;;  %13494 = vmatprep.subr.bf16.mxu0 %v16226_v38  ;;  %v16650_v36 = vld [vmem:[#allocation17 + $0x78] sm:$0xff]  }
 0x7b9   :  { %13666 = vmatprep.subr.bf16.mxu1 %v16228_v42  ;;  %v16651_v38 = vld [vmem:[#allocation17 + $0xf8] sm:$0xff]  }
 0x7ba   :  { %v16652_v42 = vld [vmem:[#allocation17 + $0x38] sm:$0xff]  }
 0x7bb   :  { %13495 = vmatpush1.bf16.msra.mxu0 %v16225_v39  ;;  %v16657_v39 = vld [vmem:[#allocation17 + $0x180] sm:$0xff]  }
 0x7bc   :  { %13667 = vmatpush1.bf16.msra.mxu1 %v16227_v5  ;;  %13496 = vmatprep.subr.bf16.mxu0 %v16234_v8  ;;  %v16658_v5 = vld [vmem:[#allocation17 + $0x148] sm:$0xff]  }
 0x7bd   :  { %13668 = vmatprep.subr.bf16.mxu1 %v16236_v6  ;;  %v16659_v8 = vld [vmem:[#allocation17 + $0x1c8] sm:$0xff]  }
 0x7be   :  { %v16660_v6 = vld [vmem:[#allocation17 + $0x108] sm:$0xff]  }
 0x7bf   :  { %13497 = vmatpush1.bf16.msra.mxu0 %v16233_v3  ;;  %v16665_v3 = vld [vmem:[#allocation17 + $0x190] sm:$0xff]  }
 0x7c0   :  { %13669 = vmatpush1.bf16.msra.mxu1 %v16235_v7  ;;  %13498 = vmatprep.subr.bf16.mxu0 %v16242_v14  ;;  %v16666_v7 = vld [vmem:[#allocation17 + $0x158] sm:$0xff]  }
 0x7c1   :  { %13670 = vmatprep.subr.bf16.mxu1 %v16244_v20  ;;  %v16667_v14 = vld [vmem:[#allocation17 + $0x1d8] sm:$0xff]   ;;  %v16670_v20 = vld [vmem:[#allocation17 + $0x160] sm:$0xff]  }
 0x7c3   :  { %13499 = vmatpush1.bf16.msra.mxu0 %v16241_v15  ;;  %v16675_v15 = vld [vmem:[#allocation17 + $0x1e8] sm:$0xff]  }
 0x7c4   :  { %13671 = vmatpush1.bf16.msra.mxu1 %v16243_v52  ;;  %13500 = vmatprep.subr.bf16.mxu0 %v16250_v13  ;;  %v16676_v52 = vld [vmem:[#allocation17 + $0x128] sm:$0xff]  }
 0x7c5   :  { %13672 = vmatprep.subr.bf16.mxu1 %v16252_v51  ;;  %v16677_v13 = vld [vmem:[#allocation17 + $0x1a8] sm:$0xff]   ;;  %v16678_v51 = vld [vmem:[#allocation17 + $0x170] sm:$0xff]  }
 0x7c7   :  { %13501 = vmatpush1.bf16.msra.mxu0 %v16249_v16  ;;  %v16679_v16 = vld [vmem:[#allocation17 + $0x1f0] sm:$0xff]  }
 0x7c8   :  { %13673 = vmatpush1.bf16.msra.mxu1 %v16251_v60  ;;  %16318 = vmatprep.subr.bf16.mxu0 %v16622_v4  ;;  %v16680_v60 = vld [vmem:[#allocation17 + $0x130] sm:$0xff]  }
 0x7c9   :  { %16340 = vmatprep.subr.bf16.mxu1 %v16623_v17  ;;  %v16681_v4 = vld [vmem:[#allocation17 + $0x1b0] sm:$0xff]   ;;  %v16682_v17 = vld [vmem:[#allocation17 + $0x178] sm:$0xff]  }
 0x7ca   :  { %13503 = vmatmul.mubr.bf16.vlgmr.msra.gmra.mrb[36].mxu0 %v17467_v41 }
 0x7cb   :  { %13675 = vmatmul.mubr.bf16.vlgmr.msra.gmra.mrb[36].mxu1 %v17467_v41  ;;  %16319 = vmatpush3.bf16.msra.mxu0 %v16624_v61  ;;  %v16635_v41 = vld [vmem:[#allocation17 + $0xd8] sm:$0xff]  }
 0x7cc   :  { %14260 = vmatprep.mubr.bf16.mxu0 %v17543_v29  ;;  %16341 = vmatpush3.bf16.msra.mxu1 %v16625_v18  ;;  %v16637_v29 = vld [vmem:[#allocation17 + $0x98] sm:$0xff]  }
 0x7cd   :  { %14301 = vmatprep.mubr.bf16.mxu1 %v17545_v19  ;;  %16320 = vmatprep.subr.bf16.mxu0 %v16626_v54  ;;  %v16640_v19 = vld [vmem:[#allocation17 + $0x20] sm:$0xff]   ;;  %v16683_v61 = vld [vmem:[#allocation17 + $0x1f8] sm:$0xff]  }
 0x7ce   :  { %16342 = vmatprep.subr.bf16.mxu1 %v16627_v21  ;;  %v16684_v18 = vld [vmem:[#allocation17 + $0x138] sm:$0xff]   ;;  %v10416_v21 = vrot.slane %v17529_v53, %v17324_v40 }
 0x7cf   :  { %16321 = vmatpush3.bf16.msra.mxu0 %v16628_v22  ;;  %v16685_v54 = vld [vmem:[#allocation17 + $0x1b8] sm:$0xff]   ;;  %v10424_v22 = vrot.slane %v17529_v53, %v17327_v44 }
 0x7d0   :  { %16343 = vmatpush3.bf16.msra.mxu1 %v16629_v58  ;;  %16322 = vmatprep.subr.bf16.mxu0 %v16630_v26  ;;  %v10420_v58 = vrot.slane %v17529_v53, %v17330_v45  ;;  %v10428_v26 = vrot.slane %v17529_v53, %v17333_v48 }
 0x7d1   :  { %16344 = vmatprep.subr.bf16.mxu1 %v16631_v27 }
 0x7d3   :  { %16323 = vmatpush3.bf16.msra.mxu0 %v16632_v50 }
 0x7d4   :  { %16345 = vmatpush3.bf16.msra.mxu1 %v16633_v28  ;;  %16324 = vmatprep.subr.bf16.mxu0 %v16634_v24 }
 0x7d5   :  { %16346 = vmatprep.subr.bf16.mxu1 %v16635_v41 }
 0x7d7   :  { %16325 = vmatpush3.bf16.msra.mxu0 %v16636_v30 }
 0x7d8   :  { %16347 = vmatpush3.bf16.msra.mxu1 %v16637_v29  ;;  %16326 = vmatprep.subr.bf16.mxu0 %v16638_v31 }
 0x7d9   :  { %16348 = vmatprep.subr.bf16.mxu1 %v16639_v25 }
 0x7db   :  { %16327 = vmatpush3.bf16.msra.mxu0 %v16640_v19 }
 0x7dc   :  { %16349 = vmatpush3.bf16.msra.mxu1 %v16641_v55  ;;  %16328 = vmatprep.subr.bf16.mxu0 %v16642_v32 }
 0x7dd   :  { %16350 = vmatprep.subr.bf16.mxu1 %v16643_v33 }
 0x7df   :  { %16329 = vmatpush3.bf16.msra.mxu0 %v16644_v57 }
 0x7e0   :  { %16351 = vmatpush3.bf16.msra.mxu1 %v16645_v10  ;;  %16330 = vmatprep.subr.bf16.mxu0 %v16646_v47 }
 0x7e1   :  { %16352 = vmatprep.subr.bf16.mxu1 %v16647_v34 }
 0x7e3   :  { %16331 = vmatpush3.bf16.msra.mxu0 %v16648_v59 }
 0x7e4   :  { %16353 = vmatpush3.bf16.msra.mxu1 %v16649_v35  ;;  %16332 = vmatprep.subr.bf16.mxu0 %v16650_v36 }
 0x7e5   :  { %16354 = vmatprep.subr.bf16.mxu1 %v16651_v38 }
 0x7e7   :  { %16333 = vmatpush3.bf16.msra.mxu0 %v16652_v42 }
 0x7e8   :  { %16355 = vmatpush3.bf16.msra.mxu1 %v16653_v23  ;;  %16362 = vmatprep.subr.bf16.mxu0 %v16654_v62 }
 0x7e9   :  { %16384 = vmatprep.subr.bf16.mxu1 %v16655_v43 }
 0x7ea   :  { %14261 = vmatmul.mubr.bf16.vlgmr.msra.gmra.mrb[40].mxu0 %v17539_v11  ;;  %v16668_v11 = vld [vmem:[#allocation17 + $0x118] sm:$0xff]  }
 0x7eb   :  { %14302 = vmatmul.mubr.bf16.vlgmr.msra.gmra.mrb[40].mxu1 %v17541_v12  ;;  %16363 = vmatpush3.bf16.msra.mxu0 %v16656_v63  ;;  %v16669_v12 = vld [vmem:[#allocation17 + $0x198] sm:$0xff]   ;;  %v16253_v63 = vld [vmem:[#allocation19] ss:$0 sm:$0xff] }
 0x7ec   :  { %16385 = vmatpush3.bf16.msra.mxu1 %v16657_v39  ;;  %16364 = vmatprep.subr.bf16.mxu0 %v16658_v5 }
 0x7ed   :  { %16386 = vmatprep.subr.bf16.mxu1 %v16659_v8 }
 0x7ef   :  { %16365 = vmatpush3.bf16.msra.mxu0 %v16660_v6 }
 0x7f0   :  { %16387 = vmatpush3.bf16.msra.mxu1 %v16661_v0  ;;  %16366 = vmatprep.subr.bf16.mxu0 %v16662_v37 }
 0x7f1   :  { %16388 = vmatprep.subr.bf16.mxu1 %v16663_v2 }
 0x7f3   :  { %16367 = vmatpush3.bf16.msra.mxu0 %v16664_v1 }
 0x7f4   :  { %16389 = vmatpush3.bf16.msra.mxu1 %v16665_v3  ;;  %16368 = vmatprep.subr.bf16.mxu0 %v16666_v7 }
 0x7f5   :  { %16390 = vmatprep.subr.bf16.mxu1 %v16667_v14 }
 0x7f7   :  { %16369 = vmatpush3.bf16.msra.mxu0 %v16668_v11 }
 0x7f8   :  { %16391 = vmatpush3.bf16.msra.mxu1 %v16669_v12  ;;  %16370 = vmatprep.subr.bf16.mxu0 %v16670_v20 }
 0x7f9   :  { %16392 = vmatprep.subr.bf16.mxu1 %v16671_v56 }
 0x7fb   :  { %16371 = vmatpush3.bf16.msra.mxu0 %v16672_v49 }
 0x7fc   :  { %16393 = vmatpush3.bf16.msra.mxu1 %v16673_v9  ;;  %16372 = vmatprep.subr.bf16.mxu0 %v16674_v46 }
 0x7fd   :  { %16394 = vmatprep.subr.bf16.mxu1 %v16675_v15 }
 0x7ff   :  { %16373 = vmatpush3.bf16.msra.mxu0 %v16676_v52 }
 0x800   :  { %16395 = vmatpush3.bf16.msra.mxu1 %v16677_v13  ;;  %16374 = vmatprep.subr.bf16.mxu0 %v16678_v51 }
 0x801   :  { %16396 = vmatprep.subr.bf16.mxu1 %v16679_v16 }
 0x803   :  { %16375 = vmatpush3.bf16.msra.mxu0 %v16680_v60 }
 0x804   :  { %16397 = vmatpush3.bf16.msra.mxu1 %v16681_v4  ;;  %16376 = vmatprep.subr.bf16.mxu0 %v16682_v17 }
 0x805   :  { %16398 = vmatprep.subr.bf16.mxu1 %v16683_v61 }
 0x807   :  { %16377 = vmatpush3.bf16.msra.mxu0 %v16684_v18 }
 0x808   :  { %16399 = vmatpush3.bf16.msra.mxu1 %v16685_v54 }
 0x89d   :  { %v13504_v27 = vpop.f32.mrb[36].mxu0 }
 0x89e   :  { %v16446_v50 = vadd.f32 %v13504_v27, %v10416_v21  ;;  %v13676_v28 = vpop.f32.mrb[36].mxu1  ;;  %v13506_v24 = vpop.f32.mrb[37].mxu0 }
 0x89f   :  { %v16450_v41 = vadd.f32 %v13676_v28, %v10424_v22  ;;  %v16447_v30 = vadd.f32 %v13506_v24, %v10420_v58  ;;  %v13678_v29 = vpop.f32.mrb[37].mxu1  ;;  %v13508_v31 = vpop.f32.mrb[38].mxu0 }
 0x8a0   :  { %v16451_v25 = vadd.f32 %v13678_v29, %v10428_v26  ;;  %v16448_v19 = vadd.f32 %v13508_v31, %v10416_v21  ;;  %v13680_v40 = vpop.f32.mrb[38].mxu1  ;;  %v13510_v55 = vpop.f32.mrb[39].mxu0  ;;  %v13689_v57 = vmax.f32 %v16446_v50, 0.0 }
 0x8a1   :  { %v16452_v32 = vadd.f32 %v13680_v40, %v10424_v22  ;;  %v16449_v44 = vadd.f32 %v13510_v55, %v10420_v58  ;;  %v13682_v33 = vpop.f32.mrb[39].mxu1  ;;  %v13691_v47 = vmax.f32 %v16450_v41, 0.0  ;;  %v13690_v48 = vmax.f32 %v16447_v30, 0.0 }
 0x8a2   :  { %v13697_v45 = vmax.f32 %v16448_v19, 0.0  ;;  %v16453_v10 = vadd.f32 %v13682_v33, %v10428_v26  ;;  %v13692_v59 = vmax.f32 %v16451_v25, 0.0 }
 0x8a3   :  { %v13699_v53 = vmax.f32 %v16452_v32, 0.0  ;;  %v13698_v34 = vmax.f32 %v16449_v44, 0.0 }
 0x8a4   :  { %v13705_v35 = vpack.c.bf16 %v13697_v45, %v13689_v57  ;;  %v13700_v36 = vmax.f32 %v16453_v10, 0.0 }
 0x8a5   :  { %v13707_v38 = vpack.c.bf16 %v13699_v53, %v13691_v47  ;;  %v13706_v42 = vpack.c.bf16 %v13698_v34, %v13690_v48 }
 0x8a6   :  { %v13708_v23 = vpack.c.bf16 %v13700_v36, %v13692_v59 }
 0x8a7   :  { %14342 = vmatprep.mubr.bf16.mxu0 %v13706_v42 }
 0x8a8   :  { %14383 = vmatprep.mubr.bf16.mxu1 %v13708_v23  ;;  %14343 = vmatmul.mubr.bf16.vlgmr.msra.gmra.mrb[44].mxu0 %v13705_v35 }
 0x8a9   :  { %14384 = vmatmul.mubr.bf16.vlgmr.msra.gmra.mrb[44].mxu1 %v13707_v38 }
 0x8bd   :  { %v16334_v62 = vpop.f32.mrb[40].mxu0 }
 0x8be   :  { %v16356_v43 = vpop.f32.mrb[40].mxu1  ;;  %v16335_v39 = vpop.f32.mrb[41].mxu0 }
 0x8bf   :  { %v16336_v5 = vadd.f32 %v16335_v39, %v16334_v62  ;;  %v16357_v8 = vpop.f32.mrb[41].mxu1  ;;  %v16337_v6 = vpop.f32.mrb[42].mxu0 }
 0x8c0   :  { %v16358_v0 = vadd.f32 %v16357_v8, %v16356_v43  ;;  %v16359_v37 = vpop.f32.mrb[42].mxu1  ;;  %v16338_v2 = vpop.f32.mrb[43].mxu0 }
 0x8c1   :  { %v14263_v1 = vadd.f32 %v16336_v5, %v16253_v63  ;;  %v16339_v3 = vadd.f32 %v16338_v2, %v16337_v6  ;;  %v16360_v7 = vpop.f32.mrb[43].mxu1 }
 0x8c2   :  { %v16361_v14 = vadd.f32 %v16360_v7, %v16359_v37 }
 0x8c3   :  { %v14304_v11 = vadd.f32 %v16358_v0, %v14263_v1  ;;  %v14266_v12 = vadd.f32 %v16339_v3, %v16253_v63 }
 0x8c5   :  { %v14307_v20 = vadd.f32 %v16361_v14, %v14266_v12 }
 0x97b   :  { %v16378_v56 = vpop.f32.mrb[44].mxu0 }
 0x97c   :  { %v16400_v49 = vpop.f32.mrb[44].mxu1  ;;  %v16379_v9 = vpop.f32.mrb[45].mxu0 }
 0x97d   :  { %v16380_v46 = vadd.f32 %v16379_v9, %v16378_v56  ;;  %v16401_v15 = vpop.f32.mrb[45].mxu1  ;;  %v16381_v52 = vpop.f32.mrb[46].mxu0 }
 0x97e   :  { %v16402_v13 = vadd.f32 %v16401_v15, %v16400_v49  ;;  %v16403_v51 = vpop.f32.mrb[46].mxu1  ;;  %v16382_v16 = vpop.f32.mrb[47].mxu0 }
 0x97f   :  { %v14345_v60 = vadd.f32 %v16380_v46, %v14304_v11  ;;  %v16383_v4 = vadd.f32 %v16382_v16, %v16381_v52  ;;  %v16404_v17 = vpop.f32.mrb[47].mxu1 }
 0x980   :  { %v16405_v61 = vadd.f32 %v16404_v17, %v16403_v51 }
 0x981   :  { %v14348_v18 = vadd.f32 %v16383_v4, %v14307_v20  ;;  %v14386_v54 = vadd.f32 %v16402_v13, %v14345_v60 }
 0x983   :  { %v14389_v21 = vadd.f32 %v16405_v61, %v14348_v18  ;;  %v14392_v22 = vmul.f32 %v14386_v54, %v14386_v54 }
 0x985   :  { %14394 = vadd.xlane.f32.xlu0 %v14392_v22  ;;  %v14393_v58 = vmul.f32 %v14389_v21, %v14389_v21 }
 0x989   :  { %14396 = vadd.xlane.f32.xlu0 %v14393_v58 }
 0x98a   :  { %16947 = shalt.err (!%p16944_p8)
}
 0x98b   :  { %s16948_s27 = scalar_lea.hbm %s17625_s12, 2048 }
 0x98c   :  { %p16949_p9 = scmp.ne.s32.totalorder %s17625_s12, %s16948_s27  ;;  %p16952_p10 = scmp.lt.u32.totalorder %s16948_s27, %s17625_s12 }
 0x98e   :  { %p16954_p11 = pnand %p16952_p10, %p16949_p9 }
 0x990   :  { %16957 = shalt.err (!%p16954_p11)
}
 0x991   :  { %14429 = dma.vmem_to_hbm [thread:$0]  %s14424_s20, 2048, %s17625_s12, [#allocation22], %s17019_s18, %s17019_s18, %s17020_s19  }
 0x992   :  { %s16958_s0 = scalar_lea.vmem %s17561_s25, 2048  ;;  %p16963_p13 = scmp.lt.s32.totalorder %s17561_s25, %s17561_s25 }
 0x993   :  { %p16959_p12 = scmp.ne.s32.totalorder %s17561_s25, %s16958_s0  ;;  %p16964_p0 = scmp.lt.s32.totalorder %s16958_s0, %s16958_s0 }
 0x995   :  { %p16965_p1 = por %p16964_p0, %p16963_p13 }
 0x997   :  { %p16966_p2 = pnand %p16965_p1, %p16959_p12 }
 0x999   :  { %16969 = shalt.err (!%p16966_p2)
}
 0x99a   :  { %s16970_s3 = scalar_lea.hbm %s17624_s11, 2048 }
 0x99b   :  { %p16971_p3 = scmp.ne.s32.totalorder %s17624_s11, %s16970_s3  ;;  %p16974_p4 = scmp.lt.u32.totalorder %s16970_s3, %s17624_s11 }
 0x99d   :  { %p16976_p5 = pnand %p16974_p4, %p16971_p3 }
 0x99f   :  { %16979 = shalt.err (!%p16976_p5)
}
 0x9a0   :  { %14417 = dma.vmem_to_hbm [thread:$0]  %s17561_s25, 2048, %s17624_s11, [#allocation4], %s17019_s18, %s17019_s18, %s17020_s19  }
 0x9a1   :  { %s17038_s17 = smov [#allocation23]  }
 0x9a2   :  { %s14435_s10 = sshll.u32 %s17038_s17, 4  ;;  %s14436_s10 = int_to_ptr.vmem [resolvable:$true] %s14435_s10 }
 0x9a3   :  { %s16980_s20 = scalar_lea.vmem %s14436_s10, 256  ;;  %p16985_p7 = scmp.lt.s32.totalorder %s14436_s10, %s14436_s10 }
 0x9a4   :  { %p16981_p6 = scmp.ne.s32.totalorder %s14436_s10, %s16980_s20  ;;  %p16986_p8 = scmp.lt.s32.totalorder %s16980_s20, %s16980_s20 }
 0x9a6   :  { %p16987_p9 = por %p16986_p8, %p16985_p7 }
 0x9a8   :  { %p16988_p10 = pnand %p16987_p9, %p16981_p6 }
 0xa12   :  { %v14395_v26 = vpop.xlane.xlu0 %14394 }
 0xa13   :  { %v14398_v27 = vmax.f32 %v14395_v26, 1e-24 }
 0xa15   :  { %16686 = vrsqrt.f32 %v14398_v27 }
 0xa16   :  { %v14397_v50 = vpop.xlane.xlu0 %14396 }
 0xa17   :  { %v14399_v28 = vmax.f32 %v14397_v50, 1e-24 }
 0xa19   :  { %16688 = vrsqrt.f32 %v14399_v28 }
 0xa1f   :  { %v16687_v24 = vpop.eup %16686 }
 0xa20   :  { %v14402_v41 = vmul.f32 %v16687_v24, %v14386_v54 }
 0xa22   :  { %14404 = vst [vmem:[#allocation23] sm:$0xff] %v14402_v41 }
 0xa23   :  { %v16689_v30 = vpop.eup %16688 }
 0xa24   :  { %v14403_v29 = vmul.f32 %v16689_v30, %v14389_v21 }
 0xa26   :  { %14405 = vst [vmem:[#allocation23 + $0x8] sm:$0xff] %v14403_v29 }
 0xa27   :  { %16991 = shalt.err (!%p16988_p10)
}
 0xa28   :  { %s16992_s19 = scalar_lea.hbm %s17626_s13, 256 }
 0xa29   :  { %p16993_p11 = scmp.ne.s32.totalorder %s17626_s13, %s16992_s19  ;;  %p16996_p12 = scmp.lt.u32.totalorder %s16992_s19, %s17626_s13 }
 0xa2b   :  { %p16998_p13 = pnand %p16996_p12, %p16993_p11 }
 0xa2d   :  { %17001 = shalt.err (!%p16998_p13)
}
 0xa2e   :  { %14441 = dma.vmem_to_hbm [thread:$0]  %s14436_s10, 256, %s17626_s13, [#allocation22], %s17029_s9, %s17029_s9, %s17030_s15  }
 0xa2f   :  { %17014 = dma.done.wait [#allocation4], 2048  }
 0xa30   :  { %17015 = vsyncadd [#allocation4], 4294965248 }
 0xa31   :  { %17016 = dma.done.wait [#allocation22], 2304  }
 0xa32   :  { %17017 = vsyncadd [#allocation22], 4294964992 }
 0xa33   :  { %14451 = vsyncpa [#allocation3], 1 }
 0xa34   :  { %14452 = vsyncpa [#allocation6], 1 }
 0xa35   :  { %14453 = vsyncpa [#allocation9], 1 }
 0xa36   :  { %14454 = vsyncpa [#allocation12], 1 }
 0xa37   :  { %14455 = vsyncpa [#allocation15], 1 }
 0xa38   :  { %14456 = vsyncpa [#allocation18], 1 }
 0xa39   :  { %14457 = vsyncpa [#allocation4], 1 }
 0xa3a   :  { %14458 = vsyncpa [#allocation22], 1 }

</bundles_post_ra>
